<compile_context>
chip_gen: v7x
topology: tpu7x:2x2x1
jax: 0.10.0
libtpu: 0.0.40
codegen_flags: <defaults>
</compile_context>

<pallas_src>
import functools

import jax
import jax.numpy as jnp
from jax import lax
from jax.experimental import pallas as pl
from jax.experimental.pallas import tpu as pltpu

BN_EPS = 1e-5
LANE = 128
SUBLANE = 8

# Set True on TPU v7x (2 TensorCores/chip) to shard the leading (parallel)
# grid axis across cores; kept off by default for v5e/v6e safety.
USE_CORE_PARALLEL = False


def _round_up(x, m):
    return ((x + m - 1) // m) * m


def _pick_tile_m(m):
    """M tile for the Linear matmul: {1024,512,256,128} minimizing tail padding."""
    if m <= 128:
        return _round_up(max(m, 1), SUBLANE)
    best_pad, best_tile = None, None
    for cand in (1024, 512, 256, 128):
        mp = _round_up(m, cand)
        if best_pad is None or mp < best_pad:
            best_pad, best_tile = mp, cand
    return best_tile


def _vmem_limit_bytes():
    """Raise the 32 MiB scoped-VMEM default towards physical capacity (w/ headroom)."""
    try:
        cap = getattr(pltpu.get_tpu_info(), "vmem_capacity_bytes", None)
        if cap:
            return int(cap) * 3 // 4          # ~96 MiB on v5e/v6e, ~48 MiB on v7x
    except Exception:
        pass
    return None


def _compiler_params(n_parallel, n_arbitrary):
    par = pltpu.CORE_PARALLEL if USE_CORE_PARALLEL else pltpu.PARALLEL
    sems = (par,) * n_parallel + (pltpu.ARBITRARY,) * n_arbitrary
    kw = dict(dimension_semantics=sems)
    lim = _vmem_limit_bytes()
    if lim is not None:
        kw["vmem_limit_bytes"] = lim
    return pltpu.CompilerParams(**kw)


# ---------------------------------------------------------------------------
# Conv kernel: one image per grid step; in-VMEM im2col; fused bias+ReLU+BN stats
# ---------------------------------------------------------------------------
def _conv_relu_stats_kernel(x_ref, w_ref, b_ref, y_ref, stats_ref, patch_ref, *,
                            kh, kw, sh, sw, hout, wout, cout):
    """x_ref     : (1, H, W, Cin)        bf16 input image
       w_ref     : (K, Npad)             bf16 weights, K = kh*kw*Cin, Npad 128-aligned
       b_ref     : (1, Npad)             f32 bias (zero in padded lanes)
       y_ref     : (1, hout*wout, cout)  bf16 post-ReLU activations (real channels)
       stats_ref : (1, 8, 2*Npad)        f32 [sum | sumsq] per channel (row 0 used)
       patch_ref : (hout*wout, K)        bf16 VMEM scratch for the patch matrix
    """
    # Build the im2col patch matrix entirely in VMEM (no HBM duplication).
    # hout is a small static int -> unrolled loop with static offsets only.
    for p in range(hout):
        r = p * sh
        pieces = []
        for i in range(kh):
            for j in range(kw):
                if sw == 1:
                    pieces.append(x_ref[0, r + i, j:j + wout, :])          # (wout, Cin)
                else:
                    pieces.append(x_ref[0, r + i, pl.ds(j, wout, sw), :])  # strided load
        patch_ref[p * wout:(p + 1) * wout, :] = jnp.concatenate(pieces, axis=-1)

    # One MXU matmul per image: (hout*wout, K) @ (K, Npad) with f32 accumulation.
    y = jnp.dot(patch_ref[...], w_ref[...], preferred_element_type=jnp.float32)
    y = jnp.maximum(y + b_ref[...], 0.0)                 # bias + ReLU, f32 epilogue
    y_ref[0] = y[:, :cout].astype(y_ref.dtype)           # store real channels, bf16

    # BatchNorm partial statistics from the f32 accumulator (padded lanes are 0).
    s = jnp.sum(y, axis=0, keepdims=True)                # (1, Npad)
    sq = jnp.sum(y * y, axis=0, keepdims=True)           # (1, Npad)
    stats_ref[0] = jnp.broadcast_to(jnp.concatenate([s, sq], axis=-1),
                                    stats_ref.shape[1:])


def _conv_relu_layer(x_nhwc, w_oihw, b_o, stride, want_stats):
    """One Conv2d(valid) + ReLU.  Returns (y_nhwc bf16, (scale, shift) or None)."""
    B, H, W, cin = x_nhwc.shape
    cout, cin_w, kh, kw = w_oihw.shape
    assert cin == cin_w, (cin, cin_w)
    sh, sw = stride
    hout = (H - kh) // sh + 1
    wout = (W - kw) // sw + 1
    K = kh * kw * cin
    m_img = hout * wout
    n_pad = _round_up(cout, LANE)

    # (Cout, Cin, kh, kw) -> (kh, kw, Cin, Cout) -> (K, Cout); pad N; bf16 for MXU.
    w_mat = jnp.transpose(w_oihw, (2, 3, 1, 0)).reshape(K, cout)
    w_mat = jnp.pad(w_mat, ((0, 0), (0, n_pad - cout))).astype(jnp.bfloat16)
    b_mat = jnp.pad(b_o, (0, n_pad - cout)).reshape(1, n_pad).astype(jnp.float32)

    kernel = functools.partial(_conv_relu_stats_kernel, kh=kh, kw=kw, sh=sh,
                               sw=sw, hout=hout, wout=wout, cout=cout)
    cost = pl.CostEstimate(
        flops=2 * B * m_img * K * n_pad,
        transcendentals=0,
        bytes_accessed=(x_nhwc.size * 2 + w_mat.size * 2 + b_mat.size * 4
                        + B * m_img * cout * 2 + B * 8 * 2 * n_pad * 4))

    y, stats = pl.pallas_call(
        kernel,
        out_shape=[
            jax.ShapeDtypeStruct((B, m_img, cout), jnp.bfloat16),
            jax.ShapeDtypeStruct((B, 8, 2 * n_pad), jnp.float32),
        ],
        grid=(B,),
        in_specs=[
            pl.BlockSpec((1, H, W, cin), lambda b: (b, 0, 0, 0)),   # one image/step
            pl.BlockSpec((K, n_pad), lambda b: (0, 0)),             # weights resident
            pl.BlockSpec((1, n_pad), lambda b: (0, 0)),             # bias resident
        ],
        out_specs=[
            pl.BlockSpec((1, m_img, cout), lambda b: (b, 0, 0)),
            pl.BlockSpec((1, 8, 2 * n_pad), lambda b: (b, 0, 0)),
        ],
        scratch_shapes=[pltpu.VMEM((m_img, K), jnp.bfloat16)],      # in-VMEM im2col
        compiler_params=_compiler_params(1, 0),
        cost_estimate=cost,
    )(x_nhwc.astype(jnp.bfloat16), w_mat, b_mat)

    y = y.reshape(B, hout, wout, cout)
    if not want_stats:
        return y, None

    # Tiny host-side reduction of per-image partials -> training-mode batch stats.
    s_sq = stats[:, 0, :].sum(axis=0)                    # (2*n_pad,)
    s = s_sq[:cout]
    sq = s_sq[n_pad:n_pad + cout]
    m_total = B * m_img
    mean = s / m_total
    # TODO(synk): one-pass E[x^2]-E[x]^2 in f32 can cancel for very large B*H*W;
    # switch to per-image centered partials / Welford merge in that regime.
    var = jnp.maximum(sq / m_total - mean * mean, 0.0)   # biased, as PyTorch train BN
    inv = lax.rsqrt(var + BN_EPS)
    scale = inv                                          # gamma = 1 (fresh BN)
    shift = -mean * inv                                  # beta  = 0
    return y, (scale, shift)


def _fold_bn_into_conv(w_oihw, b_o, scale, shift):
    """conv(y*scale + shift) == conv'(y) with folded weights (tiny host transform)."""
    w_f = w_oihw * scale.reshape(1, -1, 1, 1)
    b_f = b_o + jnp.sum(w_oihw * shift.reshape(1, -1, 1, 1), axis=(1, 2, 3))
    return w_f, b_f


# ---------------------------------------------------------------------------
# Linear layer: M-tiled, K reduction grid axis, f32 VMEM accumulator
# ---------------------------------------------------------------------------
def _linear_kernel(x_ref, w_ref, b_ref, o_ref, acc_ref):
    @pl.when(pl.program_id(1) == 0)
    def _():
        acc_ref[...] = jnp.zeros_like(acc_ref)
    acc_ref[...] += jnp.dot(x_ref[...], w_ref[...],
                            preferred_element_type=jnp.float32)
    @pl.when(pl.program_id(1) == pl.num_programs(1) - 1)
    def _():
        o_ref[...] = acc_ref[...] + b_ref[...]


def _linear_layer(flat_bf16, w_mat_kn, b_vec):
    M, K = flat_bf16.shape
    out_dim = w_mat_kn.shape[1]
    tm = _pick_tile_m(M)
    m_pad = _round_up(M, tm)
    n_pad = _round_up(out_dim, LANE)
    tk = min(512, _round_up(K, LANE))
    k_pad = _round_up(K, tk)
    grid_m, grid_k = m_pad // tm, k_pad // tk

    x = jnp.pad(flat_bf16, ((0, m_pad - M), (0, k_pad - K)))
    w = jnp.pad(w_mat_kn, ((0, k_pad - K), (0, n_pad - out_dim))).astype(jnp.bfloat16)
    b = jnp.pad(b_vec, (0, n_pad - out_dim)).reshape(1, n_pad).astype(jnp.float32)

    cost = pl.CostEstimate(
        flops=2 * m_pad * k_pad * n_pad, transcendentals=0,
        bytes_accessed=x.size * 2 + w.size * 2 + b.size * 4 + m_pad * n_pad * 4)

    out = pl.pallas_call(
        _linear_kernel,
        out_shape=jax.ShapeDtypeStruct((m_pad, n_pad), jnp.float32),
        grid=(grid_m, grid_k),
        in_specs=[
            pl.BlockSpec((tm, tk), lambda i, k: (i, k)),
            pl.BlockSpec((tk, n_pad), lambda i, k: (k, 0)),
            pl.BlockSpec((1, n_pad), lambda i, k: (0, 0)),
        ],
        out_specs=pl.BlockSpec((tm, n_pad), lambda i, k: (i, 0)),
        scratch_shapes=[pltpu.VMEM((tm, n_pad), jnp.float32)],
        compiler_params=_compiler_params(1, 1),
        cost_estimate=cost,
    )(x, w, b)
    return out[:M, :out_dim]


# ---------------------------------------------------------------------------
# Conv2dBlock forward
# ---------------------------------------------------------------------------
def conv2d_block_forward(x_nchw, params, *, output_shape, use_batch_norm=True):
    """params = {"convs": [(w_OIHW, b_O, (sh, sw)), ...],
                 "linear": (W_out_in, b_out)}"""
    B = x_nchw.shape[0]
    convs = params["convs"]
    w_lin, b_lin = params["linear"]          # (out_dim, flat_dim), (out_dim,)
    out_dim = w_lin.shape[0]

    if convs:
        x = jnp.transpose(x_nchw, (0, 2, 3, 1))          # NHWC
        pending = None                                   # BN (scale, shift) to fold
        for (w_oihw, b_o, stride) in convs:
            if pending is not None:
                w_oihw, b_o = _fold_bn_into_conv(w_oihw, b_o, *pending)
            x, pending = _conv_relu_layer(x, w_oihw, b_o, stride,
                                          want_stats=use_batch_norm)
        _, Hc, Wc, Cc = x.shape
        flat = x.reshape(B, Hc * Wc * Cc)                # NHWC flatten (bf16)
        # Permute Linear weight columns from NCHW to NHWC order (cheap, weights
        # only) instead of transposing the activations; fold the last BN too.
        w_nhwc = (w_lin.reshape(out_dim, Cc, Hc, Wc)
                  .transpose(0, 2, 3, 1)
                  .reshape(out_dim, Hc * Wc * Cc))
        b_fold = b_lin
        if pending is not None:
            scale, shift = pending
            w3 = w_nhwc.reshape(out_dim, Hc * Wc, Cc)
            b_fold = b_lin + jnp.sum(w3 * shift.reshape(1, 1, Cc), axis=(1, 2))
            w_nhwc = (w3 * scale.reshape(1, 1, Cc)).reshape(out_dim, Hc * Wc * Cc)
        w_mat = jnp.transpose(w_nhwc)                    # (flat_dim, out_dim)
    else:
        flat = x_nchw.reshape(B, -1)                     # NCHW flatten
        w_mat = jnp.transpose(w_lin)
        b_fold = b_lin

    out = _linear_layer(flat.astype(jnp.bfloat16), w_mat, b_fold)
    # Reshape(output_shape); output_activation=None -> Identity
    return out.reshape((B,) + tuple(output_shape))


# ---------------------------------------------------------------------------
# Deterministic parameter construction
# ---------------------------------------------------------------------------
def make_params(key, input_shape, output_shape, out_chans_per_layer,
                kernel_size=3, stride=1):
    out_chans_per_layer = [c for c in out_chans_per_layer if c]
    cin, h, w = input_shape
    num_layers = len(out_chans_per_layer)
    ksizes = [(kernel_size, kernel_size)] * num_layers
    strides = [(stride, stride)] * num_layers

    convs = []
    in_ch = cin
    for out_ch, (kh, kw), st in zip(out_chans_per_layer, ksizes, strides):
        key, k1, k2 = jax.random.split(key, 3)
        w_conv = jax.random.normal(k1, (out_ch, in_ch, kh, kw), jnp.float32) * 0.1
        b_conv = jax.random.normal(k2, (out_ch,), jnp.float32) * 0.1
        convs.append((w_conv, b_conv, st))
        h = (h - kh) // st[0] + 1
        w = (w - kw) // st[1] + 1
        in_ch = out_ch

    flat_conv_dim = h * w * (out_chans_per_layer[-1] if num_layers else cin)
    flat_out_dim = 1
    for d in output_shape:
        flat_out_dim *= d

    key, k1, k2 = jax.random.split(key, 3)
    w_lin = jax.random.normal(k1, (flat_out_dim, flat_conv_dim), jnp.float32) * 0.05
    b_lin = jax.random.normal(k2, (flat_out_dim,), jnp.float32) * 0.05
    return {"convs": convs, "linear": (w_lin, b_lin)}


if __name__ == "__main__":
    # Small shapes consistent with the module:
    #   input_shape = (C=4, H=16, W=16), output_shape = (8,)
    #   out_chans_per_layer = [8, 16], kernel_size=3, stride=1, batch=2
    input_shape = (4, 16, 16)
    output_shape = (8,)
    out_chans_per_layer = [8, 16]
    batch = 2

    key = jax.random.PRNGKey(0)
    key, xkey = jax.random.split(key)
    x = jax.random.normal(xkey, (batch,) + input_shape, jnp.float32)

    params = make_params(key, input_shape, output_shape, out_chans_per_layer,
                         kernel_size=3, stride=1)

    fwd = jax.jit(lambda inp: conv2d_block_forward(
        inp, params, output_shape=output_shape, use_batch_norm=True))
    out = jax.block_until_ready(fwd(x))

    assert out.shape == (batch,) + tuple(output_shape), out.shape
    assert bool(jnp.all(jnp.isfinite(out)))
    print("KERNEL_OK")
</pallas_src>

<mosaic_0001>
module attributes {stable_mosaic.version = 11 : i64} {
  func.func @_conv_relu_stats_kernel(%arg0: i32, %arg1: memref<1x16x16x4xbf16, #tpu.memory_space<vmem>>, %arg2: memref<36x128xbf16, #tpu.memory_space<vmem>>, %arg3: memref<1x128xf32, #tpu.memory_space<vmem>>, %arg4: memref<1x196x8xbf16, #tpu.memory_space<vmem>>, %arg5: memref<1x8x256xf32, #tpu.memory_space<vmem>>, %arg6: memref<196x36xbf16, #tpu.memory_space<vmem>>) attributes {dimension_semantics = [#tpu.dimension_semantics<parallel>], iteration_bounds = array<i64: 2>, scalar_prefetch = 0 : i64, scratch_operands = 1 : i64, tpu.core_type = #tpu.core_type<tc>, window_params = [{transform_indices = @transform_0, window_bounds = array<i64: 1, 16, 16, 4>}, {pipeline_mode = #tpu.pipeline_mode<synchronous>, transform_indices = @transform_1, window_bounds = array<i64: 36, 128>}, {pipeline_mode = #tpu.pipeline_mode<synchronous>, transform_indices = @transform_2, window_bounds = array<i64: 1, 128>}, {transform_indices = @transform_3, window_bounds = array<i64: 1, 196, 8>}, {transform_indices = @transform_4, window_bounds = array<i64: 1, 8, 256>}]} {
    %c0 = arith.constant 0 : index
    %c0_0 = arith.constant 0 : index
    %c0_1 = arith.constant 0 : index
    %c0_2 = arith.constant 0 : index
    %0 = vector.load %arg1[%c0, %c0_0, %c0_1, %c0_2] : memref<1x16x16x4xbf16, #tpu.memory_space<vmem>>, vector<1x1x14x4xbf16>
    %1 = vector.shape_cast %0 : vector<1x1x14x4xbf16> to vector<14x4xbf16>
    %c0_3 = arith.constant 0 : index
    %c0_4 = arith.constant 0 : index
    %c1 = arith.constant 1 : index
    %c0_5 = arith.constant 0 : index
    %2 = vector.load %arg1[%c0_3, %c0_4, %c1, %c0_5] : memref<1x16x16x4xbf16, #tpu.memory_space<vmem>>, vector<1x1x14x4xbf16>
    %3 = vector.shape_cast %2 : vector<1x1x14x4xbf16> to vector<14x4xbf16>
    %c0_6 = arith.constant 0 : index
    %c0_7 = arith.constant 0 : index
    %c2 = arith.constant 2 : index
    %c0_8 = arith.constant 0 : index
    %4 = vector.load %arg1[%c0_6, %c0_7, %c2, %c0_8] : memref<1x16x16x4xbf16, #tpu.memory_space<vmem>>, vector<1x1x14x4xbf16>
    %5 = vector.shape_cast %4 : vector<1x1x14x4xbf16> to vector<14x4xbf16>
    %c0_9 = arith.constant 0 : index
    %c1_10 = arith.constant 1 : index
    %c0_11 = arith.constant 0 : index
    %c0_12 = arith.constant 0 : index
    %6 = vector.load %arg1[%c0_9, %c1_10, %c0_11, %c0_12] : memref<1x16x16x4xbf16, #tpu.memory_space<vmem>>, vector<1x1x14x4xbf16>
    %7 = vector.shape_cast %6 : vector<1x1x14x4xbf16> to vector<14x4xbf16>
    %c0_13 = arith.constant 0 : index
    %c1_14 = arith.constant 1 : index
    %c1_15 = arith.constant 1 : index
    %c0_16 = arith.constant 0 : index
    %8 = vector.load %arg1[%c0_13, %c1_14, %c1_15, %c0_16] : memref<1x16x16x4xbf16, #tpu.memory_space<vmem>>, vector<1x1x14x4xbf16>
    %9 = vector.shape_cast %8 : vector<1x1x14x4xbf16> to vector<14x4xbf16>
    %c0_17 = arith.constant 0 : index
    %c1_18 = arith.constant 1 : index
    %c2_19 = arith.constant 2 : index
    %c0_20 = arith.constant 0 : index
    %10 = vector.load %arg1[%c0_17, %c1_18, %c2_19, %c0_20] : memref<1x16x16x4xbf16, #tpu.memory_space<vmem>>, vector<1x1x14x4xbf16>
    %11 = vector.shape_cast %10 : vector<1x1x14x4xbf16> to vector<14x4xbf16>
    %c0_21 = arith.constant 0 : index
    %c2_22 = arith.constant 2 : index
    %c0_23 = arith.constant 0 : index
    %c0_24 = arith.constant 0 : index
    %12 = vector.load %arg1[%c0_21, %c2_22, %c0_23, %c0_24] : memref<1x16x16x4xbf16, #tpu.memory_space<vmem>>, vector<1x1x14x4xbf16>
    %13 = vector.shape_cast %12 : vector<1x1x14x4xbf16> to vector<14x4xbf16>
    %c0_25 = arith.constant 0 : index
    %c2_26 = arith.constant 2 : index
    %c1_27 = arith.constant 1 : index
    %c0_28 = arith.constant 0 : index
    %14 = vector.load %arg1[%c0_25, %c2_26, %c1_27, %c0_28] : memref<1x16x16x4xbf16, #tpu.memory_space<vmem>>, vector<1x1x14x4xbf16>
    %15 = vector.shape_cast %14 : vector<1x1x14x4xbf16> to vector<14x4xbf16>
    %c0_29 = arith.constant 0 : index
    %c2_30 = arith.constant 2 : index
    %c2_31 = arith.constant 2 : index
    %c0_32 = arith.constant 0 : index
    %16 = vector.load %arg1[%c0_29, %c2_30, %c2_31, %c0_32] : memref<1x16x16x4xbf16, #tpu.memory_space<vmem>>, vector<1x1x14x4xbf16>
    %17 = vector.shape_cast %16 : vector<1x1x14x4xbf16> to vector<14x4xbf16>
    %18 = tpu.concatenate %1, %3, %5, %7, %9, %11, %13, %15, %17 in 1 : vector<14x4xbf16>, vector<14x4xbf16>, vector<14x4xbf16>, vector<14x4xbf16>, vector<14x4xbf16>, vector<14x4xbf16>, vector<14x4xbf16>, vector<14x4xbf16>, vector<14x4xbf16> -> vector<14x36xbf16>
    %c0_33 = arith.constant 0 : index
    %c0_34 = arith.constant 0 : index
    %19 = vector.load %arg6[%c0_33, %c0_34] : memref<196x36xbf16, #tpu.memory_space<vmem>>, vector<14x36xbf16>
    tpu.vector_store %arg6[%c0_33, %c0_34], %18 {strides = array<i32>} : memref<196x36xbf16, #tpu.memory_space<vmem>>, vector<14x36xbf16>,
    %c0_35 = arith.constant 0 : index
    %c1_36 = arith.constant 1 : index
    %c0_37 = arith.constant 0 : index
    %c0_38 = arith.constant 0 : index
    %20 = vector.load %arg1[%c0_35, %c1_36, %c0_37, %c0_38] : memref<1x16x16x4xbf16, #tpu.memory_space<vmem>>, vector<1x1x14x4xbf16>
    %21 = vector.shape_cast %20 : vector<1x1x14x4xbf16> to vector<14x4xbf16>
    %c0_39 = arith.constant 0 : index
    %c1_40 = arith.constant 1 : index
    %c1_41 = arith.constant 1 : index
    %c0_42 = arith.constant 0 : index
    %22 = vector.load %arg1[%c0_39, %c1_40, %c1_41, %c0_42] : memref<1x16x16x4xbf16, #tpu.memory_space<vmem>>, vector<1x1x14x4xbf16>
    %23 = vector.shape_cast %22 : vector<1x1x14x4xbf16> to vector<14x4xbf16>
    %c0_43 = arith.constant 0 : index
    %c1_44 = arith.constant 1 : index
    %c2_45 = arith.constant 2 : index
    %c0_46 = arith.constant 0 : index
    %24 = vector.load %arg1[%c0_43, %c1_44, %c2_45, %c0_46] : memref<1x16x16x4xbf16, #tpu.memory_space<vmem>>, vector<1x1x14x4xbf16>
    %25 = vector.shape_cast %24 : vector<1x1x14x4xbf16> to vector<14x4xbf16>
    %c0_47 = arith.constant 0 : index
    %c2_48 = arith.constant 2 : index
    %c0_49 = arith.constant 0 : index
    %c0_50 = arith.constant 0 : index
    %26 = vector.load %arg1[%c0_47, %c2_48, %c0_49, %c0_50] : memref<1x16x16x4xbf16, #tpu.memory_space<vmem>>, vector<1x1x14x4xbf16>
    %27 = vector.shape_cast %26 : vector<1x1x14x4xbf16> to vector<14x4xbf16>
    %c0_51 = arith.constant 0 : index
    %c2_52 = arith.constant 2 : index
    %c1_53 = arith.constant 1 : index
    %c0_54 = arith.constant 0 : index
    %28 = vector.load %arg1[%c0_51, %c2_52, %c1_53, %c0_54] : memref<1x16x16x4xbf16, #tpu.memory_space<vmem>>, vector<1x1x14x4xbf16>
    %29 = vector.shape_cast %28 : vector<1x1x14x4xbf16> to vector<14x4xbf16>
    %c0_55 = arith.constant 0 : index
    %c2_56 = arith.constant 2 : index
    %c2_57 = arith.constant 2 : index
    %c0_58 = arith.constant 0 : index
    %30 = vector.load %arg1[%c0_55, %c2_56, %c2_57, %c0_58] : memref<1x16x16x4xbf16, #tpu.memory_space<vmem>>, vector<1x1x14x4xbf16>
    %31 = vector.shape_cast %30 : vector<1x1x14x4xbf16> to vector<14x4xbf16>
    %c0_59 = arith.constant 0 : index
    %c3 = arith.constant 3 : index
    %c0_60 = arith.constant 0 : index
    %c0_61 = arith.constant 0 : index
    %32 = vector.load %arg1[%c0_59, %c3, %c0_60, %c0_61] : memref<1x16x16x4xbf16, #tpu.memory_space<vmem>>, vector<1x1x14x4xbf16>
    %33 = vector.shape_cast %32 : vector<1x1x14x4xbf16> to vector<14x4xbf16>
    %c0_62 = arith.constant 0 : index
    %c3_63 = arith.constant 3 : index
    %c1_64 = arith.constant 1 : index
    %c0_65 = arith.constant 0 : index
    %34 = vector.load %arg1[%c0_62, %c3_63, %c1_64, %c0_65] : memref<1x16x16x4xbf16, #tpu.memory_space<vmem>>, vector<1x1x14x4xbf16>
    %35 = vector.shape_cast %34 : vector<1x1x14x4xbf16> to vector<14x4xbf16>
    %c0_66 = arith.constant 0 : index
    %c3_67 = arith.constant 3 : index
    %c2_68 = arith.constant 2 : index
    %c0_69 = arith.constant 0 : index
    %36 = vector.load %arg1[%c0_66, %c3_67, %c2_68, %c0_69] : memref<1x16x16x4xbf16, #tpu.memory_space<vmem>>, vector<1x1x14x4xbf16>
    %37 = vector.shape_cast %36 : vector<1x1x14x4xbf16> to vector<14x4xbf16>
    %38 = tpu.concatenate %21, %23, %25, %27, %29, %31, %33, %35, %37 in 1 : vector<14x4xbf16>, vector<14x4xbf16>, vector<14x4xbf16>, vector<14x4xbf16>, vector<14x4xbf16>, vector<14x4xbf16>, vector<14x4xbf16>, vector<14x4xbf16>, vector<14x4xbf16> -> vector<14x36xbf16>
    %c14 = arith.constant 14 : index
    %c0_70 = arith.constant 0 : index
    %39 = vector.load %arg6[%c14, %c0_70] : memref<196x36xbf16, #tpu.memory_space<vmem>>, vector<14x36xbf16>
    tpu.vector_store %arg6[%c14, %c0_70], %38 {strides = array<i32>} : memref<196x36xbf16, #tpu.memory_space<vmem>>, vector<14x36xbf16>,
    %c0_71 = arith.constant 0 : index
    %c2_72 = arith.constant 2 : index
    %c0_73 = arith.constant 0 : index
    %c0_74 = arith.constant 0 : index
    %40 = vector.load %arg1[%c0_71, %c2_72, %c0_73, %c0_74] : memref<1x16x16x4xbf16, #tpu.memory_space<vmem>>, vector<1x1x14x4xbf16>
    %41 = vector.shape_cast %40 : vector<1x1x14x4xbf16> to vector<14x4xbf16>
    %c0_75 = arith.constant 0 : index
    %c2_76 = arith.constant 2 : index
    %c1_77 = arith.constant 1 : index
    %c0_78 = arith.constant 0 : index
    %42 = vector.load %arg1[%c0_75, %c2_76, %c1_77, %c0_78] : memref<1x16x16x4xbf16, #tpu.memory_space<vmem>>, vector<1x1x14x4xbf16>
    %43 = vector.shape_cast %42 : vector<1x1x14x4xbf16> to vector<14x4xbf16>
    %c0_79 = arith.constant 0 : index
    %c2_80 = arith.constant 2 : index
    %c2_81 = arith.constant 2 : index
    %c0_82 = arith.constant 0 : index
    %44 = vector.load %arg1[%c0_79, %c2_80, %c2_81, %c0_82] : memref<1x16x16x4xbf16, #tpu.memory_space<vmem>>, vector<1x1x14x4xbf16>
    %45 = vector.shape_cast %44 : vector<1x1x14x4xbf16> to vector<14x4xbf16>
    %c0_83 = arith.constant 0 : index
    %c3_84 = arith.constant 3 : index
    %c0_85 = arith.constant 0 : index
    %c0_86 = arith.constant 0 : index
    %46 = vector.load %arg1[%c0_83, %c3_84, %c0_85, %c0_86] : memref<1x16x16x4xbf16, #tpu.memory_space<vmem>>, vector<1x1x14x4xbf16>
    %47 = vector.shape_cast %46 : vector<1x1x14x4xbf16> to vector<14x4xbf16>
    %c0_87 = arith.constant 0 : index
    %c3_88 = arith.constant 3 : index
    %c1_89 = arith.constant 1 : index
    %c0_90 = arith.constant 0 : index
    %48 = vector.load %arg1[%c0_87, %c3_88, %c1_89, %c0_90] : memref<1x16x16x4xbf16, #tpu.memory_space<vmem>>, vector<1x1x14x4xbf16>
    %49 = vector.shape_cast %48 : vector<1x1x14x4xbf16> to vector<14x4xbf16>
    %c0_91 = arith.constant 0 : index
    %c3_92 = arith.constant 3 : index
    %c2_93 = arith.constant 2 : index
    %c0_94 = arith.constant 0 : index
    %50 = vector.load %arg1[%c0_91, %c3_92, %c2_93, %c0_94] : memref<1x16x16x4xbf16, #tpu.memory_space<vmem>>, vector<1x1x14x4xbf16>
    %51 = vector.shape_cast %50 : vector<1x1x14x4xbf16> to vector<14x4xbf16>
    %c0_95 = arith.constant 0 : index
    %c4 = arith.constant 4 : index
    %c0_96 = arith.constant 0 : index
    %c0_97 = arith.constant 0 : index
    %52 = vector.load %arg1[%c0_95, %c4, %c0_96, %c0_97] : memref<1x16x16x4xbf16, #tpu.memory_space<vmem>>, vector<1x1x14x4xbf16>
    %53 = vector.shape_cast %52 : vector<1x1x14x4xbf16> to vector<14x4xbf16>
    %c0_98 = arith.constant 0 : index
    %c4_99 = arith.constant 4 : index
    %c1_100 = arith.constant 1 : index
    %c0_101 = arith.constant 0 : index
    %54 = vector.load %arg1[%c0_98, %c4_99, %c1_100, %c0_101] : memref<1x16x16x4xbf16, #tpu.memory_space<vmem>>, vector<1x1x14x4xbf16>
    %55 = vector.shape_cast %54 : vector<1x1x14x4xbf16> to vector<14x4xbf16>
    %c0_102 = arith.constant 0 : index
    %c4_103 = arith.constant 4 : index
    %c2_104 = arith.constant 2 : index
    %c0_105 = arith.constant 0 : index
    %56 = vector.load %arg1[%c0_102, %c4_103, %c2_104, %c0_105] : memref<1x16x16x4xbf16, #tpu.memory_space<vmem>>, vector<1x1x14x4xbf16>
    %57 = vector.shape_cast %56 : vector<1x1x14x4xbf16> to vector<14x4xbf16>
    %58 = tpu.concatenate %41, %43, %45, %47, %49, %51, %53, %55, %57 in 1 : vector<14x4xbf16>, vector<14x4xbf16>, vector<14x4xbf16>, vector<14x4xbf16>, vector<14x4xbf16>, vector<14x4xbf16>, vector<14x4xbf16>, vector<14x4xbf16>, vector<14x4xbf16> -> vector<14x36xbf16>
    %c28 = arith.constant 28 : index
    %c0_106 = arith.constant 0 : index
    %59 = vector.load %arg6[%c28, %c0_106] : memref<196x36xbf16, #tpu.memory_space<vmem>>, vector<14x36xbf16>
    tpu.vector_store %arg6[%c28, %c0_106], %58 {strides = array<i32>} : memref<196x36xbf16, #tpu.memory_space<vmem>>, vector<14x36xbf16>,
    %c0_107 = arith.constant 0 : index
    %c3_108 = arith.constant 3 : index
    %c0_109 = arith.constant 0 : index
    %c0_110 = arith.constant 0 : index
    %60 = vector.load %arg1[%c0_107, %c3_108, %c0_109, %c0_110] : memref<1x16x16x4xbf16, #tpu.memory_space<vmem>>, vector<1x1x14x4xbf16>
    %61 = vector.shape_cast %60 : vector<1x1x14x4xbf16> to vector<14x4xbf16>
    %c0_111 = arith.constant 0 : index
    %c3_112 = arith.constant 3 : index
    %c1_113 = arith.constant 1 : index
    %c0_114 = arith.constant 0 : index
    %62 = vector.load %arg1[%c0_111, %c3_112, %c1_113, %c0_114] : memref<1x16x16x4xbf16, #tpu.memory_space<vmem>>, vector<1x1x14x4xbf16>
    %63 = vector.shape_cast %62 : vector<1x1x14x4xbf16> to vector<14x4xbf16>
    %c0_115 = arith.constant 0 : index
    %c3_116 = arith.constant 3 : index
    %c2_117 = arith.constant 2 : index
    %c0_118 = arith.constant 0 : index
    %64 = vector.load %arg1[%c0_115, %c3_116, %c2_117, %c0_118] : memref<1x16x16x4xbf16, #tpu.memory_space<vmem>>, vector<1x1x14x4xbf16>
    %65 = vector.shape_cast %64 : vector<1x1x14x4xbf16> to vector<14x4xbf16>
    %c0_119 = arith.constant 0 : index
    %c4_120 = arith.constant 4 : index
    %c0_121 = arith.constant 0 : index
    %c0_122 = arith.constant 0 : index
    %66 = vector.load %arg1[%c0_119, %c4_120, %c0_121, %c0_122] : memref<1x16x16x4xbf16, #tpu.memory_space<vmem>>, vector<1x1x14x4xbf16>
    %67 = vector.shape_cast %66 : vector<1x1x14x4xbf16> to vector<14x4xbf16>
    %c0_123 = arith.constant 0 : index
    %c4_124 = arith.constant 4 : index
    %c1_125 = arith.constant 1 : index
    %c0_126 = arith.constant 0 : index
    %68 = vector.load %arg1[%c0_123, %c4_124, %c1_125, %c0_126] : memref<1x16x16x4xbf16, #tpu.memory_space<vmem>>, vector<1x1x14x4xbf16>
    %69 = vector.shape_cast %68 : vector<1x1x14x4xbf16> to vector<14x4xbf16>
    %c0_127 = arith.constant 0 : index
    %c4_128 = arith.constant 4 : index
    %c2_129 = arith.constant 2 : index
    %c0_130 = arith.constant 0 : index
    %70 = vector.load %arg1[%c0_127, %c4_128, %c2_129, %c0_130] : memref<1x16x16x4xbf16, #tpu.memory_space<vmem>>, vector<1x1x14x4xbf16>
    %71 = vector.shape_cast %70 : vector<1x1x14x4xbf16> to vector<14x4xbf16>
    %c0_131 = arith.constant 0 : index
    %c5 = arith.constant 5 : index
    %c0_132 = arith.constant 0 : index
    %c0_133 = arith.constant 0 : index
    %72 = vector.load %arg1[%c0_131, %c5, %c0_132, %c0_133] : memref<1x16x16x4xbf16, #tpu.memory_space<vmem>>, vector<1x1x14x4xbf16>
    %73 = vector.shape_cast %72 : vector<1x1x14x4xbf16> to vector<14x4xbf16>
    %c0_134 = arith.constant 0 : index
    %c5_135 = arith.constant 5 : index
    %c1_136 = arith.constant 1 : index
    %c0_137 = arith.constant 0 : index
    %74 = vector.load %arg1[%c0_134, %c5_135, %c1_136, %c0_137] : memref<1x16x16x4xbf16, #tpu.memory_space<vmem>>, vector<1x1x14x4xbf16>
    %75 = vector.shape_cast %74 : vector<1x1x14x4xbf16> to vector<14x4xbf16>
    %c0_138 = arith.constant 0 : index
    %c5_139 = arith.constant 5 : index
    %c2_140 = arith.constant 2 : index
    %c0_141 = arith.constant 0 : index
    %76 = vector.load %arg1[%c0_138, %c5_139, %c2_140, %c0_141] : memref<1x16x16x4xbf16, #tpu.memory_space<vmem>>, vector<1x1x14x4xbf16>
    %77 = vector.shape_cast %76 : vector<1x1x14x4xbf16> to vector<14x4xbf16>
    %78 = tpu.concatenate %61, %63, %65, %67, %69, %71, %73, %75, %77 in 1 : vector<14x4xbf16>, vector<14x4xbf16>, vector<14x4xbf16>, vector<14x4xbf16>, vector<14x4xbf16>, vector<14x4xbf16>, vector<14x4xbf16>, vector<14x4xbf16>, vector<14x4xbf16> -> vector<14x36xbf16>
    %c42 = arith.constant 42 : index
    %c0_142 = arith.constant 0 : index
    %79 = vector.load %arg6[%c42, %c0_142] : memref<196x36xbf16, #tpu.memory_space<vmem>>, vector<14x36xbf16>
    tpu.vector_store %arg6[%c42, %c0_142], %78 {strides = array<i32>} : memref<196x36xbf16, #tpu.memory_space<vmem>>, vector<14x36xbf16>,
    %c0_143 = arith.constant 0 : index
    %c4_144 = arith.constant 4 : index
    %c0_145 = arith.constant 0 : index
    %c0_146 = arith.constant 0 : index
    %80 = vector.load %arg1[%c0_143, %c4_144, %c0_145, %c0_146] : memref<1x16x16x4xbf16, #tpu.memory_space<vmem>>, vector<1x1x14x4xbf16>
    %81 = vector.shape_cast %80 : vector<1x1x14x4xbf16> to vector<14x4xbf16>
    %c0_147 = arith.constant 0 : index
    %c4_148 = arith.constant 4 : index
    %c1_149 = arith.constant 1 : index
    %c0_150 = arith.constant 0 : index
    %82 = vector.load %arg1[%c0_147, %c4_148, %c1_149, %c0_150] : memref<1x16x16x4xbf16, #tpu.memory_space<vmem>>, vector<1x1x14x4xbf16>
    %83 = vector.shape_cast %82 : vector<1x1x14x4xbf16> to vector<14x4xbf16>
    %c0_151 = arith.constant 0 : index
    %c4_152 = arith.constant 4 : index
    %c2_153 = arith.constant 2 : index
    %c0_154 = arith.constant 0 : index
    %84 = vector.load %arg1[%c0_151, %c4_152, %c2_153, %c0_154] : memref<1x16x16x4xbf16, #tpu.memory_space<vmem>>, vector<1x1x14x4xbf16>
    %85 = vector.shape_cast %84 : vector<1x1x14x4xbf16> to vector<14x4xbf16>
    %c0_155 = arith.constant 0 : index
    %c5_156 = arith.constant 5 : index
    %c0_157 = arith.constant 0 : index
    %c0_158 = arith.constant 0 : index
    %86 = vector.load %arg1[%c0_155, %c5_156, %c0_157, %c0_158] : memref<1x16x16x4xbf16, #tpu.memory_space<vmem>>, vector<1x1x14x4xbf16>
    %87 = vector.shape_cast %86 : vector<1x1x14x4xbf16> to vector<14x4xbf16>
    %c0_159 = arith.constant 0 : index
    %c5_160 = arith.constant 5 : index
    %c1_161 = arith.constant 1 : index
    %c0_162 = arith.constant 0 : index
    %88 = vector.load %arg1[%c0_159, %c5_160, %c1_161, %c0_162] : memref<1x16x16x4xbf16, #tpu.memory_space<vmem>>, vector<1x1x14x4xbf16>
    %89 = vector.shape_cast %88 : vector<1x1x14x4xbf16> to vector<14x4xbf16>
    %c0_163 = arith.constant 0 : index
    %c5_164 = arith.constant 5 : index
    %c2_165 = arith.constant 2 : index
    %c0_166 = arith.constant 0 : index
    %90 = vector.load %arg1[%c0_163, %c5_164, %c2_165, %c0_166] : memref<1x16x16x4xbf16, #tpu.memory_space<vmem>>, vector<1x1x14x4xbf16>
    %91 = vector.shape_cast %90 : vector<1x1x14x4xbf16> to vector<14x4xbf16>
    %c0_167 = arith.constant 0 : index
    %c6 = arith.constant 6 : index
    %c0_168 = arith.constant 0 : index
    %c0_169 = arith.constant 0 : index
    %92 = vector.load %arg1[%c0_167, %c6, %c0_168, %c0_169] : memref<1x16x16x4xbf16, #tpu.memory_space<vmem>>, vector<1x1x14x4xbf16>
    %93 = vector.shape_cast %92 : vector<1x1x14x4xbf16> to vector<14x4xbf16>
    %c0_170 = arith.constant 0 : index
    %c6_171 = arith.constant 6 : index
    %c1_172 = arith.constant 1 : index
    %c0_173 = arith.constant 0 : index
    %94 = vector.load %arg1[%c0_170, %c6_171, %c1_172, %c0_173] : memref<1x16x16x4xbf16, #tpu.memory_space<vmem>>, vector<1x1x14x4xbf16>
    %95 = vector.shape_cast %94 : vector<1x1x14x4xbf16> to vector<14x4xbf16>
    %c0_174 = arith.constant 0 : index
    %c6_175 = arith.constant 6 : index
    %c2_176 = arith.constant 2 : index
    %c0_177 = arith.constant 0 : index
    %96 = vector.load %arg1[%c0_174, %c6_175, %c2_176, %c0_177] : memref<1x16x16x4xbf16, #tpu.memory_space<vmem>>, vector<1x1x14x4xbf16>
    %97 = vector.shape_cast %96 : vector<1x1x14x4xbf16> to vector<14x4xbf16>
    %98 = tpu.concatenate %81, %83, %85, %87, %89, %91, %93, %95, %97 in 1 : vector<14x4xbf16>, vector<14x4xbf16>, vector<14x4xbf16>, vector<14x4xbf16>, vector<14x4xbf16>, vector<14x4xbf16>, vector<14x4xbf16>, vector<14x4xbf16>, vector<14x4xbf16> -> vector<14x36xbf16>
    %c56 = arith.constant 56 : index
    %c0_178 = arith.constant 0 : index
    %99 = vector.load %arg6[%c56, %c0_178] : memref<196x36xbf16, #tpu.memory_space<vmem>>, vector<14x36xbf16>
    tpu.vector_store %arg6[%c56, %c0_178], %98 {strides = array<i32>} : memref<196x36xbf16, #tpu.memory_space<vmem>>, vector<14x36xbf16>,
    %c0_179 = arith.constant 0 : index
    %c5_180 = arith.constant 5 : index
    %c0_181 = arith.constant 0 : index
    %c0_182 = arith.constant 0 : index
    %100 = vector.load %arg1[%c0_179, %c5_180, %c0_181, %c0_182] : memref<1x16x16x4xbf16, #tpu.memory_space<vmem>>, vector<1x1x14x4xbf16>
    %101 = vector.shape_cast %100 : vector<1x1x14x4xbf16> to vector<14x4xbf16>
    %c0_183 = arith.constant 0 : index
    %c5_184 = arith.constant 5 : index
    %c1_185 = arith.constant 1 : index
    %c0_186 = arith.constant 0 : index
    %102 = vector.load %arg1[%c0_183, %c5_184, %c1_185, %c0_186] : memref<1x16x16x4xbf16, #tpu.memory_space<vmem>>, vector<1x1x14x4xbf16>
    %103 = vector.shape_cast %102 : vector<1x1x14x4xbf16> to vector<14x4xbf16>
    %c0_187 = arith.constant 0 : index
    %c5_188 = arith.constant 5 : index
    %c2_189 = arith.constant 2 : index
    %c0_190 = arith.constant 0 : index
    %104 = vector.load %arg1[%c0_187, %c5_188, %c2_189, %c0_190] : memref<1x16x16x4xbf16, #tpu.memory_space<vmem>>, vector<1x1x14x4xbf16>
    %105 = vector.shape_cast %104 : vector<1x1x14x4xbf16> to vector<14x4xbf16>
    %c0_191 = arith.constant 0 : index
    %c6_192 = arith.constant 6 : index
    %c0_193 = arith.constant 0 : index
    %c0_194 = arith.constant 0 : index
    %106 = vector.load %arg1[%c0_191, %c6_192, %c0_193, %c0_194] : memref<1x16x16x4xbf16, #tpu.memory_space<vmem>>, vector<1x1x14x4xbf16>
    %107 = vector.shape_cast %106 : vector<1x1x14x4xbf16> to vector<14x4xbf16>
    %c0_195 = arith.constant 0 : index
    %c6_196 = arith.constant 6 : index
    %c1_197 = arith.constant 1 : index
    %c0_198 = arith.constant 0 : index
    %108 = vector.load %arg1[%c0_195, %c6_196, %c1_197, %c0_198] : memref<1x16x16x4xbf16, #tpu.memory_space<vmem>>, vector<1x1x14x4xbf16>
    %109 = vector.shape_cast %108 : vector<1x1x14x4xbf16> to vector<14x4xbf16>
    %c0_199 = arith.constant 0 : index
    %c6_200 = arith.constant 6 : index
    %c2_201 = arith.constant 2 : index
    %c0_202 = arith.constant 0 : index
    %110 = vector.load %arg1[%c0_199, %c6_200, %c2_201, %c0_202] : memref<1x16x16x4xbf16, #tpu.memory_space<vmem>>, vector<1x1x14x4xbf16>
    %111 = vector.shape_cast %110 : vector<1x1x14x4xbf16> to vector<14x4xbf16>
    %c0_203 = arith.constant 0 : index
    %c7 = arith.constant 7 : index
    %c0_204 = arith.constant 0 : index
    %c0_205 = arith.constant 0 : index
    %112 = vector.load %arg1[%c0_203, %c7, %c0_204, %c0_205] : memref<1x16x16x4xbf16, #tpu.memory_space<vmem>>, vector<1x1x14x4xbf16>
    %113 = vector.shape_cast %112 : vector<1x1x14x4xbf16> to vector<14x4xbf16>
    %c0_206 = arith.constant 0 : index
    %c7_207 = arith.constant 7 : index
    %c1_208 = arith.constant 1 : index
    %c0_209 = arith.constant 0 : index
    %114 = vector.load %arg1[%c0_206, %c7_207, %c1_208, %c0_209] : memref<1x16x16x4xbf16, #tpu.memory_space<vmem>>, vector<1x1x14x4xbf16>
    %115 = vector.shape_cast %114 : vector<1x1x14x4xbf16> to vector<14x4xbf16>
    %c0_210 = arith.constant 0 : index
    %c7_211 = arith.constant 7 : index
    %c2_212 = arith.constant 2 : index
    %c0_213 = arith.constant 0 : index
    %116 = vector.load %arg1[%c0_210, %c7_211, %c2_212, %c0_213] : memref<1x16x16x4xbf16, #tpu.memory_space<vmem>>, vector<1x1x14x4xbf16>
    %117 = vector.shape_cast %116 : vector<1x1x14x4xbf16> to vector<14x4xbf16>
    %118 = tpu.concatenate %101, %103, %105, %107, %109, %111, %113, %115, %117 in 1 : vector<14x4xbf16>, vector<14x4xbf16>, vector<14x4xbf16>, vector<14x4xbf16>, vector<14x4xbf16>, vector<14x4xbf16>, vector<14x4xbf16>, vector<14x4xbf16>, vector<14x4xbf16> -> vector<14x36xbf16>
    %c70 = arith.constant 70 : index
    %c0_214 = arith.constant 0 : index
    %119 = vector.load %arg6[%c70, %c0_214] : memref<196x36xbf16, #tpu.memory_space<vmem>>, vector<14x36xbf16>
    tpu.vector_store %arg6[%c70, %c0_214], %118 {strides = array<i32>} : memref<196x36xbf16, #tpu.memory_space<vmem>>, vector<14x36xbf16>,
    %c0_215 = arith.constant 0 : index
    %c6_216 = arith.constant 6 : index
    %c0_217 = arith.constant 0 : index
    %c0_218 = arith.constant 0 : index
    %120 = vector.load %arg1[%c0_215, %c6_216, %c0_217, %c0_218] : memref<1x16x16x4xbf16, #tpu.memory_space<vmem>>, vector<1x1x14x4xbf16>
    %121 = vector.shape_cast %120 : vector<1x1x14x4xbf16> to vector<14x4xbf16>
    %c0_219 = arith.constant 0 : index
    %c6_220 = arith.constant 6 : index
    %c1_221 = arith.constant 1 : index
    %c0_222 = arith.constant 0 : index
    %122 = vector.load %arg1[%c0_219, %c6_220, %c1_221, %c0_222] : memref<1x16x16x4xbf16, #tpu.memory_space<vmem>>, vector<1x1x14x4xbf16>
    %123 = vector.shape_cast %122 : vector<1x1x14x4xbf16> to vector<14x4xbf16>
    %c0_223 = arith.constant 0 : index
    %c6_224 = arith.constant 6 : index
    %c2_225 = arith.constant 2 : index
    %c0_226 = arith.constant 0 : index
    %124 = vector.load %arg1[%c0_223, %c6_224, %c2_225, %c0_226] : memref<1x16x16x4xbf16, #tpu.memory_space<vmem>>, vector<1x1x14x4xbf16>
    %125 = vector.shape_cast %124 : vector<1x1x14x4xbf16> to vector<14x4xbf16>
    %c0_227 = arith.constant 0 : index
    %c7_228 = arith.constant 7 : index
    %c0_229 = arith.constant 0 : index
    %c0_230 = arith.constant 0 : index
    %126 = vector.load %arg1[%c0_227, %c7_228, %c0_229, %c0_230] : memref<1x16x16x4xbf16, #tpu.memory_space<vmem>>, vector<1x1x14x4xbf16>
    %127 = vector.shape_cast %126 : vector<1x1x14x4xbf16> to vector<14x4xbf16>
    %c0_231 = arith.constant 0 : index
    %c7_232 = arith.constant 7 : index
    %c1_233 = arith.constant 1 : index
    %c0_234 = arith.constant 0 : index
    %128 = vector.load %arg1[%c0_231, %c7_232, %c1_233, %c0_234] : memref<1x16x16x4xbf16, #tpu.memory_space<vmem>>, vector<1x1x14x4xbf16>
    %129 = vector.shape_cast %128 : vector<1x1x14x4xbf16> to vector<14x4xbf16>
    %c0_235 = arith.constant 0 : index
    %c7_236 = arith.constant 7 : index
    %c2_237 = arith.constant 2 : index
    %c0_238 = arith.constant 0 : index
    %130 = vector.load %arg1[%c0_235, %c7_236, %c2_237, %c0_238] : memref<1x16x16x4xbf16, #tpu.memory_space<vmem>>, vector<1x1x14x4xbf16>
    %131 = vector.shape_cast %130 : vector<1x1x14x4xbf16> to vector<14x4xbf16>
    %c0_239 = arith.constant 0 : index
    %c8 = arith.constant 8 : index
    %c0_240 = arith.constant 0 : index
    %c0_241 = arith.constant 0 : index
    %132 = vector.load %arg1[%c0_239, %c8, %c0_240, %c0_241] : memref<1x16x16x4xbf16, #tpu.memory_space<vmem>>, vector<1x1x14x4xbf16>
    %133 = vector.shape_cast %132 : vector<1x1x14x4xbf16> to vector<14x4xbf16>
    %c0_242 = arith.constant 0 : index
    %c8_243 = arith.constant 8 : index
    %c1_244 = arith.constant 1 : index
    %c0_245 = arith.constant 0 : index
    %134 = vector.load %arg1[%c0_242, %c8_243, %c1_244, %c0_245] : memref<1x16x16x4xbf16, #tpu.memory_space<vmem>>, vector<1x1x14x4xbf16>
    %135 = vector.shape_cast %134 : vector<1x1x14x4xbf16> to vector<14x4xbf16>
    %c0_246 = arith.constant 0 : index
    %c8_247 = arith.constant 8 : index
    %c2_248 = arith.constant 2 : index
    %c0_249 = arith.constant 0 : index
    %136 = vector.load %arg1[%c0_246, %c8_247, %c2_248, %c0_249] : memref<1x16x16x4xbf16, #tpu.memory_space<vmem>>, vector<1x1x14x4xbf16>
    %137 = vector.shape_cast %136 : vector<1x1x14x4xbf16> to vector<14x4xbf16>
    %138 = tpu.concatenate %121, %123, %125, %127, %129, %131, %133, %135, %137 in 1 : vector<14x4xbf16>, vector<14x4xbf16>, vector<14x4xbf16>, vector<14x4xbf16>, vector<14x4xbf16>, vector<14x4xbf16>, vector<14x4xbf16>, vector<14x4xbf16>, vector<14x4xbf16> -> vector<14x36xbf16>
    %c84 = arith.constant 84 : index
    %c0_250 = arith.constant 0 : index
    %139 = vector.load %arg6[%c84, %c0_250] : memref<196x36xbf16, #tpu.memory_space<vmem>>, vector<14x36xbf16>
    tpu.vector_store %arg6[%c84, %c0_250], %138 {strides = array<i32>} : memref<196x36xbf16, #tpu.memory_space<vmem>>, vector<14x36xbf16>,
    %c0_251 = arith.constant 0 : index
    %c7_252 = arith.constant 7 : index
    %c0_253 = arith.constant 0 : index
    %c0_254 = arith.constant 0 : index
    %140 = vector.load %arg1[%c0_251, %c7_252, %c0_253, %c0_254] : memref<1x16x16x4xbf16, #tpu.memory_space<vmem>>, vector<1x1x14x4xbf16>
    %141 = vector.shape_cast %140 : vector<1x1x14x4xbf16> to vector<14x4xbf16>
    %c0_255 = arith.constant 0 : index
    %c7_256 = arith.constant 7 : index
    %c1_257 = arith.constant 1 : index
    %c0_258 = arith.constant 0 : index
    %142 = vector.load %arg1[%c0_255, %c7_256, %c1_257, %c0_258] : memref<1x16x16x4xbf16, #tpu.memory_space<vmem>>, vector<1x1x14x4xbf16>
    %143 = vector.shape_cast %142 : vector<1x1x14x4xbf16> to vector<14x4xbf16>
    %c0_259 = arith.constant 0 : index
    %c7_260 = arith.constant 7 : index
    %c2_261 = arith.constant 2 : index
    %c0_262 = arith.constant 0 : index
    %144 = vector.load %arg1[%c0_259, %c7_260, %c2_261, %c0_262] : memref<1x16x16x4xbf16, #tpu.memory_space<vmem>>, vector<1x1x14x4xbf16>
    %145 = vector.shape_cast %144 : vector<1x1x14x4xbf16> to vector<14x4xbf16>
    %c0_263 = arith.constant 0 : index
    %c8_264 = arith.constant 8 : index
    %c0_265 = arith.constant 0 : index
    %c0_266 = arith.constant 0 : index
    %146 = vector.load %arg1[%c0_263, %c8_264, %c0_265, %c0_266] : memref<1x16x16x4xbf16, #tpu.memory_space<vmem>>, vector<1x1x14x4xbf16>
    %147 = vector.shape_cast %146 : vector<1x1x14x4xbf16> to vector<14x4xbf16>
    %c0_267 = arith.constant 0 : index
    %c8_268 = arith.constant 8 : index
    %c1_269 = arith.constant 1 : index
    %c0_270 = arith.constant 0 : index
    %148 = vector.load %arg1[%c0_267, %c8_268, %c1_269, %c0_270] : memref<1x16x16x4xbf16, #tpu.memory_space<vmem>>, vector<1x1x14x4xbf16>
    %149 = vector.shape_cast %148 : vector<1x1x14x4xbf16> to vector<14x4xbf16>
    %c0_271 = arith.constant 0 : index
    %c8_272 = arith.constant 8 : index
    %c2_273 = arith.constant 2 : index
    %c0_274 = arith.constant 0 : index
    %150 = vector.load %arg1[%c0_271, %c8_272, %c2_273, %c0_274] : memref<1x16x16x4xbf16, #tpu.memory_space<vmem>>, vector<1x1x14x4xbf16>
    %151 = vector.shape_cast %150 : vector<1x1x14x4xbf16> to vector<14x4xbf16>
    %c0_275 = arith.constant 0 : index
    %c9 = arith.constant 9 : index
    %c0_276 = arith.constant 0 : index
    %c0_277 = arith.constant 0 : index
    %152 = vector.load %arg1[%c0_275, %c9, %c0_276, %c0_277] : memref<1x16x16x4xbf16, #tpu.memory_space<vmem>>, vector<1x1x14x4xbf16>
    %153 = vector.shape_cast %152 : vector<1x1x14x4xbf16> to vector<14x4xbf16>
    %c0_278 = arith.constant 0 : index
    %c9_279 = arith.constant 9 : index
    %c1_280 = arith.constant 1 : index
    %c0_281 = arith.constant 0 : index
    %154 = vector.load %arg1[%c0_278, %c9_279, %c1_280, %c0_281] : memref<1x16x16x4xbf16, #tpu.memory_space<vmem>>, vector<1x1x14x4xbf16>
    %155 = vector.shape_cast %154 : vector<1x1x14x4xbf16> to vector<14x4xbf16>
    %c0_282 = arith.constant 0 : index
    %c9_283 = arith.constant 9 : index
    %c2_284 = arith.constant 2 : index
    %c0_285 = arith.constant 0 : index
    %156 = vector.load %arg1[%c0_282, %c9_283, %c2_284, %c0_285] : memref<1x16x16x4xbf16, #tpu.memory_space<vmem>>, vector<1x1x14x4xbf16>
    %157 = vector.shape_cast %156 : vector<1x1x14x4xbf16> to vector<14x4xbf16>
    %158 = tpu.concatenate %141, %143, %145, %147, %149, %151, %153, %155, %157 in 1 : vector<14x4xbf16>, vector<14x4xbf16>, vector<14x4xbf16>, vector<14x4xbf16>, vector<14x4xbf16>, vector<14x4xbf16>, vector<14x4xbf16>, vector<14x4xbf16>, vector<14x4xbf16> -> vector<14x36xbf16>
    %c98 = arith.constant 98 : index
    %c0_286 = arith.constant 0 : index
    %159 = vector.load %arg6[%c98, %c0_286] : memref<196x36xbf16, #tpu.memory_space<vmem>>, vector<14x36xbf16>
    tpu.vector_store %arg6[%c98, %c0_286], %158 {strides = array<i32>} : memref<196x36xbf16, #tpu.memory_space<vmem>>, vector<14x36xbf16>,
    %c0_287 = arith.constant 0 : index
    %c8_288 = arith.constant 8 : index
    %c0_289 = arith.constant 0 : index
    %c0_290 = arith.constant 0 : index
    %160 = vector.load %arg1[%c0_287, %c8_288, %c0_289, %c0_290] : memref<1x16x16x4xbf16, #tpu.memory_space<vmem>>, vector<1x1x14x4xbf16>
    %161 = vector.shape_cast %160 : vector<1x1x14x4xbf16> to vector<14x4xbf16>
    %c0_291 = arith.constant 0 : index
    %c8_292 = arith.constant 8 : index
    %c1_293 = arith.constant 1 : index
    %c0_294 = arith.constant 0 : index
    %162 = vector.load %arg1[%c0_291, %c8_292, %c1_293, %c0_294] : memref<1x16x16x4xbf16, #tpu.memory_space<vmem>>, vector<1x1x14x4xbf16>
    %163 = vector.shape_cast %162 : vector<1x1x14x4xbf16> to vector<14x4xbf16>
    %c0_295 = arith.constant 0 : index
    %c8_296 = arith.constant 8 : index
    %c2_297 = arith.constant 2 : index
    %c0_298 = arith.constant 0 : index
    %164 = vector.load %arg1[%c0_295, %c8_296, %c2_297, %c0_298] : memref<1x16x16x4xbf16, #tpu.memory_space<vmem>>, vector<1x1x14x4xbf16>
    %165 = vector.shape_cast %164 : vector<1x1x14x4xbf16> to vector<14x4xbf16>
    %c0_299 = arith.constant 0 : index
    %c9_300 = arith.constant 9 : index
    %c0_301 = arith.constant 0 : index
    %c0_302 = arith.constant 0 : index
    %166 = vector.load %arg1[%c0_299, %c9_300, %c0_301, %c0_302] : memref<1x16x16x4xbf16, #tpu.memory_space<vmem>>, vector<1x1x14x4xbf16>
    %167 = vector.shape_cast %166 : vector<1x1x14x4xbf16> to vector<14x4xbf16>
    %c0_303 = arith.constant 0 : index
    %c9_304 = arith.constant 9 : index
    %c1_305 = arith.constant 1 : index
    %c0_306 = arith.constant 0 : index
    %168 = vector.load %arg1[%c0_303, %c9_304, %c1_305, %c0_306] : memref<1x16x16x4xbf16, #tpu.memory_space<vmem>>, vector<1x1x14x4xbf16>
    %169 = vector.shape_cast %168 : vector<1x1x14x4xbf16> to vector<14x4xbf16>
    %c0_307 = arith.constant 0 : index
    %c9_308 = arith.constant 9 : index
    %c2_309 = arith.constant 2 : index
    %c0_310 = arith.constant 0 : index
    %170 = vector.load %arg1[%c0_307, %c9_308, %c2_309, %c0_310] : memref<1x16x16x4xbf16, #tpu.memory_space<vmem>>, vector<1x1x14x4xbf16>
    %171 = vector.shape_cast %170 : vector<1x1x14x4xbf16> to vector<14x4xbf16>
    %c0_311 = arith.constant 0 : index
    %c10 = arith.constant 10 : index
    %c0_312 = arith.constant 0 : index
    %c0_313 = arith.constant 0 : index
    %172 = vector.load %arg1[%c0_311, %c10, %c0_312, %c0_313] : memref<1x16x16x4xbf16, #tpu.memory_space<vmem>>, vector<1x1x14x4xbf16>
    %173 = vector.shape_cast %172 : vector<1x1x14x4xbf16> to vector<14x4xbf16>
    %c0_314 = arith.constant 0 : index
    %c10_315 = arith.constant 10 : index
    %c1_316 = arith.constant 1 : index
    %c0_317 = arith.constant 0 : index
    %174 = vector.load %arg1[%c0_314, %c10_315, %c1_316, %c0_317] : memref<1x16x16x4xbf16, #tpu.memory_space<vmem>>, vector<1x1x14x4xbf16>
    %175 = vector.shape_cast %174 : vector<1x1x14x4xbf16> to vector<14x4xbf16>
    %c0_318 = arith.constant 0 : index
    %c10_319 = arith.constant 10 : index
    %c2_320 = arith.constant 2 : index
    %c0_321 = arith.constant 0 : index
    %176 = vector.load %arg1[%c0_318, %c10_319, %c2_320, %c0_321] : memref<1x16x16x4xbf16, #tpu.memory_space<vmem>>, vector<1x1x14x4xbf16>
    %177 = vector.shape_cast %176 : vector<1x1x14x4xbf16> to vector<14x4xbf16>
    %178 = tpu.concatenate %161, %163, %165, %167, %169, %171, %173, %175, %177 in 1 : vector<14x4xbf16>, vector<14x4xbf16>, vector<14x4xbf16>, vector<14x4xbf16>, vector<14x4xbf16>, vector<14x4xbf16>, vector<14x4xbf16>, vector<14x4xbf16>, vector<14x4xbf16> -> vector<14x36xbf16>
    %c112 = arith.constant 112 : index
    %c0_322 = arith.constant 0 : index
    %179 = vector.load %arg6[%c112, %c0_322] : memref<196x36xbf16, #tpu.memory_space<vmem>>, vector<14x36xbf16>
    tpu.vector_store %arg6[%c112, %c0_322], %178 {strides = array<i32>} : memref<196x36xbf16, #tpu.memory_space<vmem>>, vector<14x36xbf16>,
    %c0_323 = arith.constant 0 : index
    %c9_324 = arith.constant 9 : index
    %c0_325 = arith.constant 0 : index
    %c0_326 = arith.constant 0 : index
    %180 = vector.load %arg1[%c0_323, %c9_324, %c0_325, %c0_326] : memref<1x16x16x4xbf16, #tpu.memory_space<vmem>>, vector<1x1x14x4xbf16>
    %181 = vector.shape_cast %180 : vector<1x1x14x4xbf16> to vector<14x4xbf16>
    %c0_327 = arith.constant 0 : index
    %c9_328 = arith.constant 9 : index
    %c1_329 = arith.constant 1 : index
    %c0_330 = arith.constant 0 : index
    %182 = vector.load %arg1[%c0_327, %c9_328, %c1_329, %c0_330] : memref<1x16x16x4xbf16, #tpu.memory_space<vmem>>, vector<1x1x14x4xbf16>
    %183 = vector.shape_cast %182 : vector<1x1x14x4xbf16> to vector<14x4xbf16>
    %c0_331 = arith.constant 0 : index
    %c9_332 = arith.constant 9 : index
    %c2_333 = arith.constant 2 : index
    %c0_334 = arith.constant 0 : index
    %184 = vector.load %arg1[%c0_331, %c9_332, %c2_333, %c0_334] : memref<1x16x16x4xbf16, #tpu.memory_space<vmem>>, vector<1x1x14x4xbf16>
    %185 = vector.shape_cast %184 : vector<1x1x14x4xbf16> to vector<14x4xbf16>
    %c0_335 = arith.constant 0 : index
    %c10_336 = arith.constant 10 : index
    %c0_337 = arith.constant 0 : index
    %c0_338 = arith.constant 0 : index
    %186 = vector.load %arg1[%c0_335, %c10_336, %c0_337, %c0_338] : memref<1x16x16x4xbf16, #tpu.memory_space<vmem>>, vector<1x1x14x4xbf16>
    %187 = vector.shape_cast %186 : vector<1x1x14x4xbf16> to vector<14x4xbf16>
    %c0_339 = arith.constant 0 : index
    %c10_340 = arith.constant 10 : index
    %c1_341 = arith.constant 1 : index
    %c0_342 = arith.constant 0 : index
    %188 = vector.load %arg1[%c0_339, %c10_340, %c1_341, %c0_342] : memref<1x16x16x4xbf16, #tpu.memory_space<vmem>>, vector<1x1x14x4xbf16>
    %189 = vector.shape_cast %188 : vector<1x1x14x4xbf16> to vector<14x4xbf16>
    %c0_343 = arith.constant 0 : index
    %c10_344 = arith.constant 10 : index
    %c2_345 = arith.constant 2 : index
    %c0_346 = arith.constant 0 : index
    %190 = vector.load %arg1[%c0_343, %c10_344, %c2_345, %c0_346] : memref<1x16x16x4xbf16, #tpu.memory_space<vmem>>, vector<1x1x14x4xbf16>
    %191 = vector.shape_cast %190 : vector<1x1x14x4xbf16> to vector<14x4xbf16>
    %c0_347 = arith.constant 0 : index
    %c11 = arith.constant 11 : index
    %c0_348 = arith.constant 0 : index
    %c0_349 = arith.constant 0 : index
    %192 = vector.load %arg1[%c0_347, %c11, %c0_348, %c0_349] : memref<1x16x16x4xbf16, #tpu.memory_space<vmem>>, vector<1x1x14x4xbf16>
    %193 = vector.shape_cast %192 : vector<1x1x14x4xbf16> to vector<14x4xbf16>
    %c0_350 = arith.constant 0 : index
    %c11_351 = arith.constant 11 : index
    %c1_352 = arith.constant 1 : index
    %c0_353 = arith.constant 0 : index
    %194 = vector.load %arg1[%c0_350, %c11_351, %c1_352, %c0_353] : memref<1x16x16x4xbf16, #tpu.memory_space<vmem>>, vector<1x1x14x4xbf16>
    %195 = vector.shape_cast %194 : vector<1x1x14x4xbf16> to vector<14x4xbf16>
    %c0_354 = arith.constant 0 : index
    %c11_355 = arith.constant 11 : index
    %c2_356 = arith.constant 2 : index
    %c0_357 = arith.constant 0 : index
    %196 = vector.load %arg1[%c0_354, %c11_355, %c2_356, %c0_357] : memref<1x16x16x4xbf16, #tpu.memory_space<vmem>>, vector<1x1x14x4xbf16>
    %197 = vector.shape_cast %196 : vector<1x1x14x4xbf16> to vector<14x4xbf16>
    %198 = tpu.concatenate %181, %183, %185, %187, %189, %191, %193, %195, %197 in 1 : vector<14x4xbf16>, vector<14x4xbf16>, vector<14x4xbf16>, vector<14x4xbf16>, vector<14x4xbf16>, vector<14x4xbf16>, vector<14x4xbf16>, vector<14x4xbf16>, vector<14x4xbf16> -> vector<14x36xbf16>
    %c126 = arith.constant 126 : index
    %c0_358 = arith.constant 0 : index
    %199 = vector.load %arg6[%c126, %c0_358] : memref<196x36xbf16, #tpu.memory_space<vmem>>, vector<14x36xbf16>
    tpu.vector_store %arg6[%c126, %c0_358], %198 {strides = array<i32>} : memref<196x36xbf16, #tpu.memory_space<vmem>>, vector<14x36xbf16>,
    %c0_359 = arith.constant 0 : index
    %c10_360 = arith.constant 10 : index
    %c0_361 = arith.constant 0 : index
    %c0_362 = arith.constant 0 : index
    %200 = vector.load %arg1[%c0_359, %c10_360, %c0_361, %c0_362] : memref<1x16x16x4xbf16, #tpu.memory_space<vmem>>, vector<1x1x14x4xbf16>
    %201 = vector.shape_cast %200 : vector<1x1x14x4xbf16> to vector<14x4xbf16>
    %c0_363 = arith.constant 0 : index
    %c10_364 = arith.constant 10 : index
    %c1_365 = arith.constant 1 : index
    %c0_366 = arith.constant 0 : index
    %202 = vector.load %arg1[%c0_363, %c10_364, %c1_365, %c0_366] : memref<1x16x16x4xbf16, #tpu.memory_space<vmem>>, vector<1x1x14x4xbf16>
    %203 = vector.shape_cast %202 : vector<1x1x14x4xbf16> to vector<14x4xbf16>
    %c0_367 = arith.constant 0 : index
    %c10_368 = arith.constant 10 : index
    %c2_369 = arith.constant 2 : index
    %c0_370 = arith.constant 0 : index
    %204 = vector.load %arg1[%c0_367, %c10_368, %c2_369, %c0_370] : memref<1x16x16x4xbf16, #tpu.memory_space<vmem>>, vector<1x1x14x4xbf16>
    %205 = vector.shape_cast %204 : vector<1x1x14x4xbf16> to vector<14x4xbf16>
    %c0_371 = arith.constant 0 : index
    %c11_372 = arith.constant 11 : index
    %c0_373 = arith.constant 0 : index
    %c0_374 = arith.constant 0 : index
    %206 = vector.load %arg1[%c0_371, %c11_372, %c0_373, %c0_374] : memref<1x16x16x4xbf16, #tpu.memory_space<vmem>>, vector<1x1x14x4xbf16>
    %207 = vector.shape_cast %206 : vector<1x1x14x4xbf16> to vector<14x4xbf16>
    %c0_375 = arith.constant 0 : index
    %c11_376 = arith.constant 11 : index
    %c1_377 = arith.constant 1 : index
    %c0_378 = arith.constant 0 : index
    %208 = vector.load %arg1[%c0_375, %c11_376, %c1_377, %c0_378] : memref<1x16x16x4xbf16, #tpu.memory_space<vmem>>, vector<1x1x14x4xbf16>
    %209 = vector.shape_cast %208 : vector<1x1x14x4xbf16> to vector<14x4xbf16>
    %c0_379 = arith.constant 0 : index
    %c11_380 = arith.constant 11 : index
    %c2_381 = arith.constant 2 : index
    %c0_382 = arith.constant 0 : index
    %210 = vector.load %arg1[%c0_379, %c11_380, %c2_381, %c0_382] : memref<1x16x16x4xbf16, #tpu.memory_space<vmem>>, vector<1x1x14x4xbf16>
    %211 = vector.shape_cast %210 : vector<1x1x14x4xbf16> to vector<14x4xbf16>
    %c0_383 = arith.constant 0 : index
    %c12 = arith.constant 12 : index
    %c0_384 = arith.constant 0 : index
    %c0_385 = arith.constant 0 : index
    %212 = vector.load %arg1[%c0_383, %c12, %c0_384, %c0_385] : memref<1x16x16x4xbf16, #tpu.memory_space<vmem>>, vector<1x1x14x4xbf16>
    %213 = vector.shape_cast %212 : vector<1x1x14x4xbf16> to vector<14x4xbf16>
    %c0_386 = arith.constant 0 : index
    %c12_387 = arith.constant 12 : index
    %c1_388 = arith.constant 1 : index
    %c0_389 = arith.constant 0 : index
    %214 = vector.load %arg1[%c0_386, %c12_387, %c1_388, %c0_389] : memref<1x16x16x4xbf16, #tpu.memory_space<vmem>>, vector<1x1x14x4xbf16>
    %215 = vector.shape_cast %214 : vector<1x1x14x4xbf16> to vector<14x4xbf16>
    %c0_390 = arith.constant 0 : index
    %c12_391 = arith.constant 12 : index
    %c2_392 = arith.constant 2 : index
    %c0_393 = arith.constant 0 : index
    %216 = vector.load %arg1[%c0_390, %c12_391, %c2_392, %c0_393] : memref<1x16x16x4xbf16, #tpu.memory_space<vmem>>, vector<1x1x14x4xbf16>
    %217 = vector.shape_cast %216 : vector<1x1x14x4xbf16> to vector<14x4xbf16>
    %218 = tpu.concatenate %201, %203, %205, %207, %209, %211, %213, %215, %217 in 1 : vector<14x4xbf16>, vector<14x4xbf16>, vector<14x4xbf16>, vector<14x4xbf16>, vector<14x4xbf16>, vector<14x4xbf16>, vector<14x4xbf16>, vector<14x4xbf16>, vector<14x4xbf16> -> vector<14x36xbf16>
    %c140 = arith.constant 140 : index
    %c0_394 = arith.constant 0 : index
    %219 = vector.load %arg6[%c140, %c0_394] : memref<196x36xbf16, #tpu.memory_space<vmem>>, vector<14x36xbf16>
    tpu.vector_store %arg6[%c140, %c0_394], %218 {strides = array<i32>} : memref<196x36xbf16, #tpu.memory_space<vmem>>, vector<14x36xbf16>,
    %c0_395 = arith.constant 0 : index
    %c11_396 = arith.constant 11 : index
    %c0_397 = arith.constant 0 : index
    %c0_398 = arith.constant 0 : index
    %220 = vector.load %arg1[%c0_395, %c11_396, %c0_397, %c0_398] : memref<1x16x16x4xbf16, #tpu.memory_space<vmem>>, vector<1x1x14x4xbf16>
    %221 = vector.shape_cast %220 : vector<1x1x14x4xbf16> to vector<14x4xbf16>
    %c0_399 = arith.constant 0 : index
    %c11_400 = arith.constant 11 : index
    %c1_401 = arith.constant 1 : index
    %c0_402 = arith.constant 0 : index
    %222 = vector.load %arg1[%c0_399, %c11_400, %c1_401, %c0_402] : memref<1x16x16x4xbf16, #tpu.memory_space<vmem>>, vector<1x1x14x4xbf16>
    %223 = vector.shape_cast %222 : vector<1x1x14x4xbf16> to vector<14x4xbf16>
    %c0_403 = arith.constant 0 : index
    %c11_404 = arith.constant 11 : index
    %c2_405 = arith.constant 2 : index
    %c0_406 = arith.constant 0 : index
    %224 = vector.load %arg1[%c0_403, %c11_404, %c2_405, %c0_406] : memref<1x16x16x4xbf16, #tpu.memory_space<vmem>>, vector<1x1x14x4xbf16>
    %225 = vector.shape_cast %224 : vector<1x1x14x4xbf16> to vector<14x4xbf16>
    %c0_407 = arith.constant 0 : index
    %c12_408 = arith.constant 12 : index
    %c0_409 = arith.constant 0 : index
    %c0_410 = arith.constant 0 : index
    %226 = vector.load %arg1[%c0_407, %c12_408, %c0_409, %c0_410] : memref<1x16x16x4xbf16, #tpu.memory_space<vmem>>, vector<1x1x14x4xbf16>
    %227 = vector.shape_cast %226 : vector<1x1x14x4xbf16> to vector<14x4xbf16>
    %c0_411 = arith.constant 0 : index
    %c12_412 = arith.constant 12 : index
    %c1_413 = arith.constant 1 : index
    %c0_414 = arith.constant 0 : index
    %228 = vector.load %arg1[%c0_411, %c12_412, %c1_413, %c0_414] : memref<1x16x16x4xbf16, #tpu.memory_space<vmem>>, vector<1x1x14x4xbf16>
    %229 = vector.shape_cast %228 : vector<1x1x14x4xbf16> to vector<14x4xbf16>
    %c0_415 = arith.constant 0 : index
    %c12_416 = arith.constant 12 : index
    %c2_417 = arith.constant 2 : index
    %c0_418 = arith.constant 0 : index
    %230 = vector.load %arg1[%c0_415, %c12_416, %c2_417, %c0_418] : memref<1x16x16x4xbf16, #tpu.memory_space<vmem>>, vector<1x1x14x4xbf16>
    %231 = vector.shape_cast %230 : vector<1x1x14x4xbf16> to vector<14x4xbf16>
    %c0_419 = arith.constant 0 : index
    %c13 = arith.constant 13 : index
    %c0_420 = arith.constant 0 : index
    %c0_421 = arith.constant 0 : index
    %232 = vector.load %arg1[%c0_419, %c13, %c0_420, %c0_421] : memref<1x16x16x4xbf16, #tpu.memory_space<vmem>>, vector<1x1x14x4xbf16>
    %233 = vector.shape_cast %232 : vector<1x1x14x4xbf16> to vector<14x4xbf16>
    %c0_422 = arith.constant 0 : index
    %c13_423 = arith.constant 13 : index
    %c1_424 = arith.constant 1 : index
    %c0_425 = arith.constant 0 : index
    %234 = vector.load %arg1[%c0_422, %c13_423, %c1_424, %c0_425] : memref<1x16x16x4xbf16, #tpu.memory_space<vmem>>, vector<1x1x14x4xbf16>
    %235 = vector.shape_cast %234 : vector<1x1x14x4xbf16> to vector<14x4xbf16>
    %c0_426 = arith.constant 0 : index
    %c13_427 = arith.constant 13 : index
    %c2_428 = arith.constant 2 : index
    %c0_429 = arith.constant 0 : index
    %236 = vector.load %arg1[%c0_426, %c13_427, %c2_428, %c0_429] : memref<1x16x16x4xbf16, #tpu.memory_space<vmem>>, vector<1x1x14x4xbf16>
    %237 = vector.shape_cast %236 : vector<1x1x14x4xbf16> to vector<14x4xbf16>
    %238 = tpu.concatenate %221, %223, %225, %227, %229, %231, %233, %235, %237 in 1 : vector<14x4xbf16>, vector<14x4xbf16>, vector<14x4xbf16>, vector<14x4xbf16>, vector<14x4xbf16>, vector<14x4xbf16>, vector<14x4xbf16>, vector<14x4xbf16>, vector<14x4xbf16> -> vector<14x36xbf16>
    %c154 = arith.constant 154 : index
    %c0_430 = arith.constant 0 : index
    %239 = vector.load %arg6[%c154, %c0_430] : memref<196x36xbf16, #tpu.memory_space<vmem>>, vector<14x36xbf16>
    tpu.vector_store %arg6[%c154, %c0_430], %238 {strides = array<i32>} : memref<196x36xbf16, #tpu.memory_space<vmem>>, vector<14x36xbf16>,
    %c0_431 = arith.constant 0 : index
    %c12_432 = arith.constant 12 : index
    %c0_433 = arith.constant 0 : index
    %c0_434 = arith.constant 0 : index
    %240 = vector.load %arg1[%c0_431, %c12_432, %c0_433, %c0_434] : memref<1x16x16x4xbf16, #tpu.memory_space<vmem>>, vector<1x1x14x4xbf16>
    %241 = vector.shape_cast %240 : vector<1x1x14x4xbf16> to vector<14x4xbf16>
    %c0_435 = arith.constant 0 : index
    %c12_436 = arith.constant 12 : index
    %c1_437 = arith.constant 1 : index
    %c0_438 = arith.constant 0 : index
    %242 = vector.load %arg1[%c0_435, %c12_436, %c1_437, %c0_438] : memref<1x16x16x4xbf16, #tpu.memory_space<vmem>>, vector<1x1x14x4xbf16>
    %243 = vector.shape_cast %242 : vector<1x1x14x4xbf16> to vector<14x4xbf16>
    %c0_439 = arith.constant 0 : index
    %c12_440 = arith.constant 12 : index
    %c2_441 = arith.constant 2 : index
    %c0_442 = arith.constant 0 : index
    %244 = vector.load %arg1[%c0_439, %c12_440, %c2_441, %c0_442] : memref<1x16x16x4xbf16, #tpu.memory_space<vmem>>, vector<1x1x14x4xbf16>
    %245 = vector.shape_cast %244 : vector<1x1x14x4xbf16> to vector<14x4xbf16>
    %c0_443 = arith.constant 0 : index
    %c13_444 = arith.constant 13 : index
    %c0_445 = arith.constant 0 : index
    %c0_446 = arith.constant 0 : index
    %246 = vector.load %arg1[%c0_443, %c13_444, %c0_445, %c0_446] : memref<1x16x16x4xbf16, #tpu.memory_space<vmem>>, vector<1x1x14x4xbf16>
    %247 = vector.shape_cast %246 : vector<1x1x14x4xbf16> to vector<14x4xbf16>
    %c0_447 = arith.constant 0 : index
    %c13_448 = arith.constant 13 : index
    %c1_449 = arith.constant 1 : index
    %c0_450 = arith.constant 0 : index
    %248 = vector.load %arg1[%c0_447, %c13_448, %c1_449, %c0_450] : memref<1x16x16x4xbf16, #tpu.memory_space<vmem>>, vector<1x1x14x4xbf16>
    %249 = vector.shape_cast %248 : vector<1x1x14x4xbf16> to vector<14x4xbf16>
    %c0_451 = arith.constant 0 : index
    %c13_452 = arith.constant 13 : index
    %c2_453 = arith.constant 2 : index
    %c0_454 = arith.constant 0 : index
    %250 = vector.load %arg1[%c0_451, %c13_452, %c2_453, %c0_454] : memref<1x16x16x4xbf16, #tpu.memory_space<vmem>>, vector<1x1x14x4xbf16>
    %251 = vector.shape_cast %250 : vector<1x1x14x4xbf16> to vector<14x4xbf16>
    %c0_455 = arith.constant 0 : index
    %c14_456 = arith.constant 14 : index
    %c0_457 = arith.constant 0 : index
    %c0_458 = arith.constant 0 : index
    %252 = vector.load %arg1[%c0_455, %c14_456, %c0_457, %c0_458] : memref<1x16x16x4xbf16, #tpu.memory_space<vmem>>, vector<1x1x14x4xbf16>
    %253 = vector.shape_cast %252 : vector<1x1x14x4xbf16> to vector<14x4xbf16>
    %c0_459 = arith.constant 0 : index
    %c14_460 = arith.constant 14 : index
    %c1_461 = arith.constant 1 : index
    %c0_462 = arith.constant 0 : index
    %254 = vector.load %arg1[%c0_459, %c14_460, %c1_461, %c0_462] : memref<1x16x16x4xbf16, #tpu.memory_space<vmem>>, vector<1x1x14x4xbf16>
    %255 = vector.shape_cast %254 : vector<1x1x14x4xbf16> to vector<14x4xbf16>
    %c0_463 = arith.constant 0 : index
    %c14_464 = arith.constant 14 : index
    %c2_465 = arith.constant 2 : index
    %c0_466 = arith.constant 0 : index
    %256 = vector.load %arg1[%c0_463, %c14_464, %c2_465, %c0_466] : memref<1x16x16x4xbf16, #tpu.memory_space<vmem>>, vector<1x1x14x4xbf16>
    %257 = vector.shape_cast %256 : vector<1x1x14x4xbf16> to vector<14x4xbf16>
    %258 = tpu.concatenate %241, %243, %245, %247, %249, %251, %253, %255, %257 in 1 : vector<14x4xbf16>, vector<14x4xbf16>, vector<14x4xbf16>, vector<14x4xbf16>, vector<14x4xbf16>, vector<14x4xbf16>, vector<14x4xbf16>, vector<14x4xbf16>, vector<14x4xbf16> -> vector<14x36xbf16>
    %c168 = arith.constant 168 : index
    %c0_467 = arith.constant 0 : index
    %259 = vector.load %arg6[%c168, %c0_467] : memref<196x36xbf16, #tpu.memory_space<vmem>>, vector<14x36xbf16>
    tpu.vector_store %arg6[%c168, %c0_467], %258 {strides = array<i32>} : memref<196x36xbf16, #tpu.memory_space<vmem>>, vector<14x36xbf16>,
    %c0_468 = arith.constant 0 : index
    %c13_469 = arith.constant 13 : index
    %c0_470 = arith.constant 0 : index
    %c0_471 = arith.constant 0 : index
    %260 = vector.load %arg1[%c0_468, %c13_469, %c0_470, %c0_471] : memref<1x16x16x4xbf16, #tpu.memory_space<vmem>>, vector<1x1x14x4xbf16>
    %261 = vector.shape_cast %260 : vector<1x1x14x4xbf16> to vector<14x4xbf16>
    %c0_472 = arith.constant 0 : index
    %c13_473 = arith.constant 13 : index
    %c1_474 = arith.constant 1 : index
    %c0_475 = arith.constant 0 : index
    %262 = vector.load %arg1[%c0_472, %c13_473, %c1_474, %c0_475] : memref<1x16x16x4xbf16, #tpu.memory_space<vmem>>, vector<1x1x14x4xbf16>
    %263 = vector.shape_cast %262 : vector<1x1x14x4xbf16> to vector<14x4xbf16>
    %c0_476 = arith.constant 0 : index
    %c13_477 = arith.constant 13 : index
    %c2_478 = arith.constant 2 : index
    %c0_479 = arith.constant 0 : index
    %264 = vector.load %arg1[%c0_476, %c13_477, %c2_478, %c0_479] : memref<1x16x16x4xbf16, #tpu.memory_space<vmem>>, vector<1x1x14x4xbf16>
    %265 = vector.shape_cast %264 : vector<1x1x14x4xbf16> to vector<14x4xbf16>
    %c0_480 = arith.constant 0 : index
    %c14_481 = arith.constant 14 : index
    %c0_482 = arith.constant 0 : index
    %c0_483 = arith.constant 0 : index
    %266 = vector.load %arg1[%c0_480, %c14_481, %c0_482, %c0_483] : memref<1x16x16x4xbf16, #tpu.memory_space<vmem>>, vector<1x1x14x4xbf16>
    %267 = vector.shape_cast %266 : vector<1x1x14x4xbf16> to vector<14x4xbf16>
    %c0_484 = arith.constant 0 : index
    %c14_485 = arith.constant 14 : index
    %c1_486 = arith.constant 1 : index
    %c0_487 = arith.constant 0 : index
    %268 = vector.load %arg1[%c0_484, %c14_485, %c1_486, %c0_487] : memref<1x16x16x4xbf16, #tpu.memory_space<vmem>>, vector<1x1x14x4xbf16>
    %269 = vector.shape_cast %268 : vector<1x1x14x4xbf16> to vector<14x4xbf16>
    %c0_488 = arith.constant 0 : index
    %c14_489 = arith.constant 14 : index
    %c2_490 = arith.constant 2 : index
    %c0_491 = arith.constant 0 : index
    %270 = vector.load %arg1[%c0_488, %c14_489, %c2_490, %c0_491] : memref<1x16x16x4xbf16, #tpu.memory_space<vmem>>, vector<1x1x14x4xbf16>
    %271 = vector.shape_cast %270 : vector<1x1x14x4xbf16> to vector<14x4xbf16>
    %c0_492 = arith.constant 0 : index
    %c15 = arith.constant 15 : index
    %c0_493 = arith.constant 0 : index
    %c0_494 = arith.constant 0 : index
    %272 = vector.load %arg1[%c0_492, %c15, %c0_493, %c0_494] : memref<1x16x16x4xbf16, #tpu.memory_space<vmem>>, vector<1x1x14x4xbf16>
    %273 = vector.shape_cast %272 : vector<1x1x14x4xbf16> to vector<14x4xbf16>
    %c0_495 = arith.constant 0 : index
    %c15_496 = arith.constant 15 : index
    %c1_497 = arith.constant 1 : index
    %c0_498 = arith.constant 0 : index
    %274 = vector.load %arg1[%c0_495, %c15_496, %c1_497, %c0_498] : memref<1x16x16x4xbf16, #tpu.memory_space<vmem>>, vector<1x1x14x4xbf16>
    %275 = vector.shape_cast %274 : vector<1x1x14x4xbf16> to vector<14x4xbf16>
    %c0_499 = arith.constant 0 : index
    %c15_500 = arith.constant 15 : index
    %c2_501 = arith.constant 2 : index
    %c0_502 = arith.constant 0 : index
    %276 = vector.load %arg1[%c0_499, %c15_500, %c2_501, %c0_502] : memref<1x16x16x4xbf16, #tpu.memory_space<vmem>>, vector<1x1x14x4xbf16>
    %277 = vector.shape_cast %276 : vector<1x1x14x4xbf16> to vector<14x4xbf16>
    %278 = tpu.concatenate %261, %263, %265, %267, %269, %271, %273, %275, %277 in 1 : vector<14x4xbf16>, vector<14x4xbf16>, vector<14x4xbf16>, vector<14x4xbf16>, vector<14x4xbf16>, vector<14x4xbf16>, vector<14x4xbf16>, vector<14x4xbf16>, vector<14x4xbf16> -> vector<14x36xbf16>
    %c182 = arith.constant 182 : index
    %c0_503 = arith.constant 0 : index
    %279 = vector.load %arg6[%c182, %c0_503] : memref<196x36xbf16, #tpu.memory_space<vmem>>, vector<14x36xbf16>
    tpu.vector_store %arg6[%c182, %c0_503], %278 {strides = array<i32>} : memref<196x36xbf16, #tpu.memory_space<vmem>>, vector<14x36xbf16>,
    %c0_504 = arith.constant 0 : index
    %c0_505 = arith.constant 0 : index
    %280 = vector.load %arg6[%c0_504, %c0_505] : memref<196x36xbf16, #tpu.memory_space<vmem>>, vector<196x36xbf16>
    %c0_506 = arith.constant 0 : index
    %c0_507 = arith.constant 0 : index
    %281 = vector.load %arg2[%c0_506, %c0_507] : memref<36x128xbf16, #tpu.memory_space<vmem>>, vector<36x128xbf16>
    %cst = arith.constant dense<0.000000e+00> : vector<196x128xf32>
    %282 = tpu.matmul %280, %281, %cst {dimension_numbers = #tpu.dot_dimension_numbers<[1], [0], [0], [1], [0, 0, 1, 1], [], []>} : vector<196x36xbf16>, vector<36x128xbf16>, vector<196x128xf32> -> vector<196x128xf32>
    %c0_508 = arith.constant 0 : index
    %c0_509 = arith.constant 0 : index
    %283 = vector.load %arg3[%c0_508, %c0_509] : memref<1x128xf32, #tpu.memory_space<vmem>>, vector<1x128xf32>
    %284 = vector.broadcast %283 : vector<1x128xf32> to vector<196x128xf32>
    %285 = arith.addf %282, %284 : vector<196x128xf32>
    %cst_510 = arith.constant 0.000000e+00 : f32
    %286 = vector.broadcast %cst_510 : f32 to vector<196x128xf32>
    %287 = arith.maximumf %285, %286 : vector<196x128xf32>
    %288 = vector.extract_strided_slice %287 {offsets = [0, 0], sizes = [196, 8], strides = [1, 1]} : vector<196x128xf32> to vector<196x8xf32>
    %289 = arith.truncf %288 : vector<196x8xf32> to vector<196x8xbf16>
    %c0_511 = arith.constant 0 : index
    %c0_512 = arith.constant 0 : index
    %c0_513 = arith.constant 0 : index
    %290 = vector.load %arg4[%c0_511, %c0_512, %c0_513] : memref<1x196x8xbf16, #tpu.memory_space<vmem>>, vector<1x196x8xbf16>
    %291 = vector.shape_cast %290 : vector<1x196x8xbf16> to vector<196x8xbf16>
    %292 = vector.shape_cast %289 : vector<196x8xbf16> to vector<1x196x8xbf16>
    tpu.vector_store %arg4[%c0_511, %c0_512, %c0_513], %292 {strides = array<i32>} : memref<1x196x8xbf16, #tpu.memory_space<vmem>>, vector<1x196x8xbf16>,
    %cst_514 = arith.constant dense<0.000000e+00> : vector<128xf32>
    %293 = vector.multi_reduction <add>, %287, %cst_514 [0] : vector<196x128xf32> to vector<128xf32>
    %294 = vector.shape_cast %293 : vector<128xf32> to vector<1x128xf32>
    %295 = arith.mulf %287, %287 : vector<196x128xf32>
    %cst_515 = arith.constant dense<0.000000e+00> : vector<128xf32>
    %296 = vector.multi_reduction <add>, %295, %cst_515 [0] : vector<196x128xf32> to vector<128xf32>
    %297 = vector.shape_cast %296 : vector<128xf32> to vector<1x128xf32>
    %298 = tpu.concatenate %294, %297 in 1 : vector<1x128xf32>, vector<1x128xf32> -> vector<1x256xf32>
    %299 = vector.shape_cast %298 : vector<1x256xf32> to vector<1x256xf32>
    %300 = vector.broadcast %299 : vector<1x256xf32> to vector<8x256xf32>
    %c0_516 = arith.constant 0 : index
    %c0_517 = arith.constant 0 : index
    %c0_518 = arith.constant 0 : index
    %301 = vector.load %arg5[%c0_516, %c0_517, %c0_518] : memref<1x8x256xf32, #tpu.memory_space<vmem>>, vector<1x8x256xf32>
    %302 = vector.shape_cast %301 : vector<1x8x256xf32> to vector<8x256xf32>
    %303 = vector.shape_cast %300 : vector<8x256xf32> to vector<1x8x256xf32>
    tpu.vector_store %arg5[%c0_516, %c0_517, %c0_518], %303 {strides = array<i32>} : memref<1x8x256xf32, #tpu.memory_space<vmem>>, vector<1x8x256xf32>,
    return
  }
  func.func @transform_0(%arg0: i32) -> (i32, i32, i32, i32) {
    %c0_i32 = arith.constant 0 : i32
    %c0_i32_0 = arith.constant 0 : i32
    %c0_i32_1 = arith.constant 0 : i32
    %c0_i32_2 = arith.constant 0 : i32
    return %arg0, %c0_i32, %c0_i32_0, %c0_i32_1 : i32, i32, i32, i32
  }
  func.func @transform_1(%arg0: i32) -> (i32, i32) {
    %c0_i32 = arith.constant 0 : i32
    %c0_i32_0 = arith.constant 0 : i32
    %c0_i32_1 = arith.constant 0 : i32
    return %c0_i32, %c0_i32_0 : i32, i32
  }
  func.func @transform_2(%arg0: i32) -> (i32, i32) {
    %c0_i32 = arith.constant 0 : i32
    %c0_i32_0 = arith.constant 0 : i32
    %c0_i32_1 = arith.constant 0 : i32
    return %c0_i32, %c0_i32_0 : i32, i32
  }
  func.func @transform_3(%arg0: i32) -> (i32, i32, i32) {
    %c0_i32 = arith.constant 0 : i32
    %c0_i32_0 = arith.constant 0 : i32
    %c0_i32_1 = arith.constant 0 : i32
    return %arg0, %c0_i32, %c0_i32_0 : i32, i32, i32
  }
  func.func @transform_4(%arg0: i32) -> (i32, i32, i32) {
    %c0_i32 = arith.constant 0 : i32
    %c0_i32_0 = arith.constant 0 : i32
    %c0_i32_1 = arith.constant 0 : i32
    return %arg0, %c0_i32, %c0_i32_0 : i32, i32, i32
  }
}

module attributes {stable_mosaic.version = 11 : i64} {
  func.func @_conv_relu_stats_kernel(%arg0: i32, %arg1: memref<1x14x14x8xbf16, #tpu.memory_space<vmem>>, %arg2: memref<72x128xbf16, #tpu.memory_space<vmem>>, %arg3: memref<1x128xf32, #tpu.memory_space<vmem>>, %arg4: memref<1x144x16xbf16, #tpu.memory_space<vmem>>, %arg5: memref<1x8x256xf32, #tpu.memory_space<vmem>>, %arg6: memref<144x72xbf16, #tpu.memory_space<vmem>>) attributes {dimension_semantics = [#tpu.dimension_semantics<parallel>], iteration_bounds = array<i64: 2>, scalar_prefetch = 0 : i64, scratch_operands = 1 : i64, tpu.core_type = #tpu.core_type<tc>, window_params = [{transform_indices = @transform_0, window_bounds = array<i64: 1, 14, 14, 8>}, {pipeline_mode = #tpu.pipeline_mode<synchronous>, transform_indices = @transform_1, window_bounds = array<i64: 72, 128>}, {pipeline_mode = #tpu.pipeline_mode<synchronous>, transform_indices = @transform_2, window_bounds = array<i64: 1, 128>}, {transform_indices = @transform_3, window_bounds = array<i64: 1, 144, 16>}, {transform_indices = @transform_4, window_bounds = array<i64: 1, 8, 256>}]} {
    %c0 = arith.constant 0 : index
    %c0_0 = arith.constant 0 : index
    %c0_1 = arith.constant 0 : index
    %c0_2 = arith.constant 0 : index
    %0 = vector.load %arg1[%c0, %c0_0, %c0_1, %c0_2] : memref<1x14x14x8xbf16, #tpu.memory_space<vmem>>, vector<1x1x12x8xbf16>
    %1 = vector.shape_cast %0 : vector<1x1x12x8xbf16> to vector<12x8xbf16>
    %c0_3 = arith.constant 0 : index
    %c0_4 = arith.constant 0 : index
    %c1 = arith.constant 1 : index
    %c0_5 = arith.constant 0 : index
    %2 = vector.load %arg1[%c0_3, %c0_4, %c1, %c0_5] : memref<1x14x14x8xbf16, #tpu.memory_space<vmem>>, vector<1x1x12x8xbf16>
    %3 = vector.shape_cast %2 : vector<1x1x12x8xbf16> to vector<12x8xbf16>
    %c0_6 = arith.constant 0 : index
    %c0_7 = arith.constant 0 : index
    %c2 = arith.constant 2 : index
    %c0_8 = arith.constant 0 : index
    %4 = vector.load %arg1[%c0_6, %c0_7, %c2, %c0_8] : memref<1x14x14x8xbf16, #tpu.memory_space<vmem>>, vector<1x1x12x8xbf16>
    %5 = vector.shape_cast %4 : vector<1x1x12x8xbf16> to vector<12x8xbf16>
    %c0_9 = arith.constant 0 : index
    %c1_10 = arith.constant 1 : index
    %c0_11 = arith.constant 0 : index
    %c0_12 = arith.constant 0 : index
    %6 = vector.load %arg1[%c0_9, %c1_10, %c0_11, %c0_12] : memref<1x14x14x8xbf16, #tpu.memory_space<vmem>>, vector<1x1x12x8xbf16>
    %7 = vector.shape_cast %6 : vector<1x1x12x8xbf16> to vector<12x8xbf16>
    %c0_13 = arith.constant 0 : index
    %c1_14 = arith.constant 1 : index
    %c1_15 = arith.constant 1 : index
    %c0_16 = arith.constant 0 : index
    %8 = vector.load %arg1[%c0_13, %c1_14, %c1_15, %c0_16] : memref<1x14x14x8xbf16, #tpu.memory_space<vmem>>, vector<1x1x12x8xbf16>
    %9 = vector.shape_cast %8 : vector<1x1x12x8xbf16> to vector<12x8xbf16>
    %c0_17 = arith.constant 0 : index
    %c1_18 = arith.constant 1 : index
    %c2_19 = arith.constant 2 : index
    %c0_20 = arith.constant 0 : index
    %10 = vector.load %arg1[%c0_17, %c1_18, %c2_19, %c0_20] : memref<1x14x14x8xbf16, #tpu.memory_space<vmem>>, vector<1x1x12x8xbf16>
    %11 = vector.shape_cast %10 : vector<1x1x12x8xbf16> to vector<12x8xbf16>
    %c0_21 = arith.constant 0 : index
    %c2_22 = arith.constant 2 : index
    %c0_23 = arith.constant 0 : index
    %c0_24 = arith.constant 0 : index
    %12 = vector.load %arg1[%c0_21, %c2_22, %c0_23, %c0_24] : memref<1x14x14x8xbf16, #tpu.memory_space<vmem>>, vector<1x1x12x8xbf16>
    %13 = vector.shape_cast %12 : vector<1x1x12x8xbf16> to vector<12x8xbf16>
    %c0_25 = arith.constant 0 : index
    %c2_26 = arith.constant 2 : index
    %c1_27 = arith.constant 1 : index
    %c0_28 = arith.constant 0 : index
    %14 = vector.load %arg1[%c0_25, %c2_26, %c1_27, %c0_28] : memref<1x14x14x8xbf16, #tpu.memory_space<vmem>>, vector<1x1x12x8xbf16>
    %15 = vector.shape_cast %14 : vector<1x1x12x8xbf16> to vector<12x8xbf16>
    %c0_29 = arith.constant 0 : index
    %c2_30 = arith.constant 2 : index
    %c2_31 = arith.constant 2 : index
    %c0_32 = arith.constant 0 : index
    %16 = vector.load %arg1[%c0_29, %c2_30, %c2_31, %c0_32] : memref<1x14x14x8xbf16, #tpu.memory_space<vmem>>, vector<1x1x12x8xbf16>
    %17 = vector.shape_cast %16 : vector<1x1x12x8xbf16> to vector<12x8xbf16>
    %18 = tpu.concatenate %1, %3, %5, %7, %9, %11, %13, %15, %17 in 1 : vector<12x8xbf16>, vector<12x8xbf16>, vector<12x8xbf16>, vector<12x8xbf16>, vector<12x8xbf16>, vector<12x8xbf16>, vector<12x8xbf16>, vector<12x8xbf16>, vector<12x8xbf16> -> vector<12x72xbf16>
    %c0_33 = arith.constant 0 : index
    %c0_34 = arith.constant 0 : index
    %19 = vector.load %arg6[%c0_33, %c0_34] : memref<144x72xbf16, #tpu.memory_space<vmem>>, vector<12x72xbf16>
    tpu.vector_store %arg6[%c0_33, %c0_34], %18 {strides = array<i32>} : memref<144x72xbf16, #tpu.memory_space<vmem>>, vector<12x72xbf16>,
    %c0_35 = arith.constant 0 : index
    %c1_36 = arith.constant 1 : index
    %c0_37 = arith.constant 0 : index
    %c0_38 = arith.constant 0 : index
    %20 = vector.load %arg1[%c0_35, %c1_36, %c0_37, %c0_38] : memref<1x14x14x8xbf16, #tpu.memory_space<vmem>>, vector<1x1x12x8xbf16>
    %21 = vector.shape_cast %20 : vector<1x1x12x8xbf16> to vector<12x8xbf16>
    %c0_39 = arith.constant 0 : index
    %c1_40 = arith.constant 1 : index
    %c1_41 = arith.constant 1 : index
    %c0_42 = arith.constant 0 : index
    %22 = vector.load %arg1[%c0_39, %c1_40, %c1_41, %c0_42] : memref<1x14x14x8xbf16, #tpu.memory_space<vmem>>, vector<1x1x12x8xbf16>
    %23 = vector.shape_cast %22 : vector<1x1x12x8xbf16> to vector<12x8xbf16>
    %c0_43 = arith.constant 0 : index
    %c1_44 = arith.constant 1 : index
    %c2_45 = arith.constant 2 : index
    %c0_46 = arith.constant 0 : index
    %24 = vector.load %arg1[%c0_43, %c1_44, %c2_45, %c0_46] : memref<1x14x14x8xbf16, #tpu.memory_space<vmem>>, vector<1x1x12x8xbf16>
    %25 = vector.shape_cast %24 : vector<1x1x12x8xbf16> to vector<12x8xbf16>
    %c0_47 = arith.constant 0 : index
    %c2_48 = arith.constant 2 : index
    %c0_49 = arith.constant 0 : index
    %c0_50 = arith.constant 0 : index
    %26 = vector.load %arg1[%c0_47, %c2_48, %c0_49, %c0_50] : memref<1x14x14x8xbf16, #tpu.memory_space<vmem>>, vector<1x1x12x8xbf16>
    %27 = vector.shape_cast %26 : vector<1x1x12x8xbf16> to vector<12x8xbf16>
    %c0_51 = arith.constant 0 : index
    %c2_52 = arith.constant 2 : index
    %c1_53 = arith.constant 1 : index
    %c0_54 = arith.constant 0 : index
    %28 = vector.load %arg1[%c0_51, %c2_52, %c1_53, %c0_54] : memref<1x14x14x8xbf16, #tpu.memory_space<vmem>>, vector<1x1x12x8xbf16>
    %29 = vector.shape_cast %28 : vector<1x1x12x8xbf16> to vector<12x8xbf16>
    %c0_55 = arith.constant 0 : index
    %c2_56 = arith.constant 2 : index
    %c2_57 = arith.constant 2 : index
    %c0_58 = arith.constant 0 : index
    %30 = vector.load %arg1[%c0_55, %c2_56, %c2_57, %c0_58] : memref<1x14x14x8xbf16, #tpu.memory_space<vmem>>, vector<1x1x12x8xbf16>
    %31 = vector.shape_cast %30 : vector<1x1x12x8xbf16> to vector<12x8xbf16>
    %c0_59 = arith.constant 0 : index
    %c3 = arith.constant 3 : index
    %c0_60 = arith.constant 0 : index
    %c0_61 = arith.constant 0 : index
    %32 = vector.load %arg1[%c0_59, %c3, %c0_60, %c0_61] : memref<1x14x14x8xbf16, #tpu.memory_space<vmem>>, vector<1x1x12x8xbf16>
    %33 = vector.shape_cast %32 : vector<1x1x12x8xbf16> to vector<12x8xbf16>
    %c0_62 = arith.constant 0 : index
    %c3_63 = arith.constant 3 : index
    %c1_64 = arith.constant 1 : index
    %c0_65 = arith.constant 0 : index
    %34 = vector.load %arg1[%c0_62, %c3_63, %c1_64, %c0_65] : memref<1x14x14x8xbf16, #tpu.memory_space<vmem>>, vector<1x1x12x8xbf16>
    %35 = vector.shape_cast %34 : vector<1x1x12x8xbf16> to vector<12x8xbf16>
    %c0_66 = arith.constant 0 : index
    %c3_67 = arith.constant 3 : index
    %c2_68 = arith.constant 2 : index
    %c0_69 = arith.constant 0 : index
    %36 = vector.load %arg1[%c0_66, %c3_67, %c2_68, %c0_69] : memref<1x14x14x8xbf16, #tpu.memory_space<vmem>>, vector<1x1x12x8xbf16>
    %37 = vector.shape_cast %36 : vector<1x1x12x8xbf16> to vector<12x8xbf16>
    %38 = tpu.concatenate %21, %23, %25, %27, %29, %31, %33, %35, %37 in 1 : vector<12x8xbf16>, vector<12x8xbf16>, vector<12x8xbf16>, vector<12x8xbf16>, vector<12x8xbf16>, vector<12x8xbf16>, vector<12x8xbf16>, vector<12x8xbf16>, vector<12x8xbf16> -> vector<12x72xbf16>
    %c12 = arith.constant 12 : index
    %c0_70 = arith.constant 0 : index
    %39 = vector.load %arg6[%c12, %c0_70] : memref<144x72xbf16, #tpu.memory_space<vmem>>, vector<12x72xbf16>
    tpu.vector_store %arg6[%c12, %c0_70], %38 {strides = array<i32>} : memref<144x72xbf16, #tpu.memory_space<vmem>>, vector<12x72xbf16>,
    %c0_71 = arith.constant 0 : index
    %c2_72 = arith.constant 2 : index
    %c0_73 = arith.constant 0 : index
    %c0_74 = arith.constant 0 : index
    %40 = vector.load %arg1[%c0_71, %c2_72, %c0_73, %c0_74] : memref<1x14x14x8xbf16, #tpu.memory_space<vmem>>, vector<1x1x12x8xbf16>
    %41 = vector.shape_cast %40 : vector<1x1x12x8xbf16> to vector<12x8xbf16>
    %c0_75 = arith.constant 0 : index
    %c2_76 = arith.constant 2 : index
    %c1_77 = arith.constant 1 : index
    %c0_78 = arith.constant 0 : index
    %42 = vector.load %arg1[%c0_75, %c2_76, %c1_77, %c0_78] : memref<1x14x14x8xbf16, #tpu.memory_space<vmem>>, vector<1x1x12x8xbf16>
    %43 = vector.shape_cast %42 : vector<1x1x12x8xbf16> to vector<12x8xbf16>
    %c0_79 = arith.constant 0 : index
    %c2_80 = arith.constant 2 : index
    %c2_81 = arith.constant 2 : index
    %c0_82 = arith.constant 0 : index
    %44 = vector.load %arg1[%c0_79, %c2_80, %c2_81, %c0_82] : memref<1x14x14x8xbf16, #tpu.memory_space<vmem>>, vector<1x1x12x8xbf16>
    %45 = vector.shape_cast %44 : vector<1x1x12x8xbf16> to vector<12x8xbf16>
    %c0_83 = arith.constant 0 : index
    %c3_84 = arith.constant 3 : index
    %c0_85 = arith.constant 0 : index
    %c0_86 = arith.constant 0 : index
    %46 = vector.load %arg1[%c0_83, %c3_84, %c0_85, %c0_86] : memref<1x14x14x8xbf16, #tpu.memory_space<vmem>>, vector<1x1x12x8xbf16>
    %47 = vector.shape_cast %46 : vector<1x1x12x8xbf16> to vector<12x8xbf16>
    %c0_87 = arith.constant 0 : index
    %c3_88 = arith.constant 3 : index
    %c1_89 = arith.constant 1 : index
    %c0_90 = arith.constant 0 : index
    %48 = vector.load %arg1[%c0_87, %c3_88, %c1_89, %c0_90] : memref<1x14x14x8xbf16, #tpu.memory_space<vmem>>, vector<1x1x12x8xbf16>
    %49 = vector.shape_cast %48 : vector<1x1x12x8xbf16> to vector<12x8xbf16>
    %c0_91 = arith.constant 0 : index
    %c3_92 = arith.constant 3 : index
    %c2_93 = arith.constant 2 : index
    %c0_94 = arith.constant 0 : index
    %50 = vector.load %arg1[%c0_91, %c3_92, %c2_93, %c0_94] : memref<1x14x14x8xbf16, #tpu.memory_space<vmem>>, vector<1x1x12x8xbf16>
    %51 = vector.shape_cast %50 : vector<1x1x12x8xbf16> to vector<12x8xbf16>
    %c0_95 = arith.constant 0 : index
    %c4 = arith.constant 4 : index
    %c0_96 = arith.constant 0 : index
    %c0_97 = arith.constant 0 : index
    %52 = vector.load %arg1[%c0_95, %c4, %c0_96, %c0_97] : memref<1x14x14x8xbf16, #tpu.memory_space<vmem>>, vector<1x1x12x8xbf16>
    %53 = vector.shape_cast %52 : vector<1x1x12x8xbf16> to vector<12x8xbf16>
    %c0_98 = arith.constant 0 : index
    %c4_99 = arith.constant 4 : index
    %c1_100 = arith.constant 1 : index
    %c0_101 = arith.constant 0 : index
    %54 = vector.load %arg1[%c0_98, %c4_99, %c1_100, %c0_101] : memref<1x14x14x8xbf16, #tpu.memory_space<vmem>>, vector<1x1x12x8xbf16>
    %55 = vector.shape_cast %54 : vector<1x1x12x8xbf16> to vector<12x8xbf16>
    %c0_102 = arith.constant 0 : index
    %c4_103 = arith.constant 4 : index
    %c2_104 = arith.constant 2 : index
    %c0_105 = arith.constant 0 : index
    %56 = vector.load %arg1[%c0_102, %c4_103, %c2_104, %c0_105] : memref<1x14x14x8xbf16, #tpu.memory_space<vmem>>, vector<1x1x12x8xbf16>
    %57 = vector.shape_cast %56 : vector<1x1x12x8xbf16> to vector<12x8xbf16>
    %58 = tpu.concatenate %41, %43, %45, %47, %49, %51, %53, %55, %57 in 1 : vector<12x8xbf16>, vector<12x8xbf16>, vector<12x8xbf16>, vector<12x8xbf16>, vector<12x8xbf16>, vector<12x8xbf16>, vector<12x8xbf16>, vector<12x8xbf16>, vector<12x8xbf16> -> vector<12x72xbf16>
    %c24 = arith.constant 24 : index
    %c0_106 = arith.constant 0 : index
    %59 = vector.load %arg6[%c24, %c0_106] : memref<144x72xbf16, #tpu.memory_space<vmem>>, vector<12x72xbf16>
    tpu.vector_store %arg6[%c24, %c0_106], %58 {strides = array<i32>} : memref<144x72xbf16, #tpu.memory_space<vmem>>, vector<12x72xbf16>,
    %c0_107 = arith.constant 0 : index
    %c3_108 = arith.constant 3 : index
    %c0_109 = arith.constant 0 : index
    %c0_110 = arith.constant 0 : index
    %60 = vector.load %arg1[%c0_107, %c3_108, %c0_109, %c0_110] : memref<1x14x14x8xbf16, #tpu.memory_space<vmem>>, vector<1x1x12x8xbf16>
    %61 = vector.shape_cast %60 : vector<1x1x12x8xbf16> to vector<12x8xbf16>
    %c0_111 = arith.constant 0 : index
    %c3_112 = arith.constant 3 : index
    %c1_113 = arith.constant 1 : index
    %c0_114 = arith.constant 0 : index
    %62 = vector.load %arg1[%c0_111, %c3_112, %c1_113, %c0_114] : memref<1x14x14x8xbf16, #tpu.memory_space<vmem>>, vector<1x1x12x8xbf16>
    %63 = vector.shape_cast %62 : vector<1x1x12x8xbf16> to vector<12x8xbf16>
    %c0_115 = arith.constant 0 : index
    %c3_116 = arith.constant 3 : index
    %c2_117 = arith.constant 2 : index
    %c0_118 = arith.constant 0 : index
    %64 = vector.load %arg1[%c0_115, %c3_116, %c2_117, %c0_118] : memref<1x14x14x8xbf16, #tpu.memory_space<vmem>>, vector<1x1x12x8xbf16>
    %65 = vector.shape_cast %64 : vector<1x1x12x8xbf16> to vector<12x8xbf16>
    %c0_119 = arith.constant 0 : index
    %c4_120 = arith.constant 4 : index
    %c0_121 = arith.constant 0 : index
    %c0_122 = arith.constant 0 : index
    %66 = vector.load %arg1[%c0_119, %c4_120, %c0_121, %c0_122] : memref<1x14x14x8xbf16, #tpu.memory_space<vmem>>, vector<1x1x12x8xbf16>
    %67 = vector.shape_cast %66 : vector<1x1x12x8xbf16> to vector<12x8xbf16>
    %c0_123 = arith.constant 0 : index
    %c4_124 = arith.constant 4 : index
    %c1_125 = arith.constant 1 : index
    %c0_126 = arith.constant 0 : index
    %68 = vector.load %arg1[%c0_123, %c4_124, %c1_125, %c0_126] : memref<1x14x14x8xbf16, #tpu.memory_space<vmem>>, vector<1x1x12x8xbf16>
    %69 = vector.shape_cast %68 : vector<1x1x12x8xbf16> to vector<12x8xbf16>
    %c0_127 = arith.constant 0 : index
    %c4_128 = arith.constant 4 : index
    %c2_129 = arith.constant 2 : index
    %c0_130 = arith.constant 0 : index
    %70 = vector.load %arg1[%c0_127, %c4_128, %c2_129, %c0_130] : memref<1x14x14x8xbf16, #tpu.memory_space<vmem>>, vector<1x1x12x8xbf16>
    %71 = vector.shape_cast %70 : vector<1x1x12x8xbf16> to vector<12x8xbf16>
    %c0_131 = arith.constant 0 : index
    %c5 = arith.constant 5 : index
    %c0_132 = arith.constant 0 : index
    %c0_133 = arith.constant 0 : index
    %72 = vector.load %arg1[%c0_131, %c5, %c0_132, %c0_133] : memref<1x14x14x8xbf16, #tpu.memory_space<vmem>>, vector<1x1x12x8xbf16>
    %73 = vector.shape_cast %72 : vector<1x1x12x8xbf16> to vector<12x8xbf16>
    %c0_134 = arith.constant 0 : index
    %c5_135 = arith.constant 5 : index
    %c1_136 = arith.constant 1 : index
    %c0_137 = arith.constant 0 : index
    %74 = vector.load %arg1[%c0_134, %c5_135, %c1_136, %c0_137] : memref<1x14x14x8xbf16, #tpu.memory_space<vmem>>, vector<1x1x12x8xbf16>
    %75 = vector.shape_cast %74 : vector<1x1x12x8xbf16> to vector<12x8xbf16>
    %c0_138 = arith.constant 0 : index
    %c5_139 = arith.constant 5 : index
    %c2_140 = arith.constant 2 : index
    %c0_141 = arith.constant 0 : index
    %76 = vector.load %arg1[%c0_138, %c5_139, %c2_140, %c0_141] : memref<1x14x14x8xbf16, #tpu.memory_space<vmem>>, vector<1x1x12x8xbf16>
    %77 = vector.shape_cast %76 : vector<1x1x12x8xbf16> to vector<12x8xbf16>
    %78 = tpu.concatenate %61, %63, %65, %67, %69, %71, %73, %75, %77 in 1 : vector<12x8xbf16>, vector<12x8xbf16>, vector<12x8xbf16>, vector<12x8xbf16>, vector<12x8xbf16>, vector<12x8xbf16>, vector<12x8xbf16>, vector<12x8xbf16>, vector<12x8xbf16> -> vector<12x72xbf16>
    %c36 = arith.constant 36 : index
    %c0_142 = arith.constant 0 : index
    %79 = vector.load %arg6[%c36, %c0_142] : memref<144x72xbf16, #tpu.memory_space<vmem>>, vector<12x72xbf16>
    tpu.vector_store %arg6[%c36, %c0_142], %78 {strides = array<i32>} : memref<144x72xbf16, #tpu.memory_space<vmem>>, vector<12x72xbf16>,
    %c0_143 = arith.constant 0 : index
    %c4_144 = arith.constant 4 : index
    %c0_145 = arith.constant 0 : index
    %c0_146 = arith.constant 0 : index
    %80 = vector.load %arg1[%c0_143, %c4_144, %c0_145, %c0_146] : memref<1x14x14x8xbf16, #tpu.memory_space<vmem>>, vector<1x1x12x8xbf16>
    %81 = vector.shape_cast %80 : vector<1x1x12x8xbf16> to vector<12x8xbf16>
    %c0_147 = arith.constant 0 : index
    %c4_148 = arith.constant 4 : index
    %c1_149 = arith.constant 1 : index
    %c0_150 = arith.constant 0 : index
    %82 = vector.load %arg1[%c0_147, %c4_148, %c1_149, %c0_150] : memref<1x14x14x8xbf16, #tpu.memory_space<vmem>>, vector<1x1x12x8xbf16>
    %83 = vector.shape_cast %82 : vector<1x1x12x8xbf16> to vector<12x8xbf16>
    %c0_151 = arith.constant 0 : index
    %c4_152 = arith.constant 4 : index
    %c2_153 = arith.constant 2 : index
    %c0_154 = arith.constant 0 : index
    %84 = vector.load %arg1[%c0_151, %c4_152, %c2_153, %c0_154] : memref<1x14x14x8xbf16, #tpu.memory_space<vmem>>, vector<1x1x12x8xbf16>
    %85 = vector.shape_cast %84 : vector<1x1x12x8xbf16> to vector<12x8xbf16>
    %c0_155 = arith.constant 0 : index
    %c5_156 = arith.constant 5 : index
    %c0_157 = arith.constant 0 : index
    %c0_158 = arith.constant 0 : index
    %86 = vector.load %arg1[%c0_155, %c5_156, %c0_157, %c0_158] : memref<1x14x14x8xbf16, #tpu.memory_space<vmem>>, vector<1x1x12x8xbf16>
    %87 = vector.shape_cast %86 : vector<1x1x12x8xbf16> to vector<12x8xbf16>
    %c0_159 = arith.constant 0 : index
    %c5_160 = arith.constant 5 : index
    %c1_161 = arith.constant 1 : index
    %c0_162 = arith.constant 0 : index
    %88 = vector.load %arg1[%c0_159, %c5_160, %c1_161, %c0_162] : memref<1x14x14x8xbf16, #tpu.memory_space<vmem>>, vector<1x1x12x8xbf16>
    %89 = vector.shape_cast %88 : vector<1x1x12x8xbf16> to vector<12x8xbf16>
    %c0_163 = arith.constant 0 : index
    %c5_164 = arith.constant 5 : index
    %c2_165 = arith.constant 2 : index
    %c0_166 = arith.constant 0 : index
    %90 = vector.load %arg1[%c0_163, %c5_164, %c2_165, %c0_166] : memref<1x14x14x8xbf16, #tpu.memory_space<vmem>>, vector<1x1x12x8xbf16>
    %91 = vector.shape_cast %90 : vector<1x1x12x8xbf16> to vector<12x8xbf16>
    %c0_167 = arith.constant 0 : index
    %c6 = arith.constant 6 : index
    %c0_168 = arith.constant 0 : index
    %c0_169 = arith.constant 0 : index
    %92 = vector.load %arg1[%c0_167, %c6, %c0_168, %c0_169] : memref<1x14x14x8xbf16, #tpu.memory_space<vmem>>, vector<1x1x12x8xbf16>
    %93 = vector.shape_cast %92 : vector<1x1x12x8xbf16> to vector<12x8xbf16>
    %c0_170 = arith.constant 0 : index
    %c6_171 = arith.constant 6 : index
    %c1_172 = arith.constant 1 : index
    %c0_173 = arith.constant 0 : index
    %94 = vector.load %arg1[%c0_170, %c6_171, %c1_172, %c0_173] : memref<1x14x14x8xbf16, #tpu.memory_space<vmem>>, vector<1x1x12x8xbf16>
    %95 = vector.shape_cast %94 : vector<1x1x12x8xbf16> to vector<12x8xbf16>
    %c0_174 = arith.constant 0 : index
    %c6_175 = arith.constant 6 : index
    %c2_176 = arith.constant 2 : index
    %c0_177 = arith.constant 0 : index
    %96 = vector.load %arg1[%c0_174, %c6_175, %c2_176, %c0_177] : memref<1x14x14x8xbf16, #tpu.memory_space<vmem>>, vector<1x1x12x8xbf16>
    %97 = vector.shape_cast %96 : vector<1x1x12x8xbf16> to vector<12x8xbf16>
    %98 = tpu.concatenate %81, %83, %85, %87, %89, %91, %93, %95, %97 in 1 : vector<12x8xbf16>, vector<12x8xbf16>, vector<12x8xbf16>, vector<12x8xbf16>, vector<12x8xbf16>, vector<12x8xbf16>, vector<12x8xbf16>, vector<12x8xbf16>, vector<12x8xbf16> -> vector<12x72xbf16>
    %c48 = arith.constant 48 : index
    %c0_178 = arith.constant 0 : index
    %99 = vector.load %arg6[%c48, %c0_178] : memref<144x72xbf16, #tpu.memory_space<vmem>>, vector<12x72xbf16>
    tpu.vector_store %arg6[%c48, %c0_178], %98 {strides = array<i32>} : memref<144x72xbf16, #tpu.memory_space<vmem>>, vector<12x72xbf16>,
    %c0_179 = arith.constant 0 : index
    %c5_180 = arith.constant 5 : index
    %c0_181 = arith.constant 0 : index
    %c0_182 = arith.constant 0 : index
    %100 = vector.load %arg1[%c0_179, %c5_180, %c0_181, %c0_182] : memref<1x14x14x8xbf16, #tpu.memory_space<vmem>>, vector<1x1x12x8xbf16>
    %101 = vector.shape_cast %100 : vector<1x1x12x8xbf16> to vector<12x8xbf16>
    %c0_183 = arith.constant 0 : index
    %c5_184 = arith.constant 5 : index
    %c1_185 = arith.constant 1 : index
    %c0_186 = arith.constant 0 : index
    %102 = vector.load %arg1[%c0_183, %c5_184, %c1_185, %c0_186] : memref<1x14x14x8xbf16, #tpu.memory_space<vmem>>, vector<1x1x12x8xbf16>
    %103 = vector.shape_cast %102 : vector<1x1x12x8xbf16> to vector<12x8xbf16>
    %c0_187 = arith.constant 0 : index
    %c5_188 = arith.constant 5 : index
    %c2_189 = arith.constant 2 : index
    %c0_190 = arith.constant 0 : index
    %104 = vector.load %arg1[%c0_187, %c5_188, %c2_189, %c0_190] : memref<1x14x14x8xbf16, #tpu.memory_space<vmem>>, vector<1x1x12x8xbf16>
    %105 = vector.shape_cast %104 : vector<1x1x12x8xbf16> to vector<12x8xbf16>
    %c0_191 = arith.constant 0 : index
    %c6_192 = arith.constant 6 : index
    %c0_193 = arith.constant 0 : index
    %c0_194 = arith.constant 0 : index
    %106 = vector.load %arg1[%c0_191, %c6_192, %c0_193, %c0_194] : memref<1x14x14x8xbf16, #tpu.memory_space<vmem>>, vector<1x1x12x8xbf16>
    %107 = vector.shape_cast %106 : vector<1x1x12x8xbf16> to vector<12x8xbf16>
    %c0_195 = arith.constant 0 : index
    %c6_196 = arith.constant 6 : index
    %c1_197 = arith.constant 1 : index
    %c0_198 = arith.constant 0 : index
    %108 = vector.load %arg1[%c0_195, %c6_196, %c1_197, %c0_198] : memref<1x14x14x8xbf16, #tpu.memory_space<vmem>>, vector<1x1x12x8xbf16>
    %109 = vector.shape_cast %108 : vector<1x1x12x8xbf16> to vector<12x8xbf16>
    %c0_199 = arith.constant 0 : index
    %c6_200 = arith.constant 6 : index
    %c2_201 = arith.constant 2 : index
    %c0_202 = arith.constant 0 : index
    %110 = vector.load %arg1[%c0_199, %c6_200, %c2_201, %c0_202] : memref<1x14x14x8xbf16, #tpu.memory_space<vmem>>, vector<1x1x12x8xbf16>
    %111 = vector.shape_cast %110 : vector<1x1x12x8xbf16> to vector<12x8xbf16>
    %c0_203 = arith.constant 0 : index
    %c7 = arith.constant 7 : index
    %c0_204 = arith.constant 0 : index
    %c0_205 = arith.constant 0 : index
    %112 = vector.load %arg1[%c0_203, %c7, %c0_204, %c0_205] : memref<1x14x14x8xbf16, #tpu.memory_space<vmem>>, vector<1x1x12x8xbf16>
    %113 = vector.shape_cast %112 : vector<1x1x12x8xbf16> to vector<12x8xbf16>
    %c0_206 = arith.constant 0 : index
    %c7_207 = arith.constant 7 : index
    %c1_208 = arith.constant 1 : index
    %c0_209 = arith.constant 0 : index
    %114 = vector.load %arg1[%c0_206, %c7_207, %c1_208, %c0_209] : memref<1x14x14x8xbf16, #tpu.memory_space<vmem>>, vector<1x1x12x8xbf16>
    %115 = vector.shape_cast %114 : vector<1x1x12x8xbf16> to vector<12x8xbf16>
    %c0_210 = arith.constant 0 : index
    %c7_211 = arith.constant 7 : index
    %c2_212 = arith.constant 2 : index
    %c0_213 = arith.constant 0 : index
    %116 = vector.load %arg1[%c0_210, %c7_211, %c2_212, %c0_213] : memref<1x14x14x8xbf16, #tpu.memory_space<vmem>>, vector<1x1x12x8xbf16>
    %117 = vector.shape_cast %116 : vector<1x1x12x8xbf16> to vector<12x8xbf16>
    %118 = tpu.concatenate %101, %103, %105, %107, %109, %111, %113, %115, %117 in 1 : vector<12x8xbf16>, vector<12x8xbf16>, vector<12x8xbf16>, vector<12x8xbf16>, vector<12x8xbf16>, vector<12x8xbf16>, vector<12x8xbf16>, vector<12x8xbf16>, vector<12x8xbf16> -> vector<12x72xbf16>
    %c60 = arith.constant 60 : index
    %c0_214 = arith.constant 0 : index
    %119 = vector.load %arg6[%c60, %c0_214] : memref<144x72xbf16, #tpu.memory_space<vmem>>, vector<12x72xbf16>
    tpu.vector_store %arg6[%c60, %c0_214], %118 {strides = array<i32>} : memref<144x72xbf16, #tpu.memory_space<vmem>>, vector<12x72xbf16>,
    %c0_215 = arith.constant 0 : index
    %c6_216 = arith.constant 6 : index
    %c0_217 = arith.constant 0 : index
    %c0_218 = arith.constant 0 : index
    %120 = vector.load %arg1[%c0_215, %c6_216, %c0_217, %c0_218] : memref<1x14x14x8xbf16, #tpu.memory_space<vmem>>, vector<1x1x12x8xbf16>
    %121 = vector.shape_cast %120 : vector<1x1x12x8xbf16> to vector<12x8xbf16>
    %c0_219 = arith.constant 0 : index
    %c6_220 = arith.constant 6 : index
    %c1_221 = arith.constant 1 : index
    %c0_222 = arith.constant 0 : index
    %122 = vector.load %arg1[%c0_219, %c6_220, %c1_221, %c0_222] : memref<1x14x14x8xbf16, #tpu.memory_space<vmem>>, vector<1x1x12x8xbf16>
    %123 = vector.shape_cast %122 : vector<1x1x12x8xbf16> to vector<12x8xbf16>
    %c0_223 = arith.constant 0 : index
    %c6_224 = arith.constant 6 : index
    %c2_225 = arith.constant 2 : index
    %c0_226 = arith.constant 0 : index
    %124 = vector.load %arg1[%c0_223, %c6_224, %c2_225, %c0_226] : memref<1x14x14x8xbf16, #tpu.memory_space<vmem>>, vector<1x1x12x8xbf16>
    %125 = vector.shape_cast %124 : vector<1x1x12x8xbf16> to vector<12x8xbf16>
    %c0_227 = arith.constant 0 : index
    %c7_228 = arith.constant 7 : index
    %c0_229 = arith.constant 0 : index
    %c0_230 = arith.constant 0 : index
    %126 = vector.load %arg1[%c0_227, %c7_228, %c0_229, %c0_230] : memref<1x14x14x8xbf16, #tpu.memory_space<vmem>>, vector<1x1x12x8xbf16>
    %127 = vector.shape_cast %126 : vector<1x1x12x8xbf16> to vector<12x8xbf16>
    %c0_231 = arith.constant 0 : index
    %c7_232 = arith.constant 7 : index
    %c1_233 = arith.constant 1 : index
    %c0_234 = arith.constant 0 : index
    %128 = vector.load %arg1[%c0_231, %c7_232, %c1_233, %c0_234] : memref<1x14x14x8xbf16, #tpu.memory_space<vmem>>, vector<1x1x12x8xbf16>
    %129 = vector.shape_cast %128 : vector<1x1x12x8xbf16> to vector<12x8xbf16>
    %c0_235 = arith.constant 0 : index
    %c7_236 = arith.constant 7 : index
    %c2_237 = arith.constant 2 : index
    %c0_238 = arith.constant 0 : index
    %130 = vector.load %arg1[%c0_235, %c7_236, %c2_237, %c0_238] : memref<1x14x14x8xbf16, #tpu.memory_space<vmem>>, vector<1x1x12x8xbf16>
    %131 = vector.shape_cast %130 : vector<1x1x12x8xbf16> to vector<12x8xbf16>
    %c0_239 = arith.constant 0 : index
    %c8 = arith.constant 8 : index
    %c0_240 = arith.constant 0 : index
    %c0_241 = arith.constant 0 : index
    %132 = vector.load %arg1[%c0_239, %c8, %c0_240, %c0_241] : memref<1x14x14x8xbf16, #tpu.memory_space<vmem>>, vector<1x1x12x8xbf16>
    %133 = vector.shape_cast %132 : vector<1x1x12x8xbf16> to vector<12x8xbf16>
    %c0_242 = arith.constant 0 : index
    %c8_243 = arith.constant 8 : index
    %c1_244 = arith.constant 1 : index
    %c0_245 = arith.constant 0 : index
    %134 = vector.load %arg1[%c0_242, %c8_243, %c1_244, %c0_245] : memref<1x14x14x8xbf16, #tpu.memory_space<vmem>>, vector<1x1x12x8xbf16>
    %135 = vector.shape_cast %134 : vector<1x1x12x8xbf16> to vector<12x8xbf16>
    %c0_246 = arith.constant 0 : index
    %c8_247 = arith.constant 8 : index
    %c2_248 = arith.constant 2 : index
    %c0_249 = arith.constant 0 : index
    %136 = vector.load %arg1[%c0_246, %c8_247, %c2_248, %c0_249] : memref<1x14x14x8xbf16, #tpu.memory_space<vmem>>, vector<1x1x12x8xbf16>
    %137 = vector.shape_cast %136 : vector<1x1x12x8xbf16> to vector<12x8xbf16>
    %138 = tpu.concatenate %121, %123, %125, %127, %129, %131, %133, %135, %137 in 1 : vector<12x8xbf16>, vector<12x8xbf16>, vector<12x8xbf16>, vector<12x8xbf16>, vector<12x8xbf16>, vector<12x8xbf16>, vector<12x8xbf16>, vector<12x8xbf16>, vector<12x8xbf16> -> vector<12x72xbf16>
    %c72 = arith.constant 72 : index
    %c0_250 = arith.constant 0 : index
    %139 = vector.load %arg6[%c72, %c0_250] : memref<144x72xbf16, #tpu.memory_space<vmem>>, vector<12x72xbf16>
    tpu.vector_store %arg6[%c72, %c0_250], %138 {strides = array<i32>} : memref<144x72xbf16, #tpu.memory_space<vmem>>, vector<12x72xbf16>,
    %c0_251 = arith.constant 0 : index
    %c7_252 = arith.constant 7 : index
    %c0_253 = arith.constant 0 : index
    %c0_254 = arith.constant 0 : index
    %140 = vector.load %arg1[%c0_251, %c7_252, %c0_253, %c0_254] : memref<1x14x14x8xbf16, #tpu.memory_space<vmem>>, vector<1x1x12x8xbf16>
    %141 = vector.shape_cast %140 : vector<1x1x12x8xbf16> to vector<12x8xbf16>
    %c0_255 = arith.constant 0 : index
    %c7_256 = arith.constant 7 : index
    %c1_257 = arith.constant 1 : index
    %c0_258 = arith.constant 0 : index
    %142 = vector.load %arg1[%c0_255, %c7_256, %c1_257, %c0_258] : memref<1x14x14x8xbf16, #tpu.memory_space<vmem>>, vector<1x1x12x8xbf16>
    %143 = vector.shape_cast %142 : vector<1x1x12x8xbf16> to vector<12x8xbf16>
    %c0_259 = arith.constant 0 : index
    %c7_260 = arith.constant 7 : index
    %c2_261 = arith.constant 2 : index
    %c0_262 = arith.constant 0 : index
    %144 = vector.load %arg1[%c0_259, %c7_260, %c2_261, %c0_262] : memref<1x14x14x8xbf16, #tpu.memory_space<vmem>>, vector<1x1x12x8xbf16>
    %145 = vector.shape_cast %144 : vector<1x1x12x8xbf16> to vector<12x8xbf16>
    %c0_263 = arith.constant 0 : index
    %c8_264 = arith.constant 8 : index
    %c0_265 = arith.constant 0 : index
    %c0_266 = arith.constant 0 : index
    %146 = vector.load %arg1[%c0_263, %c8_264, %c0_265, %c0_266] : memref<1x14x14x8xbf16, #tpu.memory_space<vmem>>, vector<1x1x12x8xbf16>
    %147 = vector.shape_cast %146 : vector<1x1x12x8xbf16> to vector<12x8xbf16>
    %c0_267 = arith.constant 0 : index
    %c8_268 = arith.constant 8 : index
    %c1_269 = arith.constant 1 : index
    %c0_270 = arith.constant 0 : index
    %148 = vector.load %arg1[%c0_267, %c8_268, %c1_269, %c0_270] : memref<1x14x14x8xbf16, #tpu.memory_space<vmem>>, vector<1x1x12x8xbf16>
    %149 = vector.shape_cast %148 : vector<1x1x12x8xbf16> to vector<12x8xbf16>
    %c0_271 = arith.constant 0 : index
    %c8_272 = arith.constant 8 : index
    %c2_273 = arith.constant 2 : index
    %c0_274 = arith.constant 0 : index
    %150 = vector.load %arg1[%c0_271, %c8_272, %c2_273, %c0_274] : memref<1x14x14x8xbf16, #tpu.memory_space<vmem>>, vector<1x1x12x8xbf16>
    %151 = vector.shape_cast %150 : vector<1x1x12x8xbf16> to vector<12x8xbf16>
    %c0_275 = arith.constant 0 : index
    %c9 = arith.constant 9 : index
    %c0_276 = arith.constant 0 : index
    %c0_277 = arith.constant 0 : index
    %152 = vector.load %arg1[%c0_275, %c9, %c0_276, %c0_277] : memref<1x14x14x8xbf16, #tpu.memory_space<vmem>>, vector<1x1x12x8xbf16>
    %153 = vector.shape_cast %152 : vector<1x1x12x8xbf16> to vector<12x8xbf16>
    %c0_278 = arith.constant 0 : index
    %c9_279 = arith.constant 9 : index
    %c1_280 = arith.constant 1 : index
    %c0_281 = arith.constant 0 : index
    %154 = vector.load %arg1[%c0_278, %c9_279, %c1_280, %c0_281] : memref<1x14x14x8xbf16, #tpu.memory_space<vmem>>, vector<1x1x12x8xbf16>
    %155 = vector.shape_cast %154 : vector<1x1x12x8xbf16> to vector<12x8xbf16>
    %c0_282 = arith.constant 0 : index
    %c9_283 = arith.constant 9 : index
    %c2_284 = arith.constant 2 : index
    %c0_285 = arith.constant 0 : index
    %156 = vector.load %arg1[%c0_282, %c9_283, %c2_284, %c0_285] : memref<1x14x14x8xbf16, #tpu.memory_space<vmem>>, vector<1x1x12x8xbf16>
    %157 = vector.shape_cast %156 : vector<1x1x12x8xbf16> to vector<12x8xbf16>
    %158 = tpu.concatenate %141, %143, %145, %147, %149, %151, %153, %155, %157 in 1 : vector<12x8xbf16>, vector<12x8xbf16>, vector<12x8xbf16>, vector<12x8xbf16>, vector<12x8xbf16>, vector<12x8xbf16>, vector<12x8xbf16>, vector<12x8xbf16>, vector<12x8xbf16> -> vector<12x72xbf16>
    %c84 = arith.constant 84 : index
    %c0_286 = arith.constant 0 : index
    %159 = vector.load %arg6[%c84, %c0_286] : memref<144x72xbf16, #tpu.memory_space<vmem>>, vector<12x72xbf16>
    tpu.vector_store %arg6[%c84, %c0_286], %158 {strides = array<i32>} : memref<144x72xbf16, #tpu.memory_space<vmem>>, vector<12x72xbf16>,
    %c0_287 = arith.constant 0 : index
    %c8_288 = arith.constant 8 : index
    %c0_289 = arith.constant 0 : index
    %c0_290 = arith.constant 0 : index
    %160 = vector.load %arg1[%c0_287, %c8_288, %c0_289, %c0_290] : memref<1x14x14x8xbf16, #tpu.memory_space<vmem>>, vector<1x1x12x8xbf16>
    %161 = vector.shape_cast %160 : vector<1x1x12x8xbf16> to vector<12x8xbf16>
    %c0_291 = arith.constant 0 : index
    %c8_292 = arith.constant 8 : index
    %c1_293 = arith.constant 1 : index
    %c0_294 = arith.constant 0 : index
    %162 = vector.load %arg1[%c0_291, %c8_292, %c1_293, %c0_294] : memref<1x14x14x8xbf16, #tpu.memory_space<vmem>>, vector<1x1x12x8xbf16>
    %163 = vector.shape_cast %162 : vector<1x1x12x8xbf16> to vector<12x8xbf16>
    %c0_295 = arith.constant 0 : index
    %c8_296 = arith.constant 8 : index
    %c2_297 = arith.constant 2 : index
    %c0_298 = arith.constant 0 : index
    %164 = vector.load %arg1[%c0_295, %c8_296, %c2_297, %c0_298] : memref<1x14x14x8xbf16, #tpu.memory_space<vmem>>, vector<1x1x12x8xbf16>
    %165 = vector.shape_cast %164 : vector<1x1x12x8xbf16> to vector<12x8xbf16>
    %c0_299 = arith.constant 0 : index
    %c9_300 = arith.constant 9 : index
    %c0_301 = arith.constant 0 : index
    %c0_302 = arith.constant 0 : index
    %166 = vector.load %arg1[%c0_299, %c9_300, %c0_301, %c0_302] : memref<1x14x14x8xbf16, #tpu.memory_space<vmem>>, vector<1x1x12x8xbf16>
    %167 = vector.shape_cast %166 : vector<1x1x12x8xbf16> to vector<12x8xbf16>
    %c0_303 = arith.constant 0 : index
    %c9_304 = arith.constant 9 : index
    %c1_305 = arith.constant 1 : index
    %c0_306 = arith.constant 0 : index
    %168 = vector.load %arg1[%c0_303, %c9_304, %c1_305, %c0_306] : memref<1x14x14x8xbf16, #tpu.memory_space<vmem>>, vector<1x1x12x8xbf16>
    %169 = vector.shape_cast %168 : vector<1x1x12x8xbf16> to vector<12x8xbf16>
    %c0_307 = arith.constant 0 : index
    %c9_308 = arith.constant 9 : index
    %c2_309 = arith.constant 2 : index
    %c0_310 = arith.constant 0 : index
    %170 = vector.load %arg1[%c0_307, %c9_308, %c2_309, %c0_310] : memref<1x14x14x8xbf16, #tpu.memory_space<vmem>>, vector<1x1x12x8xbf16>
    %171 = vector.shape_cast %170 : vector<1x1x12x8xbf16> to vector<12x8xbf16>
    %c0_311 = arith.constant 0 : index
    %c10 = arith.constant 10 : index
    %c0_312 = arith.constant 0 : index
    %c0_313 = arith.constant 0 : index
    %172 = vector.load %arg1[%c0_311, %c10, %c0_312, %c0_313] : memref<1x14x14x8xbf16, #tpu.memory_space<vmem>>, vector<1x1x12x8xbf16>
    %173 = vector.shape_cast %172 : vector<1x1x12x8xbf16> to vector<12x8xbf16>
    %c0_314 = arith.constant 0 : index
    %c10_315 = arith.constant 10 : index
    %c1_316 = arith.constant 1 : index
    %c0_317 = arith.constant 0 : index
    %174 = vector.load %arg1[%c0_314, %c10_315, %c1_316, %c0_317] : memref<1x14x14x8xbf16, #tpu.memory_space<vmem>>, vector<1x1x12x8xbf16>
    %175 = vector.shape_cast %174 : vector<1x1x12x8xbf16> to vector<12x8xbf16>
    %c0_318 = arith.constant 0 : index
    %c10_319 = arith.constant 10 : index
    %c2_320 = arith.constant 2 : index
    %c0_321 = arith.constant 0 : index
    %176 = vector.load %arg1[%c0_318, %c10_319, %c2_320, %c0_321] : memref<1x14x14x8xbf16, #tpu.memory_space<vmem>>, vector<1x1x12x8xbf16>
    %177 = vector.shape_cast %176 : vector<1x1x12x8xbf16> to vector<12x8xbf16>
    %178 = tpu.concatenate %161, %163, %165, %167, %169, %171, %173, %175, %177 in 1 : vector<12x8xbf16>, vector<12x8xbf16>, vector<12x8xbf16>, vector<12x8xbf16>, vector<12x8xbf16>, vector<12x8xbf16>, vector<12x8xbf16>, vector<12x8xbf16>, vector<12x8xbf16> -> vector<12x72xbf16>
    %c96 = arith.constant 96 : index
    %c0_322 = arith.constant 0 : index
    %179 = vector.load %arg6[%c96, %c0_322] : memref<144x72xbf16, #tpu.memory_space<vmem>>, vector<12x72xbf16>
    tpu.vector_store %arg6[%c96, %c0_322], %178 {strides = array<i32>} : memref<144x72xbf16, #tpu.memory_space<vmem>>, vector<12x72xbf16>,
    %c0_323 = arith.constant 0 : index
    %c9_324 = arith.constant 9 : index
    %c0_325 = arith.constant 0 : index
    %c0_326 = arith.constant 0 : index
    %180 = vector.load %arg1[%c0_323, %c9_324, %c0_325, %c0_326] : memref<1x14x14x8xbf16, #tpu.memory_space<vmem>>, vector<1x1x12x8xbf16>
    %181 = vector.shape_cast %180 : vector<1x1x12x8xbf16> to vector<12x8xbf16>
    %c0_327 = arith.constant 0 : index
    %c9_328 = arith.constant 9 : index
    %c1_329 = arith.constant 1 : index
    %c0_330 = arith.constant 0 : index
    %182 = vector.load %arg1[%c0_327, %c9_328, %c1_329, %c0_330] : memref<1x14x14x8xbf16, #tpu.memory_space<vmem>>, vector<1x1x12x8xbf16>
    %183 = vector.shape_cast %182 : vector<1x1x12x8xbf16> to vector<12x8xbf16>
    %c0_331 = arith.constant 0 : index
    %c9_332 = arith.constant 9 : index
    %c2_333 = arith.constant 2 : index
    %c0_334 = arith.constant 0 : index
    %184 = vector.load %arg1[%c0_331, %c9_332, %c2_333, %c0_334] : memref<1x14x14x8xbf16, #tpu.memory_space<vmem>>, vector<1x1x12x8xbf16>
    %185 = vector.shape_cast %184 : vector<1x1x12x8xbf16> to vector<12x8xbf16>
    %c0_335 = arith.constant 0 : index
    %c10_336 = arith.constant 10 : index
    %c0_337 = arith.constant 0 : index
    %c0_338 = arith.constant 0 : index
    %186 = vector.load %arg1[%c0_335, %c10_336, %c0_337, %c0_338] : memref<1x14x14x8xbf16, #tpu.memory_space<vmem>>, vector<1x1x12x8xbf16>
    %187 = vector.shape_cast %186 : vector<1x1x12x8xbf16> to vector<12x8xbf16>
    %c0_339 = arith.constant 0 : index
    %c10_340 = arith.constant 10 : index
    %c1_341 = arith.constant 1 : index
    %c0_342 = arith.constant 0 : index
    %188 = vector.load %arg1[%c0_339, %c10_340, %c1_341, %c0_342] : memref<1x14x14x8xbf16, #tpu.memory_space<vmem>>, vector<1x1x12x8xbf16>
    %189 = vector.shape_cast %188 : vector<1x1x12x8xbf16> to vector<12x8xbf16>
    %c0_343 = arith.constant 0 : index
    %c10_344 = arith.constant 10 : index
    %c2_345 = arith.constant 2 : index
    %c0_346 = arith.constant 0 : index
    %190 = vector.load %arg1[%c0_343, %c10_344, %c2_345, %c0_346] : memref<1x14x14x8xbf16, #tpu.memory_space<vmem>>, vector<1x1x12x8xbf16>
    %191 = vector.shape_cast %190 : vector<1x1x12x8xbf16> to vector<12x8xbf16>
    %c0_347 = arith.constant 0 : index
    %c11 = arith.constant 11 : index
    %c0_348 = arith.constant 0 : index
    %c0_349 = arith.constant 0 : index
    %192 = vector.load %arg1[%c0_347, %c11, %c0_348, %c0_349] : memref<1x14x14x8xbf16, #tpu.memory_space<vmem>>, vector<1x1x12x8xbf16>
    %193 = vector.shape_cast %192 : vector<1x1x12x8xbf16> to vector<12x8xbf16>
    %c0_350 = arith.constant 0 : index
    %c11_351 = arith.constant 11 : index
    %c1_352 = arith.constant 1 : index
    %c0_353 = arith.constant 0 : index
    %194 = vector.load %arg1[%c0_350, %c11_351, %c1_352, %c0_353] : memref<1x14x14x8xbf16, #tpu.memory_space<vmem>>, vector<1x1x12x8xbf16>
    %195 = vector.shape_cast %194 : vector<1x1x12x8xbf16> to vector<12x8xbf16>
    %c0_354 = arith.constant 0 : index
    %c11_355 = arith.constant 11 : index
    %c2_356 = arith.constant 2 : index
    %c0_357 = arith.constant 0 : index
    %196 = vector.load %arg1[%c0_354, %c11_355, %c2_356, %c0_357] : memref<1x14x14x8xbf16, #tpu.memory_space<vmem>>, vector<1x1x12x8xbf16>
    %197 = vector.shape_cast %196 : vector<1x1x12x8xbf16> to vector<12x8xbf16>
    %198 = tpu.concatenate %181, %183, %185, %187, %189, %191, %193, %195, %197 in 1 : vector<12x8xbf16>, vector<12x8xbf16>, vector<12x8xbf16>, vector<12x8xbf16>, vector<12x8xbf16>, vector<12x8xbf16>, vector<12x8xbf16>, vector<12x8xbf16>, vector<12x8xbf16> -> vector<12x72xbf16>
    %c108 = arith.constant 108 : index
    %c0_358 = arith.constant 0 : index
    %199 = vector.load %arg6[%c108, %c0_358] : memref<144x72xbf16, #tpu.memory_space<vmem>>, vector<12x72xbf16>
    tpu.vector_store %arg6[%c108, %c0_358], %198 {strides = array<i32>} : memref<144x72xbf16, #tpu.memory_space<vmem>>, vector<12x72xbf16>,
    %c0_359 = arith.constant 0 : index
    %c10_360 = arith.constant 10 : index
    %c0_361 = arith.constant 0 : index
    %c0_362 = arith.constant 0 : index
    %200 = vector.load %arg1[%c0_359, %c10_360, %c0_361, %c0_362] : memref<1x14x14x8xbf16, #tpu.memory_space<vmem>>, vector<1x1x12x8xbf16>
    %201 = vector.shape_cast %200 : vector<1x1x12x8xbf16> to vector<12x8xbf16>
    %c0_363 = arith.constant 0 : index
    %c10_364 = arith.constant 10 : index
    %c1_365 = arith.constant 1 : index
    %c0_366 = arith.constant 0 : index
    %202 = vector.load %arg1[%c0_363, %c10_364, %c1_365, %c0_366] : memref<1x14x14x8xbf16, #tpu.memory_space<vmem>>, vector<1x1x12x8xbf16>
    %203 = vector.shape_cast %202 : vector<1x1x12x8xbf16> to vector<12x8xbf16>
    %c0_367 = arith.constant 0 : index
    %c10_368 = arith.constant 10 : index
    %c2_369 = arith.constant 2 : index
    %c0_370 = arith.constant 0 : index
    %204 = vector.load %arg1[%c0_367, %c10_368, %c2_369, %c0_370] : memref<1x14x14x8xbf16, #tpu.memory_space<vmem>>, vector<1x1x12x8xbf16>
    %205 = vector.shape_cast %204 : vector<1x1x12x8xbf16> to vector<12x8xbf16>
    %c0_371 = arith.constant 0 : index
    %c11_372 = arith.constant 11 : index
    %c0_373 = arith.constant 0 : index
    %c0_374 = arith.constant 0 : index
    %206 = vector.load %arg1[%c0_371, %c11_372, %c0_373, %c0_374] : memref<1x14x14x8xbf16, #tpu.memory_space<vmem>>, vector<1x1x12x8xbf16>
    %207 = vector.shape_cast %206 : vector<1x1x12x8xbf16> to vector<12x8xbf16>
    %c0_375 = arith.constant 0 : index
    %c11_376 = arith.constant 11 : index
    %c1_377 = arith.constant 1 : index
    %c0_378 = arith.constant 0 : index
    %208 = vector.load %arg1[%c0_375, %c11_376, %c1_377, %c0_378] : memref<1x14x14x8xbf16, #tpu.memory_space<vmem>>, vector<1x1x12x8xbf16>
    %209 = vector.shape_cast %208 : vector<1x1x12x8xbf16> to vector<12x8xbf16>
    %c0_379 = arith.constant 0 : index
    %c11_380 = arith.constant 11 : index
    %c2_381 = arith.constant 2 : index
    %c0_382 = arith.constant 0 : index
    %210 = vector.load %arg1[%c0_379, %c11_380, %c2_381, %c0_382] : memref<1x14x14x8xbf16, #tpu.memory_space<vmem>>, vector<1x1x12x8xbf16>
    %211 = vector.shape_cast %210 : vector<1x1x12x8xbf16> to vector<12x8xbf16>
    %c0_383 = arith.constant 0 : index
    %c12_384 = arith.constant 12 : index
    %c0_385 = arith.constant 0 : index
    %c0_386 = arith.constant 0 : index
    %212 = vector.load %arg1[%c0_383, %c12_384, %c0_385, %c0_386] : memref<1x14x14x8xbf16, #tpu.memory_space<vmem>>, vector<1x1x12x8xbf16>
    %213 = vector.shape_cast %212 : vector<1x1x12x8xbf16> to vector<12x8xbf16>
    %c0_387 = arith.constant 0 : index
    %c12_388 = arith.constant 12 : index
    %c1_389 = arith.constant 1 : index
    %c0_390 = arith.constant 0 : index
    %214 = vector.load %arg1[%c0_387, %c12_388, %c1_389, %c0_390] : memref<1x14x14x8xbf16, #tpu.memory_space<vmem>>, vector<1x1x12x8xbf16>
    %215 = vector.shape_cast %214 : vector<1x1x12x8xbf16> to vector<12x8xbf16>
    %c0_391 = arith.constant 0 : index
    %c12_392 = arith.constant 12 : index
    %c2_393 = arith.constant 2 : index
    %c0_394 = arith.constant 0 : index
    %216 = vector.load %arg1[%c0_391, %c12_392, %c2_393, %c0_394] : memref<1x14x14x8xbf16, #tpu.memory_space<vmem>>, vector<1x1x12x8xbf16>
    %217 = vector.shape_cast %216 : vector<1x1x12x8xbf16> to vector<12x8xbf16>
    %218 = tpu.concatenate %201, %203, %205, %207, %209, %211, %213, %215, %217 in 1 : vector<12x8xbf16>, vector<12x8xbf16>, vector<12x8xbf16>, vector<12x8xbf16>, vector<12x8xbf16>, vector<12x8xbf16>, vector<12x8xbf16>, vector<12x8xbf16>, vector<12x8xbf16> -> vector<12x72xbf16>
    %c120 = arith.constant 120 : index
    %c0_395 = arith.constant 0 : index
    %219 = vector.load %arg6[%c120, %c0_395] : memref<144x72xbf16, #tpu.memory_space<vmem>>, vector<12x72xbf16>
    tpu.vector_store %arg6[%c120, %c0_395], %218 {strides = array<i32>} : memref<144x72xbf16, #tpu.memory_space<vmem>>, vector<12x72xbf16>,
    %c0_396 = arith.constant 0 : index
    %c11_397 = arith.constant 11 : index
    %c0_398 = arith.constant 0 : index
    %c0_399 = arith.constant 0 : index
    %220 = vector.load %arg1[%c0_396, %c11_397, %c0_398, %c0_399] : memref<1x14x14x8xbf16, #tpu.memory_space<vmem>>, vector<1x1x12x8xbf16>
    %221 = vector.shape_cast %220 : vector<1x1x12x8xbf16> to vector<12x8xbf16>
    %c0_400 = arith.constant 0 : index
    %c11_401 = arith.constant 11 : index
    %c1_402 = arith.constant 1 : index
    %c0_403 = arith.constant 0 : index
    %222 = vector.load %arg1[%c0_400, %c11_401, %c1_402, %c0_403] : memref<1x14x14x8xbf16, #tpu.memory_space<vmem>>, vector<1x1x12x8xbf16>
    %223 = vector.shape_cast %222 : vector<1x1x12x8xbf16> to vector<12x8xbf16>
    %c0_404 = arith.constant 0 : index
    %c11_405 = arith.constant 11 : index
    %c2_406 = arith.constant 2 : index
    %c0_407 = arith.constant 0 : index
    %224 = vector.load %arg1[%c0_404, %c11_405, %c2_406, %c0_407] : memref<1x14x14x8xbf16, #tpu.memory_space<vmem>>, vector<1x1x12x8xbf16>
    %225 = vector.shape_cast %224 : vector<1x1x12x8xbf16> to vector<12x8xbf16>
    %c0_408 = arith.constant 0 : index
    %c12_409 = arith.constant 12 : index
    %c0_410 = arith.constant 0 : index
    %c0_411 = arith.constant 0 : index
    %226 = vector.load %arg1[%c0_408, %c12_409, %c0_410, %c0_411] : memref<1x14x14x8xbf16, #tpu.memory_space<vmem>>, vector<1x1x12x8xbf16>
    %227 = vector.shape_cast %226 : vector<1x1x12x8xbf16> to vector<12x8xbf16>
    %c0_412 = arith.constant 0 : index
    %c12_413 = arith.constant 12 : index
    %c1_414 = arith.constant 1 : index
    %c0_415 = arith.constant 0 : index
    %228 = vector.load %arg1[%c0_412, %c12_413, %c1_414, %c0_415] : memref<1x14x14x8xbf16, #tpu.memory_space<vmem>>, vector<1x1x12x8xbf16>
    %229 = vector.shape_cast %228 : vector<1x1x12x8xbf16> to vector<12x8xbf16>
    %c0_416 = arith.constant 0 : index
    %c12_417 = arith.constant 12 : index
    %c2_418 = arith.constant 2 : index
    %c0_419 = arith.constant 0 : index
    %230 = vector.load %arg1[%c0_416, %c12_417, %c2_418, %c0_419] : memref<1x14x14x8xbf16, #tpu.memory_space<vmem>>, vector<1x1x12x8xbf16>
    %231 = vector.shape_cast %230 : vector<1x1x12x8xbf16> to vector<12x8xbf16>
    %c0_420 = arith.constant 0 : index
    %c13 = arith.constant 13 : index
    %c0_421 = arith.constant 0 : index
    %c0_422 = arith.constant 0 : index
    %232 = vector.load %arg1[%c0_420, %c13, %c0_421, %c0_422] : memref<1x14x14x8xbf16, #tpu.memory_space<vmem>>, vector<1x1x12x8xbf16>
    %233 = vector.shape_cast %232 : vector<1x1x12x8xbf16> to vector<12x8xbf16>
    %c0_423 = arith.constant 0 : index
    %c13_424 = arith.constant 13 : index
    %c1_425 = arith.constant 1 : index
    %c0_426 = arith.constant 0 : index
    %234 = vector.load %arg1[%c0_423, %c13_424, %c1_425, %c0_426] : memref<1x14x14x8xbf16, #tpu.memory_space<vmem>>, vector<1x1x12x8xbf16>
    %235 = vector.shape_cast %234 : vector<1x1x12x8xbf16> to vector<12x8xbf16>
    %c0_427 = arith.constant 0 : index
    %c13_428 = arith.constant 13 : index
    %c2_429 = arith.constant 2 : index
    %c0_430 = arith.constant 0 : index
    %236 = vector.load %arg1[%c0_427, %c13_428, %c2_429, %c0_430] : memref<1x14x14x8xbf16, #tpu.memory_space<vmem>>, vector<1x1x12x8xbf16>
    %237 = vector.shape_cast %236 : vector<1x1x12x8xbf16> to vector<12x8xbf16>
    %238 = tpu.concatenate %221, %223, %225, %227, %229, %231, %233, %235, %237 in 1 : vector<12x8xbf16>, vector<12x8xbf16>, vector<12x8xbf16>, vector<12x8xbf16>, vector<12x8xbf16>, vector<12x8xbf16>, vector<12x8xbf16>, vector<12x8xbf16>, vector<12x8xbf16> -> vector<12x72xbf16>
    %c132 = arith.constant 132 : index
    %c0_431 = arith.constant 0 : index
    %239 = vector.load %arg6[%c132, %c0_431] : memref<144x72xbf16, #tpu.memory_space<vmem>>, vector<12x72xbf16>
    tpu.vector_store %arg6[%c132, %c0_431], %238 {strides = array<i32>} : memref<144x72xbf16, #tpu.memory_space<vmem>>, vector<12x72xbf16>,
    %c0_432 = arith.constant 0 : index
    %c0_433 = arith.constant 0 : index
    %240 = vector.load %arg6[%c0_432, %c0_433] : memref<144x72xbf16, #tpu.memory_space<vmem>>, vector<144x72xbf16>
    %c0_434 = arith.constant 0 : index
    %c0_435 = arith.constant 0 : index
    %241 = vector.load %arg2[%c0_434, %c0_435] : memref<72x128xbf16, #tpu.memory_space<vmem>>, vector<72x128xbf16>
    %cst = arith.constant dense<0.000000e+00> : vector<144x128xf32>
    %242 = tpu.matmul %240, %241, %cst {dimension_numbers = #tpu.dot_dimension_numbers<[1], [0], [0], [1], [0, 0, 1, 1], [], []>} : vector<144x72xbf16>, vector<72x128xbf16>, vector<144x128xf32> -> vector<144x128xf32>
    %c0_436 = arith.constant 0 : index
    %c0_437 = arith.constant 0 : index
    %243 = vector.load %arg3[%c0_436, %c0_437] : memref<1x128xf32, #tpu.memory_space<vmem>>, vector<1x128xf32>
    %244 = vector.broadcast %243 : vector<1x128xf32> to vector<144x128xf32>
    %245 = arith.addf %242, %244 : vector<144x128xf32>
    %cst_438 = arith.constant 0.000000e+00 : f32
    %246 = vector.broadcast %cst_438 : f32 to vector<144x128xf32>
    %247 = arith.maximumf %245, %246 : vector<144x128xf32>
    %248 = vector.extract_strided_slice %247 {offsets = [0, 0], sizes = [144, 16], strides = [1, 1]} : vector<144x128xf32> to vector<144x16xf32>
    %249 = arith.truncf %248 : vector<144x16xf32> to vector<144x16xbf16>
    %c0_439 = arith.constant 0 : index
    %c0_440 = arith.constant 0 : index
    %c0_441 = arith.constant 0 : index
    %250 = vector.load %arg4[%c0_439, %c0_440, %c0_441] : memref<1x144x16xbf16, #tpu.memory_space<vmem>>, vector<1x144x16xbf16>
    %251 = vector.shape_cast %250 : vector<1x144x16xbf16> to vector<144x16xbf16>
    %252 = vector.shape_cast %249 : vector<144x16xbf16> to vector<1x144x16xbf16>
    tpu.vector_store %arg4[%c0_439, %c0_440, %c0_441], %252 {strides = array<i32>} : memref<1x144x16xbf16, #tpu.memory_space<vmem>>, vector<1x144x16xbf16>,
    %cst_442 = arith.constant dense<0.000000e+00> : vector<128xf32>
    %253 = vector.multi_reduction <add>, %247, %cst_442 [0] : vector<144x128xf32> to vector<128xf32>
    %254 = vector.shape_cast %253 : vector<128xf32> to vector<1x128xf32>
    %255 = arith.mulf %247, %247 : vector<144x128xf32>
    %cst_443 = arith.constant dense<0.000000e+00> : vector<128xf32>
    %256 = vector.multi_reduction <add>, %255, %cst_443 [0] : vector<144x128xf32> to vector<128xf32>
    %257 = vector.shape_cast %256 : vector<128xf32> to vector<1x128xf32>
    %258 = tpu.concatenate %254, %257 in 1 : vector<1x128xf32>, vector<1x128xf32> -> vector<1x256xf32>
    %259 = vector.shape_cast %258 : vector<1x256xf32> to vector<1x256xf32>
    %260 = vector.broadcast %259 : vector<1x256xf32> to vector<8x256xf32>
    %c0_444 = arith.constant 0 : index
    %c0_445 = arith.constant 0 : index
    %c0_446 = arith.constant 0 : index
    %261 = vector.load %arg5[%c0_444, %c0_445, %c0_446] : memref<1x8x256xf32, #tpu.memory_space<vmem>>, vector<1x8x256xf32>
    %262 = vector.shape_cast %261 : vector<1x8x256xf32> to vector<8x256xf32>
    %263 = vector.shape_cast %260 : vector<8x256xf32> to vector<1x8x256xf32>
    tpu.vector_store %arg5[%c0_444, %c0_445, %c0_446], %263 {strides = array<i32>} : memref<1x8x256xf32, #tpu.memory_space<vmem>>, vector<1x8x256xf32>,
    return
  }
  func.func @transform_0(%arg0: i32) -> (i32, i32, i32, i32) {
    %c0_i32 = arith.constant 0 : i32
    %c0_i32_0 = arith.constant 0 : i32
    %c0_i32_1 = arith.constant 0 : i32
    %c0_i32_2 = arith.constant 0 : i32
    return %arg0, %c0_i32, %c0_i32_0, %c0_i32_1 : i32, i32, i32, i32
  }
  func.func @transform_1(%arg0: i32) -> (i32, i32) {
    %c0_i32 = arith.constant 0 : i32
    %c0_i32_0 = arith.constant 0 : i32
    %c0_i32_1 = arith.constant 0 : i32
    return %c0_i32, %c0_i32_0 : i32, i32
  }
  func.func @transform_2(%arg0: i32) -> (i32, i32) {
    %c0_i32 = arith.constant 0 : i32
    %c0_i32_0 = arith.constant 0 : i32
    %c0_i32_1 = arith.constant 0 : i32
    return %c0_i32, %c0_i32_0 : i32, i32
  }
  func.func @transform_3(%arg0: i32) -> (i32, i32, i32) {
    %c0_i32 = arith.constant 0 : i32
    %c0_i32_0 = arith.constant 0 : i32
    %c0_i32_1 = arith.constant 0 : i32
    return %arg0, %c0_i32, %c0_i32_0 : i32, i32, i32
  }
  func.func @transform_4(%arg0: i32) -> (i32, i32, i32) {
    %c0_i32 = arith.constant 0 : i32
    %c0_i32_0 = arith.constant 0 : i32
    %c0_i32_1 = arith.constant 0 : i32
    return %arg0, %c0_i32, %c0_i32_0 : i32, i32, i32
  }
}

module attributes {stable_mosaic.version = 11 : i64} {
  func.func @_linear_kernel(%arg0: i32, %arg1: i32, %arg2: memref<8x512xbf16, #tpu.memory_space<vmem>>, %arg3: memref<512x128xbf16, #tpu.memory_space<vmem>>, %arg4: memref<1x128xf32, #tpu.memory_space<vmem>>, %arg5: memref<8x128xf32, #tpu.memory_space<vmem>>, %arg6: memref<8x128xf32, #tpu.memory_space<vmem>>) attributes {dimension_semantics = [#tpu.dimension_semantics<parallel>, #tpu.dimension_semantics<arbitrary>], iteration_bounds = array<i64: 1, 5>, scalar_prefetch = 0 : i64, scratch_operands = 1 : i64, tpu.core_type = #tpu.core_type<tc>, window_params = [{transform_indices = @transform_0, window_bounds = array<i64: 8, 512>}, {transform_indices = @transform_1, window_bounds = array<i64: 512, 128>}, {pipeline_mode = #tpu.pipeline_mode<synchronous>, transform_indices = @transform_2, window_bounds = array<i64: 1, 128>}, {transform_indices = @transform_3, window_bounds = array<i64: 8, 128>}]} {
    %c0_i32 = arith.constant 0 : i32
    %0 = arith.cmpi eq, %arg1, %c0_i32 : i32
    %1 = arith.extui %0 : i1 to i32
    %c0_i32_0 = arith.constant 0 : i32
    %2 = arith.cmpi ne, %1, %c0_i32_0 : i32
    scf.if %2 {
      %cst_9 = arith.constant 0.000000e+00 : f32
      %12 = vector.broadcast %cst_9 : f32 to vector<8x128xf32>
      %c0_10 = arith.constant 0 : index
      %c0_11 = arith.constant 0 : index
      %13 = vector.load %arg6[%c0_10, %c0_11] : memref<8x128xf32, #tpu.memory_space<vmem>>, vector<8x128xf32>
      tpu.vector_store %arg6[%c0_10, %c0_11], %12 {strides = array<i32>} : memref<8x128xf32, #tpu.memory_space<vmem>>, vector<8x128xf32>,
    } else {
    }
    %c0 = arith.constant 0 : index
    %c0_1 = arith.constant 0 : index
    %3 = vector.load %arg6[%c0, %c0_1] : memref<8x128xf32, #tpu.memory_space<vmem>>, vector<8x128xf32>
    %c0_2 = arith.constant 0 : index
    %c0_3 = arith.constant 0 : index
    %4 = vector.load %arg2[%c0_2, %c0_3] : memref<8x512xbf16, #tpu.memory_space<vmem>>, vector<8x512xbf16>
    %c0_4 = arith.constant 0 : index
    %c0_5 = arith.constant 0 : index
    %5 = vector.load %arg3[%c0_4, %c0_5] : memref<512x128xbf16, #tpu.memory_space<vmem>>, vector<512x128xbf16>
    %cst = arith.constant dense<0.000000e+00> : vector<8x128xf32>
    %6 = tpu.matmul %4, %5, %cst {dimension_numbers = #tpu.dot_dimension_numbers<[1], [0], [0], [1], [0, 0, 1, 1], [], []>} : vector<8x512xbf16>, vector<512x128xbf16>, vector<8x128xf32> -> vector<8x128xf32>
    %7 = arith.addf %3, %6 : vector<8x128xf32>
    %c0_6 = arith.constant 0 : index
    %c0_7 = arith.constant 0 : index
    %8 = vector.load %arg6[%c0_6, %c0_7] : memref<8x128xf32, #tpu.memory_space<vmem>>, vector<8x128xf32>
    tpu.vector_store %arg6[%c0_6, %c0_7], %7 {strides = array<i32>} : memref<8x128xf32, #tpu.memory_space<vmem>>, vector<8x128xf32>,
    %c4_i32 = arith.constant 4 : i32
    %9 = arith.cmpi eq, %arg1, %c4_i32 : i32
    %10 = arith.extui %9 : i1 to i32
    %c0_i32_8 = arith.constant 0 : i32
    %11 = arith.cmpi ne, %10, %c0_i32_8 : i32
    scf.if %11 {
      %c0_9 = arith.constant 0 : index
      %c0_10 = arith.constant 0 : index
      %12 = vector.load %arg6[%c0_9, %c0_10] : memref<8x128xf32, #tpu.memory_space<vmem>>, vector<8x128xf32>
      %c0_11 = arith.constant 0 : index
      %c0_12 = arith.constant 0 : index
      %13 = vector.load %arg4[%c0_11, %c0_12] : memref<1x128xf32, #tpu.memory_space<vmem>>, vector<1x128xf32>
      %14 = vector.broadcast %13 : vector<1x128xf32> to vector<8x128xf32>
      %15 = arith.addf %12, %14 : vector<8x128xf32>
      %c0_13 = arith.constant 0 : index
      %c0_14 = arith.constant 0 : index
      %16 = vector.load %arg5[%c0_13, %c0_14] : memref<8x128xf32, #tpu.memory_space<vmem>>, vector<8x128xf32>
      tpu.vector_store %arg5[%c0_13, %c0_14], %15 {strides = array<i32>} : memref<8x128xf32, #tpu.memory_space<vmem>>, vector<8x128xf32>,
    } else {
    }
    return
  }
  func.func @transform_0(%arg0: i32, %arg1: i32) -> (i32, i32) {
    %c0_i32 = arith.constant 0 : i32
    return %arg0, %arg1 : i32, i32
  }
  func.func @transform_1(%arg0: i32, %arg1: i32) -> (i32, i32) {
    %c0_i32 = arith.constant 0 : i32
    %c0_i32_0 = arith.constant 0 : i32
    return %arg1, %c0_i32 : i32, i32
  }
  func.func @transform_2(%arg0: i32, %arg1: i32) -> (i32, i32) {
    %c0_i32 = arith.constant 0 : i32
    %c0_i32_0 = arith.constant 0 : i32
    %c0_i32_1 = arith.constant 0 : i32
    return %c0_i32, %c0_i32_0 : i32, i32
  }
  func.func @transform_3(%arg0: i32, %arg1: i32) -> (i32, i32) {
    %c0_i32 = arith.constant 0 : i32
    %c0_i32_0 = arith.constant 0 : i32
    return %arg0, %c0_i32 : i32, i32
  }
}

</mosaic_0001>

<bundles_post_ra>
// kernel: _lambda_.4
= control target key start
LH: loop header
LB: loop body
LE: loop exit
PB: predicated region body
PF: predicated region fallthrough
CT: control target
= control target key end

     0   :  { %s2514_s15 = smov 0   ;;  %s3152_s0 = inlined_call_operand.vmem [shape: bf16[2,14,14,8], index: 0, kind: input, shape index: {}]   ;;  %s3153_s1 = inlined_call_operand.vmem [shape: bf16[72,128], index: 1, kind: input, shape index: {}]   ;;  %s3154_s2 = inlined_call_operand.vmem [shape: f32[1,128], index: 2, kind: input, shape index: {}]   ;;  %s3155_s3 = inlined_call_operand.vmem [shape: bf16[2,144,16], index: 3, kind: output, shape index: {0}]   ;;  %s3156_s4 = inlined_call_operand.vmem [shape: f32[2,8,256], index: 4, kind: output, shape index: {1}]  }
   0x1 LB: > { %s1971_s16 = sadd.s32 4294967295, %s2477_s15   ;;  %p1975_p0 = scmp.ge.s32.totalorder %s2477_s15, 1  ;;  %s2477_s15 = sphi %s2514_s15, %s15_s15  }
   0x2   : > { %p165_p1 = scmp.lt.s32.totalorder %s2477_s15, 3 }
   0x4   : > { %p166_p2 = pnand %p1975_p0, %p165_p1 }
   0x5   : > { %p196_p3 = scmp.lt.s32.totalorder (!%p166_p2), %s1971_s16, 1  ;;  %s2479_s21 = smov (!%p166_p2), 24   ;;  %vm1591_vm0 = vcmask (!%p166_p2), 1043456   ;;  %vm2488_vm1 = vmmov (!%p166_p2), 0   ;;  %vm299_vm2 = vcmask (!%p166_p2), 64512   ;;  %vm303_vm3 = vcmask (!%p166_p2), 130048  }
   0x6   : > { %169 = sbr.rel (%p166_p2) target bundleno = 573 (0x23d), region = 32  ;;  %s2480_s22 = smov (!%p166_p2), 48   ;;  %vm306_vm4 = vcmask (!%p166_p2), 195584   ;;  %vm309_vm5 = vcmask (!%p166_p2), 261120   ;;  %vm312_vm6 = vcmask (!%p166_p2), 326656   ;;  %vm315_vm7 = vcmask (!%p166_p2), 392192  }
   0x7   : > { %s2481_s23 = smov (!%p166_p2), 16   ;;  %s2482_s24 = smov (!%p166_p2), 40   ;;  %vm318_vm8 = vcmask (!%p166_p2), 457728   ;;  %vm321_vm9 = vcmask (!%p166_p2), 523264   ;;  %vm433_vm10 = vcmask (!%p166_p2), 588806   ;;  %vm435_vm11 = vcmask (!%p166_p2), 584704  }
   0x8   : > { %s2483_s25 = smov (!%p166_p2), 8   ;;  %s2484_s26 = smov (!%p166_p2), 32   ;;  %vm325_vm12 = vcmask (!%p166_p2), 586752   ;;  %vm1563_vm13 = vcmask (!%p166_p2), 588800   ;;  %vm543_vm14 = vcmask (!%p166_p2), 588804   ;;  %vm545_vm15 = vcmask (!%p166_p2), 582656  }
   0x9   : > { %s2485_s27 = smov (!%p166_p2), 56   ;;  %s2486_s28 = smov (!%p166_p2), 64  }
   0xd   : > { %s3158_s16 = smov (!%p196_p3, %s1971_s16), 1 }
   0xe   : > { %s2352_s17 = smul.u32 112, %s3158_s16 }
  0x10   : > { %s2528_s20 = scalar_lea.vmem %s3152_s0, %s2352_s17  ;;  %s2353_s17 = smul.u32 72, %s3158_s16 }
  0x11   : > { %v2001_v0 = vld [vmem:[%s2528_s20 + $0x10] sm:$0xf]  ;;  %v2002_v1 = vld [vmem:[%s2528_s20 + $0x14] sm:$0x3]  ;;  %v1980_v4 = vld [vmem:[%s2528_s20 + $0x8] sm:$0xf] }
  0x12   : > { %v2003_v2 = vld [vmem:[%s2528_s20 + $0x14] sm:$0x7]  ;;  %v2012_v3 = vcombine.low %v2001_v0, %v2002_v1  ;;  %v1981_v5 = vld [vmem:[%s2528_s20 + $0xc] sm:$0x3]  ;;  %v2005_v8 = vld [vmem:[%s2528_s20 + $0x18] sm:$0xf] }
  0x13   : > { %v2536_v6 = vld [vmem:[%s2528_s20 + $0xc] sm:$0x7]  ;;  %v1991_v7 = vcombine.low %v1980_v4, %v1981_v5  ;;  %v2006_v9 = vld [vmem:[%s2528_s20 + $0x1c] sm:$0x3]  ;;  %v2013_v10 = vcombine.low %v2001_v0, %v2003_v2  ;;  %v2542_v12 = vld [vmem:[%s2528_s20 + $0x8] sm:$0xf] }
  0x14   : > { %368 = vrot.lane.b32.xlu1 %v2012_v3, %s2479_s21  ;;  %v2015_v11 = vcombine.low %v2005_v8, %v2006_v9  ;;  %v1999_v13 = vld [vmem:[%s2528_s20 + $0xc] sm:$0x7]  ;;  %v2547_v14 = vld [vmem:[%s2528_s20 + $0x1c] sm:$0x7]  ;;  %v2000_v15 = vld [vmem:[%s2528_s20 + $0x8] sm:$0xe]  ;;  %v1992_v18 = vcombine.low %v1980_v4, %v2536_v6 }
  0x15   : > { %254 = vrot.lane.b32.xlu0 %v1991_v7, %s2479_s21  ;;  %v2010_v16 = vcombine.low %v2542_v12, %v1999_v13  ;;  %v2004_v17 = vld [vmem:[%s2528_s20 + $0x10] sm:$0xe]  ;;  %v2011_v19 = vcombine.low %v2000_v15, %v1999_v13  ;;  %v214_v21 = vld [vmem:[%s2528_s20 + $0x4] sm:$0x7]  ;;  %v215_v22 = vld [vmem:[%s2528_s20] sm:$0xe]  ;;  %v2016_v28 = vcombine.low %v2005_v8, %v2547_v14 }
  0x16   : > { %v2014_v20 = vcombine.low %v2004_v17, %v2003_v2  ;;  %v2556_v23 = vld [vmem:[%s2528_s20] sm:$0xf]  ;;  %v1990_v24 = vcombine.low %v215_v22, %v214_v21  ;;  %v376_v27 = vshll.u32 %v2013_v10, 16  ;;  %v262_v33 = vshll.u32 %v1992_v18, 16  ;;  %v2564_v42 = vld [vmem:[%s2528_s20 + $0x10] sm:$0xf] }
  0x17   : > { %v1989_v25 = vcombine.low %v2556_v23, %v214_v21  ;;  %v351_v26 = vshll.u32 %v2010_v16, 16  ;;  %v360_v29 = vrot.slane %v2011_v19, 1  ;;  %v349_v35 = vshrl.u32 %v2010_v16, 16  ;;  %v2020_v43 = vld [vmem:[%s2528_s20 + $0x14] sm:$0x7] }
  0x18   : > { %393 = vrot.lane.b32.xlu1 %v2015_v11, %s2480_s22  ;;  %v385_v30 = vrot.slane %v2014_v20, 1  ;;  %v246_v34 = vrot.slane %v1990_v24, 1  ;;  %v374_v38 = vshrl.u32 %v2013_v10, 16  ;;  %v378_v39 = vrot.slane %v376_v27, 1  ;;  %v1983_v47 = vld [vmem:[%s2528_s20 + $0x8] sm:$0xe] }
  0x19   : > { %v235_v31 = vshrl.u32 %v1989_v25, 16  ;;  %v237_v32 = vshll.u32 %v1989_v25, 16  ;;  %361 = vrot.lane.b32.xlu0 %v360_v29, %s2481_s23  ;;  %v353_v36 = vrot.slane %v351_v26, 1  ;;  %v401_v40 = vshll.u32 %v2016_v28, 16  ;;  %v1984_v48 = vld [vmem:[%s2528_s20 + $0x10] sm:$0xf] }
  0x1a   : > { %v260_v44 = vshrl.u32 %v1992_v18, 16  ;;  %v264_v46 = vrot.slane %v262_v33, 1  ;;  %v1986_v49 = vld [vmem:[%s2528_s20 + $0x14] sm:$0x7]  ;;  %v379_v50 = vor.u32 %v378_v39, %v374_v38  ;;  %v399_v51 = vshrl.u32 %v2016_v28, 16 }
  0x1b   : > { %v239_v37 = vrot.slane %v237_v32, 1  ;;  %v354_v45 = vor.u32 %v353_v36, %v349_v35  ;;  %v403_v52 = vrot.slane %v401_v40, 1  ;;  %v2031_v53 = vcombine.low %v2564_v42, %v2020_v43  ;;  %v2008_v54 = vld [vmem:[%s2528_s20 + $0x18] sm:$0xe]  ;;  %v2024_v62 = vld [vmem:[%s2528_s20 + $0x1c] sm:$0x7] }
  0x1c   : > { %386 = vrot.lane.b32.xlu1 %v385_v30, %s2482_s24  ;;  %v265_v55 = vor.u32 %v264_v46, %v260_v44  ;;  %v1993_v56 = vcombine.low %v1983_v47, %v2536_v6  ;;  %v1995_v57 = vcombine.low %v1984_v48, %v1986_v49  ;;  %v2017_v59 = vcombine.low %v2008_v54, %v2547_v14  ;;  %v2022_v61 = vld [vmem:[%s2528_s20 + $0x18] sm:$0xf]  ;;  %v1985_v1 = vld [vmem:[%s2528_s20 + $0x14] sm:$0x3]  ;;  %v2021_v6 = vld [vmem:[%s2528_s20 + $0x10] sm:$0xe] }
  0x1d   : > { %v240_v41 = vor.u32 %v239_v37, %v235_v31  ;;  %247 = vrot.lane.b32.xlu0 %v246_v34, %s2481_s23  ;;  %v404_v58 = vor.u32 %v403_v52, %v399_v51  ;;  %v461_v60 = vshll.u32 %v2031_v53, 16  ;;  %v459_v3 = vshrl.u32 %v2031_v53, 16  ;;  %v1987_v10 = vld [vmem:[%s2528_s20 + $0x10] sm:$0xe]  ;;  %v2026_v17 = vld [vmem:[%s2528_s20 + $0x20] sm:$0xf] }
  0x1e   : > { %v271_v63 = vrot.slane %v1993_v56, 1  ;;  %v287_v0 = vshll.u32 %v1995_v57, 16  ;;  %v410_v2 = vrot.slane %v2017_v59, 1  ;;  %v2034_v5 = vcombine.low %v2022_v61, %v2024_v62  ;;  %v2028_v18 = vld [vmem:[%s2528_s20 + $0x24] sm:$0x7]  ;;  %v2447_v52 = vld [vmem:[%s3153_s1 + $0x8] sm:$0xff]  }
  0x1f   : > { %v463_v4 = vrot.slane %v461_v60, 1  ;;  %v1994_v7 = vcombine.low %v1984_v48, %v1985_v1  ;;  %v285_v8 = vshrl.u32 %v1995_v57, 16  ;;  %v2032_v13 = vcombine.low %v2021_v6, %v2020_v43  ;;  %v2023_v24 = vld [vmem:[%s2528_s20 + $0x1c] sm:$0x3]  ;;  %v2025_v26 = vld [vmem:[%s2528_s20 + $0x18] sm:$0xe] }
  0x20   : > { %241 = vrot.lane.b32.xlu1 %v240_v41, %s2483_s25  ;;  %v289_v9 = vrot.slane %v287_v0, 1  ;;  %v486_v14 = vshll.u32 %v2034_v5, 16  ;;  %v1996_v16 = vcombine.low %v1987_v10, %v1986_v49  ;;  %v484_v20 = vshrl.u32 %v2034_v5, 16  ;;  %v2595_v27 = vld [vmem:[%s2528_s20 + $0x18] sm:$0xf]  ;;  %v2444_v43 = vld [vmem:[%s3153_s1] sm:$0xff]  }
  0x21   : > { %355 = vrot.lane.b32.xlu0 %v354_v45, %s2483_s25  ;;  %v464_v11 = vor.u32 %v463_v4, %v459_v3  ;;  %v470_v19 = vrot.slane %v2032_v13, 1  ;;  %v2037_v25 = vcombine.low %v2026_v17, %v2028_v18  ;;  %v2041_v28 = vld [vmem:[%s2528_s20 + $0x1c] sm:$0x7]  ;;  %v2027_v30 = vld [vmem:[%s2528_s20 + $0x24] sm:$0x3]  ;;  %v2033_v34 = vcombine.low %v2022_v61, %v2023_v24 }
  0x22   : > { %v290_v15 = vor.u32 %v289_v9, %v285_v8  ;;  %v488_v21 = vrot.slane %v486_v14, 1  ;;  %v296_v22 = vrot.slane %v1996_v16, 1  ;;  %v2029_v31 = vld [vmem:[%s2528_s20 + $0x20] sm:$0xe]  ;;  %v2605_v33 = vld [vmem:[%s2528_s20 + $0x24] sm:$0x7]  ;;  %v2035_v35 = vcombine.low %v2025_v26, %v2024_v62 }
  0x23   : > { %v2602_v32 = vld [vmem:[%s2528_s20 + $0x20] sm:$0xf]  ;;  %v511_v36 = vshll.u32 %v2037_v25, 16  ;;  %v2052_v37 = vcombine.low %v2595_v27, %v2041_v28  ;;  %v2036_v38 = vcombine.low %v2026_v17, %v2027_v30  ;;  %v2038_v39 = vcombine.low %v2029_v31, %v2028_v18  ;;  %v2042_v41 = vld [vmem:[%s2528_s20 + $0x18] sm:$0xe] }
  0x24   : > { %380 = vrot.lane.b32.xlu1 %v379_v50, %s2484_s26  ;;  %v489_v29 = vor.u32 %v488_v21, %v484_v20  ;;  %v2055_v40 = vcombine.low %v2602_v32, %v2605_v33  ;;  %v495_v44 = vrot.slane %v2035_v35, 1  ;;  %v509_v45 = vshrl.u32 %v2037_v25, 16  ;;  %v2047_v56 = vld [vmem:[%s2528_s20 + $0x28] sm:$0xf]  ;;  %v2049_v57 = vld [vmem:[%s2528_s20 + $0x2c] sm:$0x7] }
  0x25   : > { %266 = vrot.lane.b32.xlu0 %v265_v55, %s2484_s26  ;;  %v513_v46 = vrot.slane %v511_v36, 1  ;;  %v571_v47 = vshll.u32 %v2052_v37, 16  ;;  %v520_v48 = vrot.slane %v2038_v39, 1  ;;  %v2053_v49 = vcombine.low %v2042_v41, %v2041_v28  ;;  %v2102_v61 = vld [vmem:[%s2528_s20 + $0x30] sm:$0xf] }
  0x26   : > { %v596_v50 = vshll.u32 %v2055_v40, 16  ;;  %v2487_v51 = vmov 0.0   ;;  %v569_v54 = vshrl.u32 %v2052_v37, 16  ;;  %v594_v59 = vshrl.u32 %v2055_v40, 16  ;;  %v2630_v62 = vld [vmem:[%s2528_s20 + $0x34] sm:$0x7] }
  0x27   : > { %2296 = vmatprep.subr.bf16.mxu0 %v2487_v51  ;;  %v514_v53 = vor.u32 %v513_v46, %v509_v45  ;;  %v573_v55 = vrot.slane %v571_v47, 1  ;;  %2342 = vmatprep.subr.bf16.mxu1 %v2487_v51  ;;  %v2046_v1 = vld [vmem:[%s2528_s20 + $0x20] sm:$0xe]  ;;  %v2044_v3 = vld [vmem:[%s2528_s20 + $0x24] sm:$0x3] }
  0x28   : > { %405 = vrot.lane.b32.xlu1 %v404_v58, %s2485_s27  ;;  %2297 = vmatpush3.bf16.msra.mxu0 %v2444_v43  ;;  %v580_v58 = vrot.slane %v2053_v49, 1  ;;  %v598_v60 = vrot.slane %v596_v50, 1  ;;  %v2641_v4 = vld [vmem:[%s2528_s20 + $0x28] sm:$0xf]  ;;  %v2644_v5 = vld [vmem:[%s2528_s20 + $0x2c] sm:$0x7]  ;;  %v2056_v8 = vcombine.low %v2046_v1, %v2605_v33  ;;  %v2054_v13 = vcombine.low %v2602_v32, %v2044_v3 }
  0x29   : > { %272 = vrot.lane.b32.xlu0 %v271_v63, %s2482_s24  ;;  %2298 = vmatprep.subr.bf16.mxu0 %v2487_v51  ;;  %v2450_v63 = vld [vmem:[%s3153_s1 + $0x10] sm:$0xff]   ;;  %v574_v0 = vor.u32 %v573_v55, %v569_v54  ;;  %v2048_v9 = vld [vmem:[%s2528_s20 + $0x2c] sm:$0x3]  ;;  %v2050_v10 = vld [vmem:[%s2528_s20 + $0x28] sm:$0xe] }
  0x2a   : > { %2347 = vmatpush3.bf16.msra.mxu1 %v2444_v43  ;;  %v599_v6 = vor.u32 %v598_v60, %v594_v59  ;;  %v2660_v16 = vld [vmem:[%s2528_s20 + $0x38] sm:$0xf]  ;;  %v2125_v17 = vld [vmem:[%s2528_s20 + $0x3c] sm:$0x7]  ;;  %v2057_v18 = vcombine.low %v2047_v56, %v2048_v9  ;;  %v605_v21 = vrot.slane %v2056_v8, 1  ;;  %2306 = vmatprep.mubr.msk.bf16.mxu0 %vm2488_vm1, %v2487_v51 }
  0x2b   : > { %2343 = vmatprep.subr.bf16.mxu1 %v2487_v51  ;;  %v2136_v26 = vcombine.low %v2660_v16, %v2125_v17  ;;  %v2084_v32 = vld [vmem:[%s2528_s20 + $0x28] sm:$0xe]  ;;  %v2674_v36 = vld [vmem:[%s2528_s20 + $0x20] sm:$0xf]  ;;  %v2677_v37 = vld [vmem:[%s2528_s20 + $0x24] sm:$0x7]  ;;  %2326 = vmatprep.mubr.msk.bf16.mxu1 %vm2488_vm1, %v2487_v51 }
  0x2c   : > { %411 = vrot.lane.b32.xlu1 %v410_v2, %s2486_s28  ;;  %2299 = vmatpush3.bf16.msra.mxu0 %v2447_v52  ;;  %v2058_v2 = vcombine.low %v2047_v56, %v2049_v57  ;;  %v2095_v40 = vcombine.low %v2084_v32, %v2644_v5  ;;  %v2126_v41 = vld [vmem:[%s2528_s20 + $0x38] sm:$0xe]  ;;  %v2073_v47 = vcombine.low %v2674_v36, %v2677_v37  ;;  %v2085_v56 = vld [vmem:[%s2528_s20 + $0x30] sm:$0xf]  ;;  %v2086_v59 = vld [vmem:[%s2528_s20 + $0x34] sm:$0x3] }
  0x2d   : > { %279 = vrot.lane.b32.xlu0 %v1994_v7, %s2480_s22  ;;  %2300 = vmatprep.subr.bf16.mxu0 %v2487_v51  ;;  %v2115_v7 = vcombine.low %v2102_v61, %v2630_v62  ;;  %v1000_v35 = vshll.u32 %v2136_v26, 16  ;;  %v998_v45 = vshrl.u32 %v2136_v26, 16  ;;  %v2137_v50 = vcombine.low %v2126_v41, %v2125_v17  ;;  %v2129_v60 = vld [vmem:[%s2528_s20 + $0x44] sm:$0x7]  ;;  %v2108_v1 = vld [vmem:[%s2528_s20 + $0x3c] sm:$0x7] }
  0x2e   : > { %2348 = vmatpush3.bf16.msra.mxu1 %v2447_v52  ;;  %v621_v14 = vshll.u32 %v2058_v2, 16  ;;  %v793_v49 = vrot.slane %v2095_v40, 1  ;;  %v2087_v52 = vld [vmem:[%s2528_s20 + $0x34] sm:$0x7]  ;;  %v679_v55 = vshll.u32 %v2073_v47, 16 }
  0x2f   : > { %2344 = vmatprep.subr.bf16.mxu1 %v2487_v51  ;;  %v892_v20 = vshll.u32 %v2115_v7, 16  ;;  %v1002_v46 = vrot.slane %v1000_v35, 1 }
  0x30   : > { %465 = vrot.lane.b32.xlu1 %v464_v11, %s2483_s25  ;;  %2301 = vmatpush3.bf16.msra.mxu0 %v2450_v63  ;;  %v2451_v11 = vld [vmem:[%s3153_s1 + $0x18] sm:$0xff]   ;;  %v623_v24 = vrot.slane %v621_v14, 1 }
  0x31   : > { %291 = vrot.lane.b32.xlu0 %v290_v15, %s2485_s27  ;;  %v2094_v15 = vcombine.low %v2641_v4, %v2644_v5  ;;  %2302 = vmatprep.subr.bf16.mxu0 %v2487_v51  ;;  %v894_v30 = vrot.slane %v892_v20, 1 }
  0x32   : > { %2349 = vmatpush3.bf16.msra.mxu1 %v2450_v63  ;;  %v677_v63 = vshrl.u32 %v2073_v47, 16  ;;  %v2089_v47 = vld [vmem:[%s2528_s20 + $0x38] sm:$0xf] }
  0x33   : > { %v784_v25 = vshll.u32 %v2094_v15, 16  ;;  %2345 = vmatprep.subr.bf16.mxu1 %v2487_v51  ;;  %v782_v31 = vshrl.u32 %v2094_v15, 16 }
  0x34   : > { %471 = vrot.lane.b32.xlu1 %v470_v19, %s2481_s23  ;;  %v2059_v19 = vcombine.low %v2050_v10, %v2049_v57  ;;  %2303 = vmatpush3.bf16.msra.mxu0 %v2451_v11  ;;  %v1009_v57 = vrot.slane %v2137_v50, 1  ;;  %v2107_v10 = vld [vmem:[%s2528_s20 + $0x3c] sm:$0x3] }
  0x35   : > { %297 = vrot.lane.b32.xlu0 %v296_v22, %s2486_s28  ;;  %v619_v22 = vshrl.u32 %v2058_v2, 16  ;;  %2304 = vmatprep.subr.bf16.mxu0 %v2487_v51  ;;  %v2127_v2 = vld [vmem:[%s2528_s20 + $0x40] sm:$0xf]  ;;  %v2090_v50 = vld [vmem:[%s2528_s20 + $0x3c] sm:$0x3] }
  0x36   : > { %v630_v28 = vrot.slane %v2059_v19, 1  ;;  %2350 = vmatpush3.bf16.msra.mxu1 %v2451_v11  ;;  %v2139_v3 = vcombine.low %v2127_v2, %v2129_v60  ;;  %v2063_v11 = vld [vmem:[%s2528_s20 + $0x20] sm:$0xe] }
  0x37   : > { %v624_v33 = vor.u32 %v623_v24, %v619_v22  ;;  %2346 = vmatprep.subr.bf16.mxu1 %v2487_v51  ;;  %v2074_v19 = vcombine.low %v2063_v11, %v2677_v37 }
  0x38   : > { %490 = vrot.lane.b32.xlu1 %v489_v29, %s2484_s26  ;;  %v890_v29 = vshrl.u32 %v2115_v7, 16  ;;  %v2128_v7 = vld [vmem:[%s2528_s20 + $0x44] sm:$0x3]  ;;  %v1025_v17 = vshll.u32 %v2139_v3, 16  ;;  %v1023_v22 = vshrl.u32 %v2139_v3, 16 }
  0x39   : > { %478 = vrot.lane.b32.xlu0 %v2033_v34, %s2479_s21  ;;  %v786_v34 = vrot.slane %v784_v25, 1  ;;  %v2088_v25 = vld [vmem:[%s2528_s20 + $0x30] sm:$0xe]  ;;  %v688_v26 = vrot.slane %v2074_v19, 1 }
  0x3a   : > { %v895_v39 = vor.u32 %v894_v30, %v890_v29  ;;  %v1027_v24 = vrot.slane %v1025_v17, 1  ;;  %v2066_v30 = vld [vmem:[%s2528_s20 + $0x2c] sm:$0x7]  ;;  %v2098_v32 = vcombine.low %v2088_v25, %v2087_v52  ;;  %v2750_v17 = vld [vmem:[%s2528_s20 + $0x48] sm:$0xf] }
  0x3c   : > { %503 = vrot.lane.b32.xlu1 %v2036_v38, %s2480_s22  ;;  %v2454_v38 = vld [vmem:[%s3153_s1 + $0x20] ss:$0 sps:$4 sm:$0xff]   ;;  %v818_v40 = vrot.slane %v2098_v32, 1  ;;  %v2069_v32 = vld [vmem:[%s2528_s20 + $0x34] sm:$0x3] }
  0x3d   : > { %496 = vrot.lane.b32.xlu0 %v495_v44, %s2482_s24  ;;  %v1593_v43 = vsel %vm1591_vm0, %v2454_v38, 0  ;;  %v787_v44 = vor.u32 %v786_v34, %v782_v31  ;;  %v1028_v31 = vor.u32 %v1027_v24, %v1023_v22  ;;  %v2130_v34 = vld [vmem:[%s2528_s20 + $0x40] sm:$0xe]  ;;  %v2065_v38 = vld [vmem:[%s2528_s20 + $0x2c] sm:$0x3]  ;;  %vm653_vm0 = vcmask 588802  }
  0x3e   : > { %2305 = vmatpush3.bf16.msra.mxu0 %v1593_v43  ;;  %2351 = vmatpush3.bf16.msra.mxu1 %v1593_v43  ;;  %v2140_v41 = vcombine.low %v2130_v34, %v2129_v60  ;;  %v2091_v43 = vld [vmem:[%s2528_s20 + $0x3c] sm:$0x7]  ;;  %v2070_v22 = vld [vmem:[%s2528_s20 + $0x34] sm:$0x7] }
  0x40   : > { %521 = vrot.lane.b32.xlu1 %v520_v48, %s2486_s28  ;;  %v2105_v48 = vld [vmem:[%s2528_s20 + $0x30] sm:$0xe] }
  0x41   : > { %515 = vrot.lane.b32.xlu0 %v514_v53, %s2485_s27  ;;  %v1003_v53 = vor.u32 %v1002_v46, %v998_v45  ;;  %v2116_v54 = vcombine.low %v2105_v48, %v2630_v62  ;;  %v2096_v62 = vcombine.low %v2085_v56, %v2086_v59  ;;  %v1034_v48 = vrot.slane %v2140_v41, 1 }
  0x43   : > { %v901_v61 = vrot.slane %v2116_v54, 1 }
  0x44   : > { %581 = vrot.lane.b32.xlu1 %v580_v58, %s2481_s23  ;;  %v2097_v58 = vcombine.low %v2085_v56, %v2087_v52  ;;  %v2730_v52 = vld [vmem:[%s2528_s20 + $0x4c] sm:$0x7]  ;;  %v2734_v56 = vld [vmem:[%s2528_s20 + $0x44] sm:$0x7] }
  0x45   : > { %575 = vrot.lane.b32.xlu0 %v574_v0, %s2483_s25  ;;  %v681_v0 = vrot.slane %v679_v55, 1 }
  0x46   : > { %v809_v5 = vshll.u32 %v2097_v58, 16  ;;  %v807_v14 = vshrl.u32 %v2097_v58, 16  ;;  %v2099_v58 = vcombine.low %v2089_v47, %v2090_v50  ;;  %v2169_v50 = vld [vmem:[%s2528_s20 + $0x50] sm:$0xf] }
  0x47   : > { %v682_v8 = vor.u32 %v681_v0, %v677_v63  ;;  %v2132_v63 = vld [vmem:[%s2528_s20 + $0x4c] sm:$0x3] }
  0x48   : > { %600 = vrot.lane.b32.xlu1 %v599_v6, %s2484_s26  ;;  %v2106_v6 = vld [vmem:[%s2528_s20 + $0x38] sm:$0xf]  ;;  %v811_v15 = vrot.slane %v809_v5, 1 }
  0x49   : > { %588 = vrot.lane.b32.xlu0 %v2054_v13, %s2479_s21  ;;  %v2118_v9 = vcombine.low %v2106_v6, %v2108_v1  ;;  %v2138_v13 = vcombine.low %v2127_v2, %v2128_v7  ;;  %v2111_v2 = vld [vmem:[%s2528_s20 + $0x44] sm:$0x3] }
  0x4b   : > { %v917_v20 = vshll.u32 %v2118_v9, 16 }
  0x4c   : > { %613 = vrot.lane.b32.xlu1 %v2057_v18, %s2480_s22  ;;  %v2117_v18 = vcombine.low %v2106_v6, %v2107_v10 }
  0x4d   : > { %606 = vrot.lane.b32.xlu0 %v605_v21, %s2482_s24  ;;  %v812_v21 = vor.u32 %v811_v15, %v807_v14  ;;  %v919_v29 = vrot.slane %v917_v20, 1  ;;  %v2092_v15 = vld [vmem:[%s2528_s20 + $0x38] sm:$0xe] }
  0x4e   : > { %v2101_v25 = vcombine.low %v2092_v15, %v2091_v43  ;;  %v2147_v15 = vld [vmem:[%s2528_s20 + $0x40] sm:$0xe] }
  0x50   : > { %631 = vrot.lane.b32.xlu1 %v630_v28, %s2486_s28  ;;  %v915_v28 = vshrl.u32 %v2118_v9, 16  ;;  %v843_v34 = vrot.slane %v2101_v25, 1 }
  0x51   : > { %625 = vrot.lane.b32.xlu0 %v624_v33, %s2485_s27  ;;  %v2064_v33 = vld [vmem:[%s2528_s20 + $0x28] sm:$0xf] }
  0x52   : > { %v920_v35 = vor.u32 %v919_v29, %v915_v28  ;;  %v2076_v37 = vcombine.low %v2064_v33, %v2066_v30  ;;  %v2068_v28 = vld [vmem:[%s2528_s20 + $0x30] sm:$0xf]  ;;  %v2134_v29 = vld [vmem:[%s2528_s20 + $0x48] sm:$0xe] }
  0x54   : > { %896 = vrot.lane.b32.xlu1 %v895_v39, %s2483_s25  ;;  %v2109_v39 = vld [vmem:[%s2528_s20 + $0x38] sm:$0xe]  ;;  %v704_v46 = vshll.u32 %v2076_v37, 16  ;;  %v702_v54 = vshrl.u32 %v2076_v37, 16 }
  0x55   : > { %788 = vrot.lane.b32.xlu0 %v787_v44, %s2483_s25  ;;  %v2075_v44 = vcombine.low %v2064_v33, %v2065_v38  ;;  %v2119_v45 = vcombine.low %v2109_v39, %v2108_v1  ;;  %v2113_v33 = vld [vmem:[%s2528_s20 + $0x40] sm:$0xe]  ;;  %v2078_v39 = vcombine.low %v2068_v28, %v2069_v32 }
  0x56   : > { %v706_v55 = vrot.slane %v704_v46, 1 }
  0x58   : > { %794 = vrot.lane.b32.xlu1 %v793_v49, %s2481_s23  ;;  %v2100_v49 = vcombine.low %v2089_v47, %v2091_v43  ;;  %v707_v0 = vor.u32 %v706_v55, %v702_v54 }
  0x59   : > { %1004 = vrot.lane.b32.xlu0 %v1003_v53, %s2483_s25  ;;  %v926_v53 = vrot.slane %v2119_v45, 1  ;;  %v2774_v45 = vld [vmem:[%s2528_s20 + $0x44] sm:$0x7] }
  0x5a   : > { %v834_v60 = vshll.u32 %v2100_v49, 16  ;;  %v832_v5 = vshrl.u32 %v2100_v49, 16  ;;  %v2168_v49 = vld [vmem:[%s2528_s20 + $0x48] sm:$0xe] }
  0x5c   : > { %1010 = vrot.lane.b32.xlu1 %v1009_v57, %s2481_s23  ;;  %v2131_v57 = vld [vmem:[%s2528_s20 + $0x48] sm:$0xf]  ;;  %v836_v6 = vrot.slane %v834_v60, 1 }
  0x5d   : > { %902 = vrot.lane.b32.xlu0 %v901_v61, %s2481_s23  ;;  %v2142_v59 = vcombine.low %v2131_v57, %v2730_v52  ;;  %v2110_v61 = vld [vmem:[%s2528_s20 + $0x40] sm:$0xf]  ;;  %v2141_v3 = vcombine.low %v2131_v57, %v2132_v63 }
  0x5e   : > { %v2121_v1 = vcombine.low %v2110_v61, %v2734_v56  ;;  %v837_v11 = vor.u32 %v836_v6, %v832_v5 }
  0x5f   : > { %v1050_v7 = vshll.u32 %v2142_v59, 16 }
  0x60   : > { %801 = vrot.lane.b32.xlu1 %v2096_v62, %s2479_s21  ;;  %v2067_v62 = vld [vmem:[%s2528_s20 + $0x28] sm:$0xe]  ;;  %v942_v10 = vshll.u32 %v2121_v1, 16  ;;  %v940_v20 = vshrl.u32 %v2121_v1, 16 }
  0x61   : > { %683 = vrot.lane.b32.xlu0 %v682_v8, %s2483_s25  ;;  %v2120_v8 = vcombine.low %v2110_v61, %v2111_v2  ;;  %v2077_v9 = vcombine.low %v2067_v62, %v2066_v30  ;;  %v1052_v14 = vrot.slane %v1050_v7, 1  ;;  %v1998_v2 = vld [vmem:[%s2528_s20 + $0xc] sm:$0x3] }
  0x63   : > { %v713_v19 = vrot.slane %v2077_v9, 1  ;;  %v2170_v9 = vld [vmem:[%s2528_s20 + $0x54] sm:$0x3] }
  0x64   : > { %1017 = vrot.lane.b32.xlu1 %v2138_v13, %s2479_s21  ;;  %v1048_v13 = vshrl.u32 %v2142_v59, 16 }
  0x65   : > { %909 = vrot.lane.b32.xlu0 %v2117_v18, %s2479_s21  ;;  %v2167_v18 = vld [vmem:[%s2528_s20 + $0x4c] sm:$0x7] }
  0x66   : > { %v1053_v24 = vor.u32 %v1052_v14, %v1048_v13  ;;  %v2179_v61 = vcombine.low %v2168_v49, %v2167_v18 }
  0x68   : > { %813 = vrot.lane.b32.xlu1 %v812_v21, %s2484_s26  ;;  %v944_v21 = vrot.slane %v942_v10, 1  ;;  %v1221_v6 = vrot.slane %v2179_v61, 1 }
  0x69   : > { %689 = vrot.lane.b32.xlu0 %v688_v26, %s2481_s23  ;;  %v2178_v26 = vcombine.low %v2750_v17, %v2167_v18  ;;  %v2800_v18 = vld [vmem:[%s2528_s20 + $0x48] sm:$0xf] }
  0x6a   : > { %v945_v30 = vor.u32 %v944_v21, %v940_v20  ;;  %v213_v21 = vld [vmem:[%s2528_s20 + $0x4] sm:$0x3] }
  0x6b   : > { %v1212_v37 = vshll.u32 %v2178_v26, 16  ;;  %v1210_v47 = vshrl.u32 %v2178_v26, 16  ;;  %v2172_v26 = vld [vmem:[%s2528_s20 + $0x50] sm:$0xe] }
  0x6c   : > { %1029 = vrot.lane.b32.xlu1 %v1028_v31, %s2484_s26  ;;  %v2079_v31 = vcombine.low %v2068_v28, %v2070_v22  ;;  %v2810_v28 = vld [vmem:[%s2528_s20 + $0x58] sm:$0xf] }
  0x6d   : > { %921 = vrot.lane.b32.xlu0 %v920_v35, %s2484_s26  ;;  %v2143_v35 = vcombine.low %v2134_v29, %v2730_v52  ;;  %v2780_v52 = vld [vmem:[%s2528_s20 + $0x54] sm:$0x7]  ;;  %v2813_v29 = vld [vmem:[%s2528_s20 + $0x5c] sm:$0x7] }
  0x6e   : > { %v729_v41 = vshll.u32 %v2079_v31, 16  ;;  %v727_v55 = vshrl.u32 %v2079_v31, 16  ;;  %v2181_v63 = vcombine.low %v2169_v50, %v2780_v52 }
  0x6f   : > { %v1059_v46 = vrot.slane %v2143_v35, 1  ;;  %v1988_v35 = vcombine.low %v2556_v23, %v213_v21 }
  0x70   : > { %819 = vrot.lane.b32.xlu1 %v818_v40, %s2482_s24  ;;  %v2122_v40 = vcombine.low %v2113_v33, %v2734_v56  ;;  %v731_v56 = vrot.slane %v729_v41, 1  ;;  %v1237_v7 = vshll.u32 %v2181_v63, 16  ;;  %v2158_v33 = vcombine.low %v2147_v15, %v2774_v45 }
  0x71   : > { %696 = vrot.lane.b32.xlu0 %v2075_v44, %s2479_s21  ;;  %v2771_v44 = vld [vmem:[%s2528_s20 + $0x40] sm:$0xf] }
  0x72   : > { %v951_v54 = vrot.slane %v2122_v40, 1  ;;  %v2157_v57 = vcombine.low %v2771_v44, %v2774_v45  ;;  %v732_v1 = vor.u32 %v731_v56, %v727_v55  ;;  %v2184_v45 = vcombine.low %v2810_v28, %v2813_v29  ;;  %v2174_v56 = vld [vmem:[%s2528_s20 + $0x5c] sm:$0x3] }
  0x74   : > { %1035 = vrot.lane.b32.xlu1 %v1034_v48, %s2482_s24  ;;  %v1214_v48 = vrot.slane %v1212_v37, 1  ;;  %v1105_v13 = vshrl.u32 %v2157_v57, 16 }
  0x75   : > { %927 = vrot.lane.b32.xlu0 %v926_v53, %s2482_s24 }
  0x76   : > { %v1215_v60 = vor.u32 %v1214_v48, %v1210_v47 }
  0x78   : > { %826 = vrot.lane.b32.xlu1 %v2099_v58, %s2480_s22  ;;  %v2071_v58 = vld [vmem:[%s2528_s20 + $0x30] sm:$0xe] }
  0x79   : > { %708 = vrot.lane.b32.xlu0 %v707_v0, %s2484_s26  ;;  %v2080_v62 = vcombine.low %v2071_v58, %v2070_v22  ;;  %v1235_v22 = vshrl.u32 %v2181_v63, 16  ;;  %v2837_v58 = vld [vmem:[%s2528_s20 + $0x50] sm:$0xf] }
  0x7c   : > { %1042 = vrot.lane.b32.xlu1 %v2141_v3, %s2480_s22  ;;  %v1107_v3 = vshll.u32 %v2157_v57, 16  ;;  %v1262_v57 = vshll.u32 %v2184_v45, 16 }
  0x7d   : > { %934 = vrot.lane.b32.xlu0 %v2120_v8, %s2480_s22  ;;  %v2009_v8 = vcombine.low %v2542_v12, %v1998_v2  ;;  %v2180_v12 = vcombine.low %v2169_v50, %v2170_v9  ;;  %v2149_v50 = vld [vmem:[%s2528_s20 + $0x4c] sm:$0x3] }
  0x7e   : > { %v1109_v14 = vrot.slane %v1107_v3, 1  ;;  %v2159_v61 = vcombine.low %v2800_v18, %v2149_v50  ;;  %v2151_v3 = vld [vmem:[%s2528_s20 + $0x48] sm:$0xe] }
  0x80   : > { %838 = vrot.lane.b32.xlu1 %v837_v11, %s2485_s27  ;;  %v738_v11 = vrot.slane %v2080_v62, 1  ;;  %v1110_v32 = vor.u32 %v1109_v14, %v1105_v13  ;;  %v2183_v62 = vcombine.low %v2810_v28, %v2174_v56  ;;  %v2176_v13 = vld [vmem:[%s2528_s20 + $0x58] sm:$0xe] }
  0x81   : > { %714 = vrot.lane.b32.xlu0 %v713_v19, %s2482_s24  ;;  %v2803_v19 = vld [vmem:[%s2528_s20 + $0x4c] sm:$0x7]  ;;  %v2870_v28 = vld [vmem:[%s2528_s20 + $0x58] sm:$0xf] }
  0x84   : > { %1054 = vrot.lane.b32.xlu1 %v1053_v24, %s2485_s27  ;;  %v1239_v24 = vrot.slane %v1237_v7, 1  ;;  %v2852_v7 = vld [vmem:[%s2528_s20 + $0x54] sm:$0x7] }
  0x85   : > { %946 = vrot.lane.b32.xlu0 %v945_v30, %s2485_s27 }
  0x86   : > { %v2765_v38 = vpop.permute.xlu1 %368  ;;  %v1240_v41 = vor.u32 %v1239_v24, %v1235_v22  ;;  %v2019_v24 = vld [vmem:[%s2528_s20 + $0x14] sm:$0x3] }
  0x87   : > { %v2768_v43 = vpop.permute.xlu0 %254 }
  0x88   : > { %844 = vrot.lane.b32.xlu1 %v843_v34, %s2486_s28  ;;  %v2160_v34 = vcombine.low %v2800_v18, %v2803_v19 }
  0x89   : > { %721 = vrot.lane.b32.xlu0 %v2078_v39, %s2480_s22 }
  0x8a   : > { %v2783_v53 = vpop.permute.xlu1 %393  ;;  %v1132_v48 = vshll.u32 %v2160_v34, 16  ;;  %v1130_v63 = vshrl.u32 %v2160_v34, 16  ;;  %v2030_v34 = vcombine.low %v2564_v42, %v2019_v24  ;;  %v2195_v24 = vld [vmem:[%s2528_s20 + $0x64] sm:$0x3] }
  0x8b   : > { %v362_v59 = vpop.permute.xlu0 %361 }
  0x8c   : > { %1060 = vrot.lane.b32.xlu1 %v1059_v46, %s2486_s28  ;;  %v2182_v46 = vcombine.low %v2172_v26, %v2780_v52 }
  0x8d   : > { %952 = vrot.lane.b32.xlu0 %v951_v54, %s2486_s28 }
  0x8e   : > { %v387_v0 = vpop.permute.xlu1 %386  ;;  %v1246_v55 = vrot.slane %v2182_v46, 1 }
  0x8f   : > { %v2792_v5 = vpop.permute.xlu0 %247 }
  0x90   : > { %1216 = vrot.lane.b32.xlu1 %v1215_v60, %s2483_s25 }
  0x91   : > { %733 = vrot.lane.b32.xlu0 %v732_v1, %s2485_s27 }
  0x92   : > { %v242_v10 = vpop.permute.xlu1 %241 }
  0x93   : > { %v356_v20 = vpop.permute.xlu0 %355  ;;  %v302_v54 = vsel %vm299_vm2, %v1988_v35, %v242_v10  ;;  %v1260_v10 = vshrl.u32 %v2184_v45, 16  ;;  %v2153_v35 = vld [vmem:[%s2528_s20 + $0x54] sm:$0x3] }
  0x94   : > { %1222 = vrot.lane.b32.xlu1 %v1221_v6, %s2481_s23  ;;  %v415_v25 = vsel %vm299_vm2, %v2009_v8, %v356_v20  ;;  %v305_v1 = vsel %vm303_vm3, %v302_v54, %v2792_v5  ;;  %v2152_v6 = vld [vmem:[%s2528_s20 + $0x50] sm:$0xf]  ;;  %v2161_v20 = vcombine.low %v2151_v3, %v2803_v19 }
  0x95   : > { %v417_v30 = vsel %vm303_vm3, %v415_v25, %v362_v59  ;;  %739 = vrot.lane.b32.xlu0 %v738_v11, %s2486_s28  ;;  %v2840_v59 = vld [vmem:[%s2528_s20 + $0x54] sm:$0x7]  ;;  %v1264_v11 = vrot.slane %v1262_v57, 1  ;;  %v308_v5 = vsel %vm306_vm4, %v305_v1, %v2768_v43  ;;  %v2163_v21 = vcombine.low %v2152_v6, %v2852_v7  ;;  %v2155_v54 = vld [vmem:[%s2528_s20 + $0x50] sm:$0xe] }
  0x96   : > { %v381_v31 = vpop.permute.xlu1 %380  ;;  %v419_v37 = vsel %vm306_vm4, %v417_v30, %v2765_v38  ;;  %v1116_v38 = vrot.slane %v2158_v33, 1  ;;  %v2199_v14 = vcombine.low %v2837_v58, %v2840_v59  ;;  %v2873_v30 = vld [vmem:[%s2528_s20 + $0x5c] sm:$0x7]  ;;  %v2194_v1 = vld [vmem:[%s2528_s20 + $0x60] sm:$0xf] }
  0x97   : > { %v267_v39 = vpop.permute.xlu0 %266  ;;  %v421_v40 = vsel %vm309_vm5, %v419_v37, %v381_v31  ;;  %v1265_v43 = vor.u32 %v1264_v11, %v1260_v10  ;;  %v2202_v45 = vcombine.low %v2870_v28, %v2873_v30 }
  0x98   : > { %1229 = vrot.lane.b32.xlu1 %v2180_v12, %s2479_s21  ;;  %v423_v47 = vsel %vm312_vm6, %v421_v40, %v387_v0  ;;  %v1134_v0 = vrot.slane %v1132_v48, 1  ;;  %v2185_v12 = vcombine.low %v2176_v13, %v2813_v29  ;;  %v1320_v25 = vshll.u32 %v2199_v14, 16  ;;  %v2040_v13 = vld [vmem:[%s2528_s20 + $0x1c] sm:$0x3] }
  0x99   : > { %1111 = vrot.lane.b32.xlu0 %v1110_v32, %s2483_s25  ;;  %v425_v49 = vsel %vm315_vm7, %v423_v47, %v2783_v53  ;;  %v311_v26 = vsel %vm309_vm5, %v308_v5, %v267_v39  ;;  %v1141_v29 = vrot.slane %v2161_v20, 1  ;;  %v1157_v32 = vshll.u32 %v2163_v21, 16  ;;  %v2209_v20 = vld [vmem:[%s2528_s20 + $0x5c] sm:$0x7] }
  0x9a   : > { %v406_v23 = vpop.permute.xlu1 %405  ;;  %v1135_v18 = vor.u32 %v1134_v0, %v1130_v63  ;;  %v1271_v37 = vrot.slane %v2185_v12, 1  ;;  %v1322_v46 = vrot.slane %v1320_v25, 1  ;;  %v1155_v48 = vshrl.u32 %v2163_v21, 16 }
  0x9b   : > { %v273_v52 = vpop.permute.xlu0 %272  ;;  %v427_v53 = vsel %vm318_vm8, %v425_v49, %v406_v23  ;;  %v2189_v23 = vld [vmem:[%s2528_s20 + $0x50] sm:$0xe]  ;;  %v1159_v49 = vrot.slane %v1157_v32, 1  ;;  %v2164_v0 = vcombine.low %v2155_v54, %v2852_v7  ;;  %v2051_v25 = vcombine.low %v2595_v27, %v2040_v13 }
  0x9c   : > { %1241 = vrot.lane.b32.xlu1 %v1240_v41, %s2484_s26  ;;  %v314_v31 = vsel %vm312_vm6, %v311_v26, %v273_v52  ;;  %v1318_v41 = vshrl.u32 %v2199_v14, 16  ;;  %v2200_v57 = vcombine.low %v2189_v23, %v2840_v59  ;;  %v2191_v14 = vld [vmem:[%s2528_s20 + $0x5c] sm:$0x3] }
  0x9d   : > { %1117 = vrot.lane.b32.xlu0 %v1116_v38, %s2481_s23  ;;  %v2162_v38 = vcombine.low %v2152_v6, %v2153_v35  ;;  %v1160_v63 = vor.u32 %v1159_v49, %v1155_v48  ;;  %v1343_v6 = vshrl.u32 %v2202_v45, 16  ;;  %v1166_v11 = vrot.slane %v2164_v0, 1 }
  0x9e   : > { %v412_v60 = vpop.permute.xlu1 %411  ;;  %v1323_v56 = vor.u32 %v1322_v46, %v1318_v41  ;;  %v1329_v59 = vrot.slane %v2200_v57, 1  ;;  %v2201_v26 = vcombine.low %v2870_v28, %v2191_v14  ;;  %v2204_v28 = vcombine.low %v2194_v1, %v2195_v24 }
  0x9f   : > { %v429_v2 = vsel %vm321_vm9, %v427_v53, %v412_v60  ;;  %v280_v8 = vpop.permute.xlu0 %279  ;;  %v1345_v53 = vshll.u32 %v2202_v45, 16  ;;  %v2210_v45 = vld [vmem:[%s2528_s20 + $0x58] sm:$0xe] }
  0xa0   : > { %v431_v9 = vrot.slane %v429_v2, 2  ;;  %1247 = vrot.lane.b32.xlu1 %v1246_v55, %s2482_s24  ;;  %v317_v33 = vsel %vm315_vm7, %v314_v31, %v280_v8  ;;  %v2196_v2 = vld [vmem:[%s2528_s20 + $0x64] sm:$0x7]  ;;  %v2197_v31 = vld [vmem:[%s2528_s20 + $0x60] sm:$0xe]  ;;  %v2221_v54 = vcombine.low %v2210_v45, %v2209_v20 }
  0xa1   : > { %1124 = vrot.lane.b32.xlu0 %v2159_v61, %s2479_s21  ;;  %v1347_v8 = vrot.slane %v1345_v53, 1  ;;  %v2205_v5 = vcombine.low %v2194_v1, %v2196_v2 }
  0xa2   : > { %434 = vst.msk [vmem:[#allocation2] sm:$0xc0] %vm433_vm10, %v431_v9  ;;  %v466_v15 = vpop.permute.xlu1 %465 }
  0xa3   : > { %436 = vst.msk [vmem:[#allocation2 + $0x8] sm:$0xf] %vm435_vm11, %v431_v9  ;;  %v292_v22 = vpop.permute.xlu0 %291  ;;  %v525_v50 = vsel %vm299_vm2, %v2030_v34, %v466_v15  ;;  %v2193_v15 = vld [vmem:[%s2528_s20 + $0x58] sm:$0xe]  ;;  %v1370_v35 = vshll.u32 %v2205_v5, 16  ;;  %v1368_v23 = vshrl.u32 %v2205_v5, 16 }
  0xa4   : > { %1254 = vrot.lane.b32.xlu1 %v2183_v62, %s2480_s22  ;;  %v320_v39 = vsel %vm318_vm8, %v317_v33, %v292_v22  ;;  %v1348_v22 = vor.u32 %v1347_v8, %v1343_v6  ;;  %v2203_v34 = vcombine.low %v2193_v15, %v2873_v30 }
  0xa5   : > { %1136 = vrot.lane.b32.xlu0 %v1135_v18, %s2484_s26  ;;  %v2909_v18 = vld [vmem:[%s2528_s20 + $0x58] sm:$0xf] }
  0xa6   : > { %v472_v19 = vpop.permute.xlu1 %471 }
  0xa7   : > { %v298_v40 = vpop.permute.xlu0 %297  ;;  %v527_v52 = vsel %vm303_vm3, %v525_v50, %v472_v19  ;;  %v2920_v19 = vld [vmem:[%s2528_s20 + $0x60] sm:$0xf] }
  0xa8   : > { %1266 = vrot.lane.b32.xlu1 %v1265_v43, %s2485_s27  ;;  %v323_v47 = vsel %vm321_vm9, %v320_v39, %v298_v40  ;;  %v2206_v40 = vcombine.low %v2197_v31, %v2196_v2 }
  0xa9   : > { %326 = vst.msk [vmem:[#allocation2] sm:$0x3f] %vm325_vm12, %v323_v47  ;;  %1142 = vrot.lane.b32.xlu0 %v1141_v29, %s2482_s24  ;;  %v2923_v29 = vld [vmem:[%s2528_s20 + $0x64] sm:$0x7]  ;;  %v1354_v47 = vrot.slane %v2203_v34, 1 }
  0xaa   : > { %v491_v42 = vpop.permute.xlu1 %490  ;;  %v2223_v41 = vcombine.low %v2920_v19, %v2923_v29  ;;  %v1379_v50 = vrot.slane %v2206_v40, 1 }
  0xab   : > { %v479_v55 = vpop.permute.xlu0 %478 }
  0xac   : > { %1272 = vrot.lane.b32.xlu1 %v1271_v37, %s2486_s28  ;;  %v529_v60 = vsel %vm306_vm4, %v527_v52, %v479_v55  ;;  %v2220_v37 = vcombine.low %v2909_v18, %v2209_v20  ;;  %v1453_v52 = vshll.u32 %v2223_v41, 16  ;;  %v2216_v20 = vld [vmem:[%s2528_s20 + $0x6c] sm:$0x3] }
  0xad   : > { %1149 = vrot.lane.b32.xlu0 %v2162_v38, %s2480_s22  ;;  %v531_v62 = vsel %vm309_vm5, %v529_v60, %v491_v42  ;;  %v1372_v42 = vrot.slane %v1370_v35, 1 }
  0xae   : > { %v504_v61 = vpop.permute.xlu1 %503  ;;  %v1428_v38 = vshll.u32 %v2220_v37, 16  ;;  %v1426_v53 = vshrl.u32 %v2220_v37, 16 }
  0xaf   : > { %v497_v3 = vpop.permute.xlu0 %496  ;;  %v1373_v57 = vor.u32 %v1372_v42, %v1368_v23 }
  0xb0   : > { %1324 = vrot.lane.b32.xlu1 %v1323_v56, %s2483_s25  ;;  %v533_v9 = vsel %vm312_vm6, %v531_v62, %v497_v3  ;;  %v1511_v10 = vld [vmem:[#allocation2] sm:$0xff]  ;;  %v1430_v60 = vrot.slane %v1428_v38, 1  ;;  %v1437_v62 = vrot.slane %v2221_v54, 1  ;;  %v1451_v3 = vshrl.u32 %v2223_v41, 16 }
  0xb1   : > { %1161 = vrot.lane.b32.xlu0 %v1160_v63, %s2485_s27  ;;  %2307 = vmatmul.mubr.msk.bf16.vlgmr.msra.gmra.mrb[0].mxu0 %vm1563_vm13, %v1511_v10  ;;  %v535_v21 = vsel %vm315_vm7, %v533_v9, %v504_v61  ;;  %v2215_v61 = vld [vmem:[%s2528_s20 + $0x68] sm:$0xf]  ;;  %v2217_v63 = vld [vmem:[%s2528_s20 + $0x6c] sm:$0x7] }
  0xb2   : > { %v522_v7 = vpop.permute.xlu1 %521  ;;  %2310 = vmatprep.mubr.msk.bf16.mxu0 %vm2488_vm1, %v2487_v51  ;;  %v1431_v9 = vor.u32 %v1430_v60, %v1426_v53  ;;  %v2226_v10 = vcombine.low %v2215_v61, %v2217_v63 }
  0xb3   : > { %v516_v12 = vpop.permute.xlu0 %515 }
  0xb4   : > { %1330 = vrot.lane.b32.xlu1 %v1329_v59, %s2481_s23  ;;  %v537_v43 = vsel %vm318_vm8, %v535_v21, %v516_v12  ;;  %v1455_v59 = vrot.slane %v1453_v52, 1  ;;  %v2218_v21 = vld [vmem:[%s2528_s20 + $0x68] sm:$0xe]  ;;  %v1476_v37 = vshrl.u32 %v2226_v10, 16 }
  0xb5   : > { %v539_v32 = vsel %vm321_vm9, %v537_v43, %v522_v7  ;;  %1167 = vrot.lane.b32.xlu0 %v1166_v11, %s2486_s28  ;;  %v2212_v7 = vld [vmem:[%s2528_s20 + $0x64] sm:$0x3]  ;;  %v2214_v11 = vld [vmem:[%s2528_s20 + $0x60] sm:$0xe] }
  0xb6   : > { %v582_v33 = vpop.permute.xlu1 %581  ;;  %v541_v39 = vrot.slane %v539_v32, 4  ;;  %v1456_v5 = vor.u32 %v1455_v59, %v1451_v3  ;;  %v2222_v24 = vcombine.low %v2920_v19, %v2212_v7  ;;  %v2224_v43 = vcombine.low %v2214_v11, %v2923_v29 }
  0xb7   : > { %v576_v27 = vpop.permute.xlu0 %575  ;;  %v2225_v32 = vcombine.low %v2215_v61, %v2216_v20 }
  0xb8   : > { %1349 = vrot.lane.b32.xlu1 %v1348_v22, %s2484_s26  ;;  %544 = vst.msk [vmem:[#allocation2 + $0x8] sm:$0xf0] %vm543_vm14, %v541_v39  ;;  %v635_v46 = vsel %vm299_vm2, %v2051_v25, %v576_v27  ;;  %v1478_v25 = vshll.u32 %v2226_v10, 16  ;;  %v1462_v35 = vrot.slane %v2224_v43, 1 }
  0xb9   : > { %546 = vst.msk [vmem:[#allocation2 + $0x10] sm:$0x3] %vm545_vm15, %v541_v39  ;;  %1337 = vrot.lane.b32.xlu0 %v2201_v26, %s2479_s21  ;;  %v637_v48 = vsel %vm303_vm3, %v635_v46, %v582_v33  ;;  %v2227_v33 = vcombine.low %v2218_v21, %v2217_v63  ;;  %v2124_v63 = vld [vmem:[%s2528_s20 + $0x3c] sm:$0x3] }
  0xba   : > { %v601_v30 = vpop.permute.xlu1 %600  ;;  %v1480_v39 = vrot.slane %v1478_v25, 1 }
  0xbb   : > { %v589_v49 = vpop.permute.xlu0 %588  ;;  %v1487_v19 = vrot.slane %v2227_v33, 1 }
  0xbc   : > { %1362 = vrot.lane.b32.xlu1 %v2204_v28, %s2480_s22  ;;  %v639_v55 = vsel %vm306_vm4, %v637_v48, %v589_v49  ;;  %v1481_v28 = vor.u32 %v1480_v39, %v1476_v37 }
  0xbd   : > { %1355 = vrot.lane.b32.xlu0 %v1354_v47, %s2482_s24  ;;  %v641_v0 = vsel %vm309_vm5, %v639_v55, %v601_v30 }
  0xbe   : > { %v614_v56 = vpop.permute.xlu1 %613 }
  0xbf   : > { %v607_v1 = vpop.permute.xlu0 %606  ;;  %v1512_v2 = vld [vmem:[#allocation2 + $0x8] sm:$0xff] }
  0xc0   : > { %1380 = vrot.lane.b32.xlu1 %v1379_v50, %s2486_s28  ;;  %v643_v6 = vsel %vm312_vm6, %v641_v0, %v607_v1  ;;  %2311 = vmatmul.mubr.msk.bf16.gmra.mrb[4].mxu0 %vm1563_vm13, %v1512_v2  ;;  %v2103_v1 = vld [vmem:[%s2528_s20 + $0x34] sm:$0x3] }
  0xc1   : > { %1374 = vrot.lane.b32.xlu0 %v1373_v57, %s2485_s27  ;;  %2314 = vmatprep.mubr.msk.bf16.mxu0 %vm2488_vm1, %v2487_v51  ;;  %v645_v13 = vsel %vm315_vm7, %v643_v6, %v614_v56  ;;  %v2082_v57 = vld [vmem:[%s2528_s20 + $0x2c] sm:$0x3]  ;;  %v2470_v6 = vld [vmem:[%s2528_s20 + $0x30] sm:$0xf] }
  0xc2   : > { %v632_v8 = vpop.permute.xlu1 %631  ;;  %v2093_v60 = vcombine.low %v2641_v4, %v2082_v57 }
  0xc3   : > { %v626_v14 = vpop.permute.xlu0 %625 }
  0xc4   : > { %1438 = vrot.lane.b32.xlu1 %v1437_v62, %s2481_s23  ;;  %v647_v15 = vsel %vm318_vm8, %v645_v13, %v626_v14  ;;  %v2135_v62 = vcombine.low %v2660_v16, %v2124_v63  ;;  %v2166_v63 = vld [vmem:[%s2528_s20 + $0x4c] sm:$0x3] }
  0xc5   : > { %v649_v12 = vsel %vm321_vm9, %v647_v15, %v632_v8  ;;  %1432 = vrot.lane.b32.xlu0 %v1431_v9, %s2483_s25  ;;  %v2114_v8 = vcombine.low %v2470_v6, %v2103_v1 }
  0xc6   : > { %v2959_v22 = vpop.permute.xlu1 %896  ;;  %v651_v26 = vrot.slane %v649_v12, 6 }
  0xc7   : > { %v789_v31 = vpop.permute.xlu0 %788 }
  0xc8   : > { %1457 = vrot.lane.b32.xlu1 %v1456_v5, %s2484_s26  ;;  %654 = vst.msk [vmem:[#allocation2 + $0x10] sm:$0xfc] %vm653_vm0, %v651_v26  ;;  %v848_v2 = vsel %vm299_vm2, %v2093_v60, %v789_v31  ;;  %v956_v5 = vsel %vm299_vm2, %v2114_v8, %v2959_v22 }
  0xc9   : > { %1445 = vrot.lane.b32.xlu0 %v2222_v24, %s2479_s21  ;;  %v2061_v24 = vld [vmem:[%s2528_s20 + $0x24] sm:$0x3]  ;;  %s2263_s21 = sshll.u32 %s3158_s16, 4 }
  0xca   : > { %v795_v34 = vpop.permute.xlu1 %794 }
  0xcb   : > { %v1005_v27 = vpop.permute.xlu0 %1004  ;;  %v850_v59 = vsel %vm303_vm3, %v848_v2, %v795_v34  ;;  %v2177_v2 = vcombine.low %v2750_v17, %v2166_v63 }
  0xcc   : > { %1470 = vrot.lane.b32.xlu1 %v2225_v32, %s2480_s22  ;;  %v1064_v4 = vsel %vm299_vm2, %v2135_v62, %v1005_v27 }
  0xcd   : > { %1463 = vrot.lane.b32.xlu0 %v1462_v35, %s2482_s24  ;;  %v2072_v35 = vcombine.low %v2674_v36, %v2061_v24  ;;  %s210_s24 = scalar_lea.vmem %s3156_s4, %s2263_s21 }
  0xce   : > { %v1011_v29 = vpop.permute.xlu1 %1010 }
  0xcf   : > { %v903_v40 = vpop.permute.xlu0 %902  ;;  %v1513_v41 = vld [vmem:[#allocation2 + $0x10] sm:$0xff]  ;;  %v1066_v14 = vsel %vm303_vm3, %v1064_v4, %v1011_v29  ;;  %v2145_v4 = vld [vmem:[%s2528_s20 + $0x44] sm:$0x3] }
  0xd0   : > { %1488 = vrot.lane.b32.xlu1 %v1487_v19, %s2486_s28  ;;  %2315 = vmatmul.mubr.msk.bf16.gmra.mrb[8].mxu0 %vm1563_vm13, %v1513_v41  ;;  %v958_v12 = vsel %vm303_vm3, %v956_v5, %v903_v40 }
  0xd1   : > { %1482 = vrot.lane.b32.xlu0 %v1481_v28, %s2485_s27  ;;  %2318 = vmatprep.mubr.msk.bf16.mxu0 %vm2488_vm1, %v2487_v51 }
  0xd2   : > { %v802_v46 = vpop.permute.xlu1 %801 }
  0xd3   : > { %v684_v45 = vpop.permute.xlu0 %683  ;;  %v852_v9 = vsel %vm306_vm4, %v850_v59, %v802_v46 }
  0xd4   : > { %v743_v36 = vsel %vm299_vm2, %v2072_v35, %v684_v45 }
  0xd6   : > { %v1018_v30 = vpop.permute.xlu1 %1017 }
  0xd7   : > { %v910_v47 = vpop.permute.xlu0 %909  ;;  %v1068_v15 = vsel %vm306_vm4, %v1066_v14, %v1018_v30 }
  0xd8   : > { %v960_v26 = vsel %vm306_vm4, %v958_v12, %v910_v47 }
  0xda   : > { %v814_v23 = vpop.permute.xlu1 %813 }
  0xdb   : > { %v690_v42 = vpop.permute.xlu0 %689  ;;  %v854_v7 = vsel %vm309_vm5, %v852_v9, %v814_v23 }
  0xdc   : > { %v745_v23 = vsel %vm303_vm3, %v743_v36, %v690_v42 }
  0xde   : > { %v1030_v38 = vpop.permute.xlu1 %1029 }
  0xdf   : > { %v922_v48 = vpop.permute.xlu0 %921  ;;  %v1070_v43 = vsel %vm309_vm5, %v1068_v15, %v1030_v38 }
  0xe0   : > { %v962_v22 = vsel %vm309_vm5, %v960_v26, %v922_v48 }
  0xe2   : > { %v820_v49 = vpop.permute.xlu1 %819 }
  0xe3   : > { %v697_v50 = vpop.permute.xlu0 %696  ;;  %v856_v11 = vsel %vm312_vm6, %v854_v7, %v820_v49 }
  0xe4   : > { %v747_v38 = vsel %vm306_vm4, %v745_v23, %v697_v50 }
  0xe6   : > { %v1036_v54 = vpop.permute.xlu1 %1035 }
  0xe7   : > { %v928_v52 = vpop.permute.xlu0 %927  ;;  %v1072_v31 = vsel %vm312_vm6, %v1070_v43, %v1036_v54 }
  0xe8   : > { %v964_v37 = vsel %vm312_vm6, %v962_v22, %v928_v52 }
  0xea   : > { %v827_v55 = vpop.permute.xlu1 %826 }
  0xeb   : > { %v709_v56 = vpop.permute.xlu0 %708  ;;  %v858_v16 = vsel %vm315_vm7, %v856_v11, %v827_v55 }
  0xec   : > { %v749_v49 = vsel %vm309_vm5, %v747_v38, %v709_v56  ;;  %v2208_v38 = vld [vmem:[%s2528_s20 + $0x5c] sm:$0x3] }
  0xee   : > { %v1043_v53 = vpop.permute.xlu1 %1042 }
  0xef   : > { %v935_v61 = vpop.permute.xlu0 %934  ;;  %v1074_v34 = vsel %vm315_vm7, %v1072_v31, %v1043_v53 }
  0xf0   : > { %v966_v19 = vsel %vm315_vm7, %v964_v37, %v935_v61 }
  0xf2   : > { %v839_v0 = vpop.permute.xlu1 %838 }
  0xf3   : > { %v715_v3 = vpop.permute.xlu0 %714  ;;  %v860_v20 = vsel %vm318_vm8, %v858_v16, %v839_v0  ;;  %v2156_v16 = vcombine.low %v2771_v44, %v2145_v4  ;;  %v2187_v44 = vld [vmem:[%s2528_s20 + $0x54] sm:$0x3]  ;;  %s3091_s20 = scalar_lea.vmem %s3155_s3, %s2353_s17 }
  0xf4   : > { %v751_v54 = vsel %vm312_vm6, %v749_v49, %v715_v3  ;;  %v2198_v35 = vcombine.low %v2837_v58, %v2187_v44 }
  0xf6   : > { %v1055_v10 = vpop.permute.xlu1 %1054 }
  0xf7   : > { %v947_v13 = vpop.permute.xlu0 %946  ;;  %v1076_v39 = vsel %vm318_vm8, %v1074_v34, %v1055_v10 }
  0xf8   : > { %v968_v28 = vsel %vm318_vm8, %v966_v19, %v947_v13 }
  0xfa   : > { %v845_v21 = vpop.permute.xlu1 %844 }
  0xfb   : > { %v862_v25 = vsel %vm321_vm9, %v860_v20, %v845_v21  ;;  %v722_v32 = vpop.permute.xlu0 %721 }
  0xfc   : > { %v864_v33 = vrot.slane %v862_v25, 2  ;;  %v753_v45 = vsel %vm315_vm7, %v751_v54, %v722_v32 }
  0xfe   : > { %866 = vst.msk [vmem:[#allocation2 + $0x18] sm:$0xc0] %vm433_vm10, %v864_v33  ;;  %v1061_v27 = vpop.permute.xlu1 %1060 }
  0xff   : > { %867 = vst.msk [vmem:[#allocation2 + $0x20] sm:$0xf] %vm435_vm11, %v864_v33  ;;  %v1078_v29 = vsel %vm321_vm9, %v1076_v39, %v1061_v27  ;;  %v953_v40 = vpop.permute.xlu0 %952 }
 0x100   : > { %v1080_v41 = vrot.slane %v1078_v29, 6  ;;  %v970_v46 = vsel %vm321_vm9, %v968_v28, %v953_v40 }
 0x101   : > { %v972_v30 = vrot.slane %v970_v46, 4 }
 0x102   : > { %1082 = vst.msk [vmem:[#allocation2 + $0x28] sm:$0xfc] %vm653_vm0, %v1080_v41  ;;  %v1217_v47 = vpop.permute.xlu1 %1216 }
 0x103   : > { %974 = vst.msk [vmem:[#allocation2 + $0x20] sm:$0xf0] %vm543_vm14, %v972_v30  ;;  %v734_v48 = vpop.permute.xlu0 %733  ;;  %v1276_v59 = vsel %vm299_vm2, %v2177_v2, %v1217_v47 }
 0x104   : > { %975 = vst.msk [vmem:[#allocation2 + $0x28] sm:$0x3] %vm545_vm15, %v972_v30  ;;  %v755_v55 = vsel %vm318_vm8, %v753_v45, %v734_v48 }
 0x106   : > { %v1223_v52 = vpop.permute.xlu1 %1222 }
 0x107   : > { %v740_v57 = vpop.permute.xlu0 %739  ;;  %v1278_v8 = vsel %vm303_vm3, %v1276_v59, %v1223_v52  ;;  %v2219_v52 = vcombine.low %v2909_v18, %v2208_v38 }
 0x108   : > { %v757_v42 = vsel %vm321_vm9, %v755_v55, %v740_v57 }
 0x109   : > { %759 = vst.msk [vmem:[#allocation2 + $0x18] sm:$0x3f] %vm325_vm12, %v757_v42 }
 0x10a   : > { %v1230_v50 = vpop.permute.xlu1 %1229  ;;  %v1515_v9 = vld [vmem:[#allocation2 + $0x20] sm:$0xff] }
 0x10b   : > { %v1516_v53 = vld [vmem:[#allocation2 + $0x28] sm:$0xff]  ;;  %v1112_v60 = vpop.permute.xlu0 %1111  ;;  %v1280_v10 = vsel %vm306_vm4, %v1278_v8, %v1230_v50 }
 0x10c   : > { %2327 = vmatmul.mubr.msk.bf16.vlgmr.msra.gmra.mrb[0].mxu1 %vm1563_vm13, %v1516_v53  ;;  %v1171_v24 = vsel %vm299_vm2, %v2156_v16, %v1112_v60 }
 0x10d   : > { %2330 = vmatprep.mubr.msk.bf16.mxu1 %vm2488_vm1, %v2487_v51 }
 0x10e   : > { %v1242_v56 = vpop.permute.xlu1 %1241 }
 0x10f   : > { %v1118_v61 = vpop.permute.xlu0 %1117  ;;  %v1282_v11 = vsel %vm309_vm5, %v1280_v10, %v1242_v56 }
 0x110   : > { %v1514_v0 = vld [vmem:[#allocation2 + $0x18] sm:$0xff]  ;;  %v1173_v25 = vsel %vm303_vm3, %v1171_v24, %v1118_v61 }
 0x111   : > { %2319 = vmatmul.mubr.msk.bf16.gmra.mrb[12].mxu0 %vm1563_vm13, %v1514_v0 }
 0x112   : > { %v1248_v1 = vpop.permute.xlu1 %1247  ;;  %2322 = vmatprep.mubr.msk.bf16.mxu0 %vm2488_vm1, %v2487_v51 }
 0x113   : > { %v1125_v62 = vpop.permute.xlu0 %1124  ;;  %v1284_v13 = vsel %vm312_vm6, %v1282_v11, %v1248_v1 }
 0x114   : > { %v1175_v26 = vsel %vm306_vm4, %v1173_v25, %v1125_v62 }
 0x116   : > { %v1255_v3 = vpop.permute.xlu1 %1254 }
 0x117   : > { %v1137_v6 = vpop.permute.xlu0 %1136  ;;  %v1286_v14 = vsel %vm315_vm7, %v1284_v13, %v1255_v3 }
 0x118   : > { %v1177_v32 = vsel %vm309_vm5, %v1175_v26, %v1137_v6 }
 0x119   : > { %2323 = vmatmul.mubr.msk.bf16.gmra.mrb[16].mxu0 %vm1563_vm13, %v1515_v9 }
 0x11a   : > { %v1267_v7 = vpop.permute.xlu1 %1266 }
 0x11b   : > { %v1143_v17 = vpop.permute.xlu0 %1142  ;;  %v1288_v5 = vsel %vm318_vm8, %v1286_v14, %v1267_v7  ;;  %v3083_v7 = vld [vmem:[%s3154_s2] ss:$0 sm:$0xff] }
 0x11c   : > { %v1179_v33 = vsel %vm312_vm6, %v1177_v32, %v1143_v17 }
 0x11e   : > { %v1273_v15 = vpop.permute.xlu1 %1272 }
 0x11f   : > { %v1290_v20 = vsel %vm321_vm9, %v1288_v5, %v1273_v15  ;;  %v1150_v21 = vpop.permute.xlu0 %1149 }
 0x120   : > { %v1292_v12 = vrot.slane %v1290_v20, 2  ;;  %v1181_v34 = vsel %vm315_vm7, %v1179_v33, %v1150_v21 }
 0x122   : > { %1294 = vst.msk [vmem:[#allocation2 + $0x30] sm:$0xc0] %vm433_vm10, %v1292_v12  ;;  %v1325_v43 = vpop.permute.xlu1 %1324 }
 0x123   : > { %1295 = vst.msk [vmem:[#allocation2 + $0x38] sm:$0xf] %vm435_vm11, %v1292_v12  ;;  %v1162_v31 = vpop.permute.xlu0 %1161  ;;  %v1384_v29 = vsel %vm299_vm2, %v2198_v35, %v1325_v43 }
 0x124   : > { %v1183_v37 = vsel %vm318_vm8, %v1181_v34, %v1162_v31 }
 0x126   : > { %v1331_v22 = vpop.permute.xlu1 %1330 }
 0x127   : > { %v1168_v39 = vpop.permute.xlu0 %1167  ;;  %v1386_v28 = vsel %vm303_vm3, %v1384_v29, %v1331_v22 }
 0x128   : > { %v1185_v27 = vsel %vm321_vm9, %v1183_v37, %v1168_v39 }
 0x129   : > { %1187 = vst.msk [vmem:[#allocation2 + $0x30] sm:$0x3f] %vm325_vm12, %v1185_v27 }
 0x12a   : > { %v1350_v19 = vpop.permute.xlu1 %1349 }
 0x12b   : > { %v1338_v40 = vpop.permute.xlu0 %1337 }
 0x12c   : > { %v1388_v41 = vsel %vm306_vm4, %v1386_v28, %v1338_v40 }
 0x12d   : > { %v1390_v36 = vsel %vm309_vm5, %v1388_v41, %v1350_v19 }
 0x12e   : > { %v1363_v46 = vpop.permute.xlu1 %1362 }
 0x12f   : > { %v1356_v58 = vpop.permute.xlu0 %1355 }
 0x130   : > { %v1392_v30 = vsel %vm312_vm6, %v1390_v36, %v1356_v58  ;;  %v1517_v47 = vld [vmem:[#allocation2 + $0x30] sm:$0xff] }
 0x131   : > { %2331 = vmatmul.mubr.msk.bf16.gmra.mrb[4].mxu1 %vm1563_vm13, %v1517_v47  ;;  %v1394_v48 = vsel %vm315_vm7, %v1392_v30, %v1363_v46 }
 0x132   : > { %v1381_v23 = vpop.permute.xlu1 %1380  ;;  %2334 = vmatprep.mubr.msk.bf16.mxu1 %vm2488_vm1, %v2487_v51 }
 0x133   : > { %v1375_v49 = vpop.permute.xlu0 %1374 }
 0x134   : > { %v1396_v54 = vsel %vm318_vm8, %v1394_v48, %v1375_v49 }
 0x135   : > { %v1398_v45 = vsel %vm321_vm9, %v1396_v54, %v1381_v23 }
 0x136   : > { %v1439_v55 = vpop.permute.xlu1 %1438  ;;  %v1400_v57 = vrot.slane %v1398_v45, 4 }
 0x137   : > { %v1433_v42 = vpop.permute.xlu0 %1432 }
 0x138   : > { %1402 = vst.msk [vmem:[#allocation2 + $0x38] sm:$0xf0] %vm543_vm14, %v1400_v57  ;;  %v1492_v50 = vsel %vm299_vm2, %v2219_v52, %v1433_v42 }
 0x139   : > { %1403 = vst.msk [vmem:[#allocation2 + $0x40] sm:$0x3] %vm545_vm15, %v1400_v57  ;;  %v1494_v60 = vsel %vm303_vm3, %v1492_v50, %v1439_v55 }
 0x13a   : > { %v1458_v53 = vpop.permute.xlu1 %1457 }
 0x13b   : > { %v1446_v56 = vpop.permute.xlu0 %1445 }
 0x13c   : > { %v1496_v61 = vsel %vm306_vm4, %v1494_v60, %v1446_v56 }
 0x13d   : > { %v1498_v18 = vsel %vm309_vm5, %v1496_v61, %v1458_v53 }
 0x13e   : > { %v1471_v63 = vpop.permute.xlu1 %1470 }
 0x13f   : > { %v1464_v0 = vpop.permute.xlu0 %1463  ;;  %v1518_v1 = vld [vmem:[#allocation2 + $0x38] sm:$0xff] }
 0x140   : > { %v1500_v2 = vsel %vm312_vm6, %v1498_v18, %v1464_v0  ;;  %2335 = vmatmul.mubr.msk.bf16.gmra.mrb[8].mxu1 %vm1563_vm13, %v1518_v1 }
 0x141   : > { %2338 = vmatprep.mubr.msk.bf16.mxu1 %vm2488_vm1, %v2487_v51  ;;  %v1502_v3 = vsel %vm315_vm7, %v1500_v2, %v1471_v63  ;;  %vm1790_vm1 = vcmask 125952  }
 0x142   : > { %v1489_v62 = vpop.permute.xlu1 %1488 }
 0x143   : > { %v1483_v59 = vpop.permute.xlu0 %1482 }
 0x144   : > { %v1504_v6 = vsel %vm318_vm8, %v1502_v3, %v1483_v59 }
 0x145   : > { %v1506_v8 = vsel %vm321_vm9, %v1504_v6, %v1489_v62 }
 0x146   : > { %v1508_v9 = vrot.slane %v1506_v8, 6 }
 0x148   : > { %1510 = vst.msk [vmem:[#allocation2 + $0x40] sm:$0xfc] %vm653_vm0, %v1508_v9 }
 0x14f   : > { %v1519_v10 = vld [vmem:[#allocation2 + $0x40] sm:$0xff] }
 0x150   : > { %2339 = vmatmul.mubr.msk.bf16.gmra.mrb[12].mxu1 %vm1563_vm13, %v1519_v10 }
 0x184   : > { %v1629_v51 = vpop.f32.mrb[0].mxu0 }
 0x185   : > { %v1630_v4 = vadd.f32 %v3083_v7, %v1629_v51  ;;  %v2308_v11 = vpop.f32.mrb[1].mxu0 }
 0x186   : > { %v1632_v13 = vpop.f32.mrb[2].mxu0 }
 0x187   : > { %v1700_v17 = vmax.f32 %v1630_v4, 0.0  ;;  %v1633_v14 = vadd.f32 %v3083_v7, %v1632_v13  ;;  %v2309_v16 = vpop.f32.mrb[3].mxu0 }
 0x189   : > { %v2264_v5 = vpack.c.bf16 %v1700_v17, %v1700_v17  ;;  %v1701_v15 = vmax.f32 %v1633_v14, 0.0  ;;  %v1832_v20 = vmul.f32 %v1700_v17, %v1700_v17 }
 0x18b   : > { %1791 = vst.msk [vmem:[%s3091_s20] sm:$0xf] %vm1790_vm1, %v2264_v5  ;;  %v2265_v21 = vpack.c.bf16 %v1701_v15, %v1701_v15  ;;  %v1809_v12 = vadd.f32 %v1701_v15, %v1700_v17  ;;  %v1833_v24 = vmul.f32 %v1701_v15, %v1701_v15 }
 0x18d   : > { %1792 = vst.msk [vmem:[%s3091_s20 + $0x4] sm:$0xf] %vm1790_vm1, %v2265_v21  ;;  %v1850_v43 = vadd.f32 %v1833_v24, %v1832_v20 }
 0x193   : > { %v1637_v25 = vpop.f32.mrb[4].mxu0 }
 0x194   : > { %v1638_v26 = vadd.f32 %v3083_v7, %v1637_v25  ;;  %v2312_v31 = vpop.f32.mrb[5].mxu0 }
 0x195   : > { %v1640_v44 = vpop.f32.mrb[6].mxu0 }
 0x196   : > { %v1702_v32 = vmax.f32 %v1638_v26, 0.0  ;;  %v1641_v33 = vadd.f32 %v3083_v7, %v1640_v44  ;;  %v2313_v22 = vpop.f32.mrb[7].mxu0 }
 0x198   : > { %v2266_v34 = vpack.c.bf16 %v1702_v32, %v1702_v32  ;;  %v1810_v35 = vadd.f32 %v1809_v12, %v1702_v32  ;;  %v1834_v37 = vmul.f32 %v1702_v32, %v1702_v32  ;;  %v1703_v39 = vmax.f32 %v1641_v33, 0.0 }
 0x19a   : > { %1793 = vst.msk [vmem:[%s3091_s20 + $0x8] sm:$0xf] %vm1790_vm1, %v2266_v34  ;;  %v1851_v27 = vadd.f32 %v1850_v43, %v1834_v37  ;;  %v2267_v19 = vpack.c.bf16 %v1703_v39, %v1703_v39  ;;  %v1811_v29 = vadd.f32 %v1810_v35, %v1703_v39  ;;  %v1835_v28 = vmul.f32 %v1703_v39, %v1703_v39 }
 0x19c   : > { %1794 = vst.msk [vmem:[%s3091_s20 + $0xc] sm:$0xf] %vm1790_vm1, %v2267_v19  ;;  %v1852_v40 = vadd.f32 %v1851_v27, %v1835_v28 }
 0x1a3   : > { %v1645_v41 = vpop.f32.mrb[8].mxu0 }
 0x1a4   : > { %v1646_v46 = vadd.f32 %v3083_v7, %v1645_v41  ;;  %v2316_v36 = vpop.f32.mrb[9].mxu0 }
 0x1a5   : > { %v1648_v58 = vpop.f32.mrb[10].mxu0 }
 0x1a6   : > { %v1704_v30 = vmax.f32 %v1646_v46, 0.0  ;;  %v1649_v47 = vadd.f32 %v3083_v7, %v1648_v58  ;;  %v2317_v23 = vpop.f32.mrb[11].mxu0 }
 0x1a8   : > { %v2268_v38 = vpack.c.bf16 %v1704_v30, %v1704_v30  ;;  %v1812_v48 = vadd.f32 %v1811_v29, %v1704_v30  ;;  %v1836_v49 = vmul.f32 %v1704_v30, %v1704_v30  ;;  %v1705_v54 = vmax.f32 %v1649_v47, 0.0 }
 0x1aa   : > { %1795 = vst.msk [vmem:[%s3091_s20 + $0x10] sm:$0xf] %vm1790_vm1, %v2268_v38  ;;  %v1853_v52 = vadd.f32 %v1852_v40, %v1836_v49  ;;  %v2269_v45 = vpack.c.bf16 %v1705_v54, %v1705_v54  ;;  %v1813_v55 = vadd.f32 %v1812_v48, %v1705_v54  ;;  %v1837_v57 = vmul.f32 %v1705_v54, %v1705_v54 }
 0x1ac   : > { %1796 = vst.msk [vmem:[%s3091_s20 + $0x14] sm:$0xf] %vm1790_vm1, %v2269_v45  ;;  %v1854_v42 = vadd.f32 %v1853_v52, %v1837_v57 }
 0x1df   : > { %v1669_v50 = vpop.f32.mrb[0].mxu1 }
 0x1e0   : > { %v1670_v53 = vadd.f32 %v3083_v7, %v1669_v50  ;;  %v2328_v60 = vpop.f32.mrb[1].mxu1 }
 0x1e1   : > { %v1672_v56 = vpop.f32.mrb[2].mxu1 }
 0x1e2   : > { %v1710_v61 = vmax.f32 %v1670_v53, 0.0  ;;  %v1673_v63 = vadd.f32 %v3083_v7, %v1672_v56  ;;  %v2329_v18 = vpop.f32.mrb[3].mxu1 }
 0x1e4   : > { %v2274_v0 = vpack.c.bf16 %v1710_v61, %v1710_v61  ;;  %v1711_v1 = vmax.f32 %v1673_v63, 0.0  ;;  %v1653_v2 = vpop.f32.mrb[12].mxu0  ;;  %v1842_v39 = vmul.f32 %v1710_v61, %v1710_v61 }
 0x1e5   : > { %v1654_v3 = vadd.f32 %v3083_v7, %v1653_v2  ;;  %v2320_v59 = vpop.f32.mrb[13].mxu0 }
 0x1e6   : > { %1801 = vst.msk [vmem:[%s3091_s20 + $0x28] sm:$0xf] %vm1790_vm1, %v2274_v0  ;;  %v2275_v62 = vpack.c.bf16 %v1711_v1, %v1711_v1  ;;  %v1656_v6 = vpop.f32.mrb[14].mxu0  ;;  %v1843_v29 = vmul.f32 %v1711_v1, %v1711_v1 }
 0x1e7   : > { %v1706_v8 = vmax.f32 %v1654_v3, 0.0  ;;  %v1657_v9 = vadd.f32 %v3083_v7, %v1656_v6  ;;  %v2321_v10 = vpop.f32.mrb[15].mxu0 }
 0x1e8   : > { %1802 = vst.msk [vmem:[%s3091_s20 + $0x2c] sm:$0xf] %vm1790_vm1, %v2275_v62 }
 0x1e9   : > { %v2270_v51 = vpack.c.bf16 %v1706_v8, %v1706_v8  ;;  %v1814_v4 = vadd.f32 %v1813_v55, %v1706_v8  ;;  %v1838_v11 = vmul.f32 %v1706_v8, %v1706_v8  ;;  %v1707_v13 = vmax.f32 %v1657_v9, 0.0 }
 0x1eb   : > { %1797 = vst.msk [vmem:[%s3091_s20 + $0x18] sm:$0xf] %vm1790_vm1, %v2270_v51  ;;  %v1855_v17 = vadd.f32 %v1854_v42, %v1838_v11  ;;  %v2271_v14 = vpack.c.bf16 %v1707_v13, %v1707_v13  ;;  %v1815_v16 = vadd.f32 %v1814_v4, %v1707_v13  ;;  %v1839_v5 = vmul.f32 %v1707_v13, %v1707_v13 }
 0x1ec   : > { %v1661_v15 = vpop.f32.mrb[16].mxu0 }
 0x1ed   : > { %1798 = vst.msk [vmem:[%s3091_s20 + $0x1c] sm:$0xf] %vm1790_vm1, %v2271_v14  ;;  %v1856_v20 = vadd.f32 %v1855_v17, %v1839_v5  ;;  %v1662_v21 = vadd.f32 %v3083_v7, %v1661_v15  ;;  %v2324_v12 = vpop.f32.mrb[17].mxu0 }
 0x1ee   : > { %v1664_v24 = vpop.f32.mrb[18].mxu0 }
 0x1ef   : > { %v1708_v43 = vmax.f32 %v1662_v21, 0.0  ;;  %v1665_v25 = vadd.f32 %v3083_v7, %v1664_v24  ;;  %v2325_v26 = vpop.f32.mrb[19].mxu0 }
 0x1f1   : > { %v2272_v31 = vpack.c.bf16 %v1708_v43, %v1708_v43  ;;  %v1816_v44 = vadd.f32 %v1815_v16, %v1708_v43  ;;  %v1840_v32 = vmul.f32 %v1708_v43, %v1708_v43  ;;  %v1709_v33 = vmax.f32 %v1665_v25, 0.0 }
 0x1f3   : > { %1799 = vst.msk [vmem:[%s3091_s20 + $0x20] sm:$0xf] %vm1790_vm1, %v2272_v31  ;;  %v1857_v22 = vadd.f32 %v1856_v20, %v1840_v32  ;;  %v2273_v34 = vpack.c.bf16 %v1709_v33, %v1709_v33  ;;  %v1817_v35 = vadd.f32 %v1816_v44, %v1709_v33  ;;  %v1841_v37 = vmul.f32 %v1709_v33, %v1709_v33 }
 0x1f4   : > { %v1873_v44 = vlaneseq }
 0x1f5   : > { %1800 = vst.msk [vmem:[%s3091_s20 + $0x24] sm:$0xf] %vm1790_vm1, %v2273_v34  ;;  %v1818_v27 = vadd.f32 %v1817_v35, %v1710_v61  ;;  %v1858_v19 = vadd.f32 %v1857_v22, %v1841_v37 }
 0x1f6   : > { %v1874_v34 = vshrl.u32 %v1873_v44, 7 }
 0x1f7   : > { %v1859_v28 = vadd.f32 %v1858_v19, %v1842_v39  ;;  %v1819_v40 = vadd.f32 %v1818_v27, %v1711_v1 }
 0x1f8   : > { %v1875_v19 = vsub.s32 0, %v1874_v34 }
 0x1f9   : > { %v1860_v41 = vadd.f32 %v1859_v28, %v1843_v29 }
 0x204   : > { %v1677_v46 = vpop.f32.mrb[4].mxu1 }
 0x205   : > { %v1678_v36 = vadd.f32 %v3083_v7, %v1677_v46  ;;  %v2332_v58 = vpop.f32.mrb[5].mxu1 }
 0x206   : > { %v1680_v30 = vpop.f32.mrb[6].mxu1 }
 0x207   : > { %v1712_v47 = vmax.f32 %v1678_v36, 0.0  ;;  %v1681_v23 = vadd.f32 %v3083_v7, %v1680_v30  ;;  %v2333_v38 = vpop.f32.mrb[7].mxu1 }
 0x209   : > { %v2276_v48 = vpack.c.bf16 %v1712_v47, %v1712_v47  ;;  %v1820_v49 = vadd.f32 %v1819_v40, %v1712_v47  ;;  %v1844_v54 = vmul.f32 %v1712_v47, %v1712_v47  ;;  %v1713_v52 = vmax.f32 %v1681_v23, 0.0 }
 0x20b   : > { %1803 = vst.msk [vmem:[%s3091_s20 + $0x30] sm:$0xf] %vm1790_vm1, %v2276_v48  ;;  %v1861_v45 = vadd.f32 %v1860_v41, %v1844_v54  ;;  %v2277_v55 = vpack.c.bf16 %v1713_v52, %v1713_v52  ;;  %v1821_v57 = vadd.f32 %v1820_v49, %v1713_v52  ;;  %v1845_v42 = vmul.f32 %v1713_v52, %v1713_v52 }
 0x20d   : > { %1804 = vst.msk [vmem:[%s3091_s20 + $0x34] sm:$0xf] %vm1790_vm1, %v2277_v55  ;;  %v1862_v50 = vadd.f32 %v1861_v45, %v1845_v42 }
 0x213   : > { %v1685_v53 = vpop.f32.mrb[8].mxu1 }
 0x214   : > { %v1686_v60 = vadd.f32 %v3083_v7, %v1685_v53  ;;  %v2336_v56 = vpop.f32.mrb[9].mxu1 }
 0x215   : > { %v1688_v61 = vpop.f32.mrb[10].mxu1 }
 0x216   : > { %v1714_v63 = vmax.f32 %v1686_v60, 0.0  ;;  %v1689_v18 = vadd.f32 %v3083_v7, %v1688_v61  ;;  %v2337_v0 = vpop.f32.mrb[11].mxu1 }
 0x218   : > { %v2278_v1 = vpack.c.bf16 %v1714_v63, %v1714_v63  ;;  %v1822_v2 = vadd.f32 %v1821_v57, %v1714_v63  ;;  %v1846_v62 = vmul.f32 %v1714_v63, %v1714_v63  ;;  %v1715_v3 = vmax.f32 %v1689_v18, 0.0 }
 0x21a   : > { %1805 = vst.msk [vmem:[%s3091_s20 + $0x38] sm:$0xf] %vm1790_vm1, %v2278_v1  ;;  %v1863_v59 = vadd.f32 %v1862_v50, %v1846_v62  ;;  %v2279_v6 = vpack.c.bf16 %v1715_v3, %v1715_v3  ;;  %v1823_v8 = vadd.f32 %v1822_v2, %v1715_v3  ;;  %v1847_v9 = vmul.f32 %v1715_v3, %v1715_v3 }
 0x21c   : > { %1806 = vst.msk [vmem:[%s3091_s20 + $0x3c] sm:$0xf] %vm1790_vm1, %v2279_v6  ;;  %v1864_v10 = vadd.f32 %v1863_v59, %v1847_v9 }
 0x223   : > { %v1693_v51 = vpop.f32.mrb[12].mxu1 }
 0x224   : > { %v1694_v4 = vadd.f32 %v3083_v7, %v1693_v51  ;;  %v2340_v11 = vpop.f32.mrb[13].mxu1 }
 0x225   : > { %v1696_v13 = vpop.f32.mrb[14].mxu1 }
 0x226   : > { %v1716_v17 = vmax.f32 %v1694_v4, 0.0  ;;  %v1697_v14 = vadd.f32 %v3083_v7, %v1696_v13  ;;  %v2341_v16 = vpop.f32.mrb[15].mxu1 }
 0x228   : > { %v2280_v5 = vpack.c.bf16 %v1716_v17, %v1716_v17  ;;  %v1824_v15 = vadd.f32 %v1823_v8, %v1716_v17  ;;  %v1848_v20 = vmul.f32 %v1716_v17, %v1716_v17  ;;  %v1717_v21 = vmax.f32 %v1697_v14, 0.0 }
 0x22a   : > { %1807 = vst.msk [vmem:[%s3091_s20 + $0x40] sm:$0xf] %vm1790_vm1, %v2280_v5  ;;  %v1865_v12 = vadd.f32 %v1864_v10, %v1848_v20  ;;  %v2281_v24 = vpack.c.bf16 %v1717_v21, %v1717_v21  ;;  %v1825_v43 = vadd.f32 %v1824_v15, %v1717_v21  ;;  %v1849_v25 = vmul.f32 %v1717_v21, %v1717_v21 }
 0x22c   : > { %1808 = vst.msk [vmem:[%s3091_s20 + $0x44] sm:$0xf] %vm1790_vm1, %v2281_v24  ;;  %v1826_v26 = vrot.slane %v1825_v43, 4  ;;  %v1866_v31 = vadd.f32 %v1865_v12, %v1849_v25 }
 0x22e   : > { %v1827_v32 = vadd.f32 %v1826_v26, %v1825_v43  ;;  %v1867_v33 = vrot.slane %v1866_v31, 4 }
 0x230   : > { %v1828_v7 = vrot.slane %v1827_v32, 2  ;;  %v1868_v22 = vadd.f32 %v1867_v33, %v1866_v31 }
 0x232   : > { %v1829_v35 = vadd.f32 %v1828_v7, %v1827_v32  ;;  %v1869_v37 = vrot.slane %v1868_v22, 2 }
 0x234   : > { %v1830_v39 = vrot.slane %v1829_v35, 1  ;;  %v1870_v27 = vadd.f32 %v1869_v37, %v1868_v22 }
 0x236   : > { %v1831_v29 = vadd.f32 %v1830_v39, %v1829_v35  ;;  %v1871_v28 = vrot.slane %v1870_v27, 1 }
 0x238   : > { %v1872_v40 = vadd.f32 %v1871_v28, %v1870_v27  ;;  %v1876_v41 = vrot.slane %v1831_v29, %v1875_v19 }
 0x23a   : > { %v1880_v46 = vrot.slane %v1872_v40, %v1875_v19  ;;  %1881 = vst [vmem:[%s210_s24] sm:$0xff] %v1876_v41 }
 0x23c   : > { %1882 = vst [vmem:[%s210_s24 + $0x8] sm:$0xff] %v1880_v46 }
 0x23d PF: > { %s15_s15 = sadd.s32 1, %s2477_s15  }
 0x23e   : > { %p12_p4 = scmp.ge.s32.totalorder %s15_s15, 4  }
 0x240   :  { %14 = sbr.rel (!%p12_p4) target bundleno = 1 (0x1), region = 87 }

// kernel: _lambda_.3
= control target key start
LH: loop header
LB: loop body
LE: loop exit
PB: predicated region body
PF: predicated region fallthrough
CT: control target
= control target key end

     0   :  { %10 = vsyncpa [#allocation4], 0  ;;  %s4243_s0 = inlined_call_operand.vmem [shape: bf16[2,16,16,4], index: 0, kind: input, shape index: {}]   ;;  %s4244_s1 = inlined_call_operand.hbm [shape: bf16[36,128], index: 1, kind: input, shape index: {}]   ;;  %s4245_s2 = inlined_call_operand.hbm [shape: f32[1,128], index: 2, kind: input, shape index: {}]   ;;  %s4246_s3 = inlined_call_operand.vmem [shape: bf16[2,196,8], index: 3, kind: output, shape index: {0}]   ;;  %s4247_s4 = inlined_call_operand.vmem [shape: f32[2,8,256], index: 4, kind: output, shape index: {1}]  }
   0x1   :  { %11 = vsyncpa [#allocation6], 0  ;;  %s3328_s15 = smov 0  }
   0x2 LB: > { %s3334_s16 = sadd.s32 4294967295, %s3287_s15   ;;  %p2552_p0 = scmp.ge.s32.totalorder %s3287_s15, 1  ;;  %s3287_s15 = sphi %s3328_s15, %s17_s15  }
   0x3   : > { %p142_p1 = scmp.lt.s32.totalorder %s3287_s15, 3  ;;  %s3289_s17 = smov [#allocation3]  }
   0x4   : > { %s154_s18 = sshll.u32 %s3289_s17, 4  ;;  %p4248_p3 = scmp.eq.s32.totalorder %s3334_s16, 0  ;;  %s155_s18 = int_to_ptr.vmem [resolvable:$true] %s154_s18 }
   0x5   : > { %p3338_p2 = pnand %p2552_p0, %p142_p1  ;;  %s3290_s20 = smov [#allocation5]  }
   0x6   : > { %s168_s21 = sshll.u32 %s3290_s20, 4  ;;  %s3217_s25 = scalar_lea.hbm %s4244_s1, 320  ;;  %s3351_s21 = int_to_ptr.vmem [resolvable:$true] %s168_s21 }
   0x7   : > { %s4257_s19 = scalar_select %p3338_p2, 1, 0 }
   0x8   : > { %p3055_p4 = pneg %p3338_p2  ;;  %p3218_p6 = scmp.ne.s32.totalorder %s4244_s1, %s3217_s25 }
   0x9   : > { %p3224_p10 = scmp.lt.u32.totalorder %s3217_s25, %s4244_s1 }
   0xa   : > { %p3347_p5 = pnand %p4248_p3, %p3055_p4 }
   0xc   : > { %p3219_p7 = pneg %p3347_p5 }
   0xe   : > { %p3220_p8 = pnand %p3219_p7, %p3218_p6 }
  0x10   : > { %p3221_p9 = pneg %p3220_p8 }
  0x12   : > { %p3226_p11 = pnand %p3224_p10, %p3221_p9 }
  0x14   : > { %3229 = shalt.err (!%p3226_p11)
}
  0x15   : > { %s3230_s30 = scalar_lea.vmem %s155_s18, 320  ;;  %p3238_p1 = scmp.lt.s32.totalorder %s155_s18, %s155_s18 }
  0x16   : > { %p3231_p12 = scmp.ne.s32.totalorder %s155_s18, %s3230_s30  ;;  %p3239_p4 = scmp.lt.s32.totalorder %s3230_s30, %s3230_s30 }
  0x18   : > { %p3233_p13 = pnand %p3231_p12, %p3219_p7  ;;  %p3240_p3 = por %p3239_p4, %p3238_p1 }
  0x1a   : > { %p3234_p0 = pneg %p3233_p13 }
  0x1c   : > { %p3241_p2 = pnand %p3240_p3, %p3234_p0 }
  0x1e   : > { %3244 = shalt.err (!%p3241_p2)
}
  0x1f   : > { %s3291_s5 = smov 64   ;;  %s3292_s6 = smov 4  }
  0x20   : > { %3058 = dma.hbm_to_vmem [thread:$0]  (!%p3347_p5), %s4244_s1, 320, %s155_s18, [#allocation4], %s3291_s5, %s3291_s5, %s3292_s6  }
  0x21   : > { %s3245_s11 = scalar_lea.hbm %s4245_s2, 16 }
  0x22   : > { %p3246_p6 = scmp.ne.s32.totalorder %s4245_s2, %s3245_s11  ;;  %p3252_p8 = scmp.lt.u32.totalorder %s3245_s11, %s4245_s2 }
  0x24   : > { %p3248_p2 = pnand %p3246_p6, %p3219_p7 }
  0x26   : > { %p3249_p3 = pneg %p3248_p2 }
  0x28   : > { %p3254_p9 = pnand %p3252_p8, %p3249_p3 }
  0x2a   : > { %3257 = shalt.err (!%p3254_p9)
}
  0x2b   : > { %s3258_s18 = scalar_lea.vmem %s3351_s21, 16  ;;  %s3265_s20 = scalar_lea.vmem %s3351_s21, 32 }
  0x2c   : > { %p3259_p10 = scmp.ne.s32.totalorder %s3351_s21, %s3258_s18  ;;  %p3266_p13 = scmp.lt.s32.totalorder %s3351_s21, %s3351_s21 }
  0x2d   : > { %p3267_p0 = scmp.lt.s32.totalorder %s3265_s20, %s3258_s18 }
  0x2e   : > { %p3261_p11 = pnand %p3259_p10, %p3219_p7 }
  0x2f   : > { %p3268_p1 = por %p3267_p0, %p3266_p13 }
  0x30   : > { %p3262_p12 = pneg %p3261_p11 }
  0x32   : > { %p3269_p4 = pnand %p3268_p1, %p3262_p12 }
  0x34   : > { %3272 = shalt.err (!%p3269_p4)
}
  0x35   : > { %3061 = dma.hbm_to_vmem [thread:$0]  (!%p3347_p5), %s4245_s2, 16, %s3351_s21, [#allocation6]  }
  0x36   : > { %p4259_p6 = scmp.ne.s32.totalorder %s4257_s19, 0 }
  0x37   : > { %p4260_p7 = scmp.eq.s32.totalorder (!%p4259_p6), %s3334_s16, 0 }
  0x38   : > { %189 = sbr.rel (%p4259_p6) target bundleno = 673 (0x2a1), region = 32 }
  0x3f   : > { %3278 = dma.done.wait (%p4260_p7), [#allocation4], 320   ;;  %p4261_p2 = pmov %p4260_p7 }
  0x41   : > { %3280 = vsyncadd (%p4261_p2), [#allocation4], 4294966976  ;;  %p4262_p3 = pmov %p4261_p2 }
  0x42   : > { %p4263_p8 = pmov %p4261_p2 }
  0x43   : > { %3282 = dma.done.wait (%p4262_p3), [#allocation6], 16  }
  0x44   : > { %3284 = vsyncadd (%p4263_p8), [#allocation6], 4294967280  ;;  %p224_p9 = scmp.lt.s32.totalorder %s3334_s16, 1  ;;  %s3293_s26 = smov 12   ;;  %vm595_vm0 = vcmask 1041408   ;;  %vm3302_vm1 = vmmov 0  }
  0x45   : > { %s3294_s27 = smov 24   ;;  %s3295_s28 = smov 8   ;;  %vm327_vm2 = vcmask 31744   ;;  %vm331_vm3 = vcmask 64512   ;;  %vm334_vm4 = vcmask 97280   ;;  %vm337_vm5 = vcmask 130048  }
  0x46   : > { %s4294_s16 = smov (!%p224_p9, %s3334_s16), 1  ;;  %s3296_s29 = smov 20   ;;  %vm340_vm6 = vcmask 162816   ;;  %vm343_vm7 = vcmask 195584   ;;  %vm346_vm8 = vcmask 228352   ;;  %vm4253_vm9 = vcmask 261120  }
  0x47   : > { %s2939_s19 = sshll.u32 %s4294_s16, 7  ;;  %s3297_s30 = smov 4   ;;  %vm471_vm10 = vcmask 1042432   ;;  %vm472_vm11 = vcmask 1046532   ;;  %vm4251_vm12 = vcmask 289795   ;;  %vm359_vm13 = vcmask 289792  }
  0x48   : > { %s3419_s25 = scalar_lea.vmem %s4243_s0, %s2939_s19  ;;  %s3298_s5 = smov 16   ;;  %vm3730_vm14 = vmor %vm471_vm10, %vm472_vm11  ;;  %vm4250_vm15 = vcmask 287744   ;;  %vm4252_vm10 = vcmask 288768   ;;  %vm2009_vm11 = vcmask 293888  }
  0x49   : > { %v2587_v0 = vld [vmem:[%s3419_s25 + $0x10] sm:$0xf]  ;;  %v2588_v1 = vld [vmem:[%s3419_s25 + $0x14] sm:$0x7]  ;;  %v2564_v4 = vld [vmem:[%s3419_s25 + $0x8] sm:$0xf] }
  0x4a   : > { %v2589_v2 = vld [vmem:[%s3419_s25 + $0x14] sm:$0xf]  ;;  %v2598_v3 = vcombine.low %v2587_v0, %v2588_v1  ;;  %v2565_v5 = vld [vmem:[%s3419_s25 + $0xc] sm:$0x7]  ;;  %v2591_v8 = vld [vmem:[%s3419_s25 + $0x18] sm:$0xf] }
  0x4b   : > { %v3427_v6 = vld [vmem:[%s3419_s25 + $0xc] sm:$0xf]  ;;  %v2575_v7 = vcombine.low %v2564_v4, %v2565_v5  ;;  %v2592_v9 = vld [vmem:[%s3419_s25 + $0x1c] sm:$0x7]  ;;  %v2599_v10 = vcombine.low %v2587_v0, %v2589_v2  ;;  %v3433_v12 = vld [vmem:[%s3419_s25 + $0x8] sm:$0xf] }
  0x4c   : > { %404 = vrot.lane.b32.xlu1 %v2598_v3, %s3293_s26  ;;  %v2601_v11 = vcombine.low %v2591_v8, %v2592_v9  ;;  %v2585_v13 = vld [vmem:[%s3419_s25 + $0xc] sm:$0xf]  ;;  %v3438_v14 = vld [vmem:[%s3419_s25 + $0x1c] sm:$0xf]  ;;  %v2586_v15 = vld [vmem:[%s3419_s25 + $0x8] sm:$0xe]  ;;  %v2576_v18 = vcombine.low %v2564_v4, %v3427_v6 }
  0x4d   : > { %282 = vrot.lane.b32.xlu0 %v2575_v7, %s3293_s26  ;;  %v2596_v16 = vcombine.low %v3433_v12, %v2585_v13  ;;  %v2590_v17 = vld [vmem:[%s3419_s25 + $0x10] sm:$0xe]  ;;  %v2597_v19 = vcombine.low %v2586_v15, %v2585_v13  ;;  %v242_v21 = vld [vmem:[%s3419_s25 + $0x4] sm:$0xf]  ;;  %v243_v22 = vld [vmem:[%s3419_s25] sm:$0xe]  ;;  %v2602_v28 = vcombine.low %v2591_v8, %v3438_v14 }
  0x4e   : > { %v2600_v20 = vcombine.low %v2590_v17, %v2589_v2  ;;  %v3447_v23 = vld [vmem:[%s3419_s25] sm:$0xf]  ;;  %v2574_v24 = vcombine.low %v243_v22, %v242_v21  ;;  %v412_v27 = vshll.u32 %v2599_v10, 16  ;;  %v290_v33 = vshll.u32 %v2576_v18, 16  ;;  %v3455_v42 = vld [vmem:[%s3419_s25 + $0x10] sm:$0xf] }
  0x4f   : > { %v2573_v25 = vcombine.low %v3447_v23, %v242_v21  ;;  %v387_v26 = vshll.u32 %v2596_v16, 16  ;;  %v396_v29 = vrot.slane %v2597_v19, 1  ;;  %v385_v35 = vshrl.u32 %v2596_v16, 16  ;;  %v2608_v43 = vld [vmem:[%s3419_s25 + $0x14] sm:$0xf]  ;;  %s3299_s6 = smov 28  }
  0x50   : > { %429 = vrot.lane.b32.xlu1 %v2601_v11, %s3294_s27  ;;  %v421_v30 = vrot.slane %v2600_v20, 1  ;;  %v274_v34 = vrot.slane %v2574_v24, 1  ;;  %v410_v38 = vshrl.u32 %v2599_v10, 16  ;;  %v414_v39 = vrot.slane %v412_v27, 1  ;;  %v2567_v47 = vld [vmem:[%s3419_s25 + $0x8] sm:$0xe] }
  0x51   : > { %v263_v31 = vshrl.u32 %v2573_v25, 16  ;;  %v265_v32 = vshll.u32 %v2573_v25, 16  ;;  %397 = vrot.lane.b32.xlu0 %v396_v29, %s3295_s28  ;;  %v389_v36 = vrot.slane %v387_v26, 1  ;;  %v437_v40 = vshll.u32 %v2602_v28, 16  ;;  %v2568_v48 = vld [vmem:[%s3419_s25 + $0x10] sm:$0xf] }
  0x52   : > { %v288_v44 = vshrl.u32 %v2576_v18, 16  ;;  %v292_v46 = vrot.slane %v290_v33, 1  ;;  %v2570_v49 = vld [vmem:[%s3419_s25 + $0x14] sm:$0xf]  ;;  %v415_v50 = vor.u32 %v414_v39, %v410_v38  ;;  %v435_v51 = vshrl.u32 %v2602_v28, 16  ;;  %s3300_s7 = smov 32  }
  0x53   : > { %v267_v37 = vrot.slane %v265_v32, 1  ;;  %v390_v45 = vor.u32 %v389_v36, %v385_v35  ;;  %v439_v52 = vrot.slane %v437_v40, 1  ;;  %v2619_v53 = vcombine.low %v3455_v42, %v2608_v43  ;;  %v2594_v54 = vld [vmem:[%s3419_s25 + $0x18] sm:$0xe]  ;;  %v2612_v62 = vld [vmem:[%s3419_s25 + $0x1c] sm:$0xf] }
  0x54   : > { %422 = vrot.lane.b32.xlu1 %v421_v30, %s3296_s29  ;;  %v293_v55 = vor.u32 %v292_v46, %v288_v44  ;;  %v2577_v56 = vcombine.low %v2567_v47, %v3427_v6  ;;  %v2579_v57 = vcombine.low %v2568_v48, %v2570_v49  ;;  %v2603_v59 = vcombine.low %v2594_v54, %v3438_v14  ;;  %v2610_v61 = vld [vmem:[%s3419_s25 + $0x18] sm:$0xf]  ;;  %v2569_v1 = vld [vmem:[%s3419_s25 + $0x14] sm:$0x7]  ;;  %v2609_v6 = vld [vmem:[%s3419_s25 + $0x10] sm:$0xe] }
  0x55   : > { %v268_v41 = vor.u32 %v267_v37, %v263_v31  ;;  %275 = vrot.lane.b32.xlu0 %v274_v34, %s3295_s28  ;;  %v440_v58 = vor.u32 %v439_v52, %v435_v51  ;;  %v511_v60 = vshll.u32 %v2619_v53, 16  ;;  %v509_v3 = vshrl.u32 %v2619_v53, 16  ;;  %v2571_v10 = vld [vmem:[%s3419_s25 + $0x10] sm:$0xe]  ;;  %v2614_v17 = vld [vmem:[%s3419_s25 + $0x20] sm:$0xf] }
  0x56   : > { %v299_v63 = vrot.slane %v2577_v56, 1  ;;  %v315_v0 = vshll.u32 %v2579_v57, 16  ;;  %v446_v2 = vrot.slane %v2603_v59, 1  ;;  %v2622_v5 = vcombine.low %v2610_v61, %v2612_v62  ;;  %v2616_v18 = vld [vmem:[%s3419_s25 + $0x24] sm:$0xf]  ;;  %s3046_s8 = smul.u32 100, %s4294_s16 }
  0x57   : > { %v513_v4 = vrot.slane %v511_v60, 1  ;;  %v2578_v7 = vcombine.low %v2568_v48, %v2569_v1  ;;  %v313_v8 = vshrl.u32 %v2579_v57, 16  ;;  %v2620_v13 = vcombine.low %v2609_v6, %v2608_v43  ;;  %v2611_v24 = vld [vmem:[%s3419_s25 + $0x1c] sm:$0x7]  ;;  %v2613_v26 = vld [vmem:[%s3419_s25 + $0x18] sm:$0xe] }
  0x58   : > { %269 = vrot.lane.b32.xlu1 %v268_v41, %s3297_s30  ;;  %v317_v9 = vrot.slane %v315_v0, 1  ;;  %v536_v14 = vshll.u32 %v2622_v5, 16  ;;  %v2580_v16 = vcombine.low %v2571_v10, %v2570_v49  ;;  %v534_v20 = vshrl.u32 %v2622_v5, 16  ;;  %v3486_v27 = vld [vmem:[%s3419_s25 + $0x18] sm:$0xf]  ;;  %s4148_s11 = scalar_lea.vmem %s4246_s3, %s3046_s8  ;;  %s2940_s12 = sshll.u32 %s4294_s16, 4 }
  0x59   : > { %391 = vrot.lane.b32.xlu0 %v390_v45, %s3297_s30  ;;  %v514_v11 = vor.u32 %v513_v4, %v509_v3  ;;  %v520_v19 = vrot.slane %v2620_v13, 1  ;;  %v2625_v25 = vcombine.low %v2614_v17, %v2616_v18  ;;  %v2631_v28 = vld [vmem:[%s3419_s25 + $0x1c] sm:$0xf]  ;;  %v2615_v30 = vld [vmem:[%s3419_s25 + $0x24] sm:$0x7]  ;;  %v2621_v34 = vcombine.low %v2610_v61, %v2611_v24  ;;  %s238_s17 = scalar_lea.vmem %s4247_s4, %s2940_s12 }
  0x5a   : > { %v318_v15 = vor.u32 %v317_v9, %v313_v8  ;;  %v538_v21 = vrot.slane %v536_v14, 1  ;;  %v324_v22 = vrot.slane %v2580_v16, 1  ;;  %v2617_v31 = vld [vmem:[%s3419_s25 + $0x20] sm:$0xe]  ;;  %v2635_v33 = vld [vmem:[%s3419_s25 + $0x24] sm:$0xf]  ;;  %v2623_v35 = vcombine.low %v2613_v26, %v2612_v62 }
  0x5b   : > { %v2633_v32 = vld [vmem:[%s3419_s25 + $0x20] sm:$0xf]  ;;  %v561_v36 = vshll.u32 %v2625_v25, 16  ;;  %v2642_v37 = vcombine.low %v3486_v27, %v2631_v28  ;;  %v2624_v38 = vcombine.low %v2614_v17, %v2615_v30  ;;  %v2626_v39 = vcombine.low %v2617_v31, %v2616_v18  ;;  %v2632_v41 = vld [vmem:[%s3419_s25 + $0x18] sm:$0xe] }
  0x5c   : > { %416 = vrot.lane.b32.xlu1 %v415_v50, %s3298_s5  ;;  %v539_v29 = vor.u32 %v538_v21, %v534_v20  ;;  %v2645_v40 = vcombine.low %v2633_v32, %v2635_v33  ;;  %v545_v43 = vrot.slane %v2623_v35, 1  ;;  %v559_v44 = vshrl.u32 %v2625_v25, 16  ;;  %v2637_v53 = vld [vmem:[%s3419_s25 + $0x28] sm:$0xf]  ;;  %v2639_v54 = vld [vmem:[%s3419_s25 + $0x2c] sm:$0xf] }
  0x5d   : > { %294 = vrot.lane.b32.xlu0 %v293_v55, %s3298_s5  ;;  %v563_v45 = vrot.slane %v561_v36, 1  ;;  %v635_v46 = vshll.u32 %v2642_v37, 16  ;;  %v570_v47 = vrot.slane %v2626_v39, 1  ;;  %v2643_v48 = vcombine.low %v2632_v41, %v2631_v28  ;;  %v2634_v59 = vld [vmem:[%s3419_s25 + $0x24] sm:$0x7] }
  0x5e   : > { %v660_v49 = vshll.u32 %v2645_v40, 16  ;;  %v633_v51 = vshrl.u32 %v2642_v37, 16  ;;  %v658_v56 = vshrl.u32 %v2645_v40, 16  ;;  %v2648_v60 = vcombine.low %v2637_v53, %v2639_v54  ;;  %v2636_v61 = vld [vmem:[%s3419_s25 + $0x20] sm:$0xe]  ;;  %v3164_v21 = vld [vmem:[#allocation3] sm:$0xff]  }
  0x5f   : > { %v564_v50 = vor.u32 %v563_v45, %v559_v44  ;;  %v637_v52 = vrot.slane %v635_v46, 1  ;;  %v644_v55 = vrot.slane %v2643_v48, 1  ;;  %v2652_v62 = vld [vmem:[%s3419_s25 + $0x20] sm:$0xf]  ;;  %v2638_v1 = vld [vmem:[%s3419_s25 + $0x2c] sm:$0x7]  ;;  %v2644_v5 = vcombine.low %v2633_v32, %v2634_v59 }
  0x60   : > { %441 = vrot.lane.b32.xlu1 %v440_v58, %s3299_s6  ;;  %v662_v57 = vrot.slane %v660_v49, 1  ;;  %v3513_v3 = vld [vmem:[%s3419_s25 + $0x28] sm:$0xf]  ;;  %v3516_v4 = vld [vmem:[%s3419_s25 + $0x2c] sm:$0xf]  ;;  %v2646_v6 = vcombine.low %v2636_v61, %v2635_v33  ;;  %v2647_v9 = vcombine.low %v2637_v53, %v2638_v1  ;;  %v3301_v32 = vmov 0.0  }
  0x61   : > { %300 = vrot.lane.b32.xlu0 %v299_v63, %s3296_s29  ;;  %v638_v58 = vor.u32 %v637_v52, %v633_v51  ;;  %v2654_v63 = vld [vmem:[%s3419_s25 + $0x24] sm:$0xf]  ;;  %v2668_v13 = vcombine.low %v3513_v3, %v3516_v4  ;;  %v3526_v20 = vld [vmem:[%s3419_s25 + $0x2c] sm:$0xf]  ;;  %2982 = vmatprep.subr.bf16.mxu0 %v3301_v32  ;;  %v2659_v35 = vld [vmem:[%s3419_s25 + $0x28] sm:$0xe] }
  0x62   : > { %v663_v0 = vor.u32 %v662_v57, %v658_v56  ;;  %v2665_v8 = vcombine.low %v2652_v62, %v2654_v63  ;;  %v669_v14 = vrot.slane %v2646_v6, 1  ;;  %3040 = vmatprep.subr.bf16.mxu1 %v3301_v32  ;;  %2983 = vmatpush3.bf16.msra.mxu0 %v3164_v21  ;;  %v2767_v36 = vld [vmem:[%s3419_s25 + $0x48] sm:$0xf]  ;;  %v3537_v37 = vld [vmem:[%s3419_s25 + $0x4c] sm:$0xf]  ;;  %v2669_v44 = vcombine.low %v2659_v35, %v3516_v4 }
  0x63   : > { %v780_v24 = vshll.u32 %v2668_v13, 16  ;;  %v778_v31 = vshrl.u32 %v2668_v13, 16  ;;  %2984 = vmatprep.subr.bf16.mxu0 %v3301_v32  ;;  %3043 = vmatpush3.bf16.msra.mxu1 %v3164_v21  ;;  %v2657_v40 = vld [vmem:[%s3419_s25 + $0x2c] sm:$0x7]  ;;  %v2780_v45 = vcombine.low %v2767_v36, %v3537_v37  ;;  %v2679_v46 = vld [vmem:[%s3419_s25 + $0x30] sm:$0xf] }
  0x64   : > { %447 = vrot.lane.b32.xlu1 %v446_v2, %s3300_s7  ;;  %v2640_v2 = vld [vmem:[%s3419_s25 + $0x28] sm:$0xe]  ;;  %v755_v17 = vshll.u32 %v2665_v8, 16  ;;  %v753_v25 = vshrl.u32 %v2665_v8, 16  ;;  %3041 = vmatprep.subr.bf16.mxu1 %v3301_v32  ;;  %v2667_v49 = vcombine.low %v3513_v3, %v2657_v40  ;;  %v2662_v53 = vld [vmem:[%s3419_s25 + $0x34] sm:$0xf] }
  0x65   : > { %307 = vrot.lane.b32.xlu0 %v2578_v7, %s3294_s27  ;;  %v685_v7 = vshll.u32 %v2648_v60, 16  ;;  %v2649_v10 = vcombine.low %v2640_v2, %v2639_v54  ;;  %v782_v33 = vrot.slane %v780_v24, 1  ;;  %v3169_v41 = vld [vmem:[#allocation3 + $0x10] ss:$0 sps:$4 sm:$0x33]   ;;  %2988 = vmatprep.mubr.msk.bf16.mxu0 %vm3302_vm1, %v3301_v32  ;;  %v789_v54 = vrot.slane %v2669_v44, 1 }
  0x66   : > { %v757_v28 = vrot.slane %v755_v17, 1  ;;  %v2051_v48 = vsel %vm595_vm0, %v3169_v41, 0  ;;  %v2678_v52 = vld [vmem:[%s3419_s25 + $0x28] sm:$0xe]  ;;  %3016 = vmatprep.mubr.msk.bf16.mxu1 %vm3302_vm1, %v3301_v32  ;;  %v1333_v56 = vshll.u32 %v2780_v45, 16 }
  0x67   : > { %v687_v16 = vrot.slane %v685_v7, 1  ;;  %v2660_v57 = vld [vmem:[%s3419_s25 + $0x30] sm:$0xf]  ;;  %v2744_v2 = vld [vmem:[%s3419_s25 + $0x40] sm:$0xf] }
  0x68   : > { %515 = vrot.lane.b32.xlu1 %v514_v11, %s3297_s30  ;;  %v2655_v11 = vld [vmem:[%s3419_s25 + $0x20] sm:$0xe]  ;;  %v2671_v61 = vcombine.low %v2660_v57, %v2662_v53  ;;  %v2746_v3 = vld [vmem:[%s3419_s25 + $0x44] sm:$0xf]  ;;  %v2680_v6 = vld [vmem:[%s3419_s25 + $0x34] sm:$0x7] }
  0x69   : > { %319 = vrot.lane.b32.xlu0 %v318_v15, %s3299_s6  ;;  %v683_v15 = vshrl.u32 %v2648_v60, 16  ;;  %v2666_v18 = vcombine.low %v2655_v11, %v2654_v63  ;;  %v2689_v60 = vcombine.low %v2678_v52, %v3526_v20  ;;  %v1331_v63 = vshrl.u32 %v2780_v45, 16  ;;  %v2663_v11 = vld [vmem:[%s3419_s25 + $0x30] sm:$0xe]  ;;  %v2773_v21 = vld [vmem:[%s3419_s25 + $0x54] sm:$0xf] }
  0x6a   : > { %v2690_v13 = vcombine.low %v2679_v46, %v2680_v6  ;;  %v2772_v41 = vld [vmem:[%s3419_s25 + $0x54] sm:$0x7]  ;;  %v2748_v52 = vld [vmem:[%s3419_s25 + $0x48] sm:$0xf]  ;;  %v2775_v6 = vld [vmem:[%s3419_s25 + $0x58] sm:$0xf] }
  0x6b   : > { %v688_v26 = vor.u32 %v687_v16, %v683_v15  ;;  %v764_v30 = vrot.slane %v2666_v18, 1  ;;  %v876_v4 = vrot.slane %v2689_v60, 1  ;;  %v2770_v16 = vld [vmem:[%s3419_s25 + $0x48] sm:$0xe]  ;;  %v2672_v18 = vcombine.low %v2663_v11, %v2662_v53  ;;  %v2749_v53 = vld [vmem:[%s3419_s25 + $0x4c] sm:$0x7] }
  0x6c   : > { %521 = vrot.lane.b32.xlu1 %v520_v19, %s3295_s28  ;;  %v2675_v19 = vld [vmem:[%s3419_s25 + $0x28] sm:$0xf]  ;;  %v2781_v24 = vcombine.low %v2770_v16, %v3537_v37  ;;  %v2683_v37 = vld [vmem:[%s3419_s25 + $0x38] sm:$0xf]  ;;  %v2698_v60 = vld [vmem:[%s3419_s25 + $0x30] sm:$0xf] }
  0x6d   : > { %325 = vrot.lane.b32.xlu0 %v324_v22, %s3300_s7  ;;  %v694_v22 = vrot.slane %v2649_v10, 1  ;;  %v2757_v10 = vcombine.low %v2744_v2, %v2746_v3 }
  0x70   : > { %540 = vrot.lane.b32.xlu1 %v539_v29, %s3298_s5  ;;  %v2688_v29 = vcombine.low %v2675_v19, %v3526_v20  ;;  %v1221_v19 = vshll.u32 %v2757_v10, 16  ;;  %v2771_v20 = vld [vmem:[%s3419_s25 + $0x50] sm:$0xf] }
  0x71   : > { %528 = vrot.lane.b32.xlu0 %v2621_v34, %s3293_s26  ;;  %v3167_v34 = vld [vmem:[#allocation3 + $0x8] sm:$0xff]  }
  0x72   : > { %v867_v39 = vshll.u32 %v2688_v29, 16  ;;  %2985 = vmatpush3.bf16.msra.mxu0 %v3167_v34  ;;  %3044 = vmatpush3.bf16.msra.mxu1 %v3167_v34  ;;  %v2685_v34 = vld [vmem:[%s3419_s25 + $0x3c] sm:$0xf] }
  0x73   : > { %2986 = vmatprep.subr.bf16.mxu0 %v3301_v32  ;;  %3042 = vmatprep.subr.bf16.mxu1 %v3301_v32  ;;  %v2694_v40 = vcombine.low %v2683_v37, %v2685_v34 }
  0x74   : > { %553 = vrot.lane.b32.xlu1 %v2624_v38, %s3294_s27  ;;  %v758_v38 = vor.u32 %v757_v28, %v753_v25  ;;  %v869_v51 = vrot.slane %v867_v39, 1  ;;  %v2682_v25 = vld [vmem:[%s3419_s25 + $0x30] sm:$0xe]  ;;  %v1219_v28 = vshrl.u32 %v2757_v10, 16 }
  0x75   : > { %546 = vrot.lane.b32.xlu0 %v545_v43, %s3296_s29  ;;  %v783_v43 = vor.u32 %v782_v33, %v778_v31  ;;  %v1342_v31 = vrot.slane %v2781_v24, 1 }
  0x76   : > { %2987 = vmatpush3.bf16.msra.mxu0 %v2051_v48  ;;  %3045 = vmatpush3.bf16.msra.mxu1 %v2051_v48 }
  0x78   : > { %571 = vrot.lane.b32.xlu1 %v570_v47, %s3300_s7  ;;  %v3548_v47 = vld [vmem:[%s3419_s25 + $0x34] sm:$0xf] }
  0x79   : > { %565 = vrot.lane.b32.xlu0 %v564_v50, %s3299_s6  ;;  %v865_v50 = vshrl.u32 %v2688_v29, 16  ;;  %v1223_v29 = vrot.slane %v1221_v19, 1  ;;  %v2692_v33 = vcombine.low %v2682_v25, %v3548_v47  ;;  %v3615_v19 = vld [vmem:[%s3419_s25 + $0x54] sm:$0xf] }
  0x7b   : > { %v870_v59 = vor.u32 %v869_v51, %v865_v50  ;;  %v1224_v35 = vor.u32 %v1223_v29, %v1219_v28  ;;  %v901_v39 = vrot.slane %v2692_v33, 1  ;;  %v2750_v50 = vld [vmem:[%s3419_s25 + $0x4c] sm:$0xf]  ;;  %v2778_v29 = vld [vmem:[%s3419_s25 + $0x58] sm:$0xe] }
  0x7c   : > { %645 = vrot.lane.b32.xlu1 %v644_v55, %s3295_s28  ;;  %v2691_v55 = vcombine.low %v2679_v46, %v3548_v47  ;;  %v2782_v47 = vcombine.low %v2771_v20, %v2772_v41 }
  0x7d   : > { %639 = vrot.lane.b32.xlu0 %v638_v58, %s3297_s30  ;;  %v2661_v58 = vld [vmem:[%s3419_s25 + $0x34] sm:$0x7] }
  0x7e   : > { %v2670_v62 = vcombine.low %v2660_v57, %v2661_v58  ;;  %v892_v1 = vshll.u32 %v2691_v55, 16  ;;  %v890_v8 = vshrl.u32 %v2691_v55, 16  ;;  %v2760_v58 = vcombine.low %v2748_v52, %v2750_v50 }
  0x80   : > { %664 = vrot.lane.b32.xlu1 %v663_v0, %s3298_s5  ;;  %v1335_v0 = vrot.slane %v1333_v56, 1  ;;  %v915_v56 = vshrl.u32 %v2694_v40, 16  ;;  %v1246_v2 = vshll.u32 %v2760_v58, 16 }
  0x81   : > { %652 = vrot.lane.b32.xlu0 %v2644_v5, %s3293_s26  ;;  %v805_v5 = vshll.u32 %v2671_v61, 16 }
  0x82   : > { %v1336_v7 = vor.u32 %v1335_v0, %v1331_v63  ;;  %v1248_v11 = vrot.slane %v1246_v2, 1  ;;  %v3654_v2 = vld [vmem:[%s3419_s25 + $0x5c] sm:$0xf] }
  0x83   : > { %v807_v15 = vrot.slane %v805_v5, 1 }
  0x84   : > { %677 = vrot.lane.b32.xlu1 %v2647_v9, %s3294_s27  ;;  %v894_v9 = vrot.slane %v892_v1, 1 }
  0x85   : > { %670 = vrot.lane.b32.xlu0 %v669_v14, %s3296_s29  ;;  %v803_v14 = vshrl.u32 %v2671_v61, 16  ;;  %v2700_v61 = vld [vmem:[%s3419_s25 + $0x34] sm:$0xf] }
  0x86   : > { %v895_v17 = vor.u32 %v894_v9, %v890_v8  ;;  %v2776_v8 = vld [vmem:[%s3419_s25 + $0x5c] sm:$0x7]  ;;  %v2751_v9 = vld [vmem:[%s3419_s25 + $0x48] sm:$0xe] }
  0x87   : > { %v2761_v16 = vcombine.low %v2751_v9, %v2750_v50  ;;  %v241_v9 = vld [vmem:[%s3419_s25 + $0x4] sm:$0x7] }
  0x88   : > { %695 = vrot.lane.b32.xlu1 %v694_v22, %s3300_s7  ;;  %v808_v22 = vor.u32 %v807_v15, %v803_v14  ;;  %v2785_v15 = vcombine.low %v2775_v6, %v2776_v8 }
  0x89   : > { %689 = vrot.lane.b32.xlu0 %v688_v26, %s3299_s6  ;;  %v814_v26 = vrot.slane %v2672_v18, 1  ;;  %v2752_v18 = vld [vmem:[%s3419_s25 + $0x50] sm:$0xf]  ;;  %v1255_v25 = vrot.slane %v2761_v16, 1 }
  0x8a   : > { %v2763_v28 = vcombine.low %v2752_v18, %v3615_v19 }
  0x8c   : > { %765 = vrot.lane.b32.xlu1 %v764_v30, %s3295_s28  ;;  %v2783_v30 = vcombine.low %v2771_v20, %v2773_v21 }
  0x8d   : > { %759 = vrot.lane.b32.xlu0 %v758_v38, %s3297_s30  ;;  %v2684_v38 = vld [vmem:[%s3419_s25 + $0x3c] sm:$0x7] }
  0x8e   : > { %v1358_v36 = vshll.u32 %v2783_v30, 16  ;;  %v2693_v44 = vcombine.low %v2683_v37, %v2684_v38  ;;  %v1356_v45 = vshrl.u32 %v2783_v30, 16  ;;  %v2702_v30 = vld [vmem:[%s3419_s25 + $0x38] sm:$0xf]  ;;  %v2790_v38 = vld [vmem:[%s3419_s25 + $0x50] sm:$0xf] }
  0x90   : > { %784 = vrot.lane.b32.xlu1 %v783_v43, %s3298_s5  ;;  %v2747_v43 = vld [vmem:[%s3419_s25 + $0x40] sm:$0xe]  ;;  %v1360_v46 = vrot.slane %v1358_v36, 1 }
  0x91   : > { %772 = vrot.lane.b32.xlu0 %v2667_v49, %s3293_s26  ;;  %v2758_v48 = vcombine.low %v2747_v43, %v2746_v3  ;;  %v917_v49 = vshll.u32 %v2694_v40, 16  ;;  %v2711_v3 = vcombine.low %v2698_v60, %v2700_v61 }
  0x92   : > { %v1361_v51 = vor.u32 %v1360_v46, %v1356_v45 }
  0x93   : > { %v1230_v55 = vrot.slane %v2758_v48, 1  ;;  %v919_v57 = vrot.slane %v917_v49, 1  ;;  %v986_v14 = vshll.u32 %v2711_v3, 16  ;;  %v2753_v48 = vld [vmem:[%s3419_s25 + $0x54] sm:$0x7] }
  0x94   : > { %790 = vrot.lane.b32.xlu1 %v789_v54, %s3296_s29  ;;  %v2686_v54 = vld [vmem:[%s3419_s25 + $0x38] sm:$0xe] }
  0x95   : > { %871 = vrot.lane.b32.xlu0 %v870_v59, %s3297_s30  ;;  %v2774_v59 = vld [vmem:[%s3419_s25 + $0x50] sm:$0xe]  ;;  %v2695_v63 = vcombine.low %v2686_v54, %v2685_v34  ;;  %v920_v0 = vor.u32 %v919_v57, %v915_v56  ;;  %v2584_v56 = vld [vmem:[%s3419_s25 + $0xc] sm:$0x7] }
  0x96   : > { %v2784_v1 = vcombine.low %v2774_v59, %v2773_v21  ;;  %v984_v21 = vshrl.u32 %v2711_v3, 16 }
  0x97   : > { %v926_v5 = vrot.slane %v2695_v63, 1  ;;  %v2595_v63 = vcombine.low %v3433_v12, %v2584_v56 }
  0x98   : > { %797 = vrot.lane.b32.xlu1 %v2670_v62, %s3294_s27  ;;  %v2759_v62 = vcombine.low %v2748_v52, %v2749_v53  ;;  %v1367_v10 = vrot.slane %v2784_v1, 1  ;;  %v3651_v1 = vld [vmem:[%s3419_s25 + $0x58] sm:$0xf] }
  0x99   : > { %877 = vrot.lane.b32.xlu0 %v876_v4, %s3295_s28  ;;  %v2777_v4 = vld [vmem:[%s3419_s25 + $0x5c] sm:$0xf] }
  0x9a   : > { %v2787_v41 = vcombine.low %v2778_v29, %v2777_v4 }
  0x9c   : > { %1337 = vrot.lane.b32.xlu1 %v1336_v7, %s3297_s30  ;;  %v1244_v7 = vshrl.u32 %v2760_v58, 16  ;;  %v1392_v50 = vrot.slane %v2787_v41, 1  ;;  %v2703_v58 = vld [vmem:[%s3419_s25 + $0x3c] sm:$0x7] }
  0x9d   : > { %884 = vrot.lane.b32.xlu0 %v2690_v13, %s3293_s26  ;;  %v2786_v13 = vcombine.low %v2775_v6, %v2777_v4  ;;  %v2713_v4 = vcombine.low %v2702_v30, %v2703_v58 }
  0x9e   : > { %v1249_v20 = vor.u32 %v1248_v11, %v1244_v7  ;;  %v2755_v7 = vld [vmem:[%s3419_s25 + $0x50] sm:$0xe]  ;;  %v2806_v11 = vcombine.low %v3651_v1, %v3654_v2 }
  0x9f   : > { %v1383_v24 = vshll.u32 %v2786_v13, 16 }
  0xa0   : > { %896 = vrot.lane.b32.xlu1 %v895_v17, %s3298_s5  ;;  %v2701_v17 = vld [vmem:[%s3419_s25 + $0x30] sm:$0xe]  ;;  %v1477_v29 = vshll.u32 %v2806_v11, 16  ;;  %v1475_v41 = vshrl.u32 %v2806_v11, 16 }
  0xa1   : > { %809 = vrot.lane.b32.xlu0 %v808_v22, %s3299_s6  ;;  %v988_v22 = vrot.slane %v986_v14, 1  ;;  %v1385_v36 = vrot.slane %v1383_v24, 1  ;;  %v2705_v24 = vld [vmem:[%s3419_s25 + $0x38] sm:$0xe] }
  0xa3   : > { %v989_v34 = vor.u32 %v988_v22, %v984_v21  ;;  %v2572_v21 = vcombine.low %v3447_v23, %v241_v9 }
  0xa4   : > { %815 = vrot.lane.b32.xlu1 %v814_v26, %s3300_s7  ;;  %v2712_v26 = vcombine.low %v2701_v17, %v2700_v61  ;;  %v2764_v17 = vcombine.low %v2755_v7, %v3615_v19 }
  0xa5   : > { %1343 = vrot.lane.b32.xlu0 %v1342_v31, %s3295_s28  ;;  %v3623_v31 = vld [vmem:[%s3419_s25 + $0x3c] sm:$0xf] }
  0xa6   : > { %v995_v40 = vrot.slane %v2712_v26, 1  ;;  %v2714_v43 = vcombine.low %v2702_v30, %v3623_v31  ;;  %v2795_v30 = vld [vmem:[%s3419_s25 + $0x5c] sm:$0x7] }
  0xa8   : > { %1225 = vrot.lane.b32.xlu1 %v1224_v35, %s3297_s30  ;;  %v1381_v35 = vshrl.u32 %v2786_v13, 16  ;;  %v1011_v53 = vshll.u32 %v2714_v43, 16  ;;  %v1009_v61 = vshrl.u32 %v2714_v43, 16  ;;  %v1479_v43 = vrot.slane %v1477_v29, 1 }
  0xa9   : > { %902 = vrot.lane.b32.xlu0 %v901_v39, %s3296_s29  ;;  %v3632_v39 = vld [vmem:[%s3419_s25 + $0x54] sm:$0xf] }
  0xaa   : > { %v1386_v46 = vor.u32 %v1385_v36, %v1381_v35  ;;  %v2715_v35 = vcombine.low %v2705_v24, %v3623_v31 }
  0xac   : > { %909 = vrot.lane.b32.xlu1 %v2693_v44, %s3294_s27  ;;  %v1271_v44 = vshll.u32 %v2763_v28, 16 }
  0xad   : > { %1350 = vrot.lane.b32.xlu0 %v2782_v47, %s3293_s26  ;;  %v2803_v47 = vcombine.low %v2790_v38, %v3632_v39 }
  0xae   : > { %v1273_v52 = vrot.slane %v1271_v44, 1  ;;  %v2797_v44 = vld [vmem:[%s3419_s25 + $0x58] sm:$0xe] }
  0xaf   : > { %v1452_v57 = vshll.u32 %v2803_v47, 16 }
  0xb0   : > { %1362 = vrot.lane.b32.xlu1 %v1361_v51, %s3298_s5  ;;  %v1269_v51 = vshrl.u32 %v2763_v28, 16 }
  0xb1   : > { %1231 = vrot.lane.b32.xlu0 %v1230_v55, %s3295_s28  ;;  %v2762_v55 = vcombine.low %v2752_v18, %v2753_v48  ;;  %v1454_v6 = vrot.slane %v1452_v57, 1  ;;  %v3668_v18 = vld [vmem:[%s3419_s25 + $0x40] sm:$0xf] }
  0xb2   : > { %v1274_v60 = vor.u32 %v1273_v52, %v1269_v51 }
  0xb4   : > { %1238 = vrot.lane.b32.xlu1 %v2759_v62, %s3293_s26  ;;  %v1013_v62 = vrot.slane %v1011_v53, 1  ;;  %v2807_v53 = vcombine.low %v2797_v44, %v3654_v2  ;;  %v3768_v44 = vld [vmem:[%s3419_s25 + $0x40] sm:$0xf] }
  0xb5   : > { %921 = vrot.lane.b32.xlu0 %v920_v0, %s3299_s6  ;;  %v2793_v0 = vld [vmem:[%s3419_s25 + $0x50] sm:$0xe] }
  0xb6   : > { %v1014_v12 = vor.u32 %v1013_v62, %v1009_v61 }
  0xb8   : > { %927 = vrot.lane.b32.xlu1 %v926_v5, %s3300_s7  ;;  %v1450_v5 = vshrl.u32 %v2803_v47, 16  ;;  %v3700_v47 = vld [vmem:[%s3419_s25 + $0x64] sm:$0xf] }
  0xb9   : > { %1368 = vrot.lane.b32.xlu0 %v1367_v10, %s3296_s29  ;;  %v2804_v10 = vcombine.low %v2793_v0, %v3632_v39 }
  0xba   : > { %v1455_v16 = vor.u32 %v1454_v6, %v1450_v5 }
  0xbb   : > { %v1461_v28 = vrot.slane %v2804_v10, 1  ;;  %v2799_v10 = vld [vmem:[%s3419_s25 + $0x64] sm:$0x7] }
  0xbc   : > { %1375 = vrot.lane.b32.xlu1 %v2785_v15, %s3294_s27 }
  0xbd   : > { %1250 = vrot.lane.b32.xlu0 %v1249_v20, %s3298_s5  ;;  %v3671_v20 = vld [vmem:[%s3419_s25 + $0x44] sm:$0xf] }
  0xbe   : > { %v3626_v33 = vpop.permute.xlu1 %404  ;;  %v3685_v23 = vcombine.low %v3668_v18, %v3671_v20 }
  0xbf   : > { %v3628_v37 = vpop.permute.xlu0 %282 }
  0xc0   : > { %1256 = vrot.lane.b32.xlu1 %v1255_v25, %s3296_s29  ;;  %v1036_v31 = vshll.u32 %v3685_v23, 16  ;;  %v1034_v62 = vshrl.u32 %v3685_v23, 16 }
  0xc1   : > { %990 = vrot.lane.b32.xlu0 %v989_v34, %s3297_s30  ;;  %v1280_v34 = vrot.slane %v2764_v17, 1 }
  0xc2   : > { %v3637_v45 = vpop.permute.xlu1 %429 }
  0xc3   : > { %v398_v49 = vpop.permute.xlu0 %397 }
  0xc4   : > { %996 = vrot.lane.b32.xlu1 %v995_v40, %s3295_s28  ;;  %v2805_v40 = vcombine.low %v3651_v1, %v2795_v30 }
  0xc5   : > { %1387 = vrot.lane.b32.xlu0 %v1386_v46, %s3299_s6  ;;  %v3697_v46 = vld [vmem:[%s3419_s25 + $0x60] sm:$0xf] }
  0xc6   : > { %v423_v54 = vpop.permute.xlu1 %422 }
  0xc7   : > { %v3645_v59 = vpop.permute.xlu0 %275 }
  0xc8   : > { %1393 = vrot.lane.b32.xlu1 %v1392_v50, %s3300_s7  ;;  %v2707_v50 = vld [vmem:[%s3419_s25 + $0x44] sm:$0x7] }
  0xc9   : > { %1263 = vrot.lane.b32.xlu0 %v2762_v55, %s3294_s27  ;;  %v3713_v55 = vld [vmem:[%s3419_s25 + $0x3c] sm:$0xf]  ;;  %v2716_v61 = vcombine.low %v3668_v18, %v2707_v50 }
  0xca   : > { %v270_v3 = vpop.permute.xlu1 %269 }
  0xcb   : > { %v392_v8 = vpop.permute.xlu0 %391  ;;  %v330_v38 = vsel %vm327_vm2, %v2572_v21, %v270_v3 }
  0xcc   : > { %1275 = vrot.lane.b32.xlu1 %v1274_v60, %s3299_s6  ;;  %v451_v13 = vsel %vm327_vm2, %v2595_v63, %v392_v8  ;;  %v333_v51 = vsel %vm331_vm3, %v330_v38, %v3645_v59  ;;  %v1480_v60 = vor.u32 %v1479_v43, %v1475_v41  ;;  %v3718_v59 = vcombine.low %v3697_v46, %v3700_v47  ;;  %v2724_v43 = vld [vmem:[%s3419_s25 + $0x38] sm:$0xe] }
  0xcd   : > { %v453_v14 = vsel %vm331_vm3, %v451_v13, %v398_v49  ;;  %1003 = vrot.lane.b32.xlu0 %v2713_v4, %s3293_s26  ;;  %v1020_v49 = vrot.slane %v2715_v35, 1  ;;  %v1038_v63 = vrot.slane %v1036_v31, 1  ;;  %v336_v0 = vsel %vm334_vm4, %v333_v51, %v3628_v37  ;;  %v2709_v4 = vld [vmem:[%s3419_s25 + $0x40] sm:$0xe]  ;;  %v2607_v37 = vld [vmem:[%s3419_s25 + $0x14] sm:$0x7] }
  0xce   : > { %v417_v15 = vpop.permute.xlu1 %416  ;;  %v455_v22 = vsel %vm334_vm4, %v453_v14, %v3626_v33  ;;  %v1502_v11 = vshll.u32 %v3718_v59, 16  ;;  %v2718_v14 = vcombine.low %v2709_v4, %v3671_v20  ;;  %v2618_v20 = vcombine.low %v3455_v42, %v2607_v37  ;;  %v3771_v31 = vld [vmem:[%s3419_s25 + $0x44] sm:$0xf] }
  0xcf   : > { %v3677_v25 = vpop.permute.xlu0 %294  ;;  %v457_v26 = vsel %vm337_vm5, %v455_v22, %v417_v15  ;;  %v3743_v15 = vld [vmem:[%s3419_s25 + $0x58] sm:$0xf]  ;;  %v1039_v22 = vor.u32 %v1038_v63, %v1034_v62  ;;  %v2726_v4 = vld [vmem:[%s3419_s25 + $0x44] sm:$0x7] }
  0xd0   : > { %1015 = vrot.lane.b32.xlu1 %v1014_v12, %s3298_s5  ;;  %v459_v19 = vsel %vm340_vm6, %v457_v26, %v423_v54  ;;  %v3710_v54 = vld [vmem:[%s3419_s25 + $0x38] sm:$0xf]  ;;  %v1486_v12 = vrot.slane %v2807_v53, 1  ;;  %v339_v13 = vsel %vm337_vm5, %v336_v0, %v3677_v25  ;;  %v2808_v26 = vcombine.low %v3697_v46, %v2799_v10  ;;  %v3788_v0 = vld [vmem:[%s3419_s25 + $0x60] sm:$0xf] }
  0xd1   : > { %1456 = vrot.lane.b32.xlu0 %v1455_v16, %s3297_s30  ;;  %v461_v36 = vsel %vm343_vm7, %v459_v19, %v3637_v45  ;;  %v2734_v5 = vcombine.low %v3710_v54, %v3713_v55  ;;  %v3746_v16 = vld [vmem:[%s3419_s25 + $0x5c] sm:$0xf]  ;;  %v1500_v19 = vshrl.u32 %v3718_v59, 16  ;;  %v1504_v30 = vrot.slane %v1502_v11, 1  ;;  %v2816_v63 = vld [vmem:[%s3419_s25 + $0x58] sm:$0xe] }
  0xd2   : > { %v442_v33 = vpop.permute.xlu1 %441  ;;  %v2826_v23 = vcombine.low %v3743_v15, %v3746_v16  ;;  %v1045_v42 = vrot.slane %v2718_v14, 1 }
  0xd3   : > { %v301_v39 = vpop.permute.xlu0 %300  ;;  %v463_v45 = vsel %vm346_vm8, %v461_v36, %v442_v33  ;;  %v1105_v24 = vshll.u32 %v2734_v5, 16 }
  0xd4   : > { %1462 = vrot.lane.b32.xlu1 %v1461_v28, %s3295_s28  ;;  %v342_v17 = vsel %vm340_vm6, %v339_v13, %v301_v39  ;;  %v1103_v39 = vshrl.u32 %v2734_v5, 16  ;;  %v1571_v50 = vshll.u32 %v2826_v23, 16  ;;  %v1569_v59 = vshrl.u32 %v2826_v23, 16 }
  0xd5   : > { %1281 = vrot.lane.b32.xlu0 %v1280_v34, %s3300_s7  ;;  %v2801_v34 = vld [vmem:[%s3419_s25 + $0x60] sm:$0xe] }
  0xd6   : > { %v448_v48 = vpop.permute.xlu1 %447 }
  0xd7   : > { %v465_v52 = vsel %vm4253_vm9, %v463_v45, %v448_v48  ;;  %v308_v56 = vpop.permute.xlu0 %307  ;;  %v1505_v48 = vor.u32 %v1504_v30, %v1500_v19 }
  0xd8   : > { %v2604_v57 = vcombine.low %v465_v52, %v465_v52  ;;  %v2605_v58 = vcombine.high %v465_v52, %v465_v52  ;;  %1469 = vrot.lane.b32.xlu1 %v2805_v40, %s3293_s26  ;;  %v345_v25 = vsel %vm343_vm7, %v342_v17, %v308_v56  ;;  %v1107_v40 = vrot.slane %v1105_v24, 1 }
  0xd9   : > { %1021 = vrot.lane.b32.xlu0 %v1020_v49, %s3296_s29  ;;  %v2810_v49 = vcombine.low %v2801_v34, %v3700_v47  ;;  %v2735_v56 = vcombine.low %v2724_v43, %v3713_v55  ;;  %v3791_v55 = vld [vmem:[%s3419_s25 + $0x64] sm:$0xf] }
  0xda   : > { %v474_v1 = vrot.slane %v2604_v57, 5  ;;  %v476_v2 = vrot.slane %v2605_v58, 5  ;;  %v516_v3 = vpop.permute.xlu1 %515  ;;  %v1108_v53 = vor.u32 %v1107_v40, %v1103_v39  ;;  %v2737_v57 = vcombine.low %v3768_v44, %v3771_v31 }
  0xdb   : > { %v320_v9 = vpop.permute.xlu0 %319  ;;  %v575_v41 = vsel %vm327_vm2, %v2618_v20, %v516_v3  ;;  %v2630_v3 = vld [vmem:[%s3419_s25 + $0x1c] sm:$0x7]  ;;  %v2829_v10 = vcombine.low %v3788_v0, %v3791_v55  ;;  %v3811_v20 = vld [vmem:[%s3419_s25 + $0x48] sm:$0xf] }
  0xdc   : > { %v475_v7 = vrot.slane %v474_v1, 4  ;;  %v478_v8 = vrot.slane %v476_v2, 4  ;;  %483 = vst.msk [vmem:[#allocation2 + $0x4] sm:$0x8] %vm4251_vm12, %v474_v1  ;;  %1481 = vrot.lane.b32.xlu1 %v1480_v60, %s3298_s5  ;;  %v348_v28 = vsel %vm346_vm8, %v345_v25, %v320_v9  ;;  %v1511_v60 = vrot.slane %v2810_v49, 1 }
  0xdd   : > { %1028 = vrot.lane.b32.xlu0 %v2716_v61, %s3294_s27  ;;  %v1573_v61 = vrot.slane %v1571_v50, 1  ;;  %v1130_v5 = vshll.u32 %v2737_v57, 16  ;;  %v2641_v13 = vcombine.low %v3486_v27, %v2630_v3  ;;  %v2728_v25 = vld [vmem:[%s3419_s25 + $0x40] sm:$0xe]  ;;  %vm4255_vm12 = vcmask 289794  }
  0xde   : > { %v477_v18 = vsel %vm3730_vm14, %v475_v7, %v476_v2  ;;  %486 = vst.msk [vmem:[#allocation2 + $0xc] sm:$0x3] %vm4250_vm15, %v478_v8  ;;  %v522_v21 = vpop.permute.xlu1 %521  ;;  %v1114_v2 = vrot.slane %v2735_v56, 1  ;;  %vm596_vm15 = vcmask 1045508   ;;  %v2820_v49 = vld [vmem:[%s3419_s25 + $0x60] sm:$0xe] }
  0xdf   : > { %484 = vst.msk [vmem:[#allocation2 + $0x8] sm:$0xf] %vm359_vm13, %v477_v18  ;;  %v326_v29 = vpop.permute.xlu0 %325  ;;  %v577_v46 = vsel %vm331_vm3, %v575_v41, %v522_v21  ;;  %v1574_v9 = vor.u32 %v1573_v61, %v1569_v59  ;;  %v2736_v18 = vcombine.low %v3768_v44, %v2726_v4  ;;  %v1132_v21 = vrot.slane %v1130_v5, 1  ;;  %v2821_v56 = vld [vmem:[%s3419_s25 + $0x68] sm:$0xf] }
  0xe0   : > { %1487 = vrot.lane.b32.xlu1 %v1486_v12, %s3296_s29  ;;  %v351_v33 = vsel %vm4253_vm9, %v348_v28, %v326_v29  ;;  %v2827_v12 = vcombine.low %v2816_v63, %v3746_v16  ;;  %v1128_v16 = vshrl.u32 %v2737_v57, 16  ;;  %v1596_v29 = vshll.u32 %v2829_v10, 16  ;;  %v2823_v57 = vld [vmem:[%s3419_s25 + $0x6c] sm:$0xf]  ;;  %v3851_v5 = vld [vmem:[%s3419_s25 + $0x60] sm:$0xf] }
  0xe1   : > { %v2581_v35 = vcombine.low %v351_v33, %v351_v33  ;;  %v2582_v36 = vcombine.high %v351_v33, %v351_v33  ;;  %1040 = vrot.lane.b32.xlu0 %v1039_v22, %s3299_s6  ;;  %v2818_v33 = vld [vmem:[%s3419_s25 + $0x64] sm:$0x7]  ;;  %v2830_v59 = vcombine.low %v2820_v49, %v3791_v55  ;;  %v2832_v4 = vcombine.low %v2821_v56, %v2823_v57 }
  0xe2   : > { %v541_v38 = vpop.permute.xlu1 %540  ;;  %v1580_v28 = vrot.slane %v2827_v12, 1  ;;  %v2828_v44 = vcombine.low %v3788_v0, %v2818_v33  ;;  %v2824_v12 = vld [vmem:[%s3419_s25 + $0x68] sm:$0xe] }
  0xe3   : > { %360 = vst.msk [vmem:[#allocation2] sm:$0xf] %vm359_vm13, %v2581_v35  ;;  %v529_v45 = vpop.permute.xlu0 %528  ;;  %v1133_v35 = vor.u32 %v1132_v21, %v1128_v16  ;;  %v1621_v21 = vshll.u32 %v2832_v4, 16 }
  0xe4   : > { %362 = vst.msk [vmem:[#allocation2 + $0x4] sm:$0x7] %vm4252_vm10, %v2582_v36  ;;  %1494 = vrot.lane.b32.xlu1 %v2808_v26, %s3294_s27  ;;  %v579_v51 = vsel %vm334_vm4, %v577_v46, %v529_v45  ;;  %v3814_v26 = vld [vmem:[%s3419_s25 + $0x4c] sm:$0xf]  ;;  %vm3821_vm10 = vmor %vm595_vm0, %vm596_vm15  ;;  %v2738_v36 = vcombine.low %v2728_v25, %v3771_v31  ;;  %v1594_v46 = vshrl.u32 %v2829_v10, 16  ;;  %v1598_v45 = vrot.slane %v1596_v29, 1 }
  0xe5   : > { %1046 = vrot.lane.b32.xlu0 %v1045_v42, %s3300_s7  ;;  %v581_v47 = vsel %vm337_vm5, %v579_v51, %v541_v38  ;;  %v2740_v38 = vcombine.low %v3811_v20, %v3814_v26  ;;  %vm4268_vm0 = vcmask 261120   ;;  %vm719_vm15 = vcmask 1040384  }
  0xe6   : > { %v554_v52 = vpop.permute.xlu1 %553  ;;  %v1139_v51 = vrot.slane %v2738_v36, 1 }
  0xe7   : > { %v547_v58 = vpop.permute.xlu0 %546 }
  0xe8   : > { %1506 = vrot.lane.b32.xlu1 %v1505_v48, %s3299_s6  ;;  %v583_v62 = vsel %vm340_vm6, %v581_v47, %v547_v58 }
  0xe9   : > { %1109 = vrot.lane.b32.xlu0 %v1108_v53, %s3297_s30  ;;  %v585_v7 = vsel %vm343_vm7, %v583_v62, %v554_v52  ;;  %v1155_v52 = vshll.u32 %v2740_v38, 16  ;;  %v2730_v53 = vld [vmem:[%s3419_s25 + $0x4c] sm:$0x7]  ;;  %v2732_v62 = vld [vmem:[%s3419_s25 + $0x48] sm:$0xe] }
  0xea   : > { %v572_v1 = vpop.permute.xlu1 %571 }
  0xeb   : > { %v3170_v37 = vld [vmem:[#allocation2] sm:$0xff]   ;;  %v566_v8 = vpop.permute.xlu0 %565  ;;  %v1157_v3 = vrot.slane %v1155_v52, 1 }
  0xec   : > { %1512 = vrot.lane.b32.xlu1 %v1511_v60, %s3300_s7  ;;  %v587_v11 = vsel %vm346_vm8, %v585_v7, %v566_v8  ;;  %2989 = vmatmul.mubr.msk.bf16.vlgmr.msra.gmra.mrb[0].mxu0 %vm2009_vm11, %v3170_v37  ;;  %v1599_v60 = vor.u32 %v1598_v45, %v1594_v46  ;;  %v2838_v37 = vld [vmem:[%s3419_s25 + $0x64] sm:$0xf]  ;;  %v1605_v8 = vrot.slane %v2830_v59, 1 }
  0xed   : > { %v589_v14 = vsel %vm4253_vm9, %v587_v11, %v572_v1  ;;  %1115 = vrot.lane.b32.xlu0 %v1114_v2, %s3295_s28  ;;  %2992 = vmatprep.mubr.msk.bf16.mxu0 %vm3302_vm1, %v3301_v32  ;;  %vm4254_vm9 = vcmask 286720   ;;  %v2739_v1 = vcombine.low %v3811_v20, %v2730_v53  ;;  %v1153_v2 = vshrl.u32 %v2740_v38, 16 }
  0xee   : > { %v646_v17 = vpop.permute.xlu1 %645  ;;  %v2627_v22 = vcombine.low %v589_v14, %v589_v14  ;;  %v2628_v24 = vcombine.high %v589_v14, %v589_v14  ;;  %v2741_v11 = vcombine.low %v2732_v62, %v3814_v26  ;;  %v3867_v14 = vld [vmem:[%s3419_s25 + $0x6c] sm:$0xf]  ;;  %v2844_v62 = vld [vmem:[%s3419_s25 + $0x70] sm:$0xf] }
  0xef   : > { %v640_v27 = vpop.permute.xlu0 %639  ;;  %v1158_v16 = vor.u32 %v1157_v3, %v1153_v2 }
  0xf0   : > { %1575 = vrot.lane.b32.xlu1 %v1574_v9, %s3297_s30  ;;  %v598_v19 = vrot.slane %v2627_v22, 6  ;;  %v600_v30 = vrot.slane %v2628_v24, 6  ;;  %v699_v23 = vsel %vm327_vm2, %v2641_v13, %v640_v27  ;;  %v2822_v9 = vld [vmem:[%s3419_s25 + $0x6c] sm:$0x7]  ;;  %v3864_v13 = vld [vmem:[%s3419_s25 + $0x68] sm:$0xf]  ;;  %v2849_v22 = vcombine.low %v3851_v5, %v2838_v37 }
  0xf1   : > { %1122 = vrot.lane.b32.xlu0 %v2736_v18, %s3293_s26  ;;  %v701_v41 = vsel %vm331_vm3, %v699_v23, %v646_v17  ;;  %v2831_v26 = vcombine.low %v2821_v56, %v2822_v9  ;;  %v2833_v27 = vcombine.low %v2824_v12, %v2823_v57  ;;  %v1164_v33 = vrot.slane %v2741_v11, 1  ;;  %v3211_v56 = vld [vmem:[%s3419_s25 + $0x20] sm:$0xf] }
  0xf2   : > { %v665_v34 = vpop.permute.xlu1 %664  ;;  %v599_v39 = vrot.slane %v598_v19, 4  ;;  %v602_v40 = vrot.slane %v600_v30, 4  ;;  %607 = vst.msk [vmem:[#allocation2 + $0xc] sm:$0xc] %vm4255_vm12, %v598_v19  ;;  %vm4256_vm12 = vcmask 289793   ;;  %v1687_v36 = vshll.u32 %v2849_v22, 16 }
  0xf3   : > { %v653_v43 = vpop.permute.xlu0 %652  ;;  %v2839_v19 = vld [vmem:[%s3419_s25 + $0x60] sm:$0xe] }
  0xf4   : > { %1581 = vrot.lane.b32.xlu1 %v1580_v28, %s3295_s28  ;;  %v601_v31 = vsel %vm3821_vm10, %v599_v39, %v600_v30  ;;  %610 = vst.msk [vmem:[#allocation2 + $0x14] sm:$0x1] %vm4254_vm9, %v602_v40  ;;  %v703_v48 = vsel %vm334_vm4, %v701_v41, %v653_v43  ;;  %vm720_vm9 = vcmask 1044484   ;;  %v2852_v28 = vcombine.low %v3864_v13, %v3867_v14  ;;  %v3887_v40 = vld [vmem:[%s3419_s25 + $0x68] sm:$0xf] }
  0xf5   : > { %608 = vst.msk [vmem:[#allocation2 + $0x10] sm:$0xf] %vm359_vm13, %v601_v31  ;;  %1134 = vrot.lane.b32.xlu0 %v1133_v35, %s3298_s5  ;;  %v705_v47 = vsel %vm337_vm5, %v703_v48, %v665_v34  ;;  %v1619_v34 = vshrl.u32 %v2832_v4, 16  ;;  %v1623_v35 = vrot.slane %v1621_v21, 1  ;;  %v3890_v41 = vld [vmem:[%s3419_s25 + $0x6c] sm:$0xf]  ;;  %v2850_v46 = vcombine.low %v2839_v19, %v2838_v37 }
  0xf6   : > { %v678_v50 = vpop.permute.xlu1 %677  ;;  %v1712_v45 = vshll.u32 %v2852_v28, 16  ;;  %v2653_v48 = vld [vmem:[%s3419_s25 + $0x24] sm:$0x7]  ;;  %v1689_v52 = vrot.slane %v1687_v36, 1  ;;  %v2872_v53 = vcombine.low %v3887_v40, %v3890_v41  ;;  %v2841_v4 = vld [vmem:[%s3419_s25 + $0x6c] sm:$0x7] }
  0xf7   : > { %v671_v58 = vpop.permute.xlu0 %670  ;;  %v2664_v57 = vcombine.low %v3211_v56, %v2653_v48  ;;  %v2863_v21 = vld [vmem:[%s3419_s25 + $0x70] sm:$0xf]  ;;  %v2867_v48 = vld [vmem:[%s3419_s25 + $0x78] sm:$0xf]  ;;  %v2860_v30 = vld [vmem:[%s3419_s25 + $0x6c] sm:$0x7] }
  0xf8   : > { %1588 = vrot.lane.b32.xlu1 %v2828_v44, %s3293_s26  ;;  %v707_v61 = vsel %vm340_vm6, %v705_v47, %v671_v58  ;;  %v1630_v44 = vrot.slane %v2833_v27, 1  ;;  %v1696_v58 = vrot.slane %v2850_v46, 1  ;;  %v1714_v59 = vrot.slane %v1712_v45, 1  ;;  %v2845_v27 = vld [vmem:[%s3419_s25 + $0x74] sm:$0x7] }
  0xf9   : > { %1140 = vrot.lane.b32.xlu0 %v1139_v51, %s3296_s29  ;;  %v3178_v0 = vld [vmem:[#allocation2 + $0x8] sm:$0xff]   ;;  %v709_v55 = vsel %vm343_vm7, %v707_v61, %v678_v50  ;;  %v1624_v50 = vor.u32 %v1623_v35, %v1619_v34  ;;  %v1685_v51 = vshrl.u32 %v2849_v22, 16  ;;  %v1799_v3 = vshll.u32 %v2872_v53, 16  ;;  %v3929_v22 = vld [vmem:[%s3419_s25 + $0x74] sm:$0xf] }
  0xfa   : > { %v696_v63 = vpop.permute.xlu1 %695  ;;  %2993 = vmatmul.mubr.msk.bf16.gmra.mrb[4].mxu0 %vm2009_vm11, %v3178_v0  ;;  %v2843_v61 = vld [vmem:[%s3419_s25 + $0x68] sm:$0xe]  ;;  %v1797_v11 = vshrl.u32 %v2872_v53, 16  ;;  %v2854_v35 = vcombine.low %v2844_v62, %v2845_v27 }
  0xfb   : > { %v690_v7 = vpop.permute.xlu0 %689  ;;  %2996 = vmatprep.mubr.msk.bf16.mxu0 %vm3302_vm1, %v3301_v32  ;;  %v1690_v2 = vor.u32 %v1689_v52, %v1685_v51  ;;  %v2853_v37 = vcombine.low %v2843_v61, %v3867_v14  ;;  %v1801_v14 = vrot.slane %v1799_v3, 1  ;;  %v2870_v3 = vld [vmem:[%s3419_s25 + $0x78] sm:$0xe] }
  0xfc   : > { %1600 = vrot.lane.b32.xlu1 %v1599_v60, %s3298_s5  ;;  %v711_v10 = vsel %vm346_vm8, %v709_v55, %v690_v7  ;;  %v1710_v60 = vshrl.u32 %v2852_v28, 16 }
  0xfd   : > { %v713_v17 = vsel %vm4268_vm0, %v711_v10, %v696_v63  ;;  %1147 = vrot.lane.b32.xlu0 %v2739_v1, %s3294_s27  ;;  %vm3878_vm0 = vmor %vm719_vm15, %vm720_vm9  ;;  %v3907_v63 = vld [vmem:[%s3419_s25 + $0x74] sm:$0xf]  ;;  %v2851_v10 = vcombine.low %v3864_v13, %v2841_v4  ;;  %v1802_v28 = vor.u32 %v1801_v14, %v1797_v11  ;;  %vm4271_vm9 = vcmask 261120  }
  0xfe   : > { %v3871_v18 = vpop.permute.xlu1 %765  ;;  %v2650_v24 = vcombine.low %v713_v17, %v713_v17  ;;  %v2651_v25 = vcombine.high %v713_v17, %v713_v17  ;;  %v2855_v9 = vcombine.low %v2844_v62, %v3907_v63  ;;  %vm4272_vm15 = vcmask 288768   ;;  %v2866_v62 = vld [vmem:[%s3419_s25 + $0x70] sm:$0xe] }
  0xff   : > { %v760_v20 = vpop.permute.xlu0 %759 }
 0x100   : > { %1606 = vrot.lane.b32.xlu1 %v1605_v8, %s3296_s29  ;;  %v722_v29 = vrot.slane %v2650_v24, 7  ;;  %v724_v39 = vrot.slane %v2651_v25, 7  ;;  %v819_v55 = vsel %vm327_vm2, %v2664_v57, %v760_v20  ;;  %v1715_v8 = vor.u32 %v1714_v59, %v1710_v60 }
 0x101   : > { %1159 = vrot.lane.b32.xlu0 %v1158_v16, %s3299_s6  ;;  %v821_v17 = vsel %vm331_vm3, %v819_v55, %v3871_v18  ;;  %v2862_v16 = vld [vmem:[%s3419_s25 + $0x68] sm:$0xe]  ;;  %v1721_v20 = vrot.slane %v2853_v37, 1  ;;  %v1735_v36 = vshrl.u32 %v2855_v9, 16  ;;  %v2876_v55 = vcombine.low %v2866_v62, %v3929_v22 }
 0x102   : > { %v3883_v23 = vpop.permute.xlu1 %784  ;;  %v723_v38 = vrot.slane %v722_v29, 4  ;;  %729 = vst.msk [vmem:[#allocation2 + $0x14] sm:$0xe] %vm4256_vm12, %v722_v29  ;;  %v2873_v18 = vcombine.low %v2862_v16, %v3890_v41  ;;  %v2875_v29 = vcombine.low %v2863_v21, %v3929_v22  ;;  %vm4274_vm12 = vcmask 287744  }
 0x103   : > { %v773_v43 = vpop.permute.xlu0 %772 }
 0x104   : > { %1613 = vrot.lane.b32.xlu1 %v2831_v26, %s3294_s27  ;;  %v725_v31 = vsel %vm3878_vm0, %v723_v38, %v724_v39  ;;  %v823_v24 = vsel %vm334_vm4, %v821_v17, %v773_v43  ;;  %v1737_v26 = vshll.u32 %v2855_v9, 16  ;;  %v2847_v43 = vld [vmem:[%s3419_s25 + $0x70] sm:$0xe]  ;;  %v1808_v46 = vrot.slane %v2873_v18, 1  ;;  %v3212_v9 = vld [vmem:[%s3419_s25 + $0x28] sm:$0xf] }
 0x105   : > { %730 = vst.msk [vmem:[#allocation2 + $0x18] sm:$0xf] %vm359_vm13, %v725_v31  ;;  %1165 = vrot.lane.b32.xlu0 %v1164_v33, %s3300_s7  ;;  %v825_v19 = vsel %vm337_vm5, %v823_v24, %v3883_v23  ;;  %v1824_v23 = vshll.u32 %v2875_v29, 16  ;;  %v2864_v31 = vld [vmem:[%s3419_s25 + $0x74] sm:$0x7]  ;;  %v2856_v56 = vcombine.low %v2847_v43, %v3907_v63  ;;  %v1822_v60 = vshrl.u32 %v2875_v29, 16 }
 0x106   : > { %v791_v49 = vpop.permute.xlu1 %790  ;;  %v1739_v38 = vrot.slane %v1737_v26, 1  ;;  %v2868_v63 = vld [vmem:[%s3419_s25 + $0x7c] sm:$0x7]  ;;  %v1833_v24 = vrot.slane %v2876_v55, 1 }
 0x107   : > { %v3901_v47 = vpop.permute.xlu0 %871  ;;  %v827_v33 = vsel %vm340_vm6, %v825_v19, %v791_v49  ;;  %v2869_v49 = vld [vmem:[%s3419_s25 + $0x7c] sm:$0xf]  ;;  %v1826_v59 = vrot.slane %v1824_v23, 1  ;;  %v2877_v14 = vcombine.low %v2867_v48, %v2868_v63 }
 0x108   : > { %1631 = vrot.lane.b32.xlu1 %v1630_v44, %s3300_s7  ;;  %v1740_v53 = vor.u32 %v1739_v38, %v1735_v36  ;;  %v2878_v61 = vcombine.low %v2867_v48, %v2869_v49  ;;  %v2879_v17 = vcombine.low %v2870_v3, %v2869_v49 }
 0x109   : > { %1625 = vrot.lane.b32.xlu0 %v1624_v50, %s3299_s6  ;;  %v3185_v1 = vld [vmem:[#allocation2 + $0x10] sm:$0xff]   ;;  %v1827_v37 = vor.u32 %v1826_v59, %v1822_v60 }
 0x10a   : > { %v798_v0 = vpop.permute.xlu1 %797  ;;  %2997 = vmatmul.mubr.msk.bf16.gmra.mrb[8].mxu0 %vm2009_vm11, %v3185_v1  ;;  %v1746_v1 = vrot.slane %v2856_v56, 1 }
 0x10b   : > { %v3913_v7 = vpop.permute.xlu0 %877  ;;  %3000 = vmatprep.mubr.msk.bf16.mxu0 %vm3302_vm1, %v3301_v32  ;;  %v829_v39 = vsel %vm343_vm7, %v827_v33, %v798_v0 }
 0x10c   : > { %1697 = vrot.lane.b32.xlu1 %v1696_v58, %s3295_s28  ;;  %v2874_v58 = vcombine.low %v2863_v21, %v2864_v31 }
 0x10d   : > { %1691 = vrot.lane.b32.xlu0 %v1690_v2, %s3297_s30  ;;  %v2676_v2 = vld [vmem:[%s3419_s25 + $0x2c] sm:$0x7] }
 0x10e   : > { %v3921_v12 = vpop.permute.xlu1 %1337 }
 0x10f   : > { %v3932_v25 = vpop.permute.xlu0 %884 }
 0x110   : > { %1716 = vrot.lane.b32.xlu1 %v1715_v8, %s3298_s5  ;;  %v1849_v8 = vshll.u32 %v2878_v61, 16 }
 0x111   : > { %1704 = vrot.lane.b32.xlu0 %v2851_v10, %s3293_s26  ;;  %v2687_v10 = vcombine.low %v3212_v9, %v2676_v2  ;;  %v3214_v9 = vld [vmem:[%s3419_s25 + $0x40] sm:$0xf] }
 0x112   : > { %v3937_v13 = vpop.permute.xlu1 %896  ;;  %v1851_v26 = vrot.slane %v1849_v8, 1 }
 0x113   : > { %v810_v34 = vpop.permute.xlu0 %809  ;;  %v931_v22 = vsel %vm327_vm2, %v2687_v10, %v3901_v47 }
 0x114   : > { %1722 = vrot.lane.b32.xlu1 %v1721_v20, %s3296_s29  ;;  %v831_v41 = vsel %vm346_vm8, %v829_v39, %v810_v34  ;;  %v1847_v20 = vshrl.u32 %v2878_v61, 16  ;;  %v933_v18 = vsel %vm331_vm3, %v931_v22, %v3913_v7 }
 0x115   : > { %1803 = vrot.lane.b32.xlu0 %v1802_v28, %s3297_s30  ;;  %v1858_v28 = vrot.slane %v2879_v17, 1  ;;  %v935_v29 = vsel %vm334_vm4, %v933_v18, %v3932_v25 }
 0x116   : > { %v816_v44 = vpop.permute.xlu1 %815  ;;  %v1852_v47 = vor.u32 %v1851_v26, %v1847_v20  ;;  %v937_v33 = vsel %vm337_vm5, %v935_v29, %v3937_v13 }
 0x117   : > { %v833_v45 = vsel %vm4271_vm9, %v831_v41, %v816_v44  ;;  %v3953_v50 = vpop.permute.xlu0 %1343  ;;  %v2768_v44 = vld [vmem:[%s3419_s25 + $0x4c] sm:$0x7] }
 0x118   : > { %v2673_v51 = vcombine.low %v833_v45, %v833_v45  ;;  %v2674_v52 = vcombine.high %v833_v45, %v833_v45  ;;  %1729 = vrot.lane.b32.xlu1 %v2854_v35, %s3294_s27  ;;  %v3213_v45 = vld [vmem:[%s3419_s25 + $0x48] sm:$0xf] }
 0x119   : > { %1809 = vrot.lane.b32.xlu0 %v1808_v46, %s3295_s28  ;;  %v2779_v31 = vcombine.low %v3213_v45, %v2768_v44 }
 0x11a   : > { %841 = vst.msk [vmem:[#allocation2 + $0x1c] sm:$0xf] %vm359_vm13, %v2673_v51  ;;  %v3960_v57 = vpop.permute.xlu1 %1225 }
 0x11b   : > { %842 = vst.msk [vmem:[#allocation2 + $0x20] sm:$0x7] %vm4272_vm15, %v2674_v52  ;;  %v903_v0 = vpop.permute.xlu0 %902  ;;  %vm4273_vm15 = vcmask 289795   ;;  %v1397_v56 = vsel %vm327_vm2, %v2779_v31, %v3921_v12  ;;  %v2745_v12 = vld [vmem:[%s3419_s25 + $0x44] sm:$0x7] }
 0x11c   : > { %1741 = vrot.lane.b32.xlu1 %v1740_v53, %s3299_s6  ;;  %v939_v34 = vsel %vm340_vm6, %v937_v33, %v903_v0  ;;  %v1399_v60 = vsel %vm331_vm3, %v1397_v56, %v3953_v50  ;;  %v2756_v10 = vcombine.low %v3214_v9, %v2745_v12 }
 0x11d   : > { %1816 = vrot.lane.b32.xlu0 %v2874_v58, %s3293_s26 }
 0x11e   : > { %v910_v4 = vpop.permute.xlu1 %909  ;;  %v1285_v20 = vsel %vm327_vm2, %v2756_v10, %v3960_v57 }
 0x11f   : > { %v1351_v11 = vpop.permute.xlu0 %1350  ;;  %v941_v7 = vsel %vm343_vm7, %v939_v34, %v910_v4 }
 0x120   : > { %1747 = vrot.lane.b32.xlu1 %v1746_v1, %s3300_s7  ;;  %v1401_v59 = vsel %vm334_vm4, %v1399_v60, %v1351_v11 }
 0x121   : > { %v3198_v16 = vld [vmem:[#allocation2 + $0x18] sm:$0xff]   ;;  %1828 = vrot.lane.b32.xlu0 %v1827_v37, %s3298_s5 }
 0x122   : > { %v1363_v21 = vpop.permute.xlu1 %1362  ;;  %3001 = vmatmul.mubr.msk.bf16.gmra.mrb[12].mxu0 %vm2009_vm11, %v3198_v16 }
 0x123   : > { %v3975_v27 = vpop.permute.xlu0 %1231  ;;  %3004 = vmatprep.mubr.msk.bf16.mxu0 %vm3302_vm1, %v3301_v32  ;;  %v1403_v62 = vsel %vm337_vm5, %v1401_v59, %v1363_v21 }
 0x124   : > { %1841 = vrot.lane.b32.xlu1 %v2877_v14, %s3294_s27 }
 0x125   : > { %1834 = vrot.lane.b32.xlu0 %v1833_v24, %s3296_s29 }
 0x126   : > { %v3985_v19 = vpop.permute.xlu1 %1238 }
 0x127   : > { %v922_v35 = vpop.permute.xlu0 %921 }
 0x128   : > { %1859 = vrot.lane.b32.xlu1 %v1858_v28, %s3300_s7  ;;  %v943_v36 = vsel %vm346_vm8, %v941_v7, %v922_v35  ;;  %v1287_v28 = vsel %vm331_vm3, %v1285_v20, %v3975_v27 }
 0x129   : > { %1853 = vrot.lane.b32.xlu0 %v1852_v47, %s3299_s6  ;;  %v1289_v18 = vsel %vm334_vm4, %v1287_v28, %v3985_v19  ;;  %v2699_v19 = vld [vmem:[%s3419_s25 + $0x34] sm:$0x7] }
 0x12a   : > { %v928_v25 = vpop.permute.xlu1 %927 }
 0x12b   : > { %v945_v38 = vsel %vm4271_vm9, %v943_v36, %v928_v25  ;;  %v1369_v39 = vpop.permute.xlu0 %1368 }
 0x12c   : > { %v2696_v43 = vcombine.low %v945_v38, %v945_v38  ;;  %v2697_v41 = vcombine.high %v945_v38, %v945_v38  ;;  %v1405_v0 = vsel %vm340_vm6, %v1403_v62, %v1369_v39 }
 0x12e   : > { %v951_v13 = vrot.slane %v2696_v43, 5  ;;  %v953_v46 = vrot.slane %v2697_v41, 5  ;;  %v1376_v23 = vpop.permute.xlu1 %1375  ;;  %v3215_v43 = vld [vmem:[%s3419_s25 + $0x30] sm:$0xf] }
 0x12f   : > { %v1251_v51 = vpop.permute.xlu0 %1250  ;;  %v1407_v2 = vsel %vm343_vm7, %v1405_v0, %v1376_v23  ;;  %v2710_v41 = vcombine.low %v3215_v43, %v2699_v19  ;;  %v2814_v43 = vld [vmem:[%s3419_s25 + $0x5c] sm:$0x7] }
 0x130   : > { %v952_v48 = vrot.slane %v951_v13, 4  ;;  %v955_v49 = vrot.slane %v953_v46, 4  ;;  %959 = vst.msk [vmem:[#allocation2 + $0x20] sm:$0x8] %vm4273_vm15, %v951_v13  ;;  %v1291_v47 = vsel %vm337_vm5, %v1289_v18, %v1251_v51  ;;  %v3216_v51 = vld [vmem:[%s3419_s25 + $0x50] sm:$0xf] }
 0x132   : > { %v954_v52 = vsel %vm3730_vm14, %v952_v48, %v953_v46  ;;  %961 = vst.msk [vmem:[#allocation2 + $0x28] sm:$0x3] %vm4274_vm12, %v955_v49  ;;  %v1257_v53 = vpop.permute.xlu1 %1256  ;;  %vm4275_vm12 = vmmov %vm4271_vm9  ;;  %v2791_v46 = vld [vmem:[%s3419_s25 + $0x54] sm:$0x7] }
 0x133   : > { %960 = vst.msk [vmem:[#allocation2 + $0x24] sm:$0xf] %vm359_vm13, %v954_v52  ;;  %v991_v58 = vpop.permute.xlu0 %990  ;;  %vm4276_vm9 = vmmov %vm4273_vm15  ;;  %vm4277_vm15 = vcmask 287744   ;;  %v1293_v57 = vsel %vm340_vm6, %v1291_v47, %v1257_v53  ;;  %v2802_v52 = vcombine.low %v3216_v51, %v2791_v46 }
 0x134   : > { %v1050_v23 = vsel %vm327_vm2, %v2710_v41, %v991_v58 }
 0x136   : > { %v997_v61 = vpop.permute.xlu1 %996 }
 0x137   : > { %v1388_v1 = vpop.permute.xlu0 %1387  ;;  %v1052_v31 = vsel %vm331_vm3, %v1050_v23, %v997_v61  ;;  %v2825_v23 = vcombine.low %v3743_v15, %v2814_v43 }
 0x138   : > { %v1409_v63 = vsel %vm346_vm8, %v1407_v2, %v1388_v1 }
 0x13a   : > { %v1394_v3 = vpop.permute.xlu1 %1393  ;;  %v3202_v4 = vld [vmem:[#allocation2 + $0x20] sm:$0xff]  }
 0x13b   : > { %v1411_v37 = vsel %vm4275_vm12, %v1409_v63, %v1394_v3  ;;  %v1264_v55 = vpop.permute.xlu0 %1263  ;;  %3005 = vmatmul.mubr.msk.bf16.gmra.mrb[16].mxu0 %vm2009_vm11, %v3202_v4 }
 0x13c   : > { %v2788_v50 = vcombine.low %v1411_v37, %v1411_v37  ;;  %v2789_v8 = vcombine.high %v1411_v37, %v1411_v37  ;;  %3008 = vmatprep.mubr.msk.bf16.mxu0 %vm3302_vm1, %v3301_v32  ;;  %v1295_v34 = vsel %vm343_vm7, %v1293_v57, %v1264_v55 }
 0x13e   : > { %v1417_v11 = vrot.slane %v2788_v50, 5  ;;  %v1419_v14 = vrot.slane %v2789_v8, 5  ;;  %v1276_v17 = vpop.permute.xlu1 %1275 }
 0x13f   : > { %v1004_v24 = vpop.permute.xlu0 %1003  ;;  %v1297_v35 = vsel %vm346_vm8, %v1295_v34, %v1276_v17 }
 0x140   : > { %v1418_v16 = vrot.slane %v1417_v11, 4  ;;  %v1421_v21 = vrot.slane %v1419_v14, 4  ;;  %1425 = vst.msk [vmem:[#allocation2 + $0x3c] sm:$0x8] %vm4276_vm9, %v1417_v11  ;;  %vm4278_vm9 = vcmask 288768   ;;  %v1054_v49 = vsel %vm334_vm4, %v1052_v31, %v1004_v24 }
 0x142   : > { %v1420_v26 = vsel %vm3730_vm14, %v1418_v16, %v1419_v14  ;;  %1427 = vst.msk [vmem:[#allocation2 + $0x44] sm:$0x3] %vm4277_vm15, %v1421_v21  ;;  %v1016_v22 = vpop.permute.xlu1 %1015  ;;  %vm4279_vm15 = vmmov %vm4275_vm12 }
 0x143   : > { %1426 = vst.msk [vmem:[#allocation2 + $0x40] sm:$0xf] %vm359_vm13, %v1420_v26  ;;  %v1457_v29 = vpop.permute.xlu0 %1456  ;;  %v1056_v56 = vsel %vm337_vm5, %v1054_v49, %v1016_v22 }
 0x144   : > { %v1516_v61 = vsel %vm327_vm2, %v2802_v52, %v1457_v29 }
 0x146   : > { %v1463_v33 = vpop.permute.xlu1 %1462 }
 0x147   : > { %v1282_v7 = vpop.permute.xlu0 %1281  ;;  %v1518_v1 = vsel %vm331_vm3, %v1516_v61, %v1463_v33 }
 0x148   : > { %v1299_v27 = vsel %vm4275_vm12, %v1297_v35, %v1282_v7  ;;  %vm4280_vm12 = vcmask 289794  }
 0x149   : > { %v2765_v36 = vcombine.low %v1299_v27, %v1299_v27  ;;  %v2766_v25 = vcombine.high %v1299_v27, %v1299_v27 }
 0x14a   : > { %v1470_v38 = vpop.permute.xlu1 %1469 }
 0x14b   : > { %1307 = vst.msk [vmem:[#allocation2 + $0x38] sm:$0xf] %vm359_vm13, %v2765_v36  ;;  %v1022_v39 = vpop.permute.xlu0 %1021  ;;  %v1520_v63 = vsel %vm334_vm4, %v1518_v1, %v1470_v38 }
 0x14c   : > { %1308 = vst.msk [vmem:[#allocation2 + $0x3c] sm:$0x7] %vm4278_vm9, %v2766_v25  ;;  %v1058_v60 = vsel %vm340_vm6, %v1056_v56, %v1022_v39  ;;  %vm4281_vm9 = vmmov %vm4279_vm15  ;;  %v2722_v25 = vld [vmem:[%s3419_s25 + $0x3c] sm:$0x7] }
 0x14d   : > { %v2733_v42 = vcombine.low %v3710_v54, %v2722_v25 }
 0x14e   : > { %v1482_v44 = vpop.permute.xlu1 %1481 }
 0x14f   : > { %v1029_v13 = vpop.permute.xlu0 %1028  ;;  %v1522_v37 = vsel %vm337_vm5, %v1520_v63, %v1482_v44 }
 0x150   : > { %v1060_v58 = vsel %vm343_vm7, %v1058_v60, %v1029_v13 }
 0x152   : > { %v1488_v45 = vpop.permute.xlu1 %1487 }
 0x153   : > { %v3203_v48 = vld [vmem:[#allocation2 + $0x38] sm:$0xff]   ;;  %v1041_v53 = vpop.permute.xlu0 %1040  ;;  %v1524_v55 = vsel %vm340_vm6, %v1522_v37, %v1488_v45 }
 0x154   : > { %3017 = vmatmul.mubr.msk.bf16.vlgmr.msra.gmra.mrb[0].mxu1 %vm2009_vm11, %v3203_v48  ;;  %v1062_v62 = vsel %vm346_vm8, %v1060_v58, %v1041_v53 }
 0x155   : > { %3020 = vmatprep.mubr.msk.bf16.mxu1 %vm3302_vm1, %v3301_v32 }
 0x156   : > { %v1495_v59 = vpop.permute.xlu1 %1494 }
 0x157   : > { %v1047_v0 = vpop.permute.xlu0 %1046  ;;  %v1526_v10 = vsel %vm343_vm7, %v1524_v55, %v1495_v59 }
 0x158   : > { %v1064_v2 = vsel %vm4279_vm15, %v1062_v62, %v1047_v0  ;;  %vm4282_vm15 = vcmask 286720  }
 0x159   : > { %v2719_v3 = vcombine.low %v1064_v2, %v1064_v2  ;;  %v2720_v4 = vcombine.high %v1064_v2, %v1064_v2 }
 0x15a   : > { %v1507_v12 = vpop.permute.xlu1 %1506 }
 0x15b   : > { %v1070_v50 = vrot.slane %v2719_v3, 6  ;;  %v1072_v8 = vrot.slane %v2720_v4, 6  ;;  %v1110_v9 = vpop.permute.xlu0 %1109  ;;  %v1528_v17 = vsel %vm346_vm8, %v1526_v10, %v1507_v12 }
 0x15c   : > { %v1169_v44 = vsel %vm327_vm2, %v2733_v42, %v1110_v9 }
 0x15d   : > { %v1071_v11 = vrot.slane %v1070_v50, 4  ;;  %v1074_v14 = vrot.slane %v1072_v8, 4  ;;  %1078 = vst.msk [vmem:[#allocation2 + $0x28] sm:$0xc] %vm4280_vm12, %v1070_v50 }
 0x15e   : > { %v1513_v16 = vpop.permute.xlu1 %1512 }
 0x15f   : > { %v1530_v21 = vsel %vm4281_vm9, %v1528_v17, %v1513_v16  ;;  %v1073_v24 = vsel %vm3821_vm10, %v1071_v11, %v1072_v8  ;;  %1080 = vst.msk [vmem:[#allocation2 + $0x30] sm:$0x1] %vm4282_vm15, %v1074_v14  ;;  %v1116_v20 = vpop.permute.xlu0 %1115  ;;  %vm4283_vm9 = vmmov %vm4282_vm15  ;;  %vm4285_vm15 = vcmask 289793   ;;  %v2837_v17 = vld [vmem:[%s3419_s25 + $0x64] sm:$0x7] }
 0x160   : > { %v2811_v26 = vcombine.low %v1530_v21, %v1530_v21  ;;  %v2812_v22 = vcombine.high %v1530_v21, %v1530_v21  ;;  %1079 = vst.msk [vmem:[#allocation2 + $0x2c] sm:$0xf] %vm359_vm13, %v1073_v24  ;;  %v1171_v46 = vsel %vm331_vm3, %v1169_v44, %v1116_v20  ;;  %v2848_v20 = vcombine.low %v3851_v5, %v2837_v17 }
 0x162   : > { %v1536_v28 = vrot.slane %v2811_v26, 6  ;;  %v1538_v18 = vrot.slane %v2812_v22, 6  ;;  %v1576_v29 = vpop.permute.xlu1 %1575 }
 0x163   : > { %v1123_v33 = vpop.permute.xlu0 %1122  ;;  %v1635_v51 = vsel %vm327_vm2, %v2825_v23, %v1576_v29 }
 0x164   : > { %v1537_v47 = vrot.slane %v1536_v28, 4  ;;  %v1540_v57 = vrot.slane %v1538_v18, 4  ;;  %1544 = vst.msk [vmem:[#allocation2 + $0x44] sm:$0xc] %vm4280_vm12, %v1536_v28  ;;  %v1173_v45 = vsel %vm334_vm4, %v1171_v46, %v1123_v33 }
 0x166   : > { %v1539_v34 = vsel %vm3821_vm10, %v1537_v47, %v1538_v18  ;;  %1546 = vst.msk [vmem:[#allocation2 + $0x4c] sm:$0x1] %vm4283_vm9, %v1540_v57  ;;  %v1582_v35 = vpop.permute.xlu1 %1581  ;;  %vm4284_vm10 = vcmask 261120   ;;  %vm4287_vm9 = vmmov %vm4285_vm15 }
 0x167   : > { %1545 = vst.msk [vmem:[#allocation2 + $0x48] sm:$0xf] %vm359_vm13, %v1539_v34  ;;  %v1135_v7 = vpop.permute.xlu0 %1134  ;;  %v3204_v27 = vld [vmem:[#allocation2 + $0x28] sm:$0xff]   ;;  %v1637_v53 = vsel %vm331_vm3, %v1635_v51, %v1582_v35  ;;  %vm4286_vm12 = vmmov %vm4284_vm10 }
 0x168   : > { %3009 = vmatmul.mubr.msk.bf16.gmra.mrb[20].mxu0 %vm2009_vm11, %v3204_v27  ;;  %v1175_v48 = vsel %vm337_vm5, %v1173_v45, %v1135_v7 }
 0x169   : > { %3012 = vmatprep.mubr.msk.bf16.mxu0 %vm3302_vm1, %v3301_v32 }
 0x16a   : > { %v1589_v36 = vpop.permute.xlu1 %1588 }
 0x16b   : > { %v3205_v38 = vld [vmem:[#allocation2 + $0x40] sm:$0xff]   ;;  %v1141_v19 = vpop.permute.xlu0 %1140  ;;  %v1639_v59 = vsel %vm334_vm4, %v1637_v53, %v1589_v36 }
 0x16c   : > { %3021 = vmatmul.mubr.msk.bf16.gmra.mrb[4].mxu1 %vm2009_vm11, %v3205_v38  ;;  %v1177_v54 = vsel %vm340_vm6, %v1175_v48, %v1141_v19  ;;  %v2871_v38 = vcombine.low %v3887_v40, %v2860_v30 }
 0x16d   : > { %3024 = vmatprep.mubr.msk.bf16.mxu1 %vm3302_vm1, %v3301_v32 }
 0x16e   : > { %v1601_v39 = vpop.permute.xlu1 %1600 }
 0x16f   : > { %v1148_v41 = vpop.permute.xlu0 %1147  ;;  %v1641_v58 = vsel %vm337_vm5, %v1639_v59, %v1601_v39 }
 0x170   : > { %v1179_v52 = vsel %vm343_vm7, %v1177_v54, %v1148_v41 }
 0x172   : > { %v1607_v13 = vpop.permute.xlu1 %1606 }
 0x173   : > { %v1160_v31 = vpop.permute.xlu0 %1159  ;;  %v1643_v1 = vsel %vm340_vm6, %v1641_v58, %v1607_v13 }
 0x174   : > { %v1181_v56 = vsel %vm346_vm8, %v1179_v52, %v1160_v31 }
 0x176   : > { %v1614_v49 = vpop.permute.xlu1 %1613 }
 0x177   : > { %v1166_v60 = vpop.permute.xlu0 %1165  ;;  %v1645_v63 = vsel %vm343_vm7, %v1643_v1, %v1614_v49 }
 0x178   : > { %v1183_v15 = vsel %vm4284_vm10, %v1181_v56, %v1166_v60 }
 0x179   : > { %v2742_v61 = vcombine.low %v1183_v15, %v1183_v15  ;;  %v2743_v62 = vcombine.high %v1183_v15, %v1183_v15 }
 0x17a   : > { %v1632_v0 = vpop.permute.xlu1 %1631 }
 0x17b   : > { %v1189_v2 = vrot.slane %v2742_v61, 7  ;;  %v1626_v3 = vpop.permute.xlu0 %1625  ;;  %v1191_v37 = vrot.slane %v2743_v62, 7 }
 0x17c   : > { %v1647_v4 = vsel %vm346_vm8, %v1645_v63, %v1626_v3  ;;  %v4140_v3 = vld [vmem:[#allocation5] ss:$0 sm:$0xff] }
 0x17d   : > { %v1190_v12 = vrot.slane %v1189_v2, 4  ;;  %1195 = vst.msk [vmem:[#allocation2 + $0x30] sm:$0xe] %vm4285_vm15, %v1189_v2  ;;  %v1649_v55 = vsel %vm4286_vm12, %v1647_v4, %v1632_v0 }
 0x17e   : > { %v1698_v50 = vpop.permute.xlu1 %1697  ;;  %v2834_v8 = vcombine.low %v1649_v55, %v1649_v55  ;;  %v2835_v9 = vcombine.high %v1649_v55, %v1649_v55 }
 0x17f   : > { %v1192_v10 = vsel %vm3878_vm0, %v1190_v12, %v1191_v37  ;;  %v1692_v11 = vpop.permute.xlu0 %1691 }
 0x180   : > { %1196 = vst.msk [vmem:[#allocation2 + $0x34] sm:$0xf] %vm359_vm13, %v1192_v10  ;;  %v1655_v14 = vrot.slane %v2834_v8, 7  ;;  %v1657_v24 = vrot.slane %v2835_v9, 7  ;;  %v1751_v18 = vsel %vm327_vm2, %v2848_v20, %v1692_v11 }
 0x181   : > { %v1753_v34 = vsel %vm331_vm3, %v1751_v18, %v1698_v50 }
 0x182   : > { %v1717_v16 = vpop.permute.xlu1 %1716  ;;  %v1656_v21 = vrot.slane %v1655_v14, 4  ;;  %1661 = vst.msk [vmem:[#allocation2 + $0x4c] sm:$0xe] %vm4287_vm9, %v1655_v14 }
 0x183   : > { %v1705_v26 = vpop.permute.xlu0 %1704 }
 0x184   : > { %v1658_v22 = vsel %vm3878_vm0, %v1656_v21, %v1657_v24  ;;  %v1755_v5 = vsel %vm334_vm4, %v1753_v34, %v1705_v26  ;;  %vm4288_vm0 = vmmov %vm4284_vm10  ;;  %vm4289_vm10 = vcmask 288768  }
 0x185   : > { %1662 = vst.msk [vmem:[#allocation2 + $0x50] sm:$0xf] %vm359_vm13, %v1658_v22  ;;  %v1757_v27 = vsel %vm337_vm5, %v1755_v5, %v1717_v16 }
 0x186   : > { %v1723_v28 = vpop.permute.xlu1 %1722 }
 0x187   : > { %v1804_v29 = vpop.permute.xlu0 %1803  ;;  %v3206_v47 = vld [vmem:[#allocation2 + $0x30] sm:$0xff]   ;;  %v1759_v36 = vsel %vm340_vm6, %v1757_v27, %v1723_v28 }
 0x188   : > { %3013 = vmatmul.mubr.msk.bf16.gmra.mrb[24].mxu0 %vm2009_vm11, %v3206_v47  ;;  %v1863_v46 = vsel %vm327_vm2, %v2871_v38, %v1804_v29  ;;  %vm4290_vm2 = vmmov %vm4288_vm0 }
 0x189   : > { %v3207_v33 = vld [vmem:[#allocation2 + $0x48] sm:$0xff]  }
 0x18a   : > { %v1730_v57 = vpop.permute.xlu1 %1729  ;;  %3025 = vmatmul.mubr.msk.bf16.gmra.mrb[8].mxu1 %vm2009_vm11, %v3207_v33 }
 0x18b   : > { %v1810_v35 = vpop.permute.xlu0 %1809  ;;  %3028 = vmatprep.mubr.msk.bf16.mxu1 %vm3302_vm1, %v3301_v32  ;;  %v1761_v19 = vsel %vm343_vm7, %v1759_v36, %v1730_v57 }
 0x18c   : > { %v1865_v23 = vsel %vm331_vm3, %v1863_v46, %v1810_v35  ;;  %vm4291_vm3 = vcmask 289795  }
 0x18e   : > { %v1742_v7 = vpop.permute.xlu1 %1741 }
 0x18f   : > { %v1817_v25 = vpop.permute.xlu0 %1816  ;;  %v1763_v42 = vsel %vm346_vm8, %v1761_v19, %v1742_v7 }
 0x190   : > { %v1867_v40 = vsel %vm334_vm4, %v1865_v23, %v1817_v25  ;;  %vm4292_vm4 = vcmask 287744  }
 0x192   : > { %v1748_v39 = vpop.permute.xlu1 %1747 }
 0x193   : > { %v1765_v43 = vsel %vm4288_vm0, %v1763_v42, %v1748_v39  ;;  %v1829_v41 = vpop.permute.xlu0 %1828 }
 0x194   : > { %v2857_v44 = vcombine.low %v1765_v43, %v1765_v43  ;;  %v2858_v13 = vcombine.high %v1765_v43, %v1765_v43  ;;  %v1869_v31 = vsel %vm337_vm5, %v1867_v40, %v1829_v41  ;;  %vm2365_vm5 = vcmask 1043456  }
 0x196   : > { %1773 = vst.msk [vmem:[#allocation2 + $0x54] sm:$0xf] %vm359_vm13, %v2857_v44  ;;  %v1842_v45 = vpop.permute.xlu1 %1841 }
 0x197   : > { %1774 = vst.msk [vmem:[#allocation2 + $0x58] sm:$0x7] %vm4289_vm10, %v2858_v13  ;;  %v1835_v48 = vpop.permute.xlu0 %1834 }
 0x198   : > { %v1871_v54 = vsel %vm340_vm6, %v1869_v31, %v1835_v48  ;;  %vm2340_vm6 = vcmask 58368  }
 0x199   : > { %v1873_v51 = vsel %vm343_vm7, %v1871_v54, %v1842_v45 }
 0x19a   : > { %v1860_v49 = vpop.permute.xlu1 %1859 }
 0x19b   : > { %v1854_v52 = vpop.permute.xlu0 %1853 }
 0x19c   : > { %v1875_v53 = vsel %vm346_vm8, %v1873_v51, %v1854_v52 }
 0x19d   : > { %v3208_v56 = vld [vmem:[#allocation2 + $0x50] sm:$0xff]   ;;  %v1877_v60 = vsel %vm4290_vm2, %v1875_v53, %v1860_v49 }
 0x19e   : > { %v2880_v59 = vcombine.low %v1877_v60, %v1877_v60  ;;  %v2881_v15 = vcombine.high %v1877_v60, %v1877_v60  ;;  %3029 = vmatmul.mubr.msk.bf16.gmra.mrb[12].mxu1 %vm2009_vm11, %v3208_v56 }
 0x19f   : > { %3032 = vmatprep.mubr.msk.bf16.mxu1 %vm3302_vm1, %v3301_v32 }
 0x1a0   : > { %v1883_v58 = vrot.slane %v2880_v59, 5  ;;  %v1885_v61 = vrot.slane %v2881_v15, 5 }
 0x1a2   : > { %v1884_v62 = vrot.slane %v1883_v58, 4  ;;  %v1887_v0 = vrot.slane %v1885_v61, 4  ;;  %1891 = vst.msk [vmem:[#allocation2 + $0x58] sm:$0x8] %vm4291_vm3, %v1883_v58 }
 0x1a4   : > { %v1886_v1 = vsel %vm3730_vm14, %v1884_v62, %v1885_v61  ;;  %1893 = vst.msk [vmem:[#allocation2 + $0x60] sm:$0x3] %vm4292_vm4, %v1887_v0 }
 0x1a5   : > { %1892 = vst.msk [vmem:[#allocation2 + $0x5c] sm:$0xf] %vm359_vm13, %v1886_v1 }
 0x1ab   : > { %v3210_v63 = vld [vmem:[#allocation2 + $0x60] ss:$0 sps:$4 sm:$0x33]  }
 0x1ac   : > { %v3209_v2 = vld [vmem:[#allocation2 + $0x58] sm:$0xff]  }
 0x1ad   : > { %3033 = vmatmul.mubr.msk.bf16.gmra.mrb[16].mxu1 %vm2009_vm11, %v3209_v2 }
 0x1ae   : > { %3036 = vmatprep.mubr.msk.bf16.mxu1 %vm3302_vm1, %v3301_v32  ;;  %vm2315_vm1 = vcmask 60416  }
 0x1b5   : > { %3037 = vmatmul.mubr.msk.bf16.gmra.mrb[20].mxu1 %vm2009_vm11, %v3210_v63 }
 0x1bf   : > { %v2087_v4 = vpop.f32.mrb[0].mxu0 }
 0x1c0   : > { %v2088_v6 = vadd.f32 %v4140_v3, %v2087_v4  ;;  %v2990_v12 = vpop.f32.mrb[1].mxu0 }
 0x1c1   : > { %v2090_v37 = vpop.f32.mrb[2].mxu0 }
 0x1c2   : > { %v2189_v55 = vmax.f32 %v2088_v6, 0.0  ;;  %v2091_v50 = vadd.f32 %v4140_v3, %v2090_v37  ;;  %v2991_v8 = vpop.f32.mrb[3].mxu0 }
 0x1c4   : > { %v2941_v32 = vpack.c.bf16 %v2189_v55, %v2189_v55  ;;  %v2190_v9 = vmax.f32 %v2091_v50, 0.0  ;;  %v2374_v10 = vmul.f32 %v2189_v55, %v2189_v55 }
 0x1c6   : > { %2316 = vst.msk [vmem:[%s4148_s11] sm:$0xf] %vm2315_vm1, %v2941_v32  ;;  %v2942_v11 = vpack.c.bf16 %v2190_v9, %v2190_v9  ;;  %v2342_v14 = vadd.f32 %v2190_v9, %v2189_v55  ;;  %v2375_v17 = vmul.f32 %v2190_v9, %v2190_v9 }
 0x1c8   : > { %2317 = vst.msk [vmem:[%s4148_s11 + $0x4] sm:$0xf] %vm2315_vm1, %v2942_v11  ;;  %v2399_v16 = vadd.f32 %v2375_v17, %v2374_v10 }
 0x1cd   : > { %v2095_v21 = vpop.f32.mrb[4].mxu0 }
 0x1ce   : > { %v2096_v24 = vadd.f32 %v4140_v3, %v2095_v21  ;;  %v2994_v20 = vpop.f32.mrb[5].mxu0 }
 0x1cf   : > { %v2098_v26 = vpop.f32.mrb[6].mxu0 }
 0x1d0   : > { %v2191_v22 = vmax.f32 %v2096_v24, 0.0  ;;  %v2099_v28 = vadd.f32 %v4140_v3, %v2098_v26  ;;  %v2995_v18 = vpop.f32.mrb[7].mxu0 }
 0x1d2   : > { %v2943_v29 = vpack.c.bf16 %v2191_v22, %v2191_v22  ;;  %v2343_v47 = vadd.f32 %v2342_v14, %v2191_v22  ;;  %v2376_v57 = vmul.f32 %v2191_v22, %v2191_v22  ;;  %v2192_v33 = vmax.f32 %v2099_v28, 0.0 }
 0x1d4   : > { %2318 = vst.msk [vmem:[%s4148_s11 + $0x8] sm:$0xf] %vm2315_vm1, %v2943_v29  ;;  %v2400_v34 = vadd.f32 %v2399_v16, %v2376_v57  ;;  %v2944_v5 = vpack.c.bf16 %v2192_v33, %v2192_v33  ;;  %v2344_v35 = vadd.f32 %v2343_v47, %v2192_v33  ;;  %v2377_v30 = vmul.f32 %v2192_v33, %v2192_v33 }
 0x1d6   : > { %2319 = vst.msk [vmem:[%s4148_s11 + $0xc] sm:$0xf] %vm2315_vm1, %v2944_v5  ;;  %v2401_v7 = vadd.f32 %v2400_v34, %v2377_v30 }
 0x1dd   : > { %v2103_v27 = vpop.f32.mrb[8].mxu0 }
 0x1de   : > { %v2104_v36 = vadd.f32 %v4140_v3, %v2103_v27  ;;  %v2998_v25 = vpop.f32.mrb[9].mxu0 }
 0x1df   : > { %v2106_v38 = vpop.f32.mrb[10].mxu0 }
 0x1e0   : > { %v2193_v19 = vmax.f32 %v2104_v36, 0.0  ;;  %v2107_v42 = vadd.f32 %v4140_v3, %v2106_v38  ;;  %v2999_v39 = vpop.f32.mrb[11].mxu0 }
 0x1e2   : > { %v2945_v43 = vpack.c.bf16 %v2193_v19, %v2193_v19  ;;  %v2345_v41 = vadd.f32 %v2344_v35, %v2193_v19  ;;  %v2378_v44 = vmul.f32 %v2193_v19, %v2193_v19  ;;  %v2194_v13 = vmax.f32 %v2107_v42, 0.0 }
 0x1e4   : > { %2320 = vst.msk [vmem:[%s4148_s11 + $0x10] sm:$0xf] %vm2315_vm1, %v2945_v43  ;;  %v2402_v46 = vadd.f32 %v2401_v7, %v2378_v44  ;;  %v2946_v23 = vpack.c.bf16 %v2194_v13, %v2194_v13  ;;  %v2346_v45 = vadd.f32 %v2345_v41, %v2194_v13  ;;  %v2379_v40 = vmul.f32 %v2194_v13, %v2194_v13 }
 0x1e6   : > { %2321 = vst.msk [vmem:[%s4148_s11 + $0x14] sm:$0xf] %vm2315_vm1, %v2946_v23  ;;  %v2403_v31 = vadd.f32 %v2402_v46, %v2379_v40 }
 0x1f5   : > { %v2111_v48 = vpop.f32.mrb[12].mxu0 }
 0x1f6   : > { %v2112_v54 = vadd.f32 %v4140_v3, %v2111_v48  ;;  %v3002_v49 = vpop.f32.mrb[13].mxu0 }
 0x1f7   : > { %v2114_v51 = vpop.f32.mrb[14].mxu0 }
 0x1f8   : > { %v2195_v52 = vmax.f32 %v2112_v54, 0.0  ;;  %v2115_v53 = vadd.f32 %v4140_v3, %v2114_v51  ;;  %v3003_v56 = vpop.f32.mrb[15].mxu0 }
 0x1fa   : > { %v2947_v60 = vpack.c.bf16 %v2195_v52, %v2195_v52  ;;  %v2347_v59 = vadd.f32 %v2346_v45, %v2195_v52  ;;  %v2380_v15 = vmul.f32 %v2195_v52, %v2195_v52  ;;  %v2196_v58 = vmax.f32 %v2115_v53, 0.0 }
 0x1fc   : > { %2322 = vst.msk [vmem:[%s4148_s11 + $0x18] sm:$0xf] %vm2315_vm1, %v2947_v60  ;;  %v2404_v61 = vadd.f32 %v2403_v31, %v2380_v15  ;;  %v2948_v62 = vpack.c.bf16 %v2196_v58, %v2196_v58  ;;  %v2348_v0 = vadd.f32 %v2347_v59, %v2196_v58  ;;  %v2381_v1 = vmul.f32 %v2196_v58, %v2196_v58 }
 0x1fe   : > { %2323 = vst.msk [vmem:[%s4148_s11 + $0x1c] sm:$0xf] %vm2315_vm1, %v2948_v62  ;;  %v2405_v2 = vadd.f32 %v2404_v61, %v2381_v1 }
 0x20e   : > { %v2119_v63 = vpop.f32.mrb[16].mxu0 }
 0x20f   : > { %v2120_v4 = vadd.f32 %v4140_v3, %v2119_v63  ;;  %v3006_v6 = vpop.f32.mrb[17].mxu0 }
 0x210   : > { %v2122_v12 = vpop.f32.mrb[18].mxu0 }
 0x211   : > { %v2197_v37 = vmax.f32 %v2120_v4, 0.0  ;;  %v2123_v55 = vadd.f32 %v4140_v3, %v2122_v12  ;;  %v3007_v50 = vpop.f32.mrb[19].mxu0 }
 0x213   : > { %v2949_v8 = vpack.c.bf16 %v2197_v37, %v2197_v37  ;;  %v2349_v32 = vadd.f32 %v2348_v0, %v2197_v37  ;;  %v2382_v9 = vmul.f32 %v2197_v37, %v2197_v37  ;;  %v2198_v10 = vmax.f32 %v2123_v55, 0.0 }
 0x215   : > { %2324 = vst.msk [vmem:[%s4148_s11 + $0x20] sm:$0xf] %vm2315_vm1, %v2949_v8  ;;  %v2406_v11 = vadd.f32 %v2405_v2, %v2382_v9  ;;  %v2950_v14 = vpack.c.bf16 %v2198_v10, %v2198_v10  ;;  %v2350_v17 = vadd.f32 %v2349_v32, %v2198_v10  ;;  %v2383_v16 = vmul.f32 %v2198_v10, %v2198_v10 }
 0x217   : > { %2325 = vst.msk [vmem:[%s4148_s11 + $0x24] sm:$0xf] %vm2315_vm1, %v2950_v14  ;;  %v2407_v21 = vadd.f32 %v2406_v11, %v2383_v16 }
 0x227   : > { %v2143_v24 = vpop.f32.mrb[0].mxu1 }
 0x228   : > { %v2144_v20 = vadd.f32 %v4140_v3, %v2143_v24  ;;  %v3018_v26 = vpop.f32.mrb[1].mxu1 }
 0x229   : > { %v2146_v22 = vpop.f32.mrb[2].mxu1 }
 0x22a   : > { %v4179_v28 = vmax.f32 %v2144_v20, 0.0  ;;  %v2147_v18 = vadd.f32 %v4140_v3, %v2146_v22  ;;  %v3019_v29 = vpop.f32.mrb[3].mxu1 }
 0x22c   : > { %v2955_v47 = vpack.c.bf16 %v4179_v28, %v4179_v28  ;;  %v4184_v57 = vmax.f32 %v2147_v18, 0.0 }
 0x22e   : > { %2330 = vst.msk [vmem:[%s4148_s11 + $0x38] sm:$0xf] %vm2315_vm1, %v2955_v47  ;;  %v2956_v33 = vpack.c.bf16 %v4184_v57, %v4184_v57  ;;  %v2389_v20 = vmul.f32 %v4184_v57, %v4184_v57 }
 0x230   : > { %2331 = vst.msk [vmem:[%s4148_s11 + $0x3c] sm:$0xf] %vm2315_vm1, %v2956_v33 }
 0x23b   : > { %v2127_v34 = vpop.f32.mrb[20].mxu0 }
 0x23c   : > { %v2128_v5 = vadd.f32 %v4140_v3, %v2127_v34  ;;  %v3010_v35 = vpop.f32.mrb[21].mxu0 }
 0x23d   : > { %v2130_v30 = vpop.f32.mrb[22].mxu0 }
 0x23e   : > { %v2199_v7 = vmax.f32 %v2128_v5, 0.0  ;;  %v2131_v27 = vadd.f32 %v4140_v3, %v2130_v30  ;;  %v3011_v36 = vpop.f32.mrb[23].mxu0 }
 0x23f   : > { %v2151_v25 = vpop.f32.mrb[4].mxu1 }
 0x240   : > { %v2152_v38 = vadd.f32 %v4140_v3, %v2151_v25  ;;  %v3022_v19 = vpop.f32.mrb[5].mxu1  ;;  %v2951_v42 = vpack.c.bf16 %v2199_v7, %v2199_v7  ;;  %v2351_v39 = vadd.f32 %v2350_v17, %v2199_v7  ;;  %v2384_v43 = vmul.f32 %v2199_v7, %v2199_v7 }
 0x241   : > { %v2200_v41 = vmax.f32 %v2131_v27, 0.0  ;;  %v2154_v44 = vpop.f32.mrb[6].mxu1  ;;  %v2388_v17 = vmul.f32 %v4179_v28, %v4179_v28 }
 0x242   : > { %v2205_v13 = vmax.f32 %v2152_v38, 0.0  ;;  %v2155_v46 = vadd.f32 %v4140_v3, %v2154_v44  ;;  %v3023_v23 = vpop.f32.mrb[7].mxu1  ;;  %2326 = vst.msk [vmem:[%s4148_s11 + $0x28] sm:$0xf] %vm2315_vm1, %v2951_v42  ;;  %v2408_v45 = vadd.f32 %v2407_v21, %v2384_v43 }
 0x243   : > { %v2952_v40 = vpack.c.bf16 %v2200_v41, %v2200_v41  ;;  %v2352_v31 = vadd.f32 %v2351_v39, %v2200_v41  ;;  %v2385_v48 = vmul.f32 %v2200_v41, %v2200_v41 }
 0x244   : > { %v2957_v54 = vpack.c.bf16 %v2205_v13, %v2205_v13  ;;  %v2206_v49 = vmax.f32 %v2155_v46, 0.0  ;;  %v2390_v18 = vmul.f32 %v2205_v13, %v2205_v13 }
 0x245   : > { %2327 = vst.msk [vmem:[%s4148_s11 + $0x2c] sm:$0xf] %vm2315_vm1, %v2952_v40  ;;  %v2409_v51 = vadd.f32 %v2408_v45, %v2385_v48 }
 0x246   : > { %2332 = vst.msk [vmem:[%s4148_s11 + $0x40] sm:$0xf] %vm2315_vm1, %v2957_v54  ;;  %v2958_v52 = vpack.c.bf16 %v2206_v49, %v2206_v49  ;;  %v2391_v33 = vmul.f32 %v2206_v49, %v2206_v49 }
 0x248   : > { %2333 = vst.msk [vmem:[%s4148_s11 + $0x44] sm:$0xf] %vm2315_vm1, %v2958_v52 }
 0x25b   : > { %v2135_v53 = vpop.f32.mrb[24].mxu0 }
 0x25c   : > { %v2136_v56 = vadd.f32 %v4140_v3, %v2135_v53  ;;  %v3014_v60 = vpop.f32.mrb[25].mxu0 }
 0x25d   : > { %v2138_v59 = vpop.f32.mrb[26].mxu0  ;;  %v2159_v15 = vpop.f32.mrb[8].mxu1 }
 0x25e   : > { %v2201_v58 = vmax.f32 %v2136_v56, 0.0  ;;  %v2139_v61 = vadd.f32 %v4140_v3, %v2138_v59  ;;  %v2160_v62 = vadd.f32 %v4140_v3, %v2159_v15  ;;  %v3015_v0 = vpop.f32.mrb[27].mxu0  ;;  %v3026_v1 = vpop.f32.mrb[9].mxu1 }
 0x25f   : > { %v2162_v2 = vpop.f32.mrb[10].mxu1 }
 0x260   : > { %v2953_v63 = vpack.c.bf16 %v2201_v58, %v2201_v58  ;;  %v2353_v4 = vadd.f32 %v2352_v31, %v2201_v58  ;;  %v2386_v6 = vmul.f32 %v2201_v58, %v2201_v58  ;;  %v2202_v12 = vmax.f32 %v2139_v61, 0.0  ;;  %v3027_v37 = vpop.f32.mrb[11].mxu1 }
 0x261   : > { %v2207_v55 = vmax.f32 %v2160_v62, 0.0  ;;  %v2163_v50 = vadd.f32 %v4140_v3, %v2162_v2 }
 0x262   : > { %2328 = vst.msk [vmem:[%s4148_s11 + $0x30] sm:$0xf] %vm2315_vm1, %v2953_v63  ;;  %v2410_v8 = vadd.f32 %v2409_v51, %v2386_v6  ;;  %v2954_v32 = vpack.c.bf16 %v2202_v12, %v2202_v12  ;;  %v2354_v9 = vadd.f32 %v2353_v4, %v2202_v12  ;;  %v2387_v10 = vmul.f32 %v2202_v12, %v2202_v12 }
 0x263   : > { %v2959_v11 = vpack.c.bf16 %v2207_v55, %v2207_v55  ;;  %v2208_v14 = vmax.f32 %v2163_v50, 0.0 }
 0x264   : > { %2329 = vst.msk [vmem:[%s4148_s11 + $0x34] sm:$0xf] %vm2315_vm1, %v2954_v32  ;;  %v2355_v16 = vadd.f32 %v2354_v9, %v4179_v28  ;;  %v2411_v21 = vadd.f32 %v2410_v8, %v2387_v10  ;;  %v2392_v28 = vmul.f32 %v2207_v55, %v2207_v55 }
 0x265   : > { %2334 = vst.msk [vmem:[%s4148_s11 + $0x48] sm:$0xf] %vm2315_vm1, %v2959_v11  ;;  %v2960_v24 = vpack.c.bf16 %v2208_v14, %v2208_v14  ;;  %v2393_v36 = vmul.f32 %v2208_v14, %v2208_v14 }
 0x266   : > { %v2356_v26 = vadd.f32 %v2355_v16, %v4184_v57  ;;  %v2412_v22 = vadd.f32 %v2411_v21, %v2388_v17  ;;  %v2430_v21 = vlaneseq }
 0x267   : > { %2335 = vst.msk [vmem:[%s4148_s11 + $0x4c] sm:$0xf] %vm2315_vm1, %v2960_v24 }
 0x268   : > { %v2413_v29 = vadd.f32 %v2412_v22, %v2389_v20  ;;  %v2357_v47 = vadd.f32 %v2356_v26, %v2205_v13  ;;  %v2431_v22 = vshrl.u32 %v2430_v21, 7 }
 0x26a   : > { %v2358_v34 = vadd.f32 %v2357_v47, %v2206_v49  ;;  %v2414_v5 = vadd.f32 %v2413_v29, %v2390_v18 }
 0x26c   : > { %v2359_v35 = vadd.f32 %v2358_v34, %v2207_v55  ;;  %v2415_v30 = vadd.f32 %v2414_v5, %v2391_v33  ;;  %v2432_v34 = vsub.s32 0, %v2431_v22 }
 0x26e   : > { %v2416_v7 = vadd.f32 %v2415_v30, %v2392_v28  ;;  %v2360_v27 = vadd.f32 %v2359_v35, %v2208_v14 }
 0x270   : > { %v2417_v25 = vadd.f32 %v2416_v7, %v2393_v36 }
 0x271   : > { %v2167_v38 = vpop.f32.mrb[12].mxu1 }
 0x272   : > { %v2168_v57 = vadd.f32 %v4140_v3, %v2167_v38  ;;  %v3030_v19 = vpop.f32.mrb[13].mxu1 }
 0x273   : > { %v2170_v42 = vpop.f32.mrb[14].mxu1 }
 0x274   : > { %v2209_v39 = vmax.f32 %v2168_v57, 0.0  ;;  %v2171_v43 = vadd.f32 %v4140_v3, %v2170_v42  ;;  %v3031_v41 = vpop.f32.mrb[15].mxu1 }
 0x276   : > { %v2961_v44 = vpack.c.bf16 %v2209_v39, %v2209_v39  ;;  %v2361_v13 = vadd.f32 %v2360_v27, %v2209_v39  ;;  %v2394_v46 = vmul.f32 %v2209_v39, %v2209_v39  ;;  %v2210_v23 = vmax.f32 %v2171_v43, 0.0 }
 0x278   : > { %2336 = vst.msk [vmem:[%s4148_s11 + $0x50] sm:$0xf] %vm2315_vm1, %v2961_v44  ;;  %v2418_v45 = vadd.f32 %v2417_v25, %v2394_v46  ;;  %v2962_v40 = vpack.c.bf16 %v2210_v23, %v2210_v23  ;;  %v2362_v31 = vadd.f32 %v2361_v13, %v2210_v23  ;;  %v2395_v48 = vmul.f32 %v2210_v23, %v2210_v23 }
 0x27a   : > { %2337 = vst.msk [vmem:[%s4148_s11 + $0x54] sm:$0xf] %vm2315_vm1, %v2962_v40  ;;  %v2419_v54 = vadd.f32 %v2418_v45, %v2395_v48 }
 0x280   : > { %v2175_v49 = vpop.f32.mrb[16].mxu1 }
 0x281   : > { %v2176_v51 = vadd.f32 %v4140_v3, %v2175_v49  ;;  %v3034_v52 = vpop.f32.mrb[17].mxu1 }
 0x282   : > { %v2178_v53 = vpop.f32.mrb[18].mxu1 }
 0x283   : > { %v2211_v56 = vmax.f32 %v2176_v51, 0.0  ;;  %v2179_v60 = vadd.f32 %v4140_v3, %v2178_v53  ;;  %v3035_v59 = vpop.f32.mrb[19].mxu1 }
 0x285   : > { %v2963_v15 = vpack.c.bf16 %v2211_v56, %v2211_v56  ;;  %v2363_v58 = vadd.f32 %v2362_v31, %v2211_v56  ;;  %v2396_v61 = vmul.f32 %v2211_v56, %v2211_v56  ;;  %v2212_v62 = vmax.f32 %v2179_v60, 0.0 }
 0x287   : > { %2338 = vst.msk [vmem:[%s4148_s11 + $0x58] sm:$0xf] %vm2315_vm1, %v2963_v15  ;;  %v2420_v0 = vadd.f32 %v2419_v54, %v2396_v61  ;;  %v2964_v1 = vpack.c.bf16 %v2212_v62, %v2212_v62  ;;  %v2364_v2 = vadd.f32 %v2363_v58, %v2212_v62  ;;  %v2397_v63 = vmul.f32 %v2212_v62, %v2212_v62 }
 0x288   : > { %v2183_v4 = vpop.f32.mrb[20].mxu1 }
 0x289   : > { %2339 = vst.msk [vmem:[%s4148_s11 + $0x5c] sm:$0xf] %vm2315_vm1, %v2964_v1  ;;  %v2421_v6 = vadd.f32 %v2420_v0, %v2397_v63  ;;  %v2184_v12 = vadd.f32 %v4140_v3, %v2183_v4  ;;  %v3038_v37 = vpop.f32.mrb[21].mxu1 }
 0x28a   : > { %v2186_v55 = vpop.f32.mrb[22].mxu1 }
 0x28b   : > { %v2213_v50 = vmax.f32 %v2184_v12, 0.0  ;;  %v3039_v8 = vpop.f32.mrb[23].mxu1 }
 0x28d   : > { %v2965_v32 = vpack.c.bf16 %v2213_v50, %v2213_v50  ;;  %v2366_v9 = vsel %vm2365_vm5, %v2213_v50, 0.0  ;;  %v2398_v10 = vmul.f32 %v2213_v50, %v2213_v50 }
 0x28e   : > { %v2367_v11 = vadd.f32 %v2366_v9, %v2364_v2 }
 0x28f   : > { %2341 = vst.msk [vmem:[%s4148_s11 + $0x60] sm:$0x3] %vm2340_vm6, %v2965_v32  ;;  %v2422_v14 = vsel %vm2365_vm5, %v2398_v10, 0.0 }
 0x290   : > { %v2368_v17 = vrot.slane %v2367_v11, 4  ;;  %v2423_v16 = vadd.f32 %v2422_v14, %v2421_v6 }
 0x292   : > { %v2369_v24 = vadd.f32 %v2368_v17, %v2367_v11  ;;  %v2424_v20 = vrot.slane %v2423_v16, 4 }
 0x294   : > { %v2370_v26 = vrot.slane %v2369_v24, 2  ;;  %v2425_v3 = vadd.f32 %v2424_v20, %v2423_v16 }
 0x296   : > { %v2371_v18 = vadd.f32 %v2370_v26, %v2369_v24  ;;  %v2426_v29 = vrot.slane %v2425_v3, 2 }
 0x298   : > { %v2372_v47 = vrot.slane %v2371_v18, 1  ;;  %v2427_v33 = vadd.f32 %v2426_v29, %v2425_v3 }
 0x29a   : > { %v2373_v5 = vadd.f32 %v2372_v47, %v2371_v18  ;;  %v2428_v35 = vrot.slane %v2427_v33, 1 }
 0x29c   : > { %v2429_v28 = vadd.f32 %v2428_v35, %v2427_v33  ;;  %v2433_v30 = vrot.slane %v2373_v5, %v2432_v34 }
 0x29e   : > { %v2437_v7 = vrot.slane %v2429_v28, %v2432_v34  ;;  %2438 = vst [vmem:[%s238_s17] sm:$0xff] %v2433_v30 }
 0x2a0   : > { %2439 = vst [vmem:[%s238_s17 + $0x8] sm:$0xff] %v2437_v7 }
 0x2a1 PF: > { %s17_s15 = sadd.s32 1, %s3287_s15  }
 0x2a2   : > { %p14_p5 = scmp.ge.s32.totalorder %s17_s15, 4  }
 0x2a4   :  { %16 = sbr.rel (!%p14_p5) target bundleno = 2 (0x2), region = 98 }
 0x2ab   :  { %2477 = vsyncpa [#allocation4], 1 }
 0x2ac   :  { %2479 = vsyncpa [#allocation4 + $0x1], 1 }
 0x2ad   :  { %2480 = vsyncpa [#allocation6], 1 }

// kernel: _lambda_.5
= control target key start
LH: loop header
LB: loop body
LE: loop exit
PB: predicated region body
PF: predicated region fallthrough
CT: control target
= control target key end

     0   :  { %s871_s12 = smov 0   ;;  %s873_s13 = smov 0   ;;  %s954_s0 = inlined_call_operand.vmem [shape: bf16[8,2560], index: 0, kind: input, shape index: {}]   ;;  %s955_s1 = inlined_call_operand.vmem [shape: bf16[2560,128], index: 1, kind: input, shape index: {}]   ;;  %s956_s2 = inlined_call_operand.vmem [shape: f32[1,128], index: 2, kind: input, shape index: {}]   ;;  %s957_s3 = inlined_call_operand.vmem [shape: f32[8,128], index: 3, kind: output, shape index: {}]  }
   0x1   :  { %s875_s14 = smov 0  }
   0x2 LB: > { %s22_s15 = sadd.s32 1, %s844_s13  ;;  %p674_p0 = scmp.ge.s32.totalorder %s848_s14, 1  ;;  %s848_s14 = sphi %s875_s14, %s13_s14   ;;  %s844_s13 = sphi %s873_s13, %s959_s13   ;;  %s840_s12 = sphi %s871_s12, %s958_s12  }
   0x3   : > { %p23_p1 = scmp.ge.s32.totalorder %s22_s15, 5  ;;  %p167_p2 = scmp.lt.s32.totalorder %s848_s14, 6 }
   0x5   : > { %s961_s15 = smov (%p23_p1, %s22_s15), 0  ;;  %p168_p3 = pnand %p674_p0, %p167_p2 }
   0x6   : > { %s675_s16 = sshll.u32 (!%p168_p3), %s840_s12, 2  ;;  %s677_s17 = sshll.u32 (!%p168_p3), %s840_s12, 6 }
   0x7   : > { %171 = sbr.rel (%p168_p3) target bundleno = 289 (0x121), region = 32  ;;  %p202_p4 = scmp.lt.s32.totalorder (!%p168_p3), %s675_s16, 19 }
   0x8   : > { %p210_p5 = scmp.lt.s32.totalorder (!%p168_p3), %s677_s17, 319  ;;  %p679_p6 = scmp.ne.s32.totalorder (!%p168_p3), %s840_s12, 0 }
   0xe   : > { %s963_s16 = smov (!%p202_p4, %s675_s16), 19  ;;  %s965_s17 = smov (!%p210_p5, %s677_s17), 319 }
   0xf   : > { %s676_s18 = sshll.u32 %s963_s16, 2  ;;  %s678_s22 = sshll.u32 %s965_s17, 2  ;;  %v850_v0 = vmov (!%p679_p6), 0.0  }
  0x10   : > { %s896_s21 = scalar_lea.vmem %s954_s0, %s676_s18  ;;  %s901_s25 = scalar_lea.vmem %s955_s1, %s678_s22  ;;  %224 = vst [vmem:[#allocation2] sm:$0xff] (!%p679_p6), %v850_v0 }
  0x11   : > { %223 = sbr.rel (%p679_p6) target bundleno = 24 (0x18), region = 36 }
  0x18 PF: > { %v790_v1 = vld [vmem:[%s901_s25 + $0x40] sm:$0xff]   ;;  %v794_v5 = vld [vmem:[%s901_s25 + $0x48] sm:$0xff]   ;;  %v798_v9 = vld [vmem:[%s901_s25 + $0x50] sm:$0xff]   ;;  %p716_p7 = scmp.ne.s32.totalorder %s840_s12, 4 }
  0x19   : > { %v791_v2 = vld [vmem:[%s901_s25 + $0xc0] sm:$0xff]   ;;  %721 = vmatprep.subr.bf16.mxu0 %v790_v1  ;;  %v795_v6 = vld [vmem:[%s901_s25 + $0xc8] sm:$0xff]   ;;  %v799_v10 = vld [vmem:[%s901_s25 + $0xd0] sm:$0xff]  }
  0x1a   : > { %v792_v3 = vld [vmem:[%s901_s25] sm:$0xff]   ;;  %743 = vmatprep.subr.bf16.mxu1 %v791_v2  ;;  %v796_v7 = vld [vmem:[%s901_s25 + $0x8] sm:$0xff]   ;;  %v800_v11 = vld [vmem:[%s901_s25 + $0x10] sm:$0xff]  }
  0x1b   : > { %v793_v4 = vld [vmem:[%s901_s25 + $0x80] sm:$0xff]   ;;  %722 = vmatpush3.bf16.msra.mxu0 %v792_v3  ;;  %v797_v8 = vld [vmem:[%s901_s25 + $0x88] sm:$0xff]   ;;  %v801_v12 = vld [vmem:[%s901_s25 + $0x90] sm:$0xff]  }
  0x1c   : > { %744 = vmatpush3.bf16.msra.mxu1 %v793_v4  ;;  %723 = vmatprep.subr.bf16.mxu0 %v794_v5  ;;  %v802_v13 = vld [vmem:[%s901_s25 + $0x58] sm:$0xff]   ;;  %v806_v17 = vld [vmem:[%s901_s25 + $0x60] sm:$0xff]   ;;  %v810_v21 = vld [vmem:[%s901_s25 + $0x68] sm:$0xff]  }
  0x1d   : > { %745 = vmatprep.subr.bf16.mxu1 %v795_v6  ;;  %v803_v14 = vld [vmem:[%s901_s25 + $0xd8] sm:$0xff]   ;;  %v807_v18 = vld [vmem:[%s901_s25 + $0xe0] sm:$0xff]   ;;  %v811_v22 = vld [vmem:[%s901_s25 + $0xe8] sm:$0xff]  }
  0x1e   : > { %v804_v15 = vld [vmem:[%s901_s25 + $0x18] sm:$0xff]   ;;  %v808_v19 = vld [vmem:[%s901_s25 + $0x20] sm:$0xff]   ;;  %v812_v23 = vld [vmem:[%s901_s25 + $0x28] sm:$0xff]  }
  0x1f   : > { %724 = vmatpush3.bf16.msra.mxu0 %v796_v7  ;;  %v805_v16 = vld [vmem:[%s901_s25 + $0x98] sm:$0xff]   ;;  %v809_v20 = vld [vmem:[%s901_s25 + $0xa0] sm:$0xff]   ;;  %v813_v24 = vld [vmem:[%s901_s25 + $0xa8] sm:$0xff]  }
  0x20   : > { %746 = vmatpush3.bf16.msra.mxu1 %v797_v8  ;;  %725 = vmatprep.subr.bf16.mxu0 %v798_v9  ;;  %v814_v25 = vld [vmem:[%s901_s25 + $0x70] sm:$0xff]   ;;  %v818_v29 = vld [vmem:[%s901_s25 + $0x78] sm:$0xff]   ;;  %v226_v33 = vld [vmem:[%s896_s21] sm:$0xff] }
  0x21   : > { %747 = vmatprep.subr.bf16.mxu1 %v799_v10  ;;  %v815_v26 = vld [vmem:[%s901_s25 + $0xf0] sm:$0xff]   ;;  %v819_v30 = vld [vmem:[%s901_s25 + $0xf8] sm:$0xff]   ;;  %v227_v34 = vld [vmem:[%s896_s21 + $0x8] sm:$0xff]  ;;  %v680_v35 = vcombine.low %v226_v33, %v226_v33  ;;  %v681_v36 = vcombine.high %v226_v33, %v226_v33 }
  0x22   : > { %v816_v27 = vld [vmem:[%s901_s25 + $0x30] sm:$0xff]   ;;  %v820_v31 = vld [vmem:[%s901_s25 + $0x38] sm:$0xff]   ;;  %v682_v37 = vcombine.low %v227_v34, %v227_v34  ;;  %v683_v38 = vcombine.high %v227_v34, %v227_v34  ;;  %v225_v47 = vld [vmem:[#allocation2] sm:$0xff] }
  0x23   : > { %726 = vmatpush3.bf16.msra.mxu0 %v800_v11  ;;  %v817_v28 = vld [vmem:[%s901_s25 + $0xb0] sm:$0xff]   ;;  %v821_v32 = vld [vmem:[%s901_s25 + $0xb8] sm:$0xff]   ;;  %530 = vmatprep.mubr.bf16.mxu0 %v681_v36  ;;  %v717_v53 = vld [vmem:[%s956_s2] ss:$0 sm:$0xff] (!%p716_p7) }
  0x24   : > { %748 = vmatpush3.bf16.msra.mxu1 %v801_v12  ;;  %727 = vmatprep.subr.bf16.mxu0 %v802_v13 }
  0x25   : > { %749 = vmatprep.subr.bf16.mxu1 %v803_v14  ;;  %570 = vmatprep.mubr.bf16.mxu1 %v683_v38 }
  0x27   : > { %728 = vmatpush3.bf16.msra.mxu0 %v804_v15 }
  0x28   : > { %750 = vmatpush3.bf16.msra.mxu1 %v805_v16  ;;  %729 = vmatprep.subr.bf16.mxu0 %v806_v17 }
  0x29   : > { %751 = vmatprep.subr.bf16.mxu1 %v807_v18 }
  0x2b   : > { %730 = vmatpush3.bf16.msra.mxu0 %v808_v19 }
  0x2c   : > { %752 = vmatpush3.bf16.msra.mxu1 %v809_v20  ;;  %731 = vmatprep.subr.bf16.mxu0 %v810_v21 }
  0x2d   : > { %753 = vmatprep.subr.bf16.mxu1 %v811_v22 }
  0x2f   : > { %732 = vmatpush3.bf16.msra.mxu0 %v812_v23 }
  0x30   : > { %754 = vmatpush3.bf16.msra.mxu1 %v813_v24  ;;  %733 = vmatprep.subr.bf16.mxu0 %v814_v25 }
  0x31   : > { %755 = vmatprep.subr.bf16.mxu1 %v815_v26 }
  0x33   : > { %734 = vmatpush3.bf16.msra.mxu0 %v816_v27 }
  0x34   : > { %756 = vmatpush3.bf16.msra.mxu1 %v817_v28  ;;  %735 = vmatprep.subr.bf16.mxu0 %v818_v29 }
  0x35   : > { %757 = vmatprep.subr.bf16.mxu1 %v819_v30 }
  0x37   : > { %736 = vmatpush3.bf16.msra.mxu0 %v820_v31 }
  0x38   : > { %758 = vmatpush3.bf16.msra.mxu1 %v821_v32 }
  0x3a   : > { %531 = vmatmul.mubr.bf16.vlgmr.msra.gmra.mrb[0].mxu0 %v680_v35 }
  0x3b   : > { %571 = vmatmul.mubr.bf16.vlgmr.msra.gmra.mrb[0].mxu1 %v682_v37 }
 0x10d   : > { %v737_v39 = vpop.f32.mrb[0].mxu0 }
 0x10e   : > { %v759_v40 = vpop.f32.mrb[0].mxu1  ;;  %v738_v41 = vpop.f32.mrb[1].mxu0 }
 0x10f   : > { %v760_v42 = vpop.f32.mrb[1].mxu1  ;;  %v739_v43 = vadd.f32 %v738_v41, %v737_v39  ;;  %v740_v45 = vpop.f32.mrb[2].mxu0 }
 0x110   : > { %v761_v44 = vadd.f32 %v760_v42, %v759_v40  ;;  %v762_v46 = vpop.f32.mrb[2].mxu1  ;;  %v741_v48 = vpop.f32.mrb[3].mxu0  ;;  %583 = sbr.rel (%p716_p7) target bundleno = 289 (0x121), region = 40 }
 0x111   : > { %v763_v49 = vpop.f32.mrb[3].mxu1 }
 0x112   : > { %v573_v50 = vadd.f32 %v761_v44, %v739_v43 }
 0x114   : > { %v578_v51 = vadd.f32 %v573_v50, %v225_v47 }
 0x116   : > { %579 = vst [vmem:[#allocation2] sm:$0xff] %v578_v51 }
 0x11d   : > { %v584_v52 = vld [vmem:[#allocation2] sm:$0xff] }
 0x11e   : > { %v592_v54 = vadd.f32 %v717_v53, %v584_v52 }
 0x120   : > { %593 = vst [vmem:[%s957_s3] sm:$0xff] %v592_v54 }
 0x121 PF: > { %s13_s14 = sadd.s32 1, %s848_s14   ;;  %s958_s12 = smov %s844_s13 }
 0x122   : > { %p10_p8 = scmp.ge.s32.totalorder %s13_s14, 7   ;;  %s959_s13 = smov %s961_s15 }
 0x124   :  { %12 = sbr.rel (!%p10_p8) target bundleno = 2 (0x2), region = 73 }

</bundles_post_ra>
